<compile_context>
chip_gen: v7x
topology: tpu7x:2x2x1
jax: 0.10.0
libtpu: 0.0.40
codegen_flags: <defaults>
</compile_context>

<pallas_src>
import functools

import jax
import jax.numpy as jnp
from jax.experimental import pallas as pl
from jax.experimental.pallas import tpu as pltpu

IN_FEATURES = 30000
HIDDEN = 2000
OUT = 100

TK = 2048                                        # K tile for layer 1 (mult of 128)
TN = 1024                                        # N tile for layer 1 (2 tiles -> megacore)
K_PAD = ((IN_FEATURES + TK - 1) // TK) * TK      # 30720
N_PAD = ((HIDDEN + TN - 1) // TN) * TN           # 2048
N_TILES = N_PAD // TN                            # 2
K_TILES = K_PAD // TK                            # 15


def _linear_relu_kernel(x_ref, w_ref, b_ref, o_ref, acc_ref):
    """One (N-tile, K-tile) step of y = relu(x @ W + b).

    Grid: axis 0 = N tiles (parallel), axis 1 = K tiles (reduction, arbitrary).
    w_ref is a (1, TK, TN) contiguous slab of the re-tiled weight.
    """
    k = pl.program_id(1)

    @pl.when(k == 0)
    def _():
        acc_ref[...] = jnp.zeros_like(acc_ref)

    acc_ref[...] += jnp.dot(
        x_ref[...], w_ref[0], preferred_element_type=jnp.float32
    )

    @pl.when(k == pl.num_programs(1) - 1)
    def _():
        o_ref[...] = jnp.maximum(acc_ref[...] + b_ref[...], 0.0).astype(o_ref.dtype)


def _linear_relu_logsoftmax_kernel(x_ref, w_ref, b_ref, o_ref):
    """y = log_softmax(relu(x @ W + b), axis=-1), single invocation."""
    z = jnp.dot(x_ref[...], w_ref[...], preferred_element_type=jnp.float32)
    z = jnp.maximum(z + b_ref[...], 0.0)
    m = jnp.max(z, axis=-1, keepdims=True)
    s = z - m
    lse = jnp.log(jnp.sum(jnp.exp(s), axis=-1, keepdims=True))
    o_ref[...] = (s - lse).astype(o_ref.dtype)


def _linear_relu_l1(x, w1_tiles, b1):
    """relu(x @ W1 + b1).

    x:        (B, K_PAD) f32
    w1_tiles: (N_TILES, K_PAD, TN) f32  (pre-padded / pre-tiled at init)
    b1:       (1, N_PAD) f32

    NOTE: blocks use the full batch dim B (B=2 < 8 sublanes is legal only
    because it equals the full array dim) — do not tile the batch here.
    """
    B = x.shape[0]
    cost = pl.CostEstimate(
        flops=2 * B * K_PAD * N_PAD,
        transcendentals=0,
        bytes_accessed=4 * (K_PAD * N_PAD + B * K_PAD + B * N_PAD + N_PAD),
    )
    return pl.pallas_call(
        _linear_relu_kernel,
        out_shape=jax.ShapeDtypeStruct((B, N_PAD), jnp.float32),
        grid_spec=pltpu.PrefetchScalarGridSpec(
            num_scalar_prefetch=0,
            grid=(N_TILES, K_TILES),
            in_specs=[
                pl.BlockSpec((B, TK), lambda j, k: (0, k)),        # x K-tile
                pl.BlockSpec((1, TK, TN), lambda j, k: (j, k, 0)),  # contiguous 8 MB W1 slab
                pl.BlockSpec((1, TN), lambda j, k: (0, j)),        # bias N-tile
            ],
            out_specs=pl.BlockSpec((B, TN), lambda j, k: (0, j)),
            scratch_shapes=[pltpu.VMEM((B, TN), jnp.float32)],
        ),
        compiler_params=pltpu.CompilerParams(
            dimension_semantics=("parallel", "arbitrary"),
            vmem_limit_bytes=40 * 1024 * 1024,
        ),
        cost_estimate=cost,
    )(x, w1_tiles, b1)


def _linear_relu_logsoftmax(x, w, b):
    """log_softmax(relu(x @ w + b), axis=-1). Small enough for one block."""
    B, K = x.shape
    _, N = w.shape
    cost = pl.CostEstimate(
        flops=2 * B * K * N,
        transcendentals=B * N,
        bytes_accessed=4 * (K * N + B * K + B * N + N),
    )
    return pl.pallas_call(
        _linear_relu_logsoftmax_kernel,
        out_shape=jax.ShapeDtypeStruct((B, N), jnp.float32),
        grid_spec=pltpu.PrefetchScalarGridSpec(
            num_scalar_prefetch=0,
            grid=(1,),
            in_specs=[
                pl.BlockSpec((B, K), lambda i: (0, 0)),
                pl.BlockSpec((K, N), lambda i: (0, 0)),
                pl.BlockSpec((1, N), lambda i: (0, 0)),
            ],
            out_specs=pl.BlockSpec((B, N), lambda i: (0, 0)),
        ),
        compiler_params=pltpu.CompilerParams(
            dimension_semantics=("arbitrary",),
        ),
        cost_estimate=cost,
    )(x, w, b)


def init_raw_params(seed=0):
    """Deterministic init mimicking nn.Linear default (U[-1/sqrt(fan_in), +]).

    Weights generated directly in (in, out) orientation.
    """
    key = jax.random.PRNGKey(seed)
    k1, k2, k3, k4 = jax.random.split(key, 4)
    lim1 = 1.0 / jnp.sqrt(jnp.float32(IN_FEATURES))
    lim2 = 1.0 / jnp.sqrt(jnp.float32(HIDDEN))
    w1 = jax.random.uniform(k1, (IN_FEATURES, HIDDEN), jnp.float32, -lim1, lim1)
    b1 = jax.random.uniform(k2, (HIDDEN,), jnp.float32, -lim1, lim1)
    w2 = jax.random.uniform(k3, (HIDDEN, OUT), jnp.float32, -lim2, lim2)
    b2 = jax.random.uniform(k4, (OUT,), jnp.float32, -lim2, lim2)
    return w1, b1, w2, b2


def prepare_params(w1, b1, w2, b2):
    """One-time pad + re-tile so the forward path never copies the big weight.

    Zero padding is numerically inert: padded x columns are 0, padded W1
    rows/columns and b1 entries are 0 (-> relu -> 0 hidden activations), and
    the corresponding padded W2 rows are 0.

    W1 is re-laid-out to (N_TILES, K_PAD, TN) so each (TK, TN) grid tile is a
    fully contiguous slab in HBM.
    """
    w1p = jnp.pad(w1, ((0, K_PAD - IN_FEATURES), (0, N_PAD - HIDDEN)))
    w1t = w1p.reshape(K_PAD, N_TILES, TN).transpose(1, 0, 2)   # (2, 30720, 1024)
    b1p = jnp.pad(b1.reshape(1, HIDDEN), ((0, 0), (0, N_PAD - HIDDEN)))
    w2p = jnp.pad(w2, ((0, N_PAD - HIDDEN), (0, 0)))
    b2p = b2.reshape(1, OUT)
    return w1t, b1p, w2p, b2p


@functools.partial(jax.jit, static_argnames=())
def net_forward(x, w1t, b1, w2, b2):
    # Glue: flatten like x.view(-1, 30000); only the tiny activation is padded
    # per call (B x 720 zeros), never the weights.
    x2d = x.reshape(-1, IN_FEATURES).astype(jnp.float32)
    x2d = jnp.pad(x2d, ((0, 0), (0, K_PAD - IN_FEATURES)))
    h = _linear_relu_l1(x2d, w1t, b1)              # (B, 2048), last 48 cols == 0
    out = _linear_relu_logsoftmax(h, w2, b2)       # (B, 100) log-probs
    return out


if __name__ == "__main__":
    # Input consistent with flattening to 30000 features: (B, 3, 100, 100).
    key = jax.random.PRNGKey(0)
    x = jax.random.normal(key, (2, 3, 100, 100), dtype=jnp.float32)

    raw = init_raw_params(seed=0)
    params = prepare_params(*raw)

    out = jax.block_until_ready(net_forward(x, *params))

    assert out.shape == (2, OUT), out.shape
    # log_softmax rows must exp-sum to 1.
    row_sums = jnp.sum(jnp.exp(out), axis=-1)
    assert bool(jnp.all(jnp.abs(row_sums - 1.0) < 1e-4)), row_sums

    # Pure-JAX reference (raw, unpadded weights) for numerical sanity.
    w1, b1, w2, b2 = raw
    x2d = x.reshape(-1, IN_FEATURES)
    h_ref = jnp.maximum(x2d @ w1 + b1, 0.0)
    z_ref = jnp.maximum(h_ref @ w2 + b2, 0.0)
    ref = jax.nn.log_softmax(z_ref, axis=-1)
    max_err = float(jnp.max(jnp.abs(out - ref)))
    assert max_err < 1e-3, max_err

    print("KERNEL_OK")
</pallas_src>

<mosaic_0001>
module attributes {stable_mosaic.version = 11 : i64} {
  func.func @_linear_relu_kernel(%arg0: i32, %arg1: i32, %arg2: memref<2x2048xf32, #tpu.memory_space<vmem>>, %arg3: memref<1x2048x1024xf32, #tpu.memory_space<vmem>>, %arg4: memref<1x1024xf32, #tpu.memory_space<vmem>>, %arg5: memref<2x1024xf32, #tpu.memory_space<vmem>>, %arg6: memref<2x1024xf32, #tpu.memory_space<vmem>>) attributes {dimension_semantics = [#tpu.dimension_semantics<parallel>, #tpu.dimension_semantics<arbitrary>], iteration_bounds = array<i64: 2, 15>, scalar_prefetch = 0 : i64, scratch_operands = 1 : i64, tpu.core_type = #tpu.core_type<tc>, window_params = [{transform_indices = @transform_0, window_bounds = array<i64: 2, 2048>}, {transform_indices = @transform_1, window_bounds = array<i64: 1, 2048, 1024>}, {transform_indices = @transform_2, window_bounds = array<i64: 1, 1024>}, {transform_indices = @transform_3, window_bounds = array<i64: 2, 1024>}]} {
    %c0_i32 = arith.constant 0 : i32
    %0 = arith.cmpi eq, %arg1, %c0_i32 : i32
    %1 = arith.extui %0 : i1 to i32
    %c0_i32_0 = arith.constant 0 : i32
    %2 = arith.cmpi ne, %1, %c0_i32_0 : i32
    scf.if %2 {
      %cst_10 = arith.constant 0.000000e+00 : f32
      %13 = vector.broadcast %cst_10 : f32 to vector<2x1024xf32>
      %c0_11 = arith.constant 0 : index
      %c0_12 = arith.constant 0 : index
      %14 = vector.load %arg6[%c0_11, %c0_12] : memref<2x1024xf32, #tpu.memory_space<vmem>>, vector<2x1024xf32>
      tpu.vector_store %arg6[%c0_11, %c0_12], %13 {strides = array<i32>} : memref<2x1024xf32, #tpu.memory_space<vmem>>, vector<2x1024xf32>,
    } else {
    }
    %c0 = arith.constant 0 : index
    %c0_1 = arith.constant 0 : index
    %3 = vector.load %arg6[%c0, %c0_1] : memref<2x1024xf32, #tpu.memory_space<vmem>>, vector<2x1024xf32>
    %c0_2 = arith.constant 0 : index
    %c0_3 = arith.constant 0 : index
    %4 = vector.load %arg2[%c0_2, %c0_3] : memref<2x2048xf32, #tpu.memory_space<vmem>>, vector<2x2048xf32>
    %c0_4 = arith.constant 0 : index
    %c0_5 = arith.constant 0 : index
    %c0_6 = arith.constant 0 : index
    %5 = vector.load %arg3[%c0_4, %c0_5, %c0_6] : memref<1x2048x1024xf32, #tpu.memory_space<vmem>>, vector<1x2048x1024xf32>
    %6 = vector.shape_cast %5 : vector<1x2048x1024xf32> to vector<2048x1024xf32>
    %cst = arith.constant dense<0.000000e+00> : vector<2x1024xf32>
    %7 = tpu.matmul %4, %6, %cst {dimension_numbers = #tpu.dot_dimension_numbers<[1], [0], [0], [1], [0, 0, 1, 1], [], []>} : vector<2x2048xf32>, vector<2048x1024xf32>, vector<2x1024xf32> -> vector<2x1024xf32>
    %8 = arith.addf %3, %7 : vector<2x1024xf32>
    %c0_7 = arith.constant 0 : index
    %c0_8 = arith.constant 0 : index
    %9 = vector.load %arg6[%c0_7, %c0_8] : memref<2x1024xf32, #tpu.memory_space<vmem>>, vector<2x1024xf32>
    tpu.vector_store %arg6[%c0_7, %c0_8], %8 {strides = array<i32>} : memref<2x1024xf32, #tpu.memory_space<vmem>>, vector<2x1024xf32>,
    %c14_i32 = arith.constant 14 : i32
    %10 = arith.cmpi eq, %arg1, %c14_i32 : i32
    %11 = arith.extui %10 : i1 to i32
    %c0_i32_9 = arith.constant 0 : i32
    %12 = arith.cmpi ne, %11, %c0_i32_9 : i32
    scf.if %12 {
      %c0_10 = arith.constant 0 : index
      %c0_11 = arith.constant 0 : index
      %13 = vector.load %arg6[%c0_10, %c0_11] : memref<2x1024xf32, #tpu.memory_space<vmem>>, vector<2x1024xf32>
      %c0_12 = arith.constant 0 : index
      %c0_13 = arith.constant 0 : index
      %14 = vector.load %arg4[%c0_12, %c0_13] : memref<1x1024xf32, #tpu.memory_space<vmem>>, vector<1x1024xf32>
      %15 = vector.broadcast %14 : vector<1x1024xf32> to vector<2x1024xf32>
      %16 = arith.addf %13, %15 : vector<2x1024xf32>
      %cst_14 = arith.constant 0.000000e+00 : f32
      %17 = vector.broadcast %cst_14 : f32 to vector<2x1024xf32>
      %18 = arith.maximumf %16, %17 : vector<2x1024xf32>
      %c0_15 = arith.constant 0 : index
      %c0_16 = arith.constant 0 : index
      %19 = vector.load %arg5[%c0_15, %c0_16] : memref<2x1024xf32, #tpu.memory_space<vmem>>, vector<2x1024xf32>
      tpu.vector_store %arg5[%c0_15, %c0_16], %18 {strides = array<i32>} : memref<2x1024xf32, #tpu.memory_space<vmem>>, vector<2x1024xf32>,
    } else {
    }
    return
  }
  func.func @transform_0(%arg0: i32, %arg1: i32) -> (i32, i32) {
    %c0_i32 = arith.constant 0 : i32
    %c0_i32_0 = arith.constant 0 : i32
    return %c0_i32, %arg1 : i32, i32
  }
  func.func @transform_1(%arg0: i32, %arg1: i32) -> (i32, i32, i32) {
    %c0_i32 = arith.constant 0 : i32
    %c0_i32_0 = arith.constant 0 : i32
    return %arg0, %arg1, %c0_i32 : i32, i32, i32
  }
  func.func @transform_2(%arg0: i32, %arg1: i32) -> (i32, i32) {
    %c0_i32 = arith.constant 0 : i32
    %c0_i32_0 = arith.constant 0 : i32
    return %c0_i32, %arg0 : i32, i32
  }
  func.func @transform_3(%arg0: i32, %arg1: i32) -> (i32, i32) {
    %c0_i32 = arith.constant 0 : i32
    %c0_i32_0 = arith.constant 0 : i32
    return %c0_i32, %arg0 : i32, i32
  }
}

module attributes {stable_mosaic.version = 11 : i64} {
  func.func @_linear_relu_logsoftmax_kernel(%arg0: i32, %arg1: memref<2x2048xf32, #tpu.memory_space<vmem>>, %arg2: memref<2048x100xf32, #tpu.memory_space<vmem>>, %arg3: memref<1x100xf32, #tpu.memory_space<vmem>>, %arg4: memref<2x100xf32, #tpu.memory_space<vmem>>) attributes {dimension_semantics = [#tpu.dimension_semantics<arbitrary>], iteration_bounds = array<i64: 1>, scalar_prefetch = 0 : i64, scratch_operands = 0 : i64, tpu.core_type = #tpu.core_type<tc>, window_params = [{pipeline_mode = #tpu.pipeline_mode<synchronous>, transform_indices = @transform_0, window_bounds = array<i64: 2, 2048>}, {pipeline_mode = #tpu.pipeline_mode<synchronous>, transform_indices = @transform_1, window_bounds = array<i64: 2048, 100>}, {pipeline_mode = #tpu.pipeline_mode<synchronous>, transform_indices = @transform_2, window_bounds = array<i64: 1, 100>}, {pipeline_mode = #tpu.pipeline_mode<synchronous>, transform_indices = @transform_3, window_bounds = array<i64: 2, 100>}]} {
    %c0 = arith.constant 0 : index
    %c0_0 = arith.constant 0 : index
    %0 = vector.load %arg1[%c0, %c0_0] : memref<2x2048xf32, #tpu.memory_space<vmem>>, vector<2x2048xf32>
    %c0_1 = arith.constant 0 : index
    %c0_2 = arith.constant 0 : index
    %1 = vector.load %arg2[%c0_1, %c0_2] : memref<2048x100xf32, #tpu.memory_space<vmem>>, vector<2048x100xf32>
    %cst = arith.constant dense<0.000000e+00> : vector<2x100xf32>
    %2 = tpu.matmul %0, %1, %cst {dimension_numbers = #tpu.dot_dimension_numbers<[1], [0], [0], [1], [0, 0, 1, 1], [], []>} : vector<2x2048xf32>, vector<2048x100xf32>, vector<2x100xf32> -> vector<2x100xf32>
    %c0_3 = arith.constant 0 : index
    %c0_4 = arith.constant 0 : index
    %3 = vector.load %arg3[%c0_3, %c0_4] : memref<1x100xf32, #tpu.memory_space<vmem>>, vector<1x100xf32>
    %4 = vector.broadcast %3 : vector<1x100xf32> to vector<2x100xf32>
    %5 = arith.addf %2, %4 : vector<2x100xf32>
    %cst_5 = arith.constant 0.000000e+00 : f32
    %6 = vector.broadcast %cst_5 : f32 to vector<2x100xf32>
    %7 = arith.maximumf %5, %6 : vector<2x100xf32>
    %cst_6 = arith.constant dense<0xFF800000> : vector<2xf32>
    %8 = vector.multi_reduction <maximumf>, %7, %cst_6 [1] : vector<2x100xf32> to vector<2xf32>
    %9 = vector.shape_cast %8 : vector<2xf32> to vector<2x1xf32>
    %10 = vector.broadcast %9 : vector<2x1xf32> to vector<2x100xf32>
    %11 = arith.subf %7, %10 : vector<2x100xf32>
    %12 = math.exp %11 : vector<2x100xf32>
    %cst_7 = arith.constant dense<0.000000e+00> : vector<2xf32>
    %13 = vector.multi_reduction <add>, %12, %cst_7 [1] : vector<2x100xf32> to vector<2xf32>
    %14 = vector.shape_cast %13 : vector<2xf32> to vector<2x1xf32>
    %15 = math.log %14 : vector<2x1xf32>
    %16 = vector.broadcast %15 : vector<2x1xf32> to vector<2x100xf32>
    %17 = arith.subf %11, %16 : vector<2x100xf32>
    %c0_8 = arith.constant 0 : index
    %c0_9 = arith.constant 0 : index
    %18 = vector.load %arg4[%c0_8, %c0_9] : memref<2x100xf32, #tpu.memory_space<vmem>>, vector<2x100xf32>
    tpu.vector_store %arg4[%c0_8, %c0_9], %17 {strides = array<i32>} : memref<2x100xf32, #tpu.memory_space<vmem>>, vector<2x100xf32>,
    return
  }
  func.func @transform_0(%arg0: i32) -> (i32, i32) {
    %c0_i32 = arith.constant 0 : i32
    %c0_i32_0 = arith.constant 0 : i32
    %c0_i32_1 = arith.constant 0 : i32
    return %c0_i32, %c0_i32_0 : i32, i32
  }
  func.func @transform_1(%arg0: i32) -> (i32, i32) {
    %c0_i32 = arith.constant 0 : i32
    %c0_i32_0 = arith.constant 0 : i32
    %c0_i32_1 = arith.constant 0 : i32
    return %c0_i32, %c0_i32_0 : i32, i32
  }
  func.func @transform_2(%arg0: i32) -> (i32, i32) {
    %c0_i32 = arith.constant 0 : i32
    %c0_i32_0 = arith.constant 0 : i32
    %c0_i32_1 = arith.constant 0 : i32
    return %c0_i32, %c0_i32_0 : i32, i32
  }
  func.func @transform_3(%arg0: i32) -> (i32, i32) {
    %c0_i32 = arith.constant 0 : i32
    %c0_i32_0 = arith.constant 0 : i32
    %c0_i32_1 = arith.constant 0 : i32
    return %c0_i32, %c0_i32_0 : i32, i32
  }
}

</mosaic_0001>

<bundles_post_ra>
// kernel: net_forward.3
= control target key start
LH: loop header
LB: loop body
LE: loop exit
PB: predicated region body
PF: predicated region fallthrough
CT: control target
= control target key end

     0   :  { %v1530_v47 = vmov 1983009808   ;;  %v290_v49 = vlaneseq  ;;  %s2390_s0 = inlined_call_operand.vmem [shape: f32[2,2048], index: 0, kind: input, shape index: {}]   ;;  %s2391_s1 = inlined_call_operand.vmem [shape: f32[2048,100], index: 1, kind: input, shape index: {}]   ;;  %s2392_s2 = inlined_call_operand.vmem [shape: f32[1,100], index: 2, kind: input, shape index: {}]   ;;  %s2393_s3 = inlined_call_operand.hbm [shape: f32[2,100], index: 3, kind: output, shape index: {}]  }
   0x1   :  { %v35_v0 = vld [vmem:[%s2391_s1 + $0x80] sm:$0xff]  ;;  %v36_v1 = vld [vmem:[%s2391_s1 + $0x88] sm:$0xff]  ;;  %v37_v11 = vld [vmem:[%s2391_s1 + $0x90] sm:$0xff]  ;;  %v288_v48 = vunpack.c.l.s4 %v1530_v47 }
   0x2   :  { %v19_v2 = vld [vmem:[%s2391_s1] sm:$0xff]  ;;  %v1240_v3 = vpack.c.bf16 %v36_v1, %v35_v0  ;;  %v20_v4 = vld [vmem:[%s2391_s1 + $0x8] sm:$0xff]  ;;  %v38_v13 = vld [vmem:[%s2391_s1 + $0x98] sm:$0xff]  ;;  %v291_v0 = vshrl.u32 %v290_v49, 7 }
   0x3   :  { %v67_v5 = vld [vmem:[%s2391_s1 + $0x180] sm:$0xff]  ;;  %v68_v6 = vld [vmem:[%s2391_s1 + $0x188] sm:$0xff]  ;;  %v1242_v7 = vpack.c.bf16 %v20_v4, %v19_v2  ;;  %v21_v14 = vld [vmem:[%s2391_s1 + $0x10] sm:$0xff]  ;;  %v1244_v16 = vpack.c.bf16 %v38_v13, %v37_v11  ;;  %v289_v63 = vunpack.c.0.s8 %v288_v48 }
   0x4   :  { %v1272_v8 = vpack.c.bf16 %v68_v6, %v67_v5  ;;  %v51_v9 = vld [vmem:[%s2391_s1 + $0x100] sm:$0xff]  ;;  %v52_v10 = vld [vmem:[%s2391_s1 + $0x108] sm:$0xff]  ;;  %1241 = vmatprep.subr.bf16.mxu0 %v1240_v3  ;;  %v22_v15 = vld [vmem:[%s2391_s1 + $0x18] sm:$0xff] }
   0x5   :  { %v1274_v12 = vpack.c.bf16 %v52_v10, %v51_v9  ;;  %1243 = vmatpush3.bf16.msra.mxu0 %v1242_v7  ;;  %v1246_v17 = vpack.c.bf16 %v22_v15, %v21_v14  ;;  %v69_v18 = vld [vmem:[%s2391_s1 + $0x190] sm:$0xff]  ;;  %v70_v19 = vld [vmem:[%s2391_s1 + $0x198] sm:$0xff]  ;;  %v39_v23 = vld [vmem:[%s2391_s1 + $0xa0] sm:$0xff]  ;;  %v1702_v13 = vsub.s32 %v289_v63, %v291_v0 }
   0x6   :  { %1273 = vmatprep.subr.bf16.mxu1 %v1272_v8  ;;  %v53_v20 = vld [vmem:[%s2391_s1 + $0x110] sm:$0xff]  ;;  %v1276_v21 = vpack.c.bf16 %v70_v19, %v69_v18  ;;  %v54_v22 = vld [vmem:[%s2391_s1 + $0x118] sm:$0xff]  ;;  %v40_v24 = vld [vmem:[%s2391_s1 + $0xa8] sm:$0xff]  ;;  %1245 = vmatprep.subr.bf16.mxu0 %v1244_v16 }
   0x7   :  { %1275 = vmatpush3.bf16.msra.mxu1 %v1274_v12  ;;  %v1278_v25 = vpack.c.bf16 %v54_v22, %v53_v20  ;;  %v1248_v26 = vpack.c.bf16 %v40_v24, %v39_v23  ;;  %v23_v27 = vld [vmem:[%s2391_s1 + $0x20] sm:$0xff]  ;;  %v24_v28 = vld [vmem:[%s2391_s1 + $0x28] sm:$0xff]  ;;  %v41_v35 = vld [vmem:[%s2391_s1 + $0xb0] sm:$0xff] }
   0x8   :  { %v71_v29 = vld [vmem:[%s2391_s1 + $0x1a0] sm:$0xff]  ;;  %1277 = vmatprep.subr.bf16.mxu1 %v1276_v21  ;;  %v72_v30 = vld [vmem:[%s2391_s1 + $0x1a8] sm:$0xff]  ;;  %v1250_v33 = vpack.c.bf16 %v24_v28, %v23_v27  ;;  %v42_v36 = vld [vmem:[%s2391_s1 + $0xb8] sm:$0xff] }
   0x9   :  { %v55_v31 = vld [vmem:[%s2391_s1 + $0x120] sm:$0xff]  ;;  %v56_v32 = vld [vmem:[%s2391_s1 + $0x128] sm:$0xff]  ;;  %1247 = vmatpush3.bf16.msra.mxu0 %v1246_v17  ;;  %v1280_v34 = vpack.c.bf16 %v72_v30, %v71_v29  ;;  %v25_v37 = vld [vmem:[%s2391_s1 + $0x30] sm:$0xff]  ;;  %v1252_v39 = vpack.c.bf16 %v42_v36, %v41_v35 }
   0xa   :  { %1249 = vmatprep.subr.bf16.mxu0 %v1248_v26  ;;  %v1282_v38 = vpack.c.bf16 %v56_v32, %v55_v31  ;;  %v26_v40 = vld [vmem:[%s2391_s1 + $0x38] sm:$0xff]  ;;  %v73_v41 = vld [vmem:[%s2391_s1 + $0x1b0] sm:$0xff]  ;;  %v43_v46 = vld [vmem:[%s2391_s1 + $0xc0] sm:$0xff] }
   0xb   :  { %1279 = vmatpush3.bf16.msra.mxu1 %v1278_v25  ;;  %v74_v42 = vld [vmem:[%s2391_s1 + $0x1b8] sm:$0xff]  ;;  %v57_v44 = vld [vmem:[%s2391_s1 + $0x130] sm:$0xff]  ;;  %v44_v50 = vld [vmem:[%s2391_s1 + $0xc8] sm:$0xff]  ;;  %v1254_v51 = vpack.c.bf16 %v26_v40, %v25_v37 }
   0xc   :  { %1281 = vmatprep.subr.bf16.mxu1 %v1280_v34  ;;  %v1284_v43 = vpack.c.bf16 %v74_v42, %v73_v41  ;;  %v58_v45 = vld [vmem:[%s2391_s1 + $0x138] sm:$0xff]  ;;  %v75_v52 = vld [vmem:[%s2391_s1 + $0x1c0] sm:$0xff]  ;;  %v76_v53 = vld [vmem:[%s2391_s1 + $0x1c8] sm:$0xff]  ;;  %v1256_v55 = vpack.c.bf16 %v44_v50, %v43_v46 }
   0xd   :  { %1251 = vmatpush3.bf16.msra.mxu0 %v1250_v33  ;;  %v1286_v54 = vpack.c.bf16 %v58_v45, %v57_v44  ;;  %v27_v56 = vld [vmem:[%s2391_s1 + $0x40] sm:$0xff]  ;;  %v28_v57 = vld [vmem:[%s2391_s1 + $0x48] sm:$0xff]  ;;  %v1288_v59 = vpack.c.bf16 %v76_v53, %v75_v52  ;;  %v45_v61 = vld [vmem:[%s2391_s1 + $0xd0] sm:$0xff] }
   0xe   :  { %1253 = vmatprep.subr.bf16.mxu0 %v1252_v39  ;;  %v59_v58 = vld [vmem:[%s2391_s1 + $0x140] sm:$0xff]  ;;  %v60_v60 = vld [vmem:[%s2391_s1 + $0x148] sm:$0xff]  ;;  %v46_v62 = vld [vmem:[%s2391_s1 + $0xd8] sm:$0xff]  ;;  %v1258_v3 = vpack.c.bf16 %v28_v57, %v27_v56 }
   0xf   :  { %1283 = vmatpush3.bf16.msra.mxu1 %v1282_v38  ;;  %v77_v1 = vld [vmem:[%s2391_s1 + $0x1d0] sm:$0xff]  ;;  %v78_v2 = vld [vmem:[%s2391_s1 + $0x1d8] sm:$0xff]  ;;  %v1290_v4 = vpack.c.bf16 %v60_v60, %v59_v58  ;;  %v1260_v5 = vpack.c.bf16 %v46_v62, %v45_v61  ;;  %v47_v11 = vld [vmem:[%s2391_s1 + $0xe0] sm:$0xff] }
  0x10   :  { %1285 = vmatprep.subr.bf16.mxu1 %v1284_v43  ;;  %v29_v6 = vld [vmem:[%s2391_s1 + $0x50] sm:$0xff]  ;;  %v30_v7 = vld [vmem:[%s2391_s1 + $0x58] sm:$0xff]  ;;  %v1292_v9 = vpack.c.bf16 %v78_v2, %v77_v1  ;;  %v48_v12 = vld [vmem:[%s2391_s1 + $0xe8] sm:$0xff] }
  0x11   :  { %1255 = vmatpush3.bf16.msra.mxu0 %v1254_v51  ;;  %v61_v8 = vld [vmem:[%s2391_s1 + $0x150] sm:$0xff]  ;;  %v62_v10 = vld [vmem:[%s2391_s1 + $0x158] sm:$0xff]  ;;  %v79_v14 = vld [vmem:[%s2391_s1 + $0x1e0] sm:$0xff]  ;;  %v1262_v16 = vpack.c.bf16 %v30_v7, %v29_v6  ;;  %v1264_v19 = vpack.c.bf16 %v48_v12, %v47_v11 }
  0x12   :  { %1257 = vmatprep.subr.bf16.mxu0 %v1256_v55  ;;  %v80_v15 = vld [vmem:[%s2391_s1 + $0x1e8] sm:$0xff]  ;;  %v31_v17 = vld [vmem:[%s2391_s1 + $0x60] sm:$0xff]  ;;  %v1294_v18 = vpack.c.bf16 %v62_v10, %v61_v8  ;;  %v49_v25 = vld [vmem:[%s2391_s1 + $0xf0] sm:$0xff] }
  0x13   :  { %1287 = vmatpush3.bf16.msra.mxu1 %v1286_v54  ;;  %v32_v20 = vld [vmem:[%s2391_s1 + $0x68] sm:$0xff]  ;;  %v63_v21 = vld [vmem:[%s2391_s1 + $0x160] sm:$0xff]  ;;  %v1296_v23 = vpack.c.bf16 %v80_v15, %v79_v14  ;;  %v50_v26 = vld [vmem:[%s2391_s1 + $0xf8] sm:$0xff] }
  0x14   :  { %1289 = vmatprep.subr.bf16.mxu1 %v1288_v59  ;;  %v15_v22 = vld [vmem:[%s2390_s0] sm:$0xff]  ;;  %v64_v24 = vld [vmem:[%s2391_s1 + $0x168] sm:$0xff]  ;;  %v81_v29 = vld [vmem:[%s2391_s1 + $0x1f0] sm:$0xff]  ;;  %v1266_v31 = vpack.c.bf16 %v32_v20, %v31_v17  ;;  %v1268_v35 = vpack.c.bf16 %v50_v26, %v49_v25 }
  0x15   :  { %1259 = vmatpush3.bf16.msra.mxu0 %v1258_v3  ;;  %v293_v27 = vrot.slane %v15_v22, %v1702_v13  ;;  %v286_v28 = vcombine.high %v15_v22, %v15_v22  ;;  %v82_v30 = vld [vmem:[%s2391_s1 + $0x1f8] sm:$0xff]  ;;  %v1298_v34 = vpack.c.bf16 %v64_v24, %v63_v21  ;;  %v33_v36 = vld [vmem:[%s2391_s1 + $0x70] sm:$0xff]  ;;  %v99_v41 = vld [vmem:[%s2391_s1 + $0x280] sm:$0xff] }
  0x16   :  { %1261 = vmatprep.subr.bf16.mxu0 %v1260_v5  ;;  %v34_v37 = vld [vmem:[%s2391_s1 + $0x78] sm:$0xff]  ;;  %v65_v38 = vld [vmem:[%s2391_s1 + $0x170] sm:$0xff]  ;;  %v1300_v39 = vpack.c.bf16 %v82_v30, %v81_v29  ;;  %v100_v42 = vld [vmem:[%s2391_s1 + $0x288] sm:$0xff] }
  0x17   :  { %1291 = vmatpush3.bf16.msra.mxu1 %v1290_v4  ;;  %v301_v32 = vcombine.high %v293_v27, %v293_v27  ;;  %v300_v33 = vrot.slane %v286_v28, %v1702_v13  ;;  %v66_v40 = vld [vmem:[%s2391_s1 + $0x178] sm:$0xff]  ;;  %v131_v44 = vld [vmem:[%s2391_s1 + $0x380] sm:$0xff]  ;;  %v132_v45 = vld [vmem:[%s2391_s1 + $0x388] sm:$0xff]  ;;  %v1270_v46 = vpack.c.bf16 %v34_v37, %v33_v36  ;;  %v1304_v48 = vpack.c.bf16 %v100_v42, %v99_v41 }
  0x18   :  { %1293 = vmatprep.subr.bf16.mxu1 %v1292_v9  ;;  %v1302_v47 = vpack.c.bf16 %v66_v40, %v65_v38  ;;  %v83_v49 = vld [vmem:[%s2391_s1 + $0x200] sm:$0xff]  ;;  %v84_v50 = vld [vmem:[%s2391_s1 + $0x208] sm:$0xff]  ;;  %v1336_v52 = vpack.c.bf16 %v132_v45, %v131_v44  ;;  %v101_v54 = vld [vmem:[%s2391_s1 + $0x290] sm:$0xff] }
  0x19   :  { %1263 = vmatpush3.bf16.msra.mxu0 %v1262_v16  ;;  %434 = vmatprep.mubr.f32.mxu0 %v301_v32  ;;  %v302_v43 = vcombine.high %v300_v33, %v300_v33  ;;  %v115_v51 = vld [vmem:[%s2391_s1 + $0x300] sm:$0xff]  ;;  %v116_v53 = vld [vmem:[%s2391_s1 + $0x308] sm:$0xff]  ;;  %v102_v55 = vld [vmem:[%s2391_s1 + $0x298] sm:$0xff]  ;;  %v1306_v58 = vpack.c.bf16 %v84_v50, %v83_v49 }
  0x1a   :  { %1265 = vmatprep.subr.bf16.mxu0 %v1264_v19  ;;  %v133_v56 = vld [vmem:[%s2391_s1 + $0x390] sm:$0xff]  ;;  %v134_v57 = vld [vmem:[%s2391_s1 + $0x398] sm:$0xff]  ;;  %v1338_v59 = vpack.c.bf16 %v116_v53, %v115_v51  ;;  %v1308_v60 = vpack.c.bf16 %v102_v55, %v101_v54  ;;  %v103_v2 = vld [vmem:[%s2391_s1 + $0x2a0] sm:$0xff] }
  0x1b   :  { %1295 = vmatpush3.bf16.msra.mxu1 %v1294_v18  ;;  %504 = vmatprep.mubr.f32.mxu1 %v302_v43  ;;  %v85_v61 = vld [vmem:[%s2391_s1 + $0x210] sm:$0xff]  ;;  %v86_v62 = vld [vmem:[%s2391_s1 + $0x218] sm:$0xff]  ;;  %v1340_v0 = vpack.c.bf16 %v134_v57, %v133_v56  ;;  %v104_v3 = vld [vmem:[%s2391_s1 + $0x2a8] sm:$0xff] }
  0x1c   :  { %1297 = vmatprep.subr.bf16.mxu1 %v1296_v23  ;;  %v117_v63 = vld [vmem:[%s2391_s1 + $0x310] sm:$0xff]  ;;  %v118_v1 = vld [vmem:[%s2391_s1 + $0x318] sm:$0xff]  ;;  %v135_v4 = vld [vmem:[%s2391_s1 + $0x3a0] sm:$0xff]  ;;  %v1310_v6 = vpack.c.bf16 %v86_v62, %v85_v61  ;;  %v1312_v8 = vpack.c.bf16 %v104_v3, %v103_v2 }
  0x1d   :  { %1267 = vmatpush3.bf16.msra.mxu0 %v1266_v31  ;;  %v136_v5 = vld [vmem:[%s2391_s1 + $0x3a8] sm:$0xff]  ;;  %v1342_v7 = vpack.c.bf16 %v118_v1, %v117_v63  ;;  %v87_v9 = vld [vmem:[%s2391_s1 + $0x220] sm:$0xff]  ;;  %v105_v15 = vld [vmem:[%s2391_s1 + $0x2b0] sm:$0xff] }
  0x1e   :  { %1269 = vmatprep.subr.bf16.mxu0 %v1268_v35  ;;  %v88_v10 = vld [vmem:[%s2391_s1 + $0x228] sm:$0xff]  ;;  %v119_v11 = vld [vmem:[%s2391_s1 + $0x320] sm:$0xff]  ;;  %v1344_v12 = vpack.c.bf16 %v136_v5, %v135_v4  ;;  %v106_v16 = vld [vmem:[%s2391_s1 + $0x2b8] sm:$0xff] }
  0x1f   :  { %1299 = vmatpush3.bf16.msra.mxu1 %v1298_v34  ;;  %v120_v14 = vld [vmem:[%s2391_s1 + $0x328] sm:$0xff]  ;;  %v137_v17 = vld [vmem:[%s2391_s1 + $0x3b0] sm:$0xff]  ;;  %v138_v18 = vld [vmem:[%s2391_s1 + $0x3b8] sm:$0xff]  ;;  %v1314_v19 = vpack.c.bf16 %v88_v10, %v87_v9  ;;  %v1316_v21 = vpack.c.bf16 %v106_v16, %v105_v15 }
  0x20   :  { %1301 = vmatprep.subr.bf16.mxu1 %v1300_v39  ;;  %v1346_v20 = vpack.c.bf16 %v120_v14, %v119_v11  ;;  %v89_v22 = vld [vmem:[%s2391_s1 + $0x230] sm:$0xff]  ;;  %v90_v23 = vld [vmem:[%s2391_s1 + $0x238] sm:$0xff]  ;;  %v1348_v25 = vpack.c.bf16 %v138_v18, %v137_v17  ;;  %v108_v28 = vld [vmem:[%s2391_s1 + $0x2c8] sm:$0xff] }
  0x21   :  { %1271 = vmatpush3.bf16.msra.mxu0 %v1270_v46  ;;  %v121_v24 = vld [vmem:[%s2391_s1 + $0x330] sm:$0xff]  ;;  %v122_v26 = vld [vmem:[%s2391_s1 + $0x338] sm:$0xff]  ;;  %v139_v29 = vld [vmem:[%s2391_s1 + $0x3c0] sm:$0xff]  ;;  %v1318_v32 = vpack.c.bf16 %v90_v23, %v89_v22 }
  0x22   :  { %1305 = vmatprep.subr.bf16.mxu0 %v1304_v48  ;;  %v140_v30 = vld [vmem:[%s2391_s1 + $0x3c8] sm:$0xff]  ;;  %v1350_v35 = vpack.c.bf16 %v122_v26, %v121_v24  ;;  %v91_v37 = vld [vmem:[%s2391_s1 + $0x240] sm:$0xff]  ;;  %v109_v42 = vld [vmem:[%s2391_s1 + $0x2d0] sm:$0xff] }
  0x23   :  { %1303 = vmatpush3.bf16.msra.mxu1 %v1302_v47  ;;  %v16_v31 = vld [vmem:[%s2390_s0 + $0x8] sm:$0xff]  ;;  %v123_v39 = vld [vmem:[%s2391_s1 + $0x340] sm:$0xff]  ;;  %v1352_v40 = vpack.c.bf16 %v140_v30, %v139_v29  ;;  %v110_v43 = vld [vmem:[%s2391_s1 + $0x2d8] sm:$0xff] }
  0x24   :  { %1337 = vmatprep.subr.bf16.mxu1 %v1336_v52  ;;  %435 = vmatmul.mubr.f32.vlgmr.msra.gmra.mrb[0].mxu0 %v293_v27  ;;  %v107_v27 = vld [vmem:[%s2391_s1 + $0x2c0] sm:$0xff]  ;;  %v303_v34 = vcombine.high %v16_v31, %v16_v31  ;;  %v92_v38 = vld [vmem:[%s2391_s1 + $0x248] sm:$0xff]  ;;  %v141_v46 = vld [vmem:[%s2391_s1 + $0x3d0] sm:$0xff]  ;;  %v1324_v51 = vpack.c.bf16 %v110_v43, %v109_v42 }
  0x25   :  { %1307 = vmatpush3.bf16.msra.mxu0 %v1306_v58  ;;  %v1320_v36 = vpack.c.bf16 %v108_v28, %v107_v27  ;;  %v124_v41 = vld [vmem:[%s2391_s1 + $0x348] sm:$0xff]  ;;  %v142_v47 = vld [vmem:[%s2391_s1 + $0x3d8] sm:$0xff]  ;;  %v1322_v48 = vpack.c.bf16 %v92_v38, %v91_v37  ;;  %v93_v52 = vld [vmem:[%s2391_s1 + $0x250] sm:$0xff] }
  0x26   :  { %505 = vmatmul.mubr.f32.vlgmr.msra.gmra.mrb[0].mxu1 %v300_v33  ;;  %1309 = vmatprep.subr.bf16.mxu0 %v1308_v60  ;;  %v1863_v33 = vrot.slane %v16_v31, %v1702_v13  ;;  %v1886_v45 = vrot.slane %v303_v34, %v1702_v13  ;;  %v1354_v50 = vpack.c.bf16 %v124_v41, %v123_v39  ;;  %v94_v53 = vld [vmem:[%s2391_s1 + $0x258] sm:$0xff]  ;;  %v125_v54 = vld [vmem:[%s2391_s1 + $0x350] sm:$0xff]  ;;  %v111_v57 = vld [vmem:[%s2391_s1 + $0x2e0] sm:$0xff] }
  0x27   :  { %1339 = vmatpush3.bf16.msra.mxu1 %v1338_v59  ;;  %v1356_v55 = vpack.c.bf16 %v142_v47, %v141_v46  ;;  %v126_v56 = vld [vmem:[%s2391_s1 + $0x358] sm:$0xff]  ;;  %v112_v58 = vld [vmem:[%s2391_s1 + $0x2e8] sm:$0xff]  ;;  %v143_v59 = vld [vmem:[%s2391_s1 + $0x3e0] sm:$0xff]  ;;  %v1326_v61 = vpack.c.bf16 %v94_v53, %v93_v52 }
  0x28   :  { %1341 = vmatprep.subr.bf16.mxu1 %v1340_v0  ;;  %v318_v44 = vcombine.high %v1863_v33, %v1863_v33  ;;  %v319_v49 = vcombine.high %v1886_v45, %v1886_v45  ;;  %v144_v60 = vld [vmem:[%s2391_s1 + $0x3e8] sm:$0xff]  ;;  %v1358_v62 = vpack.c.bf16 %v126_v56, %v125_v54  ;;  %v1328_v63 = vpack.c.bf16 %v112_v58, %v111_v57  ;;  %v95_v0 = vld [vmem:[%s2391_s1 + $0x260] sm:$0xff]  ;;  %v113_v5 = vld [vmem:[%s2391_s1 + $0x2f0] sm:$0xff] }
  0x29   :  { %1311 = vmatpush3.bf16.msra.mxu0 %v1310_v6  ;;  %v96_v1 = vld [vmem:[%s2391_s1 + $0x268] sm:$0xff]  ;;  %v127_v2 = vld [vmem:[%s2391_s1 + $0x360] sm:$0xff]  ;;  %v1360_v3 = vpack.c.bf16 %v144_v60, %v143_v59  ;;  %v114_v6 = vld [vmem:[%s2391_s1 + $0x2f8] sm:$0xff] }
  0x2a   :  { %1313 = vmatprep.subr.bf16.mxu0 %v1312_v8  ;;  %574 = vmatprep.mubr.f32.mxu0 %v318_v44  ;;  %v128_v4 = vld [vmem:[%s2391_s1 + $0x368] sm:$0xff]  ;;  %v146_v8 = vld [vmem:[%s2391_s1 + $0x3f8] sm:$0xff]  ;;  %v1330_v9 = vpack.c.bf16 %v96_v1, %v95_v0  ;;  %v1332_v11 = vpack.c.bf16 %v114_v6, %v113_v5  ;;  %v129_v15 = vld [vmem:[%s2391_s1 + $0x370] sm:$0xff] }
  0x2b   :  { %1343 = vmatpush3.bf16.msra.mxu1 %v1342_v7  ;;  %644 = vmatprep.mubr.f32.mxu1 %v319_v49  ;;  %v145_v7 = vld [vmem:[%s2391_s1 + $0x3f0] sm:$0xff]  ;;  %v1362_v10 = vpack.c.bf16 %v128_v4, %v127_v2  ;;  %v98_v14 = vld [vmem:[%s2391_s1 + $0x278] sm:$0xff]  ;;  %v163_v18 = vld [vmem:[%s2391_s1 + $0x480] sm:$0xff] }
  0x2c   :  { %1345 = vmatprep.subr.bf16.mxu1 %v1344_v12  ;;  %v97_v12 = vld [vmem:[%s2391_s1 + $0x270] sm:$0xff]  ;;  %v1364_v16 = vpack.c.bf16 %v146_v8, %v145_v7  ;;  %v130_v17 = vld [vmem:[%s2391_s1 + $0x378] sm:$0xff]  ;;  %v147_v23 = vld [vmem:[%s2391_s1 + $0x400] sm:$0xff] }
  0x2d   :  { %1315 = vmatpush3.bf16.msra.mxu0 %v1314_v19  ;;  %v164_v19 = vld [vmem:[%s2391_s1 + $0x488] sm:$0xff]  ;;  %v1334_v22 = vpack.c.bf16 %v98_v14, %v97_v12  ;;  %v1366_v24 = vpack.c.bf16 %v130_v17, %v129_v15  ;;  %v179_v27 = vld [vmem:[%s2391_s1 + $0x500] sm:$0xff]  ;;  %v165_v30 = vld [vmem:[%s2391_s1 + $0x490] sm:$0xff] }
  0x2e   :  { %1317 = vmatprep.subr.bf16.mxu0 %v1316_v21  ;;  %v196_v21 = vld [vmem:[%s2391_s1 + $0x588] sm:$0xff]  ;;  %v166_v31 = vld [vmem:[%s2391_s1 + $0x498] sm:$0xff]  ;;  %v17_v37 = vld [vmem:[%s2390_s0 + $0x10] sm:$0xff] }
  0x2f   :  { %1347 = vmatpush3.bf16.msra.mxu1 %v1346_v20  ;;  %v195_v20 = vld [vmem:[%s2391_s1 + $0x580] sm:$0xff]  ;;  %v148_v26 = vld [vmem:[%s2391_s1 + $0x408] sm:$0xff]  ;;  %v198_v34 = vld [vmem:[%s2391_s1 + $0x598] sm:$0xff]  ;;  %v1372_v38 = vpack.c.bf16 %v166_v31, %v165_v30  ;;  %v2005_v42 = vrot.slane %v17_v37, %v1702_v13  ;;  %v320_v43 = vcombine.high %v17_v37, %v17_v37 }
  0x30   :  { %1349 = vmatprep.subr.bf16.mxu1 %v1348_v25  ;;  %v1368_v25 = vpack.c.bf16 %v164_v19, %v163_v18  ;;  %v180_v28 = vld [vmem:[%s2391_s1 + $0x508] sm:$0xff]  ;;  %v1400_v29 = vpack.c.bf16 %v196_v21, %v195_v20  ;;  %v149_v39 = vld [vmem:[%s2391_s1 + $0x410] sm:$0xff]  ;;  %v182_v46 = vld [vmem:[%s2391_s1 + $0x518] sm:$0xff] }
  0x31   :  { %1319 = vmatpush3.bf16.msra.mxu0 %v1318_v32  ;;  %v197_v32 = vld [vmem:[%s2391_s1 + $0x590] sm:$0xff]  ;;  %v167_v47 = vld [vmem:[%s2391_s1 + $0x4a0] sm:$0xff]  ;;  %v2026_v52 = vrot.slane %v320_v43, %v1702_v13  ;;  %v152_v56 = vld [vmem:[%s2391_s1 + $0x428] sm:$0xff] }
  0x32   :  { %1321 = vmatprep.subr.bf16.mxu0 %v1320_v36  ;;  %v1402_v36 = vpack.c.bf16 %v180_v28, %v179_v27  ;;  %v181_v41 = vld [vmem:[%s2391_s1 + $0x510] sm:$0xff]  ;;  %v1404_v44 = vpack.c.bf16 %v198_v34, %v197_v32  ;;  %v199_v49 = vld [vmem:[%s2391_s1 + $0x5a0] sm:$0xff]  ;;  %v184_v59 = vld [vmem:[%s2391_s1 + $0x528] sm:$0xff] }
  0x33   :  { %1351 = vmatpush3.bf16.msra.mxu1 %v1350_v35  ;;  %v1370_v35 = vpack.c.bf16 %v148_v26, %v147_v23  ;;  %v183_v57 = vld [vmem:[%s2391_s1 + $0x520] sm:$0xff]  ;;  %v169_v60 = vld [vmem:[%s2391_s1 + $0x4b0] sm:$0xff]  ;;  %v154_v4 = vld [vmem:[%s2391_s1 + $0x438] sm:$0xff] }
  0x34   :  { %1353 = vmatprep.subr.bf16.mxu1 %v1352_v40  ;;  %v150_v40 = vld [vmem:[%s2391_s1 + $0x418] sm:$0xff]  ;;  %v1410_v1 = vpack.c.bf16 %v184_v59, %v183_v57  ;;  %v185_v5 = vld [vmem:[%s2391_s1 + $0x530] sm:$0xff]  ;;  %v171_v8 = vld [vmem:[%s2391_s1 + $0x4c0] sm:$0xff] }
  0x35   :  { %1323 = vmatpush3.bf16.msra.mxu0 %v1322_v48  ;;  %v168_v48 = vld [vmem:[%s2391_s1 + $0x4a8] sm:$0xff]  ;;  %v1374_v53 = vpack.c.bf16 %v150_v40, %v149_v39  ;;  %v186_v7 = vld [vmem:[%s2391_s1 + $0x538] sm:$0xff]  ;;  %v187_v18 = vld [vmem:[%s2391_s1 + $0x540] sm:$0xff] }
  0x36   :  { %1325 = vmatprep.subr.bf16.mxu0 %v1324_v51  ;;  %v335_v51 = vcombine.high %v2005_v42, %v2005_v42  ;;  %v1376_v54 = vpack.c.bf16 %v168_v48, %v167_v47  ;;  %v1414_v14 = vpack.c.bf16 %v186_v7, %v185_v5  ;;  %v156_v17 = vld [vmem:[%s2391_s1 + $0x448] sm:$0xff]  ;;  %v173_v21 = vld [vmem:[%s2391_s1 + $0x4d0] sm:$0xff]  ;;  %v190_v32 = vld [vmem:[%s2391_s1 + $0x558] sm:$0xff] }
  0x37   :  { %1355 = vmatpush3.bf16.msra.mxu1 %v1354_v50  ;;  %v200_v50 = vld [vmem:[%s2391_s1 + $0x5a8] sm:$0xff]  ;;  %v205_v23 = vld [vmem:[%s2391_s1 + $0x5d0] sm:$0xff]  ;;  %v175_v34 = vld [vmem:[%s2391_s1 + $0x4e0] sm:$0xff] }
  0x38   :  { %1357 = vmatprep.subr.bf16.mxu1 %v1356_v55  ;;  %v151_v55 = vld [vmem:[%s2391_s1 + $0x420] sm:$0xff]  ;;  %v1408_v58 = vpack.c.bf16 %v200_v50, %v199_v49  ;;  %v188_v20 = vld [vmem:[%s2391_s1 + $0x548] sm:$0xff]  ;;  %v157_v28 = vld [vmem:[%s2391_s1 + $0x450] sm:$0xff] }
  0x39   :  { %1327 = vmatpush3.bf16.msra.mxu0 %v1326_v61  ;;  %v170_v61 = vld [vmem:[%s2391_s1 + $0x4b8] sm:$0xff]  ;;  %v1378_v0 = vpack.c.bf16 %v152_v56, %v151_v55  ;;  %v1418_v26 = vpack.c.bf16 %v188_v20, %v187_v18  ;;  %v189_v30 = vld [vmem:[%s2391_s1 + $0x550] sm:$0xff]  ;;  %v208_v37 = vld [vmem:[%s2391_s1 + $0x5e8] sm:$0xff] }
  0x3a   :  { %1329 = vmatprep.subr.bf16.mxu0 %v1328_v63  ;;  %v202_v63 = vld [vmem:[%s2391_s1 + $0x5b8] sm:$0xff]  ;;  %v1380_v2 = vpack.c.bf16 %v170_v61, %v169_v60  ;;  %v159_v39 = vld [vmem:[%s2391_s1 + $0x460] sm:$0xff]  ;;  %v1422_v40 = vpack.c.bf16 %v190_v32, %v189_v30  ;;  %v160_v43 = vld [vmem:[%s2391_s1 + $0x468] sm:$0xff] }
  0x3b   :  { %1359 = vmatpush3.bf16.msra.mxu1 %v1358_v62  ;;  %v201_v62 = vld [vmem:[%s2391_s1 + $0x5b0] sm:$0xff]  ;;  %v178_v49 = vld [vmem:[%s2391_s1 + $0x4f8] sm:$0xff] }
  0x3c   :  { %1361 = vmatprep.subr.bf16.mxu1 %v1360_v3  ;;  %v153_v3 = vld [vmem:[%s2391_s1 + $0x430] sm:$0xff]  ;;  %v1412_v6 = vpack.c.bf16 %v202_v63, %v201_v62 }
  0x3d   :  { %1331 = vmatpush3.bf16.msra.mxu0 %v1330_v9  ;;  %v172_v9 = vld [vmem:[%s2391_s1 + $0x4c8] sm:$0xff]  ;;  %v1382_v12 = vpack.c.bf16 %v154_v4, %v153_v3  ;;  %v177_v48 = vld [vmem:[%s2391_s1 + $0x4f0] sm:$0xff] }
  0x3e   :  { %1333 = vmatprep.subr.bf16.mxu0 %v1332_v11  ;;  %v204_v11 = vld [vmem:[%s2391_s1 + $0x5c8] sm:$0xff]  ;;  %v1384_v15 = vpack.c.bf16 %v172_v9, %v171_v8 }
  0x3f   :  { %1363 = vmatpush3.bf16.msra.mxu1 %v1362_v10  ;;  %v203_v10 = vld [vmem:[%s2391_s1 + $0x5c0] sm:$0xff] }
  0x40   :  { %1365 = vmatprep.subr.bf16.mxu1 %v1364_v16  ;;  %v155_v16 = vld [vmem:[%s2391_s1 + $0x440] sm:$0xff]  ;;  %v1416_v19 = vpack.c.bf16 %v204_v11, %v203_v10 }
  0x41   :  { %1335 = vmatpush3.bf16.msra.mxu0 %v1334_v22  ;;  %v174_v22 = vld [vmem:[%s2391_s1 + $0x4d8] sm:$0xff] }
  0x42   :  { %1369 = vmatprep.subr.bf16.mxu0 %v1368_v25  ;;  %v1386_v25 = vpack.c.bf16 %v156_v17, %v155_v16  ;;  %v1388_v27 = vpack.c.bf16 %v174_v22, %v173_v21 }
  0x43   :  { %1367 = vmatpush3.bf16.msra.mxu1 %v1366_v24  ;;  %v206_v24 = vld [vmem:[%s2391_s1 + $0x5d8] sm:$0xff] }
  0x44   :  { %1401 = vmatprep.subr.bf16.mxu1 %v1400_v29  ;;  %575 = vmatmul.mubr.f32.vlgmr.msra.gmra.mrb[2].mxu0 %v1863_v33  ;;  %v1406_v33 = vpack.c.bf16 %v182_v46, %v181_v41  ;;  %v158_v29 = vld [vmem:[%s2391_s1 + $0x458] sm:$0xff]  ;;  %v1420_v31 = vpack.c.bf16 %v206_v24, %v205_v23  ;;  %v192_v46 = vld [vmem:[%s2391_s1 + $0x568] sm:$0xff] }
  0x45   :  { %1371 = vmatpush3.bf16.msra.mxu0 %v1370_v35  ;;  %714 = vmatprep.mubr.f32.mxu0 %v335_v51  ;;  %v176_v35 = vld [vmem:[%s2391_s1 + $0x4e8] sm:$0xff] }
  0x46   :  { %645 = vmatmul.mubr.f32.vlgmr.msra.gmra.mrb[2].mxu1 %v1886_v45  ;;  %1373 = vmatprep.subr.bf16.mxu0 %v1372_v38  ;;  %v336_v45 = vcombine.high %v2026_v52, %v2026_v52  ;;  %v1390_v38 = vpack.c.bf16 %v158_v29, %v157_v28  ;;  %v1392_v41 = vpack.c.bf16 %v176_v35, %v175_v34 }
  0x47   :  { %1403 = vmatpush3.bf16.msra.mxu1 %v1402_v36  ;;  %v207_v36 = vld [vmem:[%s2391_s1 + $0x5e0] sm:$0xff] }
  0x48   :  { %1405 = vmatprep.subr.bf16.mxu1 %v1404_v44  ;;  %784 = vmatprep.mubr.f32.mxu1 %v336_v45  ;;  %v191_v44 = vld [vmem:[%s2391_s1 + $0x560] sm:$0xff]  ;;  %v1424_v47 = vpack.c.bf16 %v208_v37, %v207_v36 }
  0x49   :  { %1375 = vmatpush3.bf16.msra.mxu0 %v1374_v53 }
  0x4a   :  { %1377 = vmatprep.subr.bf16.mxu0 %v1376_v54 }
  0x4b   :  { %1407 = vmatpush3.bf16.msra.mxu1 %v1406_v33 }
  0x4c   :  { %1409 = vmatprep.subr.bf16.mxu1 %v1408_v58 }
  0x4d   :  { %1379 = vmatpush3.bf16.msra.mxu0 %v1378_v0 }
  0x4e   :  { %1381 = vmatprep.subr.bf16.mxu0 %v1380_v2 }
  0x4f   :  { %1411 = vmatpush3.bf16.msra.mxu1 %v1410_v1 }
  0x50   :  { %1413 = vmatprep.subr.bf16.mxu1 %v1412_v6 }
  0x51   :  { %1383 = vmatpush3.bf16.msra.mxu0 %v1382_v12 }
  0x52   :  { %1385 = vmatprep.subr.bf16.mxu0 %v1384_v15 }
  0x53   :  { %1415 = vmatpush3.bf16.msra.mxu1 %v1414_v14 }
  0x54   :  { %1417 = vmatprep.subr.bf16.mxu1 %v1416_v19 }
  0x55   :  { %1387 = vmatpush3.bf16.msra.mxu0 %v1386_v25 }
  0x56   :  { %1389 = vmatprep.subr.bf16.mxu0 %v1388_v27 }
  0x57   :  { %1419 = vmatpush3.bf16.msra.mxu1 %v1418_v26 }
  0x58   :  { %1421 = vmatprep.subr.bf16.mxu1 %v1420_v31 }
  0x59   :  { %8 = vsyncpa [#allocation3], 0  ;;  %v209_v50 = vld [vmem:[%s2391_s1 + $0x5f0] sm:$0xff]  ;;  %v210_v51 = vld [vmem:[%s2391_s1 + $0x5f8] sm:$0xff]  ;;  %1391 = vmatpush3.bf16.msra.mxu0 %v1390_v38  ;;  %v1394_v53 = vpack.c.bf16 %v160_v43, %v159_v39  ;;  %v1426_v54 = vpack.c.bf16 %v192_v46, %v191_v44  ;;  %v1396_v55 = vpack.c.bf16 %v178_v49, %v177_v48  ;;  %vm931_vm0 = vcmask 812032  }
  0x5a   :  { %v18_v33 = vld [vmem:[%s2390_s0 + $0x18] sm:$0xff]  ;;  %1393 = vmatprep.subr.bf16.mxu0 %v1392_v41  ;;  %v161_v56 = vld [vmem:[%s2391_s1 + $0x470] sm:$0xff]  ;;  %v1428_v58 = vpack.c.bf16 %v210_v51, %v209_v50  ;;  %v227_v60 = vld [vmem:[%s2391_s1 + $0x680] sm:$0xff] }
  0x5b   :  { %1423 = vmatpush3.bf16.msra.mxu1 %v1422_v40  ;;  %v162_v57 = vld [vmem:[%s2391_s1 + $0x478] sm:$0xff]  ;;  %v193_v45 = vld [vmem:[%s2391_s1 + $0x570] sm:$0xff]  ;;  %v228_v61 = vld [vmem:[%s2391_s1 + $0x688] sm:$0xff]  ;;  %v337_v0 = vcombine.high %v18_v33, %v18_v33  ;;  %v2197_v11 = vrot.slane %v18_v33, %v1702_v13 }
  0x5c   :  { %1425 = vmatprep.subr.bf16.mxu1 %v1424_v47  ;;  %v194_v59 = vld [vmem:[%s2391_s1 + $0x578] sm:$0xff]  ;;  %v259_v62 = vld [vmem:[%s2391_s1 + $0x780] sm:$0xff]  ;;  %v260_v63 = vld [vmem:[%s2391_s1 + $0x788] sm:$0xff]  ;;  %v1398_v1 = vpack.c.bf16 %v162_v57, %v161_v56  ;;  %v1432_v3 = vpack.c.bf16 %v228_v61, %v227_v60 }
  0x5d   :  { %1395 = vmatpush3.bf16.msra.mxu0 %v1394_v53  ;;  %v1430_v2 = vpack.c.bf16 %v194_v59, %v193_v45  ;;  %v211_v4 = vld [vmem:[%s2391_s1 + $0x600] sm:$0xff]  ;;  %v212_v5 = vld [vmem:[%s2391_s1 + $0x608] sm:$0xff]  ;;  %v1464_v7 = vpack.c.bf16 %v260_v63, %v259_v62  ;;  %v229_v9 = vld [vmem:[%s2391_s1 + $0x690] sm:$0xff]  ;;  %v2206_v15 = vrot.slane %v337_v0, %v1702_v13  ;;  %v352_v25 = vcombine.high %v2197_v11, %v2197_v11 }
  0x5e   :  { %1397 = vmatprep.subr.bf16.mxu0 %v1396_v55  ;;  %v243_v6 = vld [vmem:[%s2391_s1 + $0x700] sm:$0xff]  ;;  %v244_v8 = vld [vmem:[%s2391_s1 + $0x708] sm:$0xff]  ;;  %v230_v10 = vld [vmem:[%s2391_s1 + $0x698] sm:$0xff]  ;;  %v1434_v16 = vpack.c.bf16 %v212_v5, %v211_v4 }
  0x5f   :  { %1427 = vmatpush3.bf16.msra.mxu1 %v1426_v54  ;;  %v261_v12 = vld [vmem:[%s2391_s1 + $0x790] sm:$0xff]  ;;  %v262_v14 = vld [vmem:[%s2391_s1 + $0x798] sm:$0xff]  ;;  %v1466_v17 = vpack.c.bf16 %v244_v8, %v243_v6  ;;  %v1436_v18 = vpack.c.bf16 %v230_v10, %v229_v9  ;;  %v231_v23 = vld [vmem:[%s2391_s1 + $0x6a0] sm:$0xff]  ;;  %v353_v28 = vcombine.high %v2206_v15, %v2206_v15 }
  0x60   :  { %1429 = vmatprep.subr.bf16.mxu1 %v1428_v58  ;;  %v213_v19 = vld [vmem:[%s2391_s1 + $0x610] sm:$0xff]  ;;  %v214_v20 = vld [vmem:[%s2391_s1 + $0x618] sm:$0xff]  ;;  %v1468_v13 = vpack.c.bf16 %v262_v14, %v261_v12  ;;  %v232_v24 = vld [vmem:[%s2391_s1 + $0x6a8] sm:$0xff] }
  0x61   :  { %1399 = vmatpush3.bf16.msra.mxu0 %v1398_v1  ;;  %v245_v21 = vld [vmem:[%s2391_s1 + $0x710] sm:$0xff]  ;;  %v246_v22 = vld [vmem:[%s2391_s1 + $0x718] sm:$0xff]  ;;  %v263_v26 = vld [vmem:[%s2391_s1 + $0x7a0] sm:$0xff]  ;;  %v1438_v29 = vpack.c.bf16 %v214_v20, %v213_v19  ;;  %v1440_v31 = vpack.c.bf16 %v232_v24, %v231_v23 }
  0x62   :  { %1433 = vmatprep.subr.bf16.mxu0 %v1432_v3  ;;  %v264_v27 = vld [vmem:[%s2391_s1 + $0x7a8] sm:$0xff]  ;;  %v1470_v30 = vpack.c.bf16 %v246_v22, %v245_v21  ;;  %v247_v34 = vld [vmem:[%s2391_s1 + $0x720] sm:$0xff]  ;;  %v233_v36 = vld [vmem:[%s2391_s1 + $0x6b0] sm:$0xff] }
  0x63   :  { %1431 = vmatpush3.bf16.msra.mxu1 %v1430_v2  ;;  %v216_v32 = vld [vmem:[%s2391_s1 + $0x628] sm:$0xff]  ;;  %v1472_v35 = vpack.c.bf16 %v264_v27, %v263_v26  ;;  %v234_v37 = vld [vmem:[%s2391_s1 + $0x6b8] sm:$0xff]  ;;  %v265_v38 = vld [vmem:[%s2391_s1 + $0x7b0] sm:$0xff] }
  0x64   :  { %1465 = vmatprep.subr.bf16.mxu1 %v1464_v7  ;;  %715 = vmatmul.mubr.f32.vlgmr.msra.gmra.mrb[4].mxu0 %v2005_v42  ;;  %v215_v42 = vld [vmem:[%s2391_s1 + $0x620] sm:$0xff]  ;;  %v266_v39 = vld [vmem:[%s2391_s1 + $0x7b8] sm:$0xff]  ;;  %v1444_v43 = vpack.c.bf16 %v234_v37, %v233_v36  ;;  %v217_v44 = vld [vmem:[%s2391_s1 + $0x630] sm:$0xff] }
  0x65   :  { %1435 = vmatpush3.bf16.msra.mxu0 %v1434_v16  ;;  %854 = vmatprep.mubr.f32.mxu0 %v352_v25  ;;  %v1442_v40 = vpack.c.bf16 %v216_v32, %v215_v42  ;;  %v218_v46 = vld [vmem:[%s2391_s1 + $0x638] sm:$0xff]  ;;  %v249_v47 = vld [vmem:[%s2391_s1 + $0x730] sm:$0xff]  ;;  %v1476_v48 = vpack.c.bf16 %v266_v39, %v265_v38  ;;  %v235_v50 = vld [vmem:[%s2391_s1 + $0x6c0] sm:$0xff] }
  0x66   :  { %785 = vmatmul.mubr.f32.vlgmr.msra.gmra.mrb[4].mxu1 %v2026_v52  ;;  %1437 = vmatprep.subr.bf16.mxu0 %v1436_v18  ;;  %v248_v52 = vld [vmem:[%s2391_s1 + $0x728] sm:$0xff]  ;;  %v250_v49 = vld [vmem:[%s2391_s1 + $0x738] sm:$0xff]  ;;  %v267_v53 = vld [vmem:[%s2391_s1 + $0x7c0] sm:$0xff]  ;;  %v1446_v54 = vpack.c.bf16 %v218_v46, %v217_v44 }
  0x67   :  { %1467 = vmatpush3.bf16.msra.mxu1 %v1466_v17  ;;  %924 = vmatprep.mubr.f32.mxu1 %v353_v28  ;;  %v1474_v41 = vpack.c.bf16 %v248_v52, %v247_v34  ;;  %v236_v51 = vld [vmem:[%s2391_s1 + $0x6c8] sm:$0xff]  ;;  %v1478_v55 = vpack.c.bf16 %v250_v49, %v249_v47  ;;  %v219_v57 = vld [vmem:[%s2391_s1 + $0x640] sm:$0xff]  ;;  %v237_v61 = vld [vmem:[%s2391_s1 + $0x6d0] sm:$0xff] }
  0x68   :  { %1469 = vmatprep.subr.bf16.mxu1 %v1468_v13  ;;  %v268_v33 = vld [vmem:[%s2391_s1 + $0x7c8] sm:$0xff]  ;;  %v1448_v56 = vpack.c.bf16 %v236_v51, %v235_v50  ;;  %v251_v58 = vld [vmem:[%s2391_s1 + $0x740] sm:$0xff]  ;;  %v238_v62 = vld [vmem:[%s2391_s1 + $0x6d8] sm:$0xff] }
  0x69   :  { %1439 = vmatpush3.bf16.msra.mxu0 %v1438_v29  ;;  %v220_v45 = vld [vmem:[%s2391_s1 + $0x648] sm:$0xff]  ;;  %v1480_v59 = vpack.c.bf16 %v268_v33, %v267_v53  ;;  %v269_v63 = vld [vmem:[%s2391_s1 + $0x7d0] sm:$0xff]  ;;  %v270_v0 = vld [vmem:[%s2391_s1 + $0x7d8] sm:$0xff]  ;;  %v1452_v3 = vpack.c.bf16 %v238_v62, %v237_v61 }
  0x6a   :  { %1441 = vmatprep.subr.bf16.mxu0 %v1440_v31  ;;  %v252_v60 = vld [vmem:[%s2391_s1 + $0x748] sm:$0xff]  ;;  %v1450_v1 = vpack.c.bf16 %v220_v45, %v219_v57  ;;  %v221_v4 = vld [vmem:[%s2391_s1 + $0x650] sm:$0xff]  ;;  %v222_v5 = vld [vmem:[%s2391_s1 + $0x658] sm:$0xff]  ;;  %v1484_v7 = vpack.c.bf16 %v270_v0, %v269_v63 }
  0x6b   :  { %1471 = vmatpush3.bf16.msra.mxu1 %v1470_v30  ;;  %v1482_v2 = vpack.c.bf16 %v252_v60, %v251_v58  ;;  %v253_v6 = vld [vmem:[%s2391_s1 + $0x750] sm:$0xff]  ;;  %v254_v8 = vld [vmem:[%s2391_s1 + $0x758] sm:$0xff]  ;;  %v239_v9 = vld [vmem:[%s2391_s1 + $0x6e0] sm:$0xff]  ;;  %v1454_v16 = vpack.c.bf16 %v222_v5, %v221_v4 }
  0x6c   :  { %1473 = vmatprep.subr.bf16.mxu1 %v1472_v35  ;;  %v240_v10 = vld [vmem:[%s2391_s1 + $0x6e8] sm:$0xff]  ;;  %v271_v12 = vld [vmem:[%s2391_s1 + $0x7e0] sm:$0xff]  ;;  %v1486_v17 = vpack.c.bf16 %v254_v8, %v253_v6  ;;  %v241_v23 = vld [vmem:[%s2391_s1 + $0x6f0] sm:$0xff] }
  0x6d   :  { %1443 = vmatpush3.bf16.msra.mxu0 %v1442_v40  ;;  %v272_v14 = vld [vmem:[%s2391_s1 + $0x7e8] sm:$0xff]  ;;  %v1456_v18 = vpack.c.bf16 %v240_v10, %v239_v9  ;;  %v223_v19 = vld [vmem:[%s2391_s1 + $0x660] sm:$0xff]  ;;  %v242_v24 = vld [vmem:[%s2391_s1 + $0x6f8] sm:$0xff] }
  0x6e   :  { %1445 = vmatprep.subr.bf16.mxu0 %v1444_v43  ;;  %v224_v20 = vld [vmem:[%s2391_s1 + $0x668] sm:$0xff]  ;;  %v255_v21 = vld [vmem:[%s2391_s1 + $0x760] sm:$0xff]  ;;  %v1488_v13 = vpack.c.bf16 %v272_v14, %v271_v12  ;;  %v273_v25 = vld [vmem:[%s2391_s1 + $0x7f0] sm:$0xff]  ;;  %v1460_v29 = vpack.c.bf16 %v242_v24, %v241_v23 }
  0x6f   :  { %1475 = vmatpush3.bf16.msra.mxu1 %v1474_v41  ;;  %v256_v22 = vld [vmem:[%s2391_s1 + $0x768] sm:$0xff]  ;;  %v274_v26 = vld [vmem:[%s2391_s1 + $0x7f8] sm:$0xff]  ;;  %v1458_v27 = vpack.c.bf16 %v224_v20, %v223_v19  ;;  %v225_v30 = vld [vmem:[%s2391_s1 + $0x670] sm:$0xff] }
  0x70   :  { %1477 = vmatprep.subr.bf16.mxu1 %v1476_v48  ;;  %v1490_v28 = vpack.c.bf16 %v256_v22, %v255_v21  ;;  %v226_v31 = vld [vmem:[%s2391_s1 + $0x678] sm:$0xff]  ;;  %v1492_v42 = vpack.c.bf16 %v274_v26, %v273_v25  ;;  %v257_v32 = vld [vmem:[%s2391_s1 + $0x770] sm:$0xff]  ;;  %v959_v37 = vld [vmem:[%s2392_s2] ss:$0 sm:$0xff] }
  0x71   :  { %1447 = vmatpush3.bf16.msra.mxu0 %v1446_v54  ;;  %v258_v34 = vld [vmem:[%s2391_s1 + $0x778] sm:$0xff]  ;;  %v1462_v35 = vpack.c.bf16 %v226_v31, %v225_v30  ;;  %s1531_s1 = smov [#allocation2]  }
  0x72   :  { %1449 = vmatprep.subr.bf16.mxu0 %v1448_v56  ;;  %v1494_v52 = vpack.c.bf16 %v258_v34, %v257_v32  ;;  %s951_s2 = sshll.u32 %s1531_s1, 4  ;;  %s952_s2 = int_to_ptr.vmem [resolvable:$true] %s951_s2 }
  0x73   :  { %1479 = vmatpush3.bf16.msra.mxu1 %v1478_v55  ;;  %s1506_s16 = scalar_lea.vmem %s952_s2, 32  ;;  %p1511_p1 = scmp.lt.s32.totalorder %s952_s2, %s952_s2 }
  0x74   :  { %1481 = vmatprep.subr.bf16.mxu1 %v1480_v59  ;;  %p1507_p0 = scmp.ne.s32.totalorder %s952_s2, %s1506_s16  ;;  %p1512_p2 = scmp.lt.s32.totalorder %s1506_s16, %s1506_s16 }
  0x75   :  { %1451 = vmatpush3.bf16.msra.mxu0 %v1450_v1 }
  0x76   :  { %1453 = vmatprep.subr.bf16.mxu0 %v1452_v3  ;;  %p1513_p3 = por %p1512_p2, %p1511_p1 }
  0x77   :  { %1483 = vmatpush3.bf16.msra.mxu1 %v1482_v2 }
  0x78   :  { %1485 = vmatprep.subr.bf16.mxu1 %v1484_v7  ;;  %p1514_p4 = pnand %p1513_p3, %p1507_p0 }
  0x79   :  { %1455 = vmatpush3.bf16.msra.mxu0 %v1454_v16 }
  0x7a   :  { %1457 = vmatprep.subr.bf16.mxu0 %v1456_v18 }
  0x7b   :  { %1487 = vmatpush3.bf16.msra.mxu1 %v1486_v17 }
  0x7c   :  { %1489 = vmatprep.subr.bf16.mxu1 %v1488_v13 }
  0x7d   :  { %1459 = vmatpush3.bf16.msra.mxu0 %v1458_v27 }
  0x7e   :  { %1461 = vmatprep.subr.bf16.mxu0 %v1460_v29 }
  0x7f   :  { %1491 = vmatpush3.bf16.msra.mxu1 %v1490_v28 }
  0x80   :  { %1493 = vmatprep.subr.bf16.mxu1 %v1492_v42 }
  0x81   :  { %1463 = vmatpush3.bf16.msra.mxu0 %v1462_v35 }
  0x83   :  { %1495 = vmatpush3.bf16.msra.mxu1 %v1494_v52 }
  0x84   :  { %855 = vmatmul.mubr.f32.vlgmr.msra.gmra.mrb[6].mxu0 %v2197_v11 }
  0x86   :  { %925 = vmatmul.mubr.f32.vlgmr.msra.gmra.mrb[6].mxu1 %v2206_v15 }
  0xf7   :  { %v992_v36 = vpop.f32.mrb[0].mxu0 }
  0xf8   :  { %v993_v38 = vpop.f32.mrb[1].mxu0 }
  0xf9   :  { %v1027_v39 = vpop.f32.mrb[0].mxu1  ;;  %v994_v40 = vadd.f32 %v993_v38, %v992_v36 }
  0xfa   :  { %v1028_v41 = vpop.f32.mrb[1].mxu1 }
  0xfb   :  { %v1029_v43 = vadd.f32 %v1028_v41, %v1027_v39  ;;  %v437_v44 = vadd.f32 %v994_v40, %v959_v37 }
  0xfd   :  { %v507_v46 = vadd.f32 %v1029_v43, %v437_v44 }
 0x117   :  { %v1062_v47 = vpop.f32.mrb[2].mxu0 }
 0x118   :  { %v1063_v48 = vpop.f32.mrb[3].mxu0 }
 0x119   :  { %v1097_v49 = vpop.f32.mrb[2].mxu1  ;;  %v1064_v50 = vadd.f32 %v1063_v48, %v1062_v47 }
 0x11a   :  { %v1098_v51 = vpop.f32.mrb[3].mxu1 }
 0x11b   :  { %v1099_v11 = vadd.f32 %v1098_v51, %v1097_v49  ;;  %v577_v53 = vadd.f32 %v1064_v50, %v507_v46 }
 0x11d   :  { %v647_v15 = vadd.f32 %v1099_v11, %v577_v53 }
 0x137   :  { %v1132_v33 = vpop.f32.mrb[4].mxu0 }
 0x138   :  { %v1133_v54 = vpop.f32.mrb[5].mxu0 }
 0x139   :  { %v1167_v55 = vpop.f32.mrb[4].mxu1  ;;  %v1134_v56 = vadd.f32 %v1133_v54, %v1132_v33 }
 0x13a   :  { %v1168_v57 = vpop.f32.mrb[5].mxu1 }
 0x13b   :  { %v1169_v45 = vadd.f32 %v1168_v57, %v1167_v55  ;;  %v717_v58 = vadd.f32 %v1134_v56, %v647_v15 }
 0x13d   :  { %v787_v59 = vadd.f32 %v1169_v45, %v717_v58 }
 0x157   :  { %v1202_v60 = vpop.f32.mrb[6].mxu0 }
 0x158   :  { %v1203_v61 = vpop.f32.mrb[7].mxu0 }
 0x159   :  { %v1237_v62 = vpop.f32.mrb[6].mxu1  ;;  %v1204_v63 = vadd.f32 %v1203_v61, %v1202_v60 }
 0x15a   :  { %v1238_v0 = vpop.f32.mrb[7].mxu1 }
 0x15b   :  { %v1239_v1 = vadd.f32 %v1238_v0, %v1237_v62  ;;  %v857_v2 = vadd.f32 %v1204_v63, %v787_v59 }
 0x15d   :  { %v927_v3 = vadd.f32 %v1239_v1, %v857_v2 }
 0x15f   :  { %v930_v4 = vmax.f32 %v927_v3, 0.0 }
 0x161   :  { %v932_v5 = vsel %vm931_vm0, %v930_v4, -inf }
 0x162   :  { %933 = vmax.xlane.f32.xlu0 %v932_v5 }
 0x1ef   :  { %v934_v6 = vpop.xlane.xlu0 %933 }
 0x1f0   :  { %v935_v7 = vsub.f32 %v930_v4, %v934_v6 }
 0x1f2   :  { %v936_v8 = vmul.f32 1.442695, %v935_v7 }
 0x1f4   :  { %1502 = vpow2.f32 %v936_v8 }
 0x1fe   :  { %v1503_v9 = vpop.eup %1502 }
 0x1ff   :  { %v938_v10 = vsel %vm931_vm0, %v1503_v9, 0.0 }
 0x200   :  { %939 = vadd.xlane.f32.xlu0 %v938_v10 }
 0x28d   :  { %v940_v12 = vpop.xlane.xlu0 %939 }
 0x28e   :  { %1504 = vlog2.f32 %v940_v12 }
 0x298   :  { %v1505_v14 = vpop.eup %1504 }
 0x299   :  { %v942_v16 = vmul.f32 0.6931472, %v1505_v14 }
 0x29b   :  { %v943_v17 = vsub.f32 %v935_v7, %v942_v16 }
 0x29d   :  { %944 = vst.msk [vmem:[#allocation2] sm:$0x3] %vm931_vm0, %v943_v17 }
 0x29e   :  { %1517 = shalt.err (!%p1514_p4)
}
 0x29f   :  { %s1518_s19 = scalar_lea.hbm %s2393_s3, 32 }
 0x2a0   :  { %p1519_p5 = scmp.ne.s32.totalorder %s2393_s3, %s1518_s19  ;;  %p1522_p6 = scmp.lt.u32.totalorder %s1518_s19, %s2393_s3 }
 0x2a2   :  { %p1524_p7 = pnand %p1522_p6, %p1519_p5 }
 0x2a4   :  { %1527 = shalt.err (!%p1524_p7)
}
 0x2a5   :  { %954 = dma.vmem_to_hbm [thread:$0]  %s952_s2, 32, %s2393_s3, [#allocation3]  }
 0x2a6   :  { %1528 = dma.done.wait [#allocation3], 32  }
 0x2a7   :  { %1529 = vsyncadd [#allocation3], 4294967264 }
 0x2a8   :  { %958 = vsyncpa [#allocation3], 1 }

// kernel: net_forward.2
= control target key start
LH: loop header
LB: loop body
LE: loop exit
PB: predicated region body
PF: predicated region fallthrough
CT: control target
= control target key end

     0   :  { %8 = vsyncpa [#allocation4], 0  ;;  %s9838_s0 = inlined_call_operand.vmem [shape: f32[2,30720], index: 0, kind: input, shape index: {}]   ;;  %s9839_s1 = inlined_call_operand.hbm [shape: f32[2,30720,1024], index: 1, kind: input, shape index: {}]   ;;  %s9840_s2 = inlined_call_operand.hbm [shape: f32[1,2048], index: 2, kind: input, shape index: {}]   ;;  %s9841_s3 = inlined_call_operand.vmem [shape: f32[2,2048], index: 3, kind: output, shape index: {}]  }
   0x1   :  { %10 = vsyncpa [#allocation4 + $0x1], 0 }
   0x2   :  { %11 = vsyncpa [#allocation6], 0 }
   0x3   :  { %13 = vsyncpa [#allocation6 + $0x1], 0  ;;  %s7357_s12 = smov 0   ;;  %s7359_s13 = smov 0  }
   0x4   :  { %s7361_s14 = smov 0   ;;  %s7363_s15 = smov 0  }
   0x5   :  { %s7365_s16 = smov 0   ;;  %s7367_s17 = smov 0  }
   0x6   :  { %s7369_s18 = smov 0   ;;  %s7371_s19 = smov 0  }
   0x7   :  { %s7373_s20 = smov 0   ;;  %s7375_s21 = smov 0  }
   0x8   :  { %s7377_s22 = smov 0  }
   0x9 LB: > { %9849 = sst [smem:[#allocation9_spill]] %s7321_s20  ;;  %s28_s23 = sadd.s32 1, %s7321_s20  ;;  %s7329_s22 = sphi %s7377_s22, %s19_s22   ;;  %s7325_s21 = sphi %s7375_s21, %s9872_s21   ;;  %s7321_s20 = sphi %s7373_s20, %s9863_s20   ;;  %s7317_s19 = sphi %s7371_s19, %s9871_s19   ;;  %s7313_s18 = sphi %s7369_s18, %s9862_s18   ;;  %s7309_s17 = sphi %s7367_s17, %s9870_s17   ;;  %s7305_s16 = sphi %s7365_s16, %s9869_s16   ;;  %s7301_s15 = sphi %s7363_s15, %s9868_s15   ;;  %s7297_s14 = sphi %s7361_s14, %s9867_s14   ;;  %s7293_s13 = sphi %s7359_s13, %s9866_s13   ;;  %s7289_s12 = sphi %s7357_s12, %s9865_s12  }
   0xa   : > { %s31_s24 = sadd.s32 1, %s7325_s21  ;;  %p29_p0 = scmp.ge.s32.totalorder %s28_s23, 15 }
   0xb   : > { %s66_s25 = sadd.s32 1, %s7309_s17  ;;  %p73_p1 = scmp.ne.s32.totalorder %s7309_s17, %s7305_s16 }
   0xc   : > { %p9846_p2 = scmp.eq.s32.totalorder %s7329_s22, 0  ;;  %s9874_s23 = smov (%p29_p0, %s28_s23), 0 }
   0xd   : > { %9850 = sst [smem:[#allocation10_spill]] %s9874_s23  ;;  %s9876_s24 = smov (!%p29_p0, %s31_s24), %s7325_s21 }
   0xe   : > { %s62_s26 = ssub.s32 %s7321_s20, %s9874_s23  ;;  %p7425_p3 = por %p9846_p2, %p73_p1 }
   0xf   : > { %p33_p4 = scmp.ge.s32.totalorder %s9876_s24, 2  ;;  %p79_p5 = scmp.ne.s32.totalorder %s7305_s16, %s7301_s15 }
  0x10   : > { %p9845_p6 = scmp.lt.s32.totalorder %s7329_s22, 30  ;;  %s164_s28 = sand.u32 1, %s7309_s17  }
  0x11   : > { %s9878_s24 = smov (%p33_p4, %s9876_s24), 0  ;;  %s4960_s29 = sshll.u32 %s7321_s20, 11 }
  0x12   : > { %9852 = sst [smem:[#allocation11_spill]] %s9878_s24  ;;  %s7438_s30 = ssub.s32 %s7325_s21, %s9878_s24 }
  0x13   : > { %s63_s4 = sor.u32 %s62_s26, %s7438_s30  ;;  %s4942_s5 = sshll.u32 %s164_s28, 14 }
  0x14   : > { %p64_p7 = scmp.eq.s32.totalorder %s63_s4, 0  ;;  %s7066_s6 = smul.u32 30720, %s7325_s21 }
  0x15   : > { %s168_s7 = scalar_lea.vmem [#allocation3], %s4942_s5  ;;  %p7451_p8 = pnand %p9845_p6, %p7425_p3 }
  0x16   : > { %s178_s8 = sshll.u32 %s168_s7, 4  ;;  %s175_s10 = sadd.s32 %s7066_s6, %s4960_s29  ;;  %s7445_s8 = int_to_ptr.vmem [resolvable:$true] %s178_s8 }
  0x17   : > { %s7443_s9 = scalar_select %p64_p7, %s7309_s17, %s66_s25  }
  0x18   : > { %s4945_s11 = sshll.u32 %s175_s10, 7  ;;  %s7460_s25 = scalar_lea.sflag [#allocation4], %s164_s28 }
  0x19   : > { %s7458_s26 = scalar_lea.hbm %s9839_s1, %s4945_s11  ;;  %p7177_p10 = pneg %p7451_p8 }
  0x1a   : > { %s7175_s29 = scalar_lea.hbm %s7458_s26, 262144  ;;  %s7180_s24 = scalar_lea.hbm %s9839_s1, 7864320 }
  0x1b   : > { %p7176_p9 = scmp.ne.s32.totalorder %s7458_s26, %s7175_s29  ;;  %p7181_p13 = scmp.lt.u32.totalorder %s7458_s26, %s9839_s1 }
  0x1c   : > { %p7182_p0 = scmp.lt.u32.totalorder %s7180_s24, %s7175_s29  ;;  %p7184_p3 = scmp.lt.u32.totalorder %s7175_s29, %s7458_s26 }
  0x1d   : > { %p7178_p11 = pnand %p7177_p10, %p7176_p9 }
  0x1e   : > { %p7183_p1 = por %p7182_p0, %p7181_p13 }
  0x1f   : > { %p7179_p12 = pneg %p7178_p11 }
  0x20   : > { %p7185_p4 = por %p7184_p3, %p7183_p1 }
  0x22   : > { %p7186_p7 = pnand %p7185_p4, %p7179_p12 }
  0x24   : > { %7189 = shalt.err (!%p7186_p7)
}
  0x25   : > { %s7190_s28 = scalar_lea.vmem %s7445_s8, 262144  ;;  %s7331_s6 = smov [#allocation3]  }
  0x26   : > { %p7191_p9 = scmp.ne.s32.totalorder %s7445_s8, %s7190_s28  ;;  %s7195_s7 = sshll.u32 %s7331_s6, 4  ;;  %s7196_s7 = int_to_ptr.vmem [resolvable:$false] %s7195_s7 }
  0x27   : > { %s7197_s10 = scalar_lea.vmem %s7196_s7, 524288  ;;  %p7198_p2 = scmp.lt.s32.totalorder %s7445_s8, %s7196_s7 }
  0x28   : > { %p7193_p11 = pnand %p7191_p9, %p7177_p10  ;;  %p7199_p13 = scmp.lt.s32.totalorder %s7197_s10, %s7190_s28 }
  0x2a   : > { %p7194_p6 = pneg %p7193_p11  ;;  %p7200_p0 = por %p7199_p13, %p7198_p2 }
  0x2c   : > { %p7201_p1 = pnand %p7200_p0, %p7194_p6 }
  0x2e   : > { %7204 = shalt.err (!%p7201_p1)
}
  0x2f   : > { %s7332_s11 = smov 1024   ;;  %s7333_s29 = smov 64  }
  0x30   : > { %7074 = dma.hbm_to_vmem [thread:$0]  (!%p7451_p8), %s7458_s26, 262144, %s7445_s8, %s7460_s25, %s7332_s11, %s7332_s11, %s7333_s29  }
  0x31   : > { %p4949_p2 = scmp.ge.s32.totalorder %s7329_s22, 1  ;;  %p205_p6 = scmp.lt.s32.totalorder %s7329_s22, 31 }
  0x32   : > { %s4938_s20 = sadd.s32 4294967295, %s7329_s22   ;;  %p90_p3 = scmp.eq.s32.totalorder %s7438_s30, 0 }
  0x33   : > { %p7490_p10 = pnand %p4949_p2, %p205_p6  ;;  %p80_p12 = scmp.eq.s32.totalorder %s4938_s20, 0 }
  0x34   : > { %s92_s24 = sadd.s32 1, %s7297_s14  ;;  %p99_p4 = scmp.ne.s32.totalorder %s7297_s14, %s7293_s13 }
  0x35   : > { %p7502_p7 = por %p80_p12, %p79_p5  ;;  %p105_p9 = scmp.ne.s32.totalorder %s7293_s13, %s7289_s12 }
  0x36   : > { %s7509_s23 = scalar_select %p90_p3, %s7297_s14, %s92_s24  }
  0x37   : > { %s9855_s4 = scalar_select %p7502_p7, 1, 0 }
  0x38   : > { %p9856_p8 = scmp.eq.s32.totalorder %s7329_s22, 0  ;;  %p7513_p13 = por %p105_p9, %p80_p12 }
  0x39   : > { %s188_s26 = sand.u32 1, %s7297_s14   ;;  %s4961_s25 = sshll.u32 %s7325_s21, 7 }
  0x3a   : > { %p101_p11 = por %p99_p4, %p9856_p8  ;;  %s4946_s5 = sshll.u32 %s188_s26, 3 }
  0x3b   : > { %s9857_s8 = scalar_select %p7513_p13, 1, 0 }
  0x3c   : > { %s7522_s15 = scalar_lea.hbm %s9840_s2, %s4961_s25  ;;  %s192_s12 = scalar_lea.vmem [#allocation5], %s4946_s5 }
  0x3d   : > { %s200_s6 = sshll.u32 %s192_s12, 4  ;;  %p9858_p5 = scmp.lt.s32.totalorder %s7329_s22, 30  ;;  %s7530_s6 = int_to_ptr.vmem [resolvable:$true] %s200_s6 }
  0x3e   : > { %s189_s10 = scalar_lea.sflag [#allocation6], %s188_s26  ;;  %s7205_s11 = scalar_lea.hbm %s7522_s15, 128 }
  0x3f   : > { %p7526_p0 = pnand %p9858_p5, %p101_p11  ;;  %p7206_p1 = scmp.ne.s32.totalorder %s7522_s15, %s7205_s11 }
  0x40   : > { %s7210_s24 = scalar_lea.hbm %s9840_s2, 256  ;;  %p7211_p3 = scmp.lt.u32.totalorder %s7522_s15, %s9840_s2 }
  0x41   : > { %p7207_p2 = pneg %p7526_p0  ;;  %p7212_p4 = scmp.lt.u32.totalorder %s7210_s24, %s7205_s11 }
  0x42   : > { %p7214_p8 = scmp.lt.u32.totalorder %s7205_s11, %s7522_s15 }
  0x43   : > { %p7208_p6 = pnand %p7207_p2, %p7206_p1  ;;  %p7213_p9 = por %p7212_p4, %p7211_p3 }
  0x45   : > { %p7209_p12 = pneg %p7208_p6  ;;  %p7215_p11 = por %p7214_p8, %p7213_p9 }
  0x47   : > { %p7216_p5 = pnand %p7215_p11, %p7209_p12 }
  0x49   : > { %7219 = shalt.err (!%p7216_p5)
}
  0x4a   : > { %s7220_s26 = scalar_lea.vmem %s7530_s6, 128  ;;  %s7334_s30 = smov [#allocation5]  }
  0x4b   : > { %p7221_p1 = scmp.ne.s32.totalorder %s7530_s6, %s7220_s26  ;;  %s7225_s28 = sshll.u32 %s7334_s30, 4  ;;  %s7226_s28 = int_to_ptr.vmem [resolvable:$false] %s7225_s28 }
  0x4c   : > { %s7227_s12 = scalar_lea.vmem %s7226_s28, 256  ;;  %p7228_p7 = scmp.lt.s32.totalorder %s7530_s6, %s7226_s28 }
  0x4d   : > { %p7223_p6 = pnand %p7221_p1, %p7207_p2  ;;  %p7229_p3 = scmp.lt.s32.totalorder %s7227_s12, %s7220_s26 }
  0x4f   : > { %p7224_p13 = pneg %p7223_p6  ;;  %p7230_p4 = por %p7229_p3, %p7228_p7 }
  0x51   : > { %p7231_p9 = pnand %p7230_p4, %p7224_p13 }
  0x53   : > { %7234 = shalt.err (!%p7231_p9)
}
  0x54   : > { %7077 = dma.hbm_to_vmem [thread:$0]  (!%p7526_p0), %s7522_s15, 128, %s7530_s6, %s189_s10  }
  0x55   : > { %209 = sbr.rel (%p7490_p10) target bundleno = 1373 (0x55d), region = 32  ;;  %s211_s11 = sand.u32 (!%p7490_p10), 1, %s7305_s16  }
  0x56   : > { %s4950_s29 = sshll.u32 (!%p7490_p10), %s211_s11, 14  ;;  %s212_s20 = scalar_lea.sflag (!%p7490_p10), [#allocation4], %s211_s11 }
  0x57   : > { %s7560_s24 = scalar_lea.vmem (!%p7490_p10), [#allocation3], %s4950_s29  ;;  %p9860_p2 = scmp.ne.s32.totalorder (!%p7490_p10), %s9855_s4, 0 }
  0x5c   : > { %7280 = dma.done.wait (%p9860_p2), %s212_s20, 262144  }
  0x5d   : > { %7282 = vsyncadd (%p9860_p2), %s212_s20, 4294705152  ;;  %s220_s7 = sand.u32 1, %s7293_s13   ;;  %p9861_p10 = scmp.ne.s32.totalorder %s9857_s8, 0 }
  0x5e   : > { %s7567_s25 = sshll.u32 %s220_s7, 3  ;;  %s221_s27 = scalar_lea.sflag [#allocation6], %s220_s7 }
  0x5f   : > { %s224_s15 = scalar_lea.vmem [#allocation5], %s7567_s25 }
  0x60   : > { %7284 = dma.done.wait (%p9861_p10), %s221_s27, 128  }
  0x61   : > { %7286 = vsyncadd (%p9861_p10), %s221_s27, 4294967168  ;;  %s4952_s6 = sshll.u32 %s7313_s18, 4  ;;  %s4954_s10 = sshll.u32 %s7317_s19, 3 }
  0x62   : > { %p258_p7 = scmp.lt.s32.totalorder %s4952_s6, 239  ;;  %p266_p13 = scmp.lt.s32.totalorder %s4954_s10, 15 }
  0x63   : > { %p4956_p0 = scmp.ne.s32.totalorder %s7313_s18, 0 }
  0x64   : > { %s9880_s6 = smov (!%p258_p7, %s4952_s6), 239  ;;  %s9882_s10 = smov (!%p266_p13, %s4954_s10), 15 }
  0x65   : > { %s4953_s4 = sshll.u32 %s9880_s6, 1  ;;  %s4955_s28 = sshll.u32 %s9882_s10, 1  ;;  %v7335_v0 = vmov (!%p4956_p0), 0.0  }
  0x66   : > { %s7579_s30 = scalar_lea.vmem %s9838_s0, %s4953_s4  ;;  %s7584_s8 = scalar_lea.vmem %s9841_s3, %s4955_s28  ;;  %275 = vst [vmem:[#allocation2] sm:$0xff] (!%p4956_p0), %v7335_v0  ;;  %276 = vst [vmem:[#allocation2 + $0x8] sm:$0xff] (!%p4956_p0), %v7335_v0 }
  0x67   : > { %274 = sbr.rel (%p4956_p0) target bundleno = 110 (0x6e), region = 44 }
  0x6e PF: > { %v284_v1 = vld [vmem:[%s7560_s24 + $0x8] sm:$0xff]  ;;  %v286_v3 = vld [vmem:[%s7560_s24 + $0x18] sm:$0xff]  ;;  %v283_v6 = vld [vmem:[%s7560_s24] sm:$0xff]  ;;  %p4957_p12 = scmp.ne.s32.totalorder %s7313_s18, 14 }
  0x6f   : > { %v292_v2 = vld [vmem:[%s7560_s24 + $0x48] sm:$0xff]  ;;  %v294_v5 = vld [vmem:[%s7560_s24 + $0x58] sm:$0xff]  ;;  %v291_v7 = vld [vmem:[%s7560_s24 + $0x40] sm:$0xff] }
  0x70   : > { %v4962_v4 = vpack.c.bf16 %v292_v2, %v284_v1  ;;  %v5474_v8 = vpack.c.bf16 %v294_v5, %v286_v3  ;;  %v4964_v9 = vpack.c.bf16 %v291_v7, %v283_v6  ;;  %v285_v10 = vld [vmem:[%s7560_s24 + $0x10] sm:$0xff]  ;;  %v300_v12 = vld [vmem:[%s7560_s24 + $0x88] sm:$0xff]  ;;  %v302_v15 = vld [vmem:[%s7560_s24 + $0x98] sm:$0xff] }
  0x71   : > { %v293_v11 = vld [vmem:[%s7560_s24 + $0x50] sm:$0xff]  ;;  %v308_v14 = vld [vmem:[%s7560_s24 + $0xc8] sm:$0xff]  ;;  %v310_v16 = vld [vmem:[%s7560_s24 + $0xd8] sm:$0xff] }
  0x72   : > { %4963 = vmatprep.subr.bf16.mxu0 %v4962_v4  ;;  %v5476_v13 = vpack.c.bf16 %v293_v11, %v285_v10  ;;  %5475 = vmatprep.subr.bf16.mxu1 %v5474_v8  ;;  %v4966_v17 = vpack.c.bf16 %v308_v14, %v300_v12  ;;  %v5478_v18 = vpack.c.bf16 %v310_v16, %v302_v15  ;;  %v299_v19 = vld [vmem:[%s7560_s24 + $0x80] sm:$0xff]  ;;  %v301_v21 = vld [vmem:[%s7560_s24 + $0x90] sm:$0xff]  ;;  %v316_v24 = vld [vmem:[%s7560_s24 + $0x108] sm:$0xff] }
  0x73   : > { %4965 = vmatpush1.bf16.msra.mxu0 %v4964_v9  ;;  %v307_v20 = vld [vmem:[%s7560_s24 + $0xc0] sm:$0xff]  ;;  %v309_v23 = vld [vmem:[%s7560_s24 + $0xd0] sm:$0xff]  ;;  %v324_v25 = vld [vmem:[%s7560_s24 + $0x148] sm:$0xff] }
  0x74   : > { %5477 = vmatpush1.bf16.msra.mxu1 %v5476_v13  ;;  %v4968_v22 = vpack.c.bf16 %v307_v20, %v299_v19  ;;  %4967 = vmatprep.subr.bf16.mxu0 %v4966_v17  ;;  %v5480_v26 = vpack.c.bf16 %v309_v23, %v301_v21  ;;  %v4970_v27 = vpack.c.bf16 %v324_v25, %v316_v24  ;;  %v318_v28 = vld [vmem:[%s7560_s24 + $0x118] sm:$0xff]  ;;  %v315_v30 = vld [vmem:[%s7560_s24 + $0x100] sm:$0xff]  ;;  %v317_v33 = vld [vmem:[%s7560_s24 + $0x110] sm:$0xff] }
  0x75   : > { %5479 = vmatprep.subr.bf16.mxu1 %v5478_v18  ;;  %v326_v29 = vld [vmem:[%s7560_s24 + $0x158] sm:$0xff]  ;;  %v323_v32 = vld [vmem:[%s7560_s24 + $0x140] sm:$0xff]  ;;  %v325_v34 = vld [vmem:[%s7560_s24 + $0x150] sm:$0xff] }
  0x76   : > { %v5482_v31 = vpack.c.bf16 %v326_v29, %v318_v28  ;;  %v4972_v35 = vpack.c.bf16 %v323_v32, %v315_v30  ;;  %v332_v36 = vld [vmem:[%s7560_s24 + $0x188] sm:$0xff]  ;;  %v334_v38 = vld [vmem:[%s7560_s24 + $0x198] sm:$0xff]  ;;  %v5484_v39 = vpack.c.bf16 %v325_v34, %v317_v33  ;;  %v331_v42 = vld [vmem:[%s7560_s24 + $0x180] sm:$0xff] }
  0x77   : > { %4969 = vmatpush1.bf16.msra.mxu0 %v4968_v22  ;;  %v340_v37 = vld [vmem:[%s7560_s24 + $0x1c8] sm:$0xff]  ;;  %v342_v41 = vld [vmem:[%s7560_s24 + $0x1d8] sm:$0xff]  ;;  %v339_v43 = vld [vmem:[%s7560_s24 + $0x1c0] sm:$0xff] }
  0x78   : > { %5481 = vmatpush1.bf16.msra.mxu1 %v5480_v26  ;;  %4971 = vmatprep.subr.bf16.mxu0 %v4970_v27  ;;  %v4974_v40 = vpack.c.bf16 %v340_v37, %v332_v36  ;;  %v5486_v44 = vpack.c.bf16 %v342_v41, %v334_v38  ;;  %v333_v45 = vld [vmem:[%s7560_s24 + $0x190] sm:$0xff]  ;;  %v348_v47 = vld [vmem:[%s7560_s24 + $0x208] sm:$0xff]  ;;  %v350_v49 = vld [vmem:[%s7560_s24 + $0x218] sm:$0xff]  ;;  %v4976_v51 = vpack.c.bf16 %v339_v43, %v331_v42 }
  0x79   : > { %5483 = vmatprep.subr.bf16.mxu1 %v5482_v31  ;;  %v341_v46 = vld [vmem:[%s7560_s24 + $0x1d0] sm:$0xff]  ;;  %v356_v48 = vld [vmem:[%s7560_s24 + $0x248] sm:$0xff]  ;;  %v358_v50 = vld [vmem:[%s7560_s24 + $0x258] sm:$0xff] }
  0x7a   : > { %v5488_v52 = vpack.c.bf16 %v341_v46, %v333_v45  ;;  %v4978_v53 = vpack.c.bf16 %v356_v48, %v348_v47  ;;  %v347_v54 = vld [vmem:[%s7560_s24 + $0x200] sm:$0xff]  ;;  %v349_v56 = vld [vmem:[%s7560_s24 + $0x210] sm:$0xff]  ;;  %v5490_v57 = vpack.c.bf16 %v358_v50, %v350_v49  ;;  %v364_v59 = vld [vmem:[%s7560_s24 + $0x288] sm:$0xff]  ;;  %v7336_v47 = vmov 1983009808  }
  0x7b   : > { %4973 = vmatpush1.bf16.msra.mxu0 %v4972_v35  ;;  %v355_v55 = vld [vmem:[%s7560_s24 + $0x240] sm:$0xff]  ;;  %v357_v58 = vld [vmem:[%s7560_s24 + $0x250] sm:$0xff]  ;;  %v372_v60 = vld [vmem:[%s7560_s24 + $0x2c8] sm:$0xff]  ;;  %v2337_v48 = vunpack.c.l.s4 %v7336_v47  ;;  %v2339_v49 = vlaneseq }
  0x7c   : > { %5485 = vmatpush1.bf16.msra.mxu1 %v5484_v39  ;;  %4975 = vmatprep.subr.bf16.mxu0 %v4974_v40  ;;  %v366_v61 = vld [vmem:[%s7560_s24 + $0x298] sm:$0xff]  ;;  %v4980_v63 = vpack.c.bf16 %v355_v55, %v347_v54  ;;  %v5492_v0 = vpack.c.bf16 %v357_v58, %v349_v56  ;;  %v4982_v1 = vpack.c.bf16 %v372_v60, %v364_v59  ;;  %v363_v2 = vld [vmem:[%s7560_s24 + $0x280] sm:$0xff]  ;;  %v365_v4 = vld [vmem:[%s7560_s24 + $0x290] sm:$0xff] }
  0x7d   : > { %5487 = vmatprep.subr.bf16.mxu1 %v5486_v44  ;;  %v374_v62 = vld [vmem:[%s7560_s24 + $0x2d8] sm:$0xff]  ;;  %v371_v3 = vld [vmem:[%s7560_s24 + $0x2c0] sm:$0xff]  ;;  %v373_v6 = vld [vmem:[%s7560_s24 + $0x2d0] sm:$0xff] }
  0x7e   : > { %v5494_v5 = vpack.c.bf16 %v374_v62, %v366_v61  ;;  %v380_v7 = vld [vmem:[%s7560_s24 + $0x308] sm:$0xff]  ;;  %v382_v9 = vld [vmem:[%s7560_s24 + $0x318] sm:$0xff]  ;;  %v4984_v11 = vpack.c.bf16 %v371_v3, %v363_v2  ;;  %v5496_v12 = vpack.c.bf16 %v373_v6, %v365_v4  ;;  %v379_v14 = vld [vmem:[%s7560_s24 + $0x300] sm:$0xff]  ;;  %v2338_v62 = vunpack.c.0.s8 %v2337_v48 }
  0x7f   : > { %4977 = vmatpush1.bf16.msra.mxu0 %v4976_v51  ;;  %v388_v8 = vld [vmem:[%s7560_s24 + $0x348] sm:$0xff]  ;;  %v390_v10 = vld [vmem:[%s7560_s24 + $0x358] sm:$0xff]  ;;  %v387_v15 = vld [vmem:[%s7560_s24 + $0x340] sm:$0xff] }
  0x80   : > { %5489 = vmatpush1.bf16.msra.mxu1 %v5488_v52  ;;  %4979 = vmatprep.subr.bf16.mxu0 %v4978_v53  ;;  %v4986_v13 = vpack.c.bf16 %v388_v8, %v380_v7  ;;  %v381_v16 = vld [vmem:[%s7560_s24 + $0x310] sm:$0xff]  ;;  %v5498_v17 = vpack.c.bf16 %v390_v10, %v382_v9  ;;  %v396_v19 = vld [vmem:[%s7560_s24 + $0x388] sm:$0xff]  ;;  %v398_v21 = vld [vmem:[%s7560_s24 + $0x398] sm:$0xff]  ;;  %v4988_v23 = vpack.c.bf16 %v387_v15, %v379_v14 }
  0x81   : > { %5491 = vmatprep.subr.bf16.mxu1 %v5490_v57  ;;  %v389_v18 = vld [vmem:[%s7560_s24 + $0x350] sm:$0xff]  ;;  %v404_v20 = vld [vmem:[%s7560_s24 + $0x3c8] sm:$0xff]  ;;  %v406_v22 = vld [vmem:[%s7560_s24 + $0x3d8] sm:$0xff] }
  0x82   : > { %v5500_v24 = vpack.c.bf16 %v389_v18, %v381_v16  ;;  %v4990_v25 = vpack.c.bf16 %v404_v20, %v396_v19  ;;  %v395_v26 = vld [vmem:[%s7560_s24 + $0x380] sm:$0xff]  ;;  %v397_v28 = vld [vmem:[%s7560_s24 + $0x390] sm:$0xff]  ;;  %v5502_v29 = vpack.c.bf16 %v406_v22, %v398_v21  ;;  %v412_v31 = vld [vmem:[%s7560_s24 + $0x408] sm:$0xff] }
  0x83   : > { %4981 = vmatpush1.bf16.msra.mxu0 %v4980_v63  ;;  %v403_v27 = vld [vmem:[%s7560_s24 + $0x3c0] sm:$0xff]  ;;  %v405_v30 = vld [vmem:[%s7560_s24 + $0x3d0] sm:$0xff]  ;;  %v420_v32 = vld [vmem:[%s7560_s24 + $0x448] sm:$0xff]  ;;  %v7671_v63 = vshrl.u32 %v2339_v49, 7 }
  0x84   : > { %5493 = vmatpush1.bf16.msra.mxu1 %v5492_v0  ;;  %4983 = vmatprep.subr.bf16.mxu0 %v4982_v1  ;;  %v414_v33 = vld [vmem:[%s7560_s24 + $0x418] sm:$0xff]  ;;  %v4992_v35 = vpack.c.bf16 %v403_v27, %v395_v26  ;;  %v5504_v36 = vpack.c.bf16 %v405_v30, %v397_v28  ;;  %v4994_v37 = vpack.c.bf16 %v420_v32, %v412_v31  ;;  %v411_v38 = vld [vmem:[%s7560_s24 + $0x400] sm:$0xff]  ;;  %v413_v40 = vld [vmem:[%s7560_s24 + $0x410] sm:$0xff] }
  0x85   : > { %5495 = vmatprep.subr.bf16.mxu1 %v5494_v5  ;;  %v422_v34 = vld [vmem:[%s7560_s24 + $0x458] sm:$0xff]  ;;  %v419_v39 = vld [vmem:[%s7560_s24 + $0x440] sm:$0xff]  ;;  %v421_v42 = vld [vmem:[%s7560_s24 + $0x450] sm:$0xff] }
  0x86   : > { %v5506_v41 = vpack.c.bf16 %v422_v34, %v414_v33  ;;  %v428_v43 = vld [vmem:[%s7560_s24 + $0x488] sm:$0xff]  ;;  %v430_v45 = vld [vmem:[%s7560_s24 + $0x498] sm:$0xff]  ;;  %v4996_v50 = vpack.c.bf16 %v419_v39, %v411_v38  ;;  %v5508_v51 = vpack.c.bf16 %v421_v42, %v413_v40  ;;  %v427_v53 = vld [vmem:[%s7560_s24 + $0x480] sm:$0xff] }
  0x87   : > { %4985 = vmatpush1.bf16.msra.mxu0 %v4984_v11  ;;  %v436_v44 = vld [vmem:[%s7560_s24 + $0x4c8] sm:$0xff]  ;;  %v438_v46 = vld [vmem:[%s7560_s24 + $0x4d8] sm:$0xff]  ;;  %v435_v54 = vld [vmem:[%s7560_s24 + $0x4c0] sm:$0xff] }
  0x88   : > { %5497 = vmatpush1.bf16.msra.mxu1 %v5496_v12  ;;  %4987 = vmatprep.subr.bf16.mxu0 %v4986_v13  ;;  %v4998_v52 = vpack.c.bf16 %v436_v44, %v428_v43  ;;  %v429_v55 = vld [vmem:[%s7560_s24 + $0x490] sm:$0xff]  ;;  %v5510_v56 = vpack.c.bf16 %v438_v46, %v430_v45  ;;  %v444_v58 = vld [vmem:[%s7560_s24 + $0x508] sm:$0xff]  ;;  %v446_v60 = vld [vmem:[%s7560_s24 + $0x518] sm:$0xff]  ;;  %v5000_v0 = vpack.c.bf16 %v435_v54, %v427_v53 }
  0x89   : > { %5499 = vmatprep.subr.bf16.mxu1 %v5498_v17  ;;  %v437_v57 = vld [vmem:[%s7560_s24 + $0x4d0] sm:$0xff]  ;;  %v452_v59 = vld [vmem:[%s7560_s24 + $0x548] sm:$0xff]  ;;  %v454_v61 = vld [vmem:[%s7560_s24 + $0x558] sm:$0xff]  ;;  %v7682_v12 = vsub.s32 %v2338_v62, %v7671_v63 }
  0x8a   : > { %v5512_v1 = vpack.c.bf16 %v437_v57, %v429_v55  ;;  %v5002_v2 = vpack.c.bf16 %v452_v59, %v444_v58  ;;  %v443_v3 = vld [vmem:[%s7560_s24 + $0x500] sm:$0xff]  ;;  %v445_v5 = vld [vmem:[%s7560_s24 + $0x510] sm:$0xff]  ;;  %v5514_v6 = vpack.c.bf16 %v454_v61, %v446_v60  ;;  %v460_v8 = vld [vmem:[%s7560_s24 + $0x588] sm:$0xff] }
  0x8b   : > { %4989 = vmatpush1.bf16.msra.mxu0 %v4988_v23  ;;  %v451_v4 = vld [vmem:[%s7560_s24 + $0x540] sm:$0xff]  ;;  %v453_v7 = vld [vmem:[%s7560_s24 + $0x550] sm:$0xff]  ;;  %v468_v9 = vld [vmem:[%s7560_s24 + $0x5c8] sm:$0xff] }
  0x8c   : > { %5501 = vmatpush1.bf16.msra.mxu1 %v5500_v24  ;;  %4991 = vmatprep.subr.bf16.mxu0 %v4990_v25  ;;  %v462_v10 = vld [vmem:[%s7560_s24 + $0x598] sm:$0xff]  ;;  %v5004_v13 = vpack.c.bf16 %v451_v4, %v443_v3  ;;  %v459_v14 = vld [vmem:[%s7560_s24 + $0x580] sm:$0xff]  ;;  %v5516_v15 = vpack.c.bf16 %v453_v7, %v445_v5  ;;  %v5006_v16 = vpack.c.bf16 %v468_v9, %v460_v8  ;;  %v461_v18 = vld [vmem:[%s7560_s24 + $0x590] sm:$0xff] }
  0x8d   : > { %5503 = vmatprep.subr.bf16.mxu1 %v5502_v29  ;;  %v470_v11 = vld [vmem:[%s7560_s24 + $0x5d8] sm:$0xff]  ;;  %v467_v17 = vld [vmem:[%s7560_s24 + $0x5c0] sm:$0xff]  ;;  %v469_v19 = vld [vmem:[%s7560_s24 + $0x5d0] sm:$0xff] }
  0x8e   : > { %v5518_v20 = vpack.c.bf16 %v470_v11, %v462_v10  ;;  %v476_v21 = vld [vmem:[%s7560_s24 + $0x608] sm:$0xff]  ;;  %v7691_v23 = vld [vmem:[%s7579_s30] sm:$0xff]  ;;  %v478_v24 = vld [vmem:[%s7560_s24 + $0x618] sm:$0xff]  ;;  %v5008_v27 = vpack.c.bf16 %v467_v17, %v459_v14  ;;  %v5520_v28 = vpack.c.bf16 %v469_v19, %v461_v18 }
  0x8f   : > { %4993 = vmatpush1.bf16.msra.mxu0 %v4992_v35  ;;  %v484_v22 = vld [vmem:[%s7560_s24 + $0x648] sm:$0xff]  ;;  %v486_v25 = vld [vmem:[%s7560_s24 + $0x658] sm:$0xff]  ;;  %v7697_v26 = vrot.slane %v7691_v23, %v7682_v12  ;;  %v475_v30 = vld [vmem:[%s7560_s24 + $0x600] sm:$0xff]  ;;  %v2335_v11 = vcombine.high %v7691_v23, %v7691_v23 }
  0x90   : > { %5505 = vmatpush1.bf16.msra.mxu1 %v5504_v36  ;;  %4995 = vmatprep.subr.bf16.mxu0 %v4994_v37  ;;  %v5010_v29 = vpack.c.bf16 %v484_v22, %v476_v21  ;;  %v483_v31 = vld [vmem:[%s7560_s24 + $0x640] sm:$0xff]  ;;  %v477_v32 = vld [vmem:[%s7560_s24 + $0x610] sm:$0xff]  ;;  %v5522_v34 = vpack.c.bf16 %v486_v25, %v478_v24  ;;  %v492_v36 = vld [vmem:[%s7560_s24 + $0x688] sm:$0xff] }
  0x91   : > { %5507 = vmatprep.subr.bf16.mxu1 %v5506_v41  ;;  %v7704_v33 = vcombine.high %v7697_v26, %v7697_v26  ;;  %v485_v35 = vld [vmem:[%s7560_s24 + $0x650] sm:$0xff]  ;;  %v500_v37 = vld [vmem:[%s7560_s24 + $0x6c8] sm:$0xff]  ;;  %v494_v38 = vld [vmem:[%s7560_s24 + $0x698] sm:$0xff]  ;;  %v5012_v40 = vpack.c.bf16 %v483_v31, %v475_v30  ;;  %v7746_v25 = vrot.slane %v2335_v11, %v7682_v12 }
  0x92   : > { %v502_v39 = vld [vmem:[%s7560_s24 + $0x6d8] sm:$0xff]  ;;  %v5524_v41 = vpack.c.bf16 %v485_v35, %v477_v32  ;;  %v5014_v42 = vpack.c.bf16 %v500_v37, %v492_v36  ;;  %v491_v43 = vld [vmem:[%s7560_s24 + $0x680] sm:$0xff]  ;;  %v493_v45 = vld [vmem:[%s7560_s24 + $0x690] sm:$0xff] }
  0x93   : > { %4997 = vmatpush1.bf16.msra.mxu0 %v4996_v50  ;;  %2483 = vmatprep.mubr.f32.mxu0 %v7704_v33  ;;  %v499_v44 = vld [vmem:[%s7560_s24 + $0x6c0] sm:$0xff]  ;;  %v5526_v46 = vpack.c.bf16 %v502_v39, %v494_v38  ;;  %v501_v47 = vld [vmem:[%s7560_s24 + $0x6d0] sm:$0xff]  ;;  %v508_v48 = vld [vmem:[%s7560_s24 + $0x708] sm:$0xff] }
  0x94   : > { %5509 = vmatpush1.bf16.msra.mxu1 %v5508_v51  ;;  %4999 = vmatprep.subr.bf16.mxu0 %v4998_v52  ;;  %v516_v49 = vld [vmem:[%s7560_s24 + $0x748] sm:$0xff]  ;;  %v510_v50 = vld [vmem:[%s7560_s24 + $0x718] sm:$0xff]  ;;  %v5016_v52 = vpack.c.bf16 %v499_v44, %v491_v43  ;;  %v5528_v53 = vpack.c.bf16 %v501_v47, %v493_v45  ;;  %v507_v55 = vld [vmem:[%s7560_s24 + $0x700] sm:$0xff] }
  0x95   : > { %5511 = vmatprep.subr.bf16.mxu1 %v5510_v56  ;;  %3051 = vmatprep.mubr.f32.mxu1 %v7704_v33  ;;  %v518_v51 = vld [vmem:[%s7560_s24 + $0x758] sm:$0xff]  ;;  %v5018_v54 = vpack.c.bf16 %v516_v49, %v508_v48  ;;  %v515_v56 = vld [vmem:[%s7560_s24 + $0x740] sm:$0xff]  ;;  %v509_v57 = vld [vmem:[%s7560_s24 + $0x710] sm:$0xff] }
  0x96   : > { %v5530_v58 = vpack.c.bf16 %v518_v51, %v510_v50  ;;  %v517_v59 = vld [vmem:[%s7560_s24 + $0x750] sm:$0xff]  ;;  %v524_v60 = vld [vmem:[%s7560_s24 + $0x788] sm:$0xff]  ;;  %v526_v62 = vld [vmem:[%s7560_s24 + $0x798] sm:$0xff] }
  0x97   : > { %5001 = vmatpush1.bf16.msra.mxu0 %v5000_v0  ;;  %v532_v61 = vld [vmem:[%s7560_s24 + $0x7c8] sm:$0xff]  ;;  %v534_v0 = vld [vmem:[%s7560_s24 + $0x7d8] sm:$0xff]  ;;  %v523_v4 = vld [vmem:[%s7560_s24 + $0x780] sm:$0xff] }
  0x98   : > { %5513 = vmatpush1.bf16.msra.mxu1 %v5512_v1  ;;  %5003 = vmatprep.subr.bf16.mxu0 %v5002_v2  ;;  %v5020_v1 = vpack.c.bf16 %v515_v56, %v507_v55  ;;  %v5532_v2 = vpack.c.bf16 %v517_v59, %v509_v57  ;;  %v5022_v3 = vpack.c.bf16 %v532_v61, %v524_v60  ;;  %v531_v5 = vld [vmem:[%s7560_s24 + $0x7c0] sm:$0xff]  ;;  %v533_v8 = vld [vmem:[%s7560_s24 + $0x7d0] sm:$0xff]  ;;  %v540_v9 = vld [vmem:[%s7560_s24 + $0x808] sm:$0xff] }
  0x99   : > { %5515 = vmatprep.subr.bf16.mxu1 %v5514_v6  ;;  %v525_v6 = vld [vmem:[%s7560_s24 + $0x790] sm:$0xff]  ;;  %v5534_v7 = vpack.c.bf16 %v534_v0, %v526_v62  ;;  %v548_v10 = vld [vmem:[%s7560_s24 + $0x848] sm:$0xff]  ;;  %v550_v14 = vld [vmem:[%s7560_s24 + $0x858] sm:$0xff] }
  0x9a   : > { %v5026_v17 = vpack.c.bf16 %v548_v10, %v540_v9  ;;  %v539_v18 = vld [vmem:[%s7560_s24 + $0x800] sm:$0xff]  ;;  %v549_v22 = vld [vmem:[%s7560_s24 + $0x850] sm:$0xff]  ;;  %v556_v23 = vld [vmem:[%s7560_s24 + $0x888] sm:$0xff] }
  0x9b   : > { %5005 = vmatpush1.bf16.msra.mxu0 %v5004_v13  ;;  %v542_v13 = vld [vmem:[%s7560_s24 + $0x818] sm:$0xff]  ;;  %v547_v19 = vld [vmem:[%s7560_s24 + $0x840] sm:$0xff]  ;;  %v564_v24 = vld [vmem:[%s7560_s24 + $0x8c8] sm:$0xff] }
  0x9c   : > { %5517 = vmatpush1.bf16.msra.mxu1 %v5516_v15  ;;  %5007 = vmatprep.subr.bf16.mxu0 %v5006_v16  ;;  %v5024_v15 = vpack.c.bf16 %v531_v5, %v523_v4  ;;  %v5536_v16 = vpack.c.bf16 %v533_v8, %v525_v6  ;;  %v5538_v21 = vpack.c.bf16 %v550_v14, %v542_v13  ;;  %v555_v32 = vld [vmem:[%s7560_s24 + $0x880] sm:$0xff]  ;;  %v557_v35 = vld [vmem:[%s7560_s24 + $0x890] sm:$0xff]  ;;  %v572_v38 = vld [vmem:[%s7560_s24 + $0x908] sm:$0xff] }
  0x9d   : > { %5519 = vmatprep.subr.bf16.mxu1 %v5518_v20  ;;  %v541_v20 = vld [vmem:[%s7560_s24 + $0x810] sm:$0xff]  ;;  %v5030_v31 = vpack.c.bf16 %v564_v24, %v556_v23  ;;  %v580_v39 = vld [vmem:[%s7560_s24 + $0x948] sm:$0xff]  ;;  %v579_v47 = vld [vmem:[%s7560_s24 + $0x940] sm:$0xff] }
  0x9e   : > { %v5540_v30 = vpack.c.bf16 %v549_v22, %v541_v20  ;;  %v565_v37 = vld [vmem:[%s7560_s24 + $0x8d0] sm:$0xff]  ;;  %v5034_v45 = vpack.c.bf16 %v580_v39, %v572_v38  ;;  %v588_v51 = vld [vmem:[%s7560_s24 + $0x988] sm:$0xff]  ;;  %v595_v59 = vld [vmem:[%s7560_s24 + $0x9c0] sm:$0xff] }
  0x9f   : > { %5009 = vmatpush1.bf16.msra.mxu0 %v5008_v27  ;;  %v558_v27 = vld [vmem:[%s7560_s24 + $0x898] sm:$0xff]  ;;  %v5544_v44 = vpack.c.bf16 %v565_v37, %v557_v35  ;;  %v573_v48 = vld [vmem:[%s7560_s24 + $0x910] sm:$0xff]  ;;  %v604_v0 = vld [vmem:[%s7560_s24 + $0xa08] sm:$0xff] }
  0xa0   : > { %5521 = vmatpush1.bf16.msra.mxu1 %v5520_v28  ;;  %5011 = vmatprep.subr.bf16.mxu0 %v5010_v29  ;;  %v566_v28 = vld [vmem:[%s7560_s24 + $0x8d8] sm:$0xff]  ;;  %v5028_v29 = vpack.c.bf16 %v547_v19, %v539_v18  ;;  %v581_v50 = vld [vmem:[%s7560_s24 + $0x950] sm:$0xff]  ;;  %v611_v8 = vld [vmem:[%s7560_s24 + $0xa40] sm:$0xff] }
  0xa1   : > { %5523 = vmatprep.subr.bf16.mxu1 %v5522_v34  ;;  %v563_v34 = vld [vmem:[%s7560_s24 + $0x8c0] sm:$0xff]  ;;  %v5542_v36 = vpack.c.bf16 %v566_v28, %v558_v27  ;;  %v5548_v56 = vpack.c.bf16 %v581_v50, %v573_v48  ;;  %v589_v60 = vld [vmem:[%s7560_s24 + $0x990] sm:$0xff]  ;;  %v620_v13 = vld [vmem:[%s7560_s24 + $0xa88] sm:$0xff] }
  0xa2   : > { %v5032_v43 = vpack.c.bf16 %v563_v34, %v555_v32  ;;  %v597_v62 = vld [vmem:[%s7560_s24 + $0x9d0] sm:$0xff]  ;;  %v628_v14 = vld [vmem:[%s7560_s24 + $0xac8] sm:$0xff]  ;;  %v619_v20 = vld [vmem:[%s7560_s24 + $0xa80] sm:$0xff] }
  0xa3   : > { %5013 = vmatpush1.bf16.msra.mxu0 %v5012_v40  ;;  %v7758_v40 = vcombine.high %v7746_v25, %v7746_v25  ;;  %v5552_v5 = vpack.c.bf16 %v597_v62, %v589_v60  ;;  %v605_v9 = vld [vmem:[%s7560_s24 + $0xa10] sm:$0xff]  ;;  %v5046_v19 = vpack.c.bf16 %v628_v14, %v620_v13  ;;  %v636_v27 = vld [vmem:[%s7560_s24 + $0xb08] sm:$0xff]  ;;  %v635_v35 = vld [vmem:[%s7560_s24 + $0xb00] sm:$0xff] }
  0xa4   : > { %5525 = vmatpush1.bf16.msra.mxu1 %v5524_v41  ;;  %5015 = vmatprep.subr.bf16.mxu0 %v5014_v42  ;;  %v574_v41 = vld [vmem:[%s7560_s24 + $0x918] sm:$0xff]  ;;  %v613_v11 = vld [vmem:[%s7560_s24 + $0xa50] sm:$0xff]  ;;  %v644_v28 = vld [vmem:[%s7560_s24 + $0xb48] sm:$0xff] }
  0xa5   : > { %5527 = vmatprep.subr.bf16.mxu1 %v5526_v46  ;;  %v582_v42 = vld [vmem:[%s7560_s24 + $0x958] sm:$0xff]  ;;  %v571_v46 = vld [vmem:[%s7560_s24 + $0x900] sm:$0xff]  ;;  %v5556_v18 = vpack.c.bf16 %v613_v11, %v605_v9  ;;  %v621_v22 = vld [vmem:[%s7560_s24 + $0xa90] sm:$0xff]  ;;  %v5050_v34 = vpack.c.bf16 %v644_v28, %v636_v27 }
  0xa6   : > { %v5546_v49 = vpack.c.bf16 %v582_v42, %v574_v41  ;;  %v5036_v55 = vpack.c.bf16 %v579_v47, %v571_v46  ;;  %v629_v24 = vld [vmem:[%s7560_s24 + $0xad0] sm:$0xff]  ;;  %v652_v41 = vld [vmem:[%s7560_s24 + $0xb88] sm:$0xff]  ;;  %v651_v48 = vld [vmem:[%s7560_s24 + $0xb80] sm:$0xff] }
  0xa7   : > { %5017 = vmatpush1.bf16.msra.mxu0 %v5016_v52  ;;  %v596_v52 = vld [vmem:[%s7560_s24 + $0x9c8] sm:$0xff]  ;;  %v5560_v32 = vpack.c.bf16 %v629_v24, %v621_v22  ;;  %v637_v37 = vld [vmem:[%s7560_s24 + $0xb10] sm:$0xff]  ;;  %v667_v60 = vld [vmem:[%s7560_s24 + $0xc00] sm:$0xff] }
  0xa8   : > { %5529 = vmatpush1.bf16.msra.mxu1 %v5528_v53  ;;  %5019 = vmatprep.subr.bf16.mxu0 %v5018_v54  ;;  %v590_v53 = vld [vmem:[%s7560_s24 + $0x998] sm:$0xff]  ;;  %v5038_v57 = vpack.c.bf16 %v596_v52, %v588_v51  ;;  %v645_v39 = vld [vmem:[%s7560_s24 + $0xb50] sm:$0xff]  ;;  %v660_v42 = vld [vmem:[%s7560_s24 + $0xbc8] sm:$0xff] }
  0xa9   : > { %5531 = vmatprep.subr.bf16.mxu1 %v5530_v58  ;;  %v598_v54 = vld [vmem:[%s7560_s24 + $0x9d8] sm:$0xff]  ;;  %v587_v58 = vld [vmem:[%s7560_s24 + $0x980] sm:$0xff]  ;;  %v5564_v46 = vpack.c.bf16 %v645_v39, %v637_v37  ;;  %v5054_v47 = vpack.c.bf16 %v660_v42, %v652_v41  ;;  %v653_v50 = vld [vmem:[%s7560_s24 + $0xb90] sm:$0xff] }
  0xaa   : > { %v5550_v61 = vpack.c.bf16 %v598_v54, %v590_v53  ;;  %v5040_v4 = vpack.c.bf16 %v595_v59, %v587_v58  ;;  %v661_v52 = vld [vmem:[%s7560_s24 + $0xbd0] sm:$0xff]  ;;  %v668_v53 = vld [vmem:[%s7560_s24 + $0xc08] sm:$0xff]  ;;  %v683_v9 = vld [vmem:[%s7560_s24 + $0xc80] sm:$0xff] }
  0xab   : > { %5021 = vmatpush1.bf16.msra.mxu0 %v5020_v1  ;;  %v612_v1 = vld [vmem:[%s7560_s24 + $0xa48] sm:$0xff]  ;;  %v5568_v58 = vpack.c.bf16 %v661_v52, %v653_v50  ;;  %v669_v62 = vld [vmem:[%s7560_s24 + $0xc10] sm:$0xff]  ;;  %v699_v22 = vld [vmem:[%s7560_s24 + $0xd00] sm:$0xff] }
  0xac   : > { %5533 = vmatpush1.bf16.msra.mxu1 %v5532_v2  ;;  %5023 = vmatprep.subr.bf16.mxu0 %v5022_v3  ;;  %v606_v2 = vld [vmem:[%s7560_s24 + $0xa18] sm:$0xff]  ;;  %v5042_v6 = vpack.c.bf16 %v612_v1, %v604_v0  ;;  %v676_v54 = vld [vmem:[%s7560_s24 + $0xc48] sm:$0xff]  ;;  %v677_v1 = vld [vmem:[%s7560_s24 + $0xc50] sm:$0xff] }
  0xad   : > { %5535 = vmatprep.subr.bf16.mxu1 %v5534_v7  ;;  %v614_v3 = vld [vmem:[%s7560_s24 + $0xa58] sm:$0xff]  ;;  %v603_v7 = vld [vmem:[%s7560_s24 + $0xa00] sm:$0xff]  ;;  %v5058_v59 = vpack.c.bf16 %v676_v54, %v668_v53  ;;  %v685_v11 = vld [vmem:[%s7560_s24 + $0xc90] sm:$0xff] }
  0xae   : > { %v5554_v10 = vpack.c.bf16 %v614_v3, %v606_v2  ;;  %v684_v2 = vld [vmem:[%s7560_s24 + $0xc88] sm:$0xff]  ;;  %v693_v14 = vld [vmem:[%s7560_s24 + $0xcd0] sm:$0xff]  ;;  %v715_v37 = vld [vmem:[%s7560_s24 + $0xd80] sm:$0xff] }
  0xaf   : > { %5025 = vmatpush1.bf16.msra.mxu0 %v5024_v15  ;;  %v622_v15 = vld [vmem:[%s7560_s24 + $0xa98] sm:$0xff]  ;;  %v692_v3 = vld [vmem:[%s7560_s24 + $0xcc8] sm:$0xff]  ;;  %v701_v24 = vld [vmem:[%s7560_s24 + $0xd10] sm:$0xff] }
  0xb0   : > { %5537 = vmatpush1.bf16.msra.mxu1 %v5536_v16  ;;  %5027 = vmatprep.subr.bf16.mxu0 %v5026_v17  ;;  %v630_v16 = vld [vmem:[%s7560_s24 + $0xad8] sm:$0xff]  ;;  %v5044_v17 = vpack.c.bf16 %v611_v8, %v603_v7  ;;  %v5572_v7 = vpack.c.bf16 %v677_v1, %v669_v62  ;;  %v5062_v8 = vpack.c.bf16 %v692_v3, %v684_v2  ;;  %v709_v28 = vld [vmem:[%s7560_s24 + $0xd50] sm:$0xff]  ;;  %v731_v50 = vld [vmem:[%s7560_s24 + $0xe00] sm:$0xff] }
  0xb1   : > { %5539 = vmatprep.subr.bf16.mxu1 %v5538_v21  ;;  %v627_v21 = vld [vmem:[%s7560_s24 + $0xac0] sm:$0xff]  ;;  %v5558_v23 = vpack.c.bf16 %v630_v16, %v622_v15  ;;  %v700_v15 = vld [vmem:[%s7560_s24 + $0xd08] sm:$0xff]  ;;  %v717_v39 = vld [vmem:[%s7560_s24 + $0xd90] sm:$0xff] }
  0xb2   : > { %2484 = vmatmul.mubr.f32.vlgmr.msra.gmra.mrb[0].mxu0 %v7697_v26  ;;  %v708_v16 = vld [vmem:[%s7560_s24 + $0xd48] sm:$0xff]  ;;  %v725_v42 = vld [vmem:[%s7560_s24 + $0xdd0] sm:$0xff]  ;;  %v747_v62 = vld [vmem:[%s7560_s24 + $0xe80] sm:$0xff] }
  0xb3   : > { %5029 = vmatpush1.bf16.msra.mxu0 %v5028_v29  ;;  %3052 = vmatmul.mubr.f32.vlgmr.msra.gmra.mrb[0].mxu1 %v7697_v26  ;;  %v638_v29 = vld [vmem:[%s7560_s24 + $0xb18] sm:$0xff]  ;;  %v733_v52 = vld [vmem:[%s7560_s24 + $0xe10] sm:$0xff] }
  0xb4   : > { %5541 = vmatpush1.bf16.msra.mxu1 %v5540_v30  ;;  %5031 = vmatprep.subr.bf16.mxu0 %v5030_v31  ;;  %v646_v30 = vld [vmem:[%s7560_s24 + $0xb58] sm:$0xff]  ;;  %v5048_v31 = vpack.c.bf16 %v627_v21, %v619_v20  ;;  %v5576_v20 = vpack.c.bf16 %v693_v14, %v685_v11  ;;  %v5066_v21 = vpack.c.bf16 %v708_v16, %v700_v15  ;;  %v741_v54 = vld [vmem:[%s7560_s24 + $0xe50] sm:$0xff]  ;;  %v763_v11 = vld [vmem:[%s7560_s24 + $0xf00] sm:$0xff] }
  0xb5   : > { %5543 = vmatprep.subr.bf16.mxu1 %v5542_v36  ;;  %2554 = vmatprep.mubr.f32.mxu0 %v7758_v40  ;;  %v643_v36 = vld [vmem:[%s7560_s24 + $0xb40] sm:$0xff]  ;;  %v5562_v38 = vpack.c.bf16 %v646_v30, %v638_v29  ;;  %v716_v29 = vld [vmem:[%s7560_s24 + $0xd88] sm:$0xff]  ;;  %v749_v1 = vld [vmem:[%s7560_s24 + $0xe90] sm:$0xff] }
  0xb6   : > { %3122 = vmatprep.mubr.f32.mxu1 %v7758_v40  ;;  %v724_v30 = vld [vmem:[%s7560_s24 + $0xdc8] sm:$0xff]  ;;  %v757_v3 = vld [vmem:[%s7560_s24 + $0xed0] sm:$0xff] }
  0xb7   : > { %5033 = vmatpush1.bf16.msra.mxu0 %v5032_v43  ;;  %v654_v43 = vld [vmem:[%s7560_s24 + $0xb98] sm:$0xff]  ;;  %v765_v14 = vld [vmem:[%s7560_s24 + $0xf10] sm:$0xff] }
  0xb8   : > { %5545 = vmatpush1.bf16.msra.mxu1 %v5544_v44  ;;  %5035 = vmatprep.subr.bf16.mxu0 %v5034_v45  ;;  %v662_v44 = vld [vmem:[%s7560_s24 + $0xbd8] sm:$0xff]  ;;  %v5052_v45 = vpack.c.bf16 %v643_v36, %v635_v35  ;;  %v5580_v35 = vpack.c.bf16 %v709_v28, %v701_v24  ;;  %v5070_v36 = vpack.c.bf16 %v724_v30, %v716_v29  ;;  %v773_v16 = vld [vmem:[%s7560_s24 + $0xf50] sm:$0xff]  ;;  %v779_v24 = vld [vmem:[%s7560_s24 + $0xf80] sm:$0xff] }
  0xb9   : > { %5547 = vmatprep.subr.bf16.mxu1 %v5546_v49  ;;  %v659_v49 = vld [vmem:[%s7560_s24 + $0xbc0] sm:$0xff]  ;;  %v5566_v51 = vpack.c.bf16 %v662_v44, %v654_v43  ;;  %v732_v43 = vld [vmem:[%s7560_s24 + $0xe08] sm:$0xff]  ;;  %v781_v28 = vld [vmem:[%s7560_s24 + $0xf90] sm:$0xff] }
  0xba   : > { %v740_v44 = vld [vmem:[%s7560_s24 + $0xe48] sm:$0xff]  ;;  %v789_v30 = vld [vmem:[%s7560_s24 + $0xfd0] sm:$0xff] }
  0xbb   : > { %5037 = vmatpush1.bf16.msra.mxu0 %v5036_v55  ;;  %v670_v55 = vld [vmem:[%s7560_s24 + $0xc18] sm:$0xff] }
  0xbc   : > { %5549 = vmatpush1.bf16.msra.mxu1 %v5548_v56  ;;  %5039 = vmatprep.subr.bf16.mxu0 %v5038_v57  ;;  %v678_v56 = vld [vmem:[%s7560_s24 + $0xc58] sm:$0xff]  ;;  %v5056_v57 = vpack.c.bf16 %v659_v49, %v651_v48  ;;  %v5584_v48 = vpack.c.bf16 %v725_v42, %v717_v39  ;;  %v5074_v49 = vpack.c.bf16 %v740_v44, %v732_v43  ;;  %v795_v39 = vld [vmem:[%s7560_s24 + $0x1000] sm:$0xff]  ;;  %v797_v42 = vld [vmem:[%s7560_s24 + $0x1010] sm:$0xff] }
  0xbd   : > { %5551 = vmatprep.subr.bf16.mxu1 %v5550_v61  ;;  %v675_v61 = vld [vmem:[%s7560_s24 + $0xc40] sm:$0xff]  ;;  %v5570_v0 = vpack.c.bf16 %v678_v56, %v670_v55  ;;  %v748_v55 = vld [vmem:[%s7560_s24 + $0xe88] sm:$0xff]  ;;  %v805_v44 = vld [vmem:[%s7560_s24 + $0x1050] sm:$0xff] }
  0xbe   : > { %v756_v56 = vld [vmem:[%s7560_s24 + $0xec8] sm:$0xff] }
  0xbf   : > { %5041 = vmatpush1.bf16.msra.mxu0 %v5040_v4  ;;  %v686_v4 = vld [vmem:[%s7560_s24 + $0xc98] sm:$0xff] }
  0xc0   : > { %5553 = vmatpush1.bf16.msra.mxu1 %v5552_v5  ;;  %5043 = vmatprep.subr.bf16.mxu0 %v5042_v6  ;;  %v694_v5 = vld [vmem:[%s7560_s24 + $0xcd8] sm:$0xff]  ;;  %v5060_v6 = vpack.c.bf16 %v675_v61, %v667_v60  ;;  %v5588_v60 = vpack.c.bf16 %v741_v54, %v733_v52  ;;  %v5078_v61 = vpack.c.bf16 %v756_v56, %v748_v55  ;;  %v819_v54 = vld [vmem:[%s7560_s24 + $0x10c0] sm:$0xff]  ;;  %v813_v55 = vld [vmem:[%s7560_s24 + $0x1090] sm:$0xff] }
  0xc1   : > { %5555 = vmatprep.subr.bf16.mxu1 %v5554_v10  ;;  %v691_v10 = vld [vmem:[%s7560_s24 + $0xcc0] sm:$0xff]  ;;  %v5574_v13 = vpack.c.bf16 %v694_v5, %v686_v4  ;;  %v764_v4 = vld [vmem:[%s7560_s24 + $0xf08] sm:$0xff] }
  0xc2   : > { %v772_v5 = vld [vmem:[%s7560_s24 + $0xf48] sm:$0xff] }
  0xc3   : > { %5045 = vmatpush1.bf16.msra.mxu0 %v5044_v17  ;;  %v702_v17 = vld [vmem:[%s7560_s24 + $0xd18] sm:$0xff] }
  0xc4   : > { %5557 = vmatpush1.bf16.msra.mxu1 %v5556_v18  ;;  %5047 = vmatprep.subr.bf16.mxu0 %v5046_v19  ;;  %v710_v18 = vld [vmem:[%s7560_s24 + $0xd58] sm:$0xff]  ;;  %v5064_v19 = vpack.c.bf16 %v691_v10, %v683_v9  ;;  %v5592_v9 = vpack.c.bf16 %v757_v3, %v749_v1  ;;  %v5082_v10 = vpack.c.bf16 %v772_v5, %v764_v4  ;;  %v827_v4 = vld [vmem:[%s7560_s24 + $0x1100] sm:$0xff] }
  0xc5   : > { %5559 = vmatprep.subr.bf16.mxu1 %v5558_v23  ;;  %v707_v23 = vld [vmem:[%s7560_s24 + $0xd40] sm:$0xff]  ;;  %v5578_v27 = vpack.c.bf16 %v710_v18, %v702_v17  ;;  %v780_v17 = vld [vmem:[%s7560_s24 + $0xf88] sm:$0xff] }
  0xc6   : > { %v788_v18 = vld [vmem:[%s7560_s24 + $0xfc8] sm:$0xff]  ;;  %v835_v5 = vld [vmem:[%s7560_s24 + $0x1140] sm:$0xff] }
  0xc7   : > { %5049 = vmatpush1.bf16.msra.mxu0 %v5048_v31  ;;  %v718_v31 = vld [vmem:[%s7560_s24 + $0xd98] sm:$0xff] }
  0xc8   : > { %5561 = vmatpush1.bf16.msra.mxu1 %v5560_v32  ;;  %5051 = vmatprep.subr.bf16.mxu0 %v5050_v34  ;;  %v726_v32 = vld [vmem:[%s7560_s24 + $0xdd8] sm:$0xff]  ;;  %v5068_v34 = vpack.c.bf16 %v707_v23, %v699_v22  ;;  %v5596_v22 = vpack.c.bf16 %v773_v16, %v765_v14  ;;  %v5086_v23 = vpack.c.bf16 %v788_v18, %v780_v17  ;;  %v843_v17 = vld [vmem:[%s7560_s24 + $0x1180] sm:$0xff] }
  0xc9   : > { %5563 = vmatprep.subr.bf16.mxu1 %v5562_v38  ;;  %v723_v38 = vld [vmem:[%s7560_s24 + $0xdc0] sm:$0xff]  ;;  %v5582_v41 = vpack.c.bf16 %v726_v32, %v718_v31  ;;  %v796_v31 = vld [vmem:[%s7560_s24 + $0x1008] sm:$0xff]  ;;  %v5100_v14 = vpack.c.bf16 %v835_v5, %v827_v4  ;;  %v910_v4 = vld [vmem:[%s7560_s24 + $0x1398] sm:$0xff] }
  0xca   : > { %v804_v32 = vld [vmem:[%s7560_s24 + $0x1048] sm:$0xff]  ;;  %v851_v18 = vld [vmem:[%s7560_s24 + $0x11c0] sm:$0xff]  ;;  %v918_v5 = vld [vmem:[%s7560_s24 + $0x13d8] sm:$0xff] }
  0xcb   : > { %5053 = vmatpush1.bf16.msra.mxu0 %v5052_v45  ;;  %v734_v45 = vld [vmem:[%s7560_s24 + $0xe18] sm:$0xff] }
  0xcc   : > { %5565 = vmatpush1.bf16.msra.mxu1 %v5564_v46  ;;  %5055 = vmatprep.subr.bf16.mxu0 %v5054_v47  ;;  %v742_v46 = vld [vmem:[%s7560_s24 + $0xe58] sm:$0xff]  ;;  %v5072_v47 = vpack.c.bf16 %v723_v38, %v715_v37  ;;  %v5600_v37 = vpack.c.bf16 %v789_v30, %v781_v28  ;;  %v5090_v38 = vpack.c.bf16 %v804_v32, %v796_v31  ;;  %v859_v31 = vld [vmem:[%s7560_s24 + $0x1200] sm:$0xff] }
  0xcd   : > { %5567 = vmatprep.subr.bf16.mxu1 %v5566_v51  ;;  %v739_v51 = vld [vmem:[%s7560_s24 + $0xe40] sm:$0xff]  ;;  %v5586_v53 = vpack.c.bf16 %v742_v46, %v734_v45  ;;  %v812_v45 = vld [vmem:[%s7560_s24 + $0x1088] sm:$0xff]  ;;  %v5104_v28 = vpack.c.bf16 %v851_v18, %v843_v17  ;;  %v926_v17 = vld [vmem:[%s7560_s24 + $0x1418] sm:$0xff] }
  0xce   : > { %v820_v46 = vld [vmem:[%s7560_s24 + $0x10c8] sm:$0xff]  ;;  %v867_v32 = vld [vmem:[%s7560_s24 + $0x1240] sm:$0xff]  ;;  %v934_v18 = vld [vmem:[%s7560_s24 + $0x1458] sm:$0xff] }
  0xcf   : > { %5057 = vmatpush1.bf16.msra.mxu0 %v5056_v57  ;;  %v750_v57 = vld [vmem:[%s7560_s24 + $0xe98] sm:$0xff]  ;;  %v5094_v52 = vpack.c.bf16 %v820_v46, %v812_v45  ;;  %v875_v45 = vld [vmem:[%s7560_s24 + $0x1280] sm:$0xff] }
  0xd0   : > { %5569 = vmatpush1.bf16.msra.mxu1 %v5568_v58  ;;  %5059 = vmatprep.subr.bf16.mxu0 %v5058_v59  ;;  %v758_v58 = vld [vmem:[%s7560_s24 + $0xed8] sm:$0xff]  ;;  %v5076_v59 = vpack.c.bf16 %v739_v51, %v731_v50  ;;  %v5604_v51 = vpack.c.bf16 %v805_v44, %v797_v42  ;;  %v5108_v42 = vpack.c.bf16 %v867_v32, %v859_v31  ;;  %v883_v46 = vld [vmem:[%s7560_s24 + $0x12c0] sm:$0xff] }
  0xd1   : > { %5571 = vmatprep.subr.bf16.mxu1 %v5570_v0  ;;  %v755_v0 = vld [vmem:[%s7560_s24 + $0xec0] sm:$0xff]  ;;  %v5590_v2 = vpack.c.bf16 %v758_v58, %v750_v57  ;;  %v7887_v50 = vld [vmem:[%s7579_s30 + $0x8] sm:$0xff]  ;;  %v821_v58 = vld [vmem:[%s7560_s24 + $0x10d0] sm:$0xff] }
  0xd2   : > { %v7894_v56 = vrot.slane %v7887_v50, %v7682_v12  ;;  %v942_v31 = vld [vmem:[%s7560_s24 + $0x1498] sm:$0xff] }
  0xd3   : > { %5061 = vmatpush1.bf16.msra.mxu0 %v5060_v6  ;;  %v766_v6 = vld [vmem:[%s7560_s24 + $0xf18] sm:$0xff] }
  0xd4   : > { %5573 = vmatpush1.bf16.msra.mxu1 %v5572_v7  ;;  %5063 = vmatprep.subr.bf16.mxu0 %v5062_v8  ;;  %v774_v7 = vld [vmem:[%s7560_s24 + $0xf58] sm:$0xff]  ;;  %v5080_v8 = vpack.c.bf16 %v755_v0, %v747_v62  ;;  %v7904_v0 = vcombine.high %v7894_v56, %v7894_v56 }
  0xd5   : > { %5575 = vmatprep.subr.bf16.mxu1 %v5574_v13  ;;  %v771_v13 = vld [vmem:[%s7560_s24 + $0xf40] sm:$0xff]  ;;  %v5594_v15 = vpack.c.bf16 %v774_v7, %v766_v6  ;;  %v838_v62 = vld [vmem:[%s7560_s24 + $0x1158] sm:$0xff]  ;;  %v829_v6 = vld [vmem:[%s7560_s24 + $0x1110] sm:$0xff] }
  0xd6   : > { %v950_v32 = vld [vmem:[%s7560_s24 + $0x14d8] sm:$0xff] }
  0xd7   : > { %5065 = vmatpush1.bf16.msra.mxu0 %v5064_v19  ;;  %v782_v19 = vld [vmem:[%s7560_s24 + $0xf98] sm:$0xff] }
  0xd8   : > { %5577 = vmatpush1.bf16.msra.mxu1 %v5576_v20  ;;  %5067 = vmatprep.subr.bf16.mxu0 %v5066_v21  ;;  %v790_v20 = vld [vmem:[%s7560_s24 + $0xfd8] sm:$0xff]  ;;  %v5084_v21 = vpack.c.bf16 %v771_v13, %v763_v11 }
  0xd9   : > { %5579 = vmatprep.subr.bf16.mxu1 %v5578_v27  ;;  %v787_v27 = vld [vmem:[%s7560_s24 + $0xfc0] sm:$0xff]  ;;  %v5598_v29 = vpack.c.bf16 %v790_v20, %v782_v19  ;;  %v846_v11 = vld [vmem:[%s7560_s24 + $0x1198] sm:$0xff]  ;;  %v845_v19 = vld [vmem:[%s7560_s24 + $0x1190] sm:$0xff] }
  0xda   : > { %v854_v13 = vld [vmem:[%s7560_s24 + $0x11d8] sm:$0xff] }
  0xdb   : > { %5069 = vmatpush1.bf16.msra.mxu0 %v5068_v34  ;;  %v798_v34 = vld [vmem:[%s7560_s24 + $0x1018] sm:$0xff]  ;;  %v5614_v20 = vpack.c.bf16 %v854_v13, %v846_v11  ;;  %v909_v11 = vld [vmem:[%s7560_s24 + $0x1390] sm:$0xff]  ;;  %v5630_v13 = vpack.c.bf16 %v918_v5, %v910_v4 }
  0xdc   : > { %5581 = vmatpush1.bf16.msra.mxu1 %v5580_v35  ;;  %5071 = vmatprep.subr.bf16.mxu0 %v5070_v36  ;;  %v806_v35 = vld [vmem:[%s7560_s24 + $0x1058] sm:$0xff]  ;;  %v5088_v36 = vpack.c.bf16 %v787_v27, %v779_v24  ;;  %v973_v4 = vld [vmem:[%s7560_s24 + $0x1590] sm:$0xff] }
  0xdd   : > { %5583 = vmatprep.subr.bf16.mxu1 %v5582_v41  ;;  %v803_v41 = vld [vmem:[%s7560_s24 + $0x1040] sm:$0xff]  ;;  %v5602_v43 = vpack.c.bf16 %v806_v35, %v798_v34  ;;  %v862_v24 = vld [vmem:[%s7560_s24 + $0x1218] sm:$0xff]  ;;  %v861_v34 = vld [vmem:[%s7560_s24 + $0x1210] sm:$0xff] }
  0xde   : > { %v870_v27 = vld [vmem:[%s7560_s24 + $0x1258] sm:$0xff] }
  0xdf   : > { %5073 = vmatpush1.bf16.msra.mxu0 %v5072_v47  ;;  %v814_v47 = vld [vmem:[%s7560_s24 + $0x1098] sm:$0xff]  ;;  %v5618_v35 = vpack.c.bf16 %v870_v27, %v862_v24  ;;  %v925_v24 = vld [vmem:[%s7560_s24 + $0x1410] sm:$0xff]  ;;  %v5634_v27 = vpack.c.bf16 %v934_v18, %v926_v17 }
  0xe0   : > { %5585 = vmatpush1.bf16.msra.mxu1 %v5584_v48  ;;  %5075 = vmatprep.subr.bf16.mxu0 %v5074_v49  ;;  %v822_v48 = vld [vmem:[%s7560_s24 + $0x10d8] sm:$0xff]  ;;  %v5092_v49 = vpack.c.bf16 %v803_v41, %v795_v39  ;;  %v989_v17 = vld [vmem:[%s7560_s24 + $0x1610] sm:$0xff] }
  0xe1   : > { %5587 = vmatprep.subr.bf16.mxu1 %v5586_v53  ;;  %v811_v53 = vld [vmem:[%s7560_s24 + $0x1080] sm:$0xff]  ;;  %v5606_v57 = vpack.c.bf16 %v822_v48, %v814_v47  ;;  %v878_v39 = vld [vmem:[%s7560_s24 + $0x1298] sm:$0xff]  ;;  %v877_v47 = vld [vmem:[%s7560_s24 + $0x1290] sm:$0xff] }
  0xe2   : > { %v5096_v1 = vpack.c.bf16 %v819_v54, %v811_v53  ;;  %v886_v41 = vld [vmem:[%s7560_s24 + $0x12d8] sm:$0xff] }
  0xe3   : > { %5077 = vmatpush1.bf16.msra.mxu0 %v5076_v59  ;;  %v828_v59 = vld [vmem:[%s7560_s24 + $0x1108] sm:$0xff]  ;;  %v5622_v48 = vpack.c.bf16 %v886_v41, %v878_v39  ;;  %v894_v53 = vld [vmem:[%s7560_s24 + $0x1318] sm:$0xff]  ;;  %v941_v39 = vld [vmem:[%s7560_s24 + $0x1490] sm:$0xff]  ;;  %v5638_v41 = vpack.c.bf16 %v950_v32, %v942_v31 }
  0xe4   : > { %5589 = vmatpush1.bf16.msra.mxu1 %v5588_v60  ;;  %5079 = vmatprep.subr.bf16.mxu0 %v5078_v61  ;;  %v836_v60 = vld [vmem:[%s7560_s24 + $0x1148] sm:$0xff]  ;;  %v830_v61 = vld [vmem:[%s7560_s24 + $0x1118] sm:$0xff]  ;;  %v1005_v31 = vld [vmem:[%s7560_s24 + $0x1690] sm:$0xff] }
  0xe5   : > { %5591 = vmatprep.subr.bf16.mxu1 %v5590_v2  ;;  %v5608_v2 = vpack.c.bf16 %v821_v58, %v813_v55  ;;  %v5098_v3 = vpack.c.bf16 %v836_v60, %v828_v59  ;;  %v5610_v7 = vpack.c.bf16 %v838_v62, %v830_v61  ;;  %v902_v54 = vld [vmem:[%s7560_s24 + $0x1358] sm:$0xff]  ;;  %v5112_v55 = vpack.c.bf16 %v883_v46, %v875_v45  ;;  %v891_v59 = vld [vmem:[%s7560_s24 + $0x1300] sm:$0xff]  ;;  %v893_v61 = vld [vmem:[%s7560_s24 + $0x1310] sm:$0xff] }
  0xe6   : > { %v899_v60 = vld [vmem:[%s7560_s24 + $0x1340] sm:$0xff]  ;;  %v5626_v62 = vpack.c.bf16 %v902_v54, %v894_v53  ;;  %v958_v45 = vld [vmem:[%s7560_s24 + $0x1518] sm:$0xff]  ;;  %v957_v53 = vld [vmem:[%s7560_s24 + $0x1510] sm:$0xff] }
  0xe7   : > { %5081 = vmatpush1.bf16.msra.mxu0 %v5080_v8  ;;  %v837_v8 = vld [vmem:[%s7560_s24 + $0x1150] sm:$0xff]  ;;  %v966_v46 = vld [vmem:[%s7560_s24 + $0x1558] sm:$0xff] }
  0xe8   : > { %5593 = vmatpush1.bf16.msra.mxu1 %v5592_v9  ;;  %5083 = vmatprep.subr.bf16.mxu0 %v5082_v10  ;;  %v844_v9 = vld [vmem:[%s7560_s24 + $0x1188] sm:$0xff]  ;;  %v5642_v54 = vpack.c.bf16 %v966_v46, %v958_v45  ;;  %v1021_v45 = vld [vmem:[%s7560_s24 + $0x1710] sm:$0xff] }
  0xe9   : > { %5595 = vmatprep.subr.bf16.mxu1 %v5594_v15  ;;  %v852_v10 = vld [vmem:[%s7560_s24 + $0x11c8] sm:$0xff]  ;;  %v5612_v15 = vpack.c.bf16 %v837_v8, %v829_v6  ;;  %v5116_v6 = vpack.c.bf16 %v899_v60, %v891_v59  ;;  %v974_v59 = vld [vmem:[%s7560_s24 + $0x1598] sm:$0xff] }
  0xea   : > { %v5102_v16 = vpack.c.bf16 %v852_v10, %v844_v9  ;;  %v907_v9 = vld [vmem:[%s7560_s24 + $0x1380] sm:$0xff]  ;;  %v982_v60 = vld [vmem:[%s7560_s24 + $0x15d8] sm:$0xff] }
  0xeb   : > { %5085 = vmatpush1.bf16.msra.mxu0 %v5084_v21  ;;  %v853_v21 = vld [vmem:[%s7560_s24 + $0x11d0] sm:$0xff]  ;;  %v915_v10 = vld [vmem:[%s7560_s24 + $0x13c0] sm:$0xff]  ;;  %v5646_v5 = vpack.c.bf16 %v982_v60, %v974_v59 }
  0xec   : > { %5597 = vmatpush1.bf16.msra.mxu1 %v5596_v22  ;;  %5087 = vmatprep.subr.bf16.mxu0 %v5086_v23  ;;  %v860_v22 = vld [vmem:[%s7560_s24 + $0x1208] sm:$0xff]  ;;  %v1037_v59 = vld [vmem:[%s7560_s24 + $0x1790] sm:$0xff] }
  0xed   : > { %5599 = vmatprep.subr.bf16.mxu1 %v5598_v29  ;;  %v868_v23 = vld [vmem:[%s7560_s24 + $0x1248] sm:$0xff]  ;;  %v5616_v29 = vpack.c.bf16 %v853_v21, %v845_v19  ;;  %v5120_v19 = vpack.c.bf16 %v915_v10, %v907_v9  ;;  %v990_v9 = vld [vmem:[%s7560_s24 + $0x1618] sm:$0xff] }
  0xee   : > { %v5106_v30 = vpack.c.bf16 %v868_v23, %v860_v22  ;;  %v923_v22 = vld [vmem:[%s7560_s24 + $0x1400] sm:$0xff]  ;;  %v998_v10 = vld [vmem:[%s7560_s24 + $0x1658] sm:$0xff] }
  0xef   : > { %5089 = vmatpush1.bf16.msra.mxu0 %v5088_v36  ;;  %v869_v36 = vld [vmem:[%s7560_s24 + $0x1250] sm:$0xff]  ;;  %v931_v23 = vld [vmem:[%s7560_s24 + $0x1440] sm:$0xff]  ;;  %v5650_v18 = vpack.c.bf16 %v998_v10, %v990_v9 }
  0xf0   : > { %5601 = vmatpush1.bf16.msra.mxu1 %v5600_v37  ;;  %5091 = vmatprep.subr.bf16.mxu0 %v5090_v38  ;;  %v876_v37 = vld [vmem:[%s7560_s24 + $0x1288] sm:$0xff]  ;;  %v1059_v9 = vld [vmem:[%s7560_s24 + $0x1840] sm:$0xff]  ;;  %v1053_v10 = vld [vmem:[%s7560_s24 + $0x1810] sm:$0xff] }
  0xf1   : > { %5603 = vmatprep.subr.bf16.mxu1 %v5602_v43  ;;  %v884_v38 = vld [vmem:[%s7560_s24 + $0x12c8] sm:$0xff]  ;;  %v5620_v43 = vpack.c.bf16 %v869_v36, %v861_v34  ;;  %v5124_v34 = vpack.c.bf16 %v931_v23, %v923_v22  ;;  %v1006_v22 = vld [vmem:[%s7560_s24 + $0x1698] sm:$0xff] }
  0xf2   : > { %2555 = vmatmul.mubr.f32.vlgmr.msra.gmra.mrb[0].mxu0 %v7746_v25  ;;  %v5110_v44 = vpack.c.bf16 %v884_v38, %v876_v37  ;;  %v939_v37 = vld [vmem:[%s7560_s24 + $0x1480] sm:$0xff]  ;;  %v1014_v23 = vld [vmem:[%s7560_s24 + $0x16d8] sm:$0xff] }
  0xf3   : > { %5093 = vmatpush1.bf16.msra.mxu0 %v5092_v49  ;;  %3123 = vmatmul.mubr.f32.vlgmr.msra.gmra.mrb[0].mxu1 %v7746_v25  ;;  %v885_v49 = vld [vmem:[%s7560_s24 + $0x12d0] sm:$0xff]  ;;  %v947_v38 = vld [vmem:[%s7560_s24 + $0x14c0] sm:$0xff]  ;;  %v5654_v32 = vpack.c.bf16 %v1014_v23, %v1006_v22 }
  0xf4   : > { %5605 = vmatpush1.bf16.msra.mxu1 %v5604_v51  ;;  %5095 = vmatprep.subr.bf16.mxu0 %v5094_v52  ;;  %v892_v51 = vld [vmem:[%s7560_s24 + $0x1308] sm:$0xff]  ;;  %v1075_v22 = vld [vmem:[%s7560_s24 + $0x18c0] sm:$0xff]  ;;  %v1069_v23 = vld [vmem:[%s7560_s24 + $0x1890] sm:$0xff] }
  0xf5   : > { %5607 = vmatprep.subr.bf16.mxu1 %v5606_v57  ;;  %2625 = vmatprep.mubr.f32.mxu0 %v7904_v0  ;;  %v900_v52 = vld [vmem:[%s7560_s24 + $0x1348] sm:$0xff]  ;;  %v5624_v57 = vpack.c.bf16 %v885_v49, %v877_v47  ;;  %v5128_v47 = vpack.c.bf16 %v947_v38, %v939_v37  ;;  %v1022_v37 = vld [vmem:[%s7560_s24 + $0x1718] sm:$0xff] }
  0xf6   : > { %3193 = vmatprep.mubr.f32.mxu1 %v7904_v0  ;;  %v5114_v58 = vpack.c.bf16 %v900_v52, %v892_v51  ;;  %v955_v51 = vld [vmem:[%s7560_s24 + $0x1500] sm:$0xff]  ;;  %v1030_v38 = vld [vmem:[%s7560_s24 + $0x1758] sm:$0xff] }
  0xf7   : > { %5097 = vmatpush1.bf16.msra.mxu0 %v5096_v1  ;;  %v901_v1 = vld [vmem:[%s7560_s24 + $0x1350] sm:$0xff]  ;;  %v963_v52 = vld [vmem:[%s7560_s24 + $0x1540] sm:$0xff]  ;;  %v5658_v46 = vpack.c.bf16 %v1030_v38, %v1022_v37 }
  0xf8   : > { %5609 = vmatpush1.bf16.msra.mxu1 %v5608_v2  ;;  %5099 = vmatprep.subr.bf16.mxu0 %v5098_v3  ;;  %v908_v2 = vld [vmem:[%s7560_s24 + $0x1388] sm:$0xff]  ;;  %v1083_v37 = vld [vmem:[%s7560_s24 + $0x1900] sm:$0xff] }
  0xf9   : > { %5611 = vmatprep.subr.bf16.mxu1 %v5610_v7  ;;  %v916_v3 = vld [vmem:[%s7560_s24 + $0x13c8] sm:$0xff]  ;;  %v5628_v7 = vpack.c.bf16 %v901_v1, %v893_v61  ;;  %v5132_v61 = vpack.c.bf16 %v963_v52, %v955_v51  ;;  %v1038_v51 = vld [vmem:[%s7560_s24 + $0x1798] sm:$0xff]  ;;  %v1091_v38 = vld [vmem:[%s7560_s24 + $0x1940] sm:$0xff] }
  0xfa   : > { %v5118_v8 = vpack.c.bf16 %v916_v3, %v908_v2  ;;  %v971_v2 = vld [vmem:[%s7560_s24 + $0x1580] sm:$0xff]  ;;  %v1046_v52 = vld [vmem:[%s7560_s24 + $0x17d8] sm:$0xff] }
  0xfb   : > { %5101 = vmatpush1.bf16.msra.mxu0 %v5100_v14  ;;  %v917_v14 = vld [vmem:[%s7560_s24 + $0x13d0] sm:$0xff]  ;;  %v979_v3 = vld [vmem:[%s7560_s24 + $0x15c0] sm:$0xff]  ;;  %v5662_v60 = vpack.c.bf16 %v1046_v52, %v1038_v51 }
  0xfc   : > { %5613 = vmatpush1.bf16.msra.mxu1 %v5612_v15  ;;  %5103 = vmatprep.subr.bf16.mxu0 %v5102_v16  ;;  %v924_v15 = vld [vmem:[%s7560_s24 + $0x1408] sm:$0xff]  ;;  %v1099_v51 = vld [vmem:[%s7560_s24 + $0x1980] sm:$0xff] }
  0xfd   : > { %5615 = vmatprep.subr.bf16.mxu1 %v5614_v20  ;;  %v932_v16 = vld [vmem:[%s7560_s24 + $0x1448] sm:$0xff]  ;;  %v5632_v20 = vpack.c.bf16 %v917_v14, %v909_v11  ;;  %v5136_v11 = vpack.c.bf16 %v979_v3, %v971_v2  ;;  %v2352_v2 = vcombine.high %v7887_v50, %v7887_v50  ;;  %v1054_v3 = vld [vmem:[%s7560_s24 + $0x1818] sm:$0xff]  ;;  %v1061_v50 = vld [vmem:[%s7560_s24 + $0x1850] sm:$0xff] }
  0xfe   : > { %v5122_v21 = vpack.c.bf16 %v932_v16, %v924_v15  ;;  %v987_v15 = vld [vmem:[%s7560_s24 + $0x1600] sm:$0xff] }
  0xff   : > { %5105 = vmatpush1.bf16.msra.mxu0 %v5104_v28  ;;  %v933_v28 = vld [vmem:[%s7560_s24 + $0x1450] sm:$0xff]  ;;  %v995_v16 = vld [vmem:[%s7560_s24 + $0x1640] sm:$0xff] }
 0x100   : > { %5617 = vmatpush1.bf16.msra.mxu1 %v5616_v29  ;;  %5107 = vmatprep.subr.bf16.mxu0 %v5106_v30  ;;  %v940_v29 = vld [vmem:[%s7560_s24 + $0x1488] sm:$0xff]  ;;  %v1107_v52 = vld [vmem:[%s7560_s24 + $0x19c0] sm:$0xff] }
 0x101   : > { %5619 = vmatprep.subr.bf16.mxu1 %v5618_v35  ;;  %v948_v30 = vld [vmem:[%s7560_s24 + $0x14c8] sm:$0xff]  ;;  %v5636_v35 = vpack.c.bf16 %v933_v28, %v925_v24  ;;  %v5140_v24 = vpack.c.bf16 %v995_v16, %v987_v15  ;;  %v8030_v15 = vrot.slane %v2352_v2, %v7682_v12  ;;  %v1070_v16 = vld [vmem:[%s7560_s24 + $0x1898] sm:$0xff]  ;;  %v1115_v2 = vld [vmem:[%s7560_s24 + $0x1a00] sm:$0xff] }
 0x102   : > { %v5126_v36 = vpack.c.bf16 %v948_v30, %v940_v29  ;;  %v1003_v29 = vld [vmem:[%s7560_s24 + $0x1680] sm:$0xff] }
 0x103   : > { %5109 = vmatpush1.bf16.msra.mxu0 %v5108_v42  ;;  %v949_v42 = vld [vmem:[%s7560_s24 + $0x14d0] sm:$0xff]  ;;  %v1011_v30 = vld [vmem:[%s7560_s24 + $0x16c0] sm:$0xff] }
 0x104   : > { %5621 = vmatpush1.bf16.msra.mxu1 %v5620_v43  ;;  %5111 = vmatprep.subr.bf16.mxu0 %v5110_v44  ;;  %v956_v43 = vld [vmem:[%s7560_s24 + $0x1508] sm:$0xff] }
 0x105   : > { %5623 = vmatprep.subr.bf16.mxu1 %v5622_v48  ;;  %v964_v44 = vld [vmem:[%s7560_s24 + $0x1548] sm:$0xff]  ;;  %v5640_v48 = vpack.c.bf16 %v949_v42, %v941_v39  ;;  %v5144_v39 = vpack.c.bf16 %v1011_v30, %v1003_v29  ;;  %v8042_v30 = vcombine.high %v8030_v15, %v8030_v15 }
 0x106   : > { %v5130_v49 = vpack.c.bf16 %v964_v44, %v956_v43  ;;  %v1019_v43 = vld [vmem:[%s7560_s24 + $0x1700] sm:$0xff]  ;;  %v1092_v29 = vld [vmem:[%s7560_s24 + $0x1948] sm:$0xff] }
 0x107   : > { %5113 = vmatpush1.bf16.msra.mxu0 %v5112_v55  ;;  %v965_v55 = vld [vmem:[%s7560_s24 + $0x1550] sm:$0xff]  ;;  %v1027_v44 = vld [vmem:[%s7560_s24 + $0x1740] sm:$0xff] }
 0x108   : > { %5625 = vmatpush1.bf16.msra.mxu1 %v5624_v57  ;;  %5115 = vmatprep.subr.bf16.mxu0 %v5114_v58  ;;  %v972_v57 = vld [vmem:[%s7560_s24 + $0x1588] sm:$0xff] }
 0x109   : > { %5627 = vmatprep.subr.bf16.mxu1 %v5626_v62  ;;  %v980_v58 = vld [vmem:[%s7560_s24 + $0x15c8] sm:$0xff]  ;;  %v5644_v62 = vpack.c.bf16 %v965_v55, %v957_v53  ;;  %v5148_v53 = vpack.c.bf16 %v1027_v44, %v1019_v43 }
 0x10a   : > { %v5134_v1 = vpack.c.bf16 %v980_v58, %v972_v57  ;;  %v1035_v57 = vld [vmem:[%s7560_s24 + $0x1780] sm:$0xff]  ;;  %v1100_v43 = vld [vmem:[%s7560_s24 + $0x1988] sm:$0xff] }
 0x10b   : > { %5117 = vmatpush1.bf16.msra.mxu0 %v5116_v6  ;;  %v981_v6 = vld [vmem:[%s7560_s24 + $0x15d0] sm:$0xff]  ;;  %v1043_v58 = vld [vmem:[%s7560_s24 + $0x17c0] sm:$0xff]  ;;  %v1108_v44 = vld [vmem:[%s7560_s24 + $0x19c8] sm:$0xff] }
 0x10c   : > { %5629 = vmatpush1.bf16.msra.mxu1 %v5628_v7  ;;  %5119 = vmatprep.subr.bf16.mxu0 %v5118_v8  ;;  %v988_v7 = vld [vmem:[%s7560_s24 + $0x1608] sm:$0xff] }
 0x10d   : > { %5631 = vmatprep.subr.bf16.mxu1 %v5630_v13  ;;  %v996_v8 = vld [vmem:[%s7560_s24 + $0x1648] sm:$0xff]  ;;  %v5648_v13 = vpack.c.bf16 %v981_v6, %v973_v4  ;;  %v1062_v4 = vld [vmem:[%s7560_s24 + $0x1858] sm:$0xff] }
 0x10e   : > { %v5138_v14 = vpack.c.bf16 %v996_v8, %v988_v7  ;;  %v1051_v8 = vld [vmem:[%s7560_s24 + $0x1800] sm:$0xff] }
 0x10f   : > { %5121 = vmatpush1.bf16.msra.mxu0 %v5120_v19  ;;  %v997_v19 = vld [vmem:[%s7560_s24 + $0x1650] sm:$0xff] }
 0x110   : > { %5633 = vmatpush1.bf16.msra.mxu1 %v5632_v20  ;;  %5123 = vmatprep.subr.bf16.mxu0 %v5122_v21  ;;  %v1004_v20 = vld [vmem:[%s7560_s24 + $0x1688] sm:$0xff] }
 0x111   : > { %5635 = vmatprep.subr.bf16.mxu1 %v5634_v27  ;;  %v1012_v21 = vld [vmem:[%s7560_s24 + $0x16c8] sm:$0xff]  ;;  %v5652_v27 = vpack.c.bf16 %v997_v19, %v989_v17  ;;  %v1078_v17 = vld [vmem:[%s7560_s24 + $0x18d8] sm:$0xff]  ;;  %v5668_v19 = vpack.c.bf16 %v1061_v50, %v1053_v10 }
 0x112   : > { %v5142_v28 = vpack.c.bf16 %v1012_v21, %v1004_v20  ;;  %v1067_v21 = vld [vmem:[%s7560_s24 + $0x1880] sm:$0xff]  ;;  %v1142_v10 = vld [vmem:[%s7560_s24 + $0x1ad8] sm:$0xff] }
 0x113   : > { %5125 = vmatpush1.bf16.msra.mxu0 %v5124_v34  ;;  %v1013_v34 = vld [vmem:[%s7560_s24 + $0x16d0] sm:$0xff] }
 0x114   : > { %5637 = vmatpush1.bf16.msra.mxu1 %v5636_v35  ;;  %5127 = vmatprep.subr.bf16.mxu0 %v5126_v36  ;;  %v1020_v35 = vld [vmem:[%s7560_s24 + $0x1708] sm:$0xff] }
 0x115   : > { %5639 = vmatprep.subr.bf16.mxu1 %v5638_v41  ;;  %v1028_v36 = vld [vmem:[%s7560_s24 + $0x1748] sm:$0xff]  ;;  %v5656_v41 = vpack.c.bf16 %v1013_v34, %v1005_v31  ;;  %v1086_v31 = vld [vmem:[%s7560_s24 + $0x1918] sm:$0xff]  ;;  %v5160_v34 = vpack.c.bf16 %v1075_v22, %v1067_v21 }
 0x116   : > { %v5146_v42 = vpack.c.bf16 %v1028_v36, %v1020_v35  ;;  %v1156_v21 = vld [vmem:[%s7560_s24 + $0x1b48] sm:$0xff]  ;;  %v1150_v22 = vld [vmem:[%s7560_s24 + $0x1b18] sm:$0xff] }
 0x117   : > { %5129 = vmatpush1.bf16.msra.mxu0 %v5128_v47  ;;  %v1029_v47 = vld [vmem:[%s7560_s24 + $0x1750] sm:$0xff] }
 0x118   : > { %5641 = vmatpush1.bf16.msra.mxu1 %v5640_v48  ;;  %5131 = vmatprep.subr.bf16.mxu0 %v5130_v49  ;;  %v1036_v48 = vld [vmem:[%s7560_s24 + $0x1788] sm:$0xff] }
 0x119   : > { %5643 = vmatprep.subr.bf16.mxu1 %v5642_v54  ;;  %v1044_v49 = vld [vmem:[%s7560_s24 + $0x17c8] sm:$0xff]  ;;  %v5660_v54 = vpack.c.bf16 %v1029_v47, %v1021_v45  ;;  %v1102_v45 = vld [vmem:[%s7560_s24 + $0x1998] sm:$0xff]  ;;  %v5164_v47 = vpack.c.bf16 %v1091_v38, %v1083_v37 }
 0x11a   : > { %v5150_v55 = vpack.c.bf16 %v1044_v49, %v1036_v48  ;;  %v5166_v49 = vpack.c.bf16 %v1108_v44, %v1100_v43  ;;  %v1172_v37 = vld [vmem:[%s7560_s24 + $0x1bc8] sm:$0xff]  ;;  %v1166_v38 = vld [vmem:[%s7560_s24 + $0x1b98] sm:$0xff]  ;;  %v1163_v44 = vld [vmem:[%s7560_s24 + $0x1b80] sm:$0xff] }
 0x11b   : > { %5133 = vmatpush1.bf16.msra.mxu0 %v5132_v61  ;;  %v1045_v61 = vld [vmem:[%s7560_s24 + $0x17d0] sm:$0xff] }
 0x11c   : > { %5645 = vmatpush1.bf16.msra.mxu1 %v5644_v62  ;;  %5135 = vmatprep.subr.bf16.mxu0 %v5134_v1  ;;  %v1052_v62 = vld [vmem:[%s7560_s24 + $0x1808] sm:$0xff]  ;;  %v5664_v6 = vpack.c.bf16 %v1045_v61, %v1037_v59  ;;  %v1118_v59 = vld [vmem:[%s7560_s24 + $0x1a18] sm:$0xff]  ;;  %v5168_v61 = vpack.c.bf16 %v1107_v52, %v1099_v51 }
 0x11d   : > { %5647 = vmatprep.subr.bf16.mxu1 %v5646_v5  ;;  %v1060_v1 = vld [vmem:[%s7560_s24 + $0x1848] sm:$0xff]  ;;  %v5152_v5 = vpack.c.bf16 %v1043_v58, %v1035_v57  ;;  %v1182_v52 = vld [vmem:[%s7560_s24 + $0x1c18] sm:$0xff] }
 0x11e   : > { %v5154_v7 = vpack.c.bf16 %v1060_v1, %v1052_v62  ;;  %v1116_v57 = vld [vmem:[%s7560_s24 + $0x1a08] sm:$0xff] }
 0x11f   : > { %5137 = vmatpush1.bf16.msra.mxu0 %v5136_v11  ;;  %v5666_v11 = vpack.c.bf16 %v1062_v4, %v1054_v3  ;;  %v1124_v58 = vld [vmem:[%s7560_s24 + $0x1a48] sm:$0xff]  ;;  %v1123_v3 = vld [vmem:[%s7560_s24 + $0x1a40] sm:$0xff]  ;;  %v1117_v4 = vld [vmem:[%s7560_s24 + $0x1a10] sm:$0xff] }
 0x120   : > { %5649 = vmatpush1.bf16.msra.mxu1 %v5648_v13  ;;  %5139 = vmatprep.subr.bf16.mxu0 %v5138_v14  ;;  %v1068_v13 = vld [vmem:[%s7560_s24 + $0x1888] sm:$0xff]  ;;  %v5170_v1 = vpack.c.bf16 %v1124_v58, %v1116_v57  ;;  %v1179_v58 = vld [vmem:[%s7560_s24 + $0x1c00] sm:$0xff] }
 0x121   : > { %5651 = vmatprep.subr.bf16.mxu1 %v5650_v18  ;;  %v1076_v14 = vld [vmem:[%s7560_s24 + $0x18c8] sm:$0xff]  ;;  %v5156_v18 = vpack.c.bf16 %v1059_v9, %v1051_v8  ;;  %v1134_v9 = vld [vmem:[%s7560_s24 + $0x1a98] sm:$0xff] }
 0x122   : > { %v5158_v20 = vpack.c.bf16 %v1076_v14, %v1068_v13  ;;  %v1140_v8 = vld [vmem:[%s7560_s24 + $0x1ac8] sm:$0xff]  ;;  %v1131_v14 = vld [vmem:[%s7560_s24 + $0x1a80] sm:$0xff] }
 0x123   : > { %5141 = vmatpush1.bf16.msra.mxu0 %v5140_v24  ;;  %v5670_v24 = vpack.c.bf16 %v1078_v17, %v1070_v16  ;;  %v1139_v16 = vld [vmem:[%s7560_s24 + $0x1ac0] sm:$0xff]  ;;  %v1133_v17 = vld [vmem:[%s7560_s24 + $0x1a90] sm:$0xff]  ;;  %v1188_v51 = vld [vmem:[%s7560_s24 + $0x1c48] sm:$0xff] }
 0x124   : > { %5653 = vmatpush1.bf16.msra.mxu1 %v5652_v27  ;;  %5143 = vmatprep.subr.bf16.mxu0 %v5142_v28  ;;  %v1077_v27 = vld [vmem:[%s7560_s24 + $0x18d0] sm:$0xff]  ;;  %v1084_v28 = vld [vmem:[%s7560_s24 + $0x1908] sm:$0xff] }
 0x125   : > { %5655 = vmatprep.subr.bf16.mxu1 %v5654_v32  ;;  %v1094_v32 = vld [vmem:[%s7560_s24 + $0x1958] sm:$0xff]  ;;  %v5672_v35 = vpack.c.bf16 %v1077_v27, %v1069_v23  ;;  %v5162_v36 = vpack.c.bf16 %v1092_v29, %v1084_v28  ;;  %v1147_v29 = vld [vmem:[%s7560_s24 + $0x1b00] sm:$0xff] }
 0x126   : > { %v1158_v23 = vld [vmem:[%s7560_s24 + $0x1b58] sm:$0xff] }
 0x127   : > { %5145 = vmatpush1.bf16.msra.mxu0 %v5144_v39  ;;  %v1085_v39 = vld [vmem:[%s7560_s24 + $0x1910] sm:$0xff] }
 0x128   : > { %5657 = vmatpush1.bf16.msra.mxu1 %v5656_v41  ;;  %5147 = vmatprep.subr.bf16.mxu0 %v5146_v42  ;;  %v5674_v41 = vpack.c.bf16 %v1094_v32, %v1086_v31  ;;  %v1093_v42 = vld [vmem:[%s7560_s24 + $0x1950] sm:$0xff]  ;;  %v1155_v31 = vld [vmem:[%s7560_s24 + $0x1b40] sm:$0xff] }
 0x129   : > { %5659 = vmatprep.subr.bf16.mxu1 %v5658_v46  ;;  %v1110_v46 = vld [vmem:[%s7560_s24 + $0x19d8] sm:$0xff]  ;;  %v5676_v48 = vpack.c.bf16 %v1093_v42, %v1085_v39  ;;  %v1149_v32 = vld [vmem:[%s7560_s24 + $0x1b10] sm:$0xff] }
 0x12a   : > { %v1174_v39 = vld [vmem:[%s7560_s24 + $0x1bd8] sm:$0xff] }
 0x12b   : > { %5149 = vmatpush1.bf16.msra.mxu0 %v5148_v53  ;;  %v1101_v53 = vld [vmem:[%s7560_s24 + $0x1990] sm:$0xff] }
 0x12c   : > { %5661 = vmatpush1.bf16.msra.mxu1 %v5660_v54  ;;  %5151 = vmatprep.subr.bf16.mxu0 %v5150_v55  ;;  %v5678_v54 = vpack.c.bf16 %v1110_v46, %v1102_v45  ;;  %v1109_v55 = vld [vmem:[%s7560_s24 + $0x19d0] sm:$0xff]  ;;  %v1171_v45 = vld [vmem:[%s7560_s24 + $0x1bc0] sm:$0xff] }
 0x12d   : > { %5663 = vmatprep.subr.bf16.mxu1 %v5662_v60  ;;  %v1126_v60 = vld [vmem:[%s7560_s24 + $0x1a58] sm:$0xff]  ;;  %v5680_v62 = vpack.c.bf16 %v1109_v55, %v1101_v53  ;;  %v1165_v46 = vld [vmem:[%s7560_s24 + $0x1b90] sm:$0xff] }
 0x12e   : > { %v1190_v53 = vld [vmem:[%s7560_s24 + $0x1c58] sm:$0xff] }
 0x12f   : > { %5153 = vmatpush1.bf16.msra.mxu0 %v5152_v5  ;;  %v5682_v5 = vpack.c.bf16 %v1126_v60, %v1118_v59  ;;  %v1187_v59 = vld [vmem:[%s7560_s24 + $0x1c40] sm:$0xff]  ;;  %v1181_v60 = vld [vmem:[%s7560_s24 + $0x1c10] sm:$0xff] }
 0x130   : > { %5665 = vmatpush1.bf16.msra.mxu1 %v5664_v6  ;;  %5155 = vmatprep.subr.bf16.mxu0 %v5154_v7  ;;  %v1125_v6 = vld [vmem:[%s7560_s24 + $0x1a50] sm:$0xff]  ;;  %v1132_v7 = vld [vmem:[%s7560_s24 + $0x1a88] sm:$0xff] }
 0x131   : > { %5667 = vmatprep.subr.bf16.mxu1 %v5666_v11  ;;  %v5172_v11 = vpack.c.bf16 %v1123_v3, %v1115_v2  ;;  %v5684_v50 = vpack.c.bf16 %v1125_v6, %v1117_v4  ;;  %v5174_v13 = vpack.c.bf16 %v1140_v8, %v1132_v7  ;;  %v1204_v2 = vld [vmem:[%s7560_s24 + $0x1cc8] sm:$0xff]  ;;  %v1198_v3 = vld [vmem:[%s7560_s24 + $0x1c98] sm:$0xff]  ;;  %v1195_v8 = vld [vmem:[%s7560_s24 + $0x1c80] sm:$0xff] }
 0x132   : > { %2626 = vmatmul.mubr.f32.vlgmr.msra.gmra.mrb[0].mxu0 %v7894_v56  ;;  %v1206_v4 = vld [vmem:[%s7560_s24 + $0x1cd8] sm:$0xff] }
 0x133   : > { %5157 = vmatpush1.bf16.msra.mxu0 %v5156_v18  ;;  %3194 = vmatmul.mubr.f32.vlgmr.msra.gmra.mrb[0].mxu1 %v7894_v56  ;;  %v5686_v18 = vpack.c.bf16 %v1142_v10, %v1134_v9  ;;  %v1203_v9 = vld [vmem:[%s7560_s24 + $0x1cc0] sm:$0xff]  ;;  %v1197_v10 = vld [vmem:[%s7560_s24 + $0x1c90] sm:$0xff] }
 0x134   : > { %5669 = vmatpush1.bf16.msra.mxu1 %v5668_v19  ;;  %5159 = vmatprep.subr.bf16.mxu0 %v5158_v20  ;;  %v1141_v19 = vld [vmem:[%s7560_s24 + $0x1ad0] sm:$0xff]  ;;  %v1148_v20 = vld [vmem:[%s7560_s24 + $0x1b08] sm:$0xff] }
 0x135   : > { %5671 = vmatprep.subr.bf16.mxu1 %v5670_v24  ;;  %2696 = vmatprep.mubr.f32.mxu0 %v8042_v30  ;;  %v5176_v24 = vpack.c.bf16 %v1139_v16, %v1131_v14  ;;  %v5688_v27 = vpack.c.bf16 %v1141_v19, %v1133_v17  ;;  %v5178_v28 = vpack.c.bf16 %v1156_v21, %v1148_v20  ;;  %v1220_v14 = vld [vmem:[%s7560_s24 + $0x1d48] sm:$0xff]  ;;  %v1214_v16 = vld [vmem:[%s7560_s24 + $0x1d18] sm:$0xff]  ;;  %v1211_v21 = vld [vmem:[%s7560_s24 + $0x1d00] sm:$0xff] }
 0x136   : > { %3264 = vmatprep.mubr.f32.mxu1 %v8042_v30  ;;  %v1222_v17 = vld [vmem:[%s7560_s24 + $0x1d58] sm:$0xff] }
 0x137   : > { %5161 = vmatpush1.bf16.msra.mxu0 %v5160_v34  ;;  %v5690_v34 = vpack.c.bf16 %v1158_v23, %v1150_v22  ;;  %v1219_v22 = vld [vmem:[%s7560_s24 + $0x1d40] sm:$0xff]  ;;  %v1213_v23 = vld [vmem:[%s7560_s24 + $0x1d10] sm:$0xff] }
 0x138   : > { %5673 = vmatpush1.bf16.msra.mxu1 %v5672_v35  ;;  %5163 = vmatprep.subr.bf16.mxu0 %v5162_v36  ;;  %v1157_v35 = vld [vmem:[%s7560_s24 + $0x1b50] sm:$0xff]  ;;  %v1164_v36 = vld [vmem:[%s7560_s24 + $0x1b88] sm:$0xff] }
 0x139   : > { %5675 = vmatprep.subr.bf16.mxu1 %v5674_v41  ;;  %v5180_v41 = vpack.c.bf16 %v1155_v31, %v1147_v29  ;;  %v5692_v42 = vpack.c.bf16 %v1157_v35, %v1149_v32  ;;  %v5182_v43 = vpack.c.bf16 %v1172_v37, %v1164_v36  ;;  %v1236_v29 = vld [vmem:[%s7560_s24 + $0x1dc8] sm:$0xff]  ;;  %v1230_v31 = vld [vmem:[%s7560_s24 + $0x1d98] sm:$0xff]  ;;  %v1227_v37 = vld [vmem:[%s7560_s24 + $0x1d80] sm:$0xff] }
 0x13a   : > { %v1238_v32 = vld [vmem:[%s7560_s24 + $0x1dd8] sm:$0xff] }
 0x13b   : > { %5165 = vmatpush1.bf16.msra.mxu0 %v5164_v47  ;;  %v5694_v47 = vpack.c.bf16 %v1174_v39, %v1166_v38  ;;  %v1235_v38 = vld [vmem:[%s7560_s24 + $0x1dc0] sm:$0xff]  ;;  %v1229_v39 = vld [vmem:[%s7560_s24 + $0x1d90] sm:$0xff] }
 0x13c   : > { %5677 = vmatpush1.bf16.msra.mxu1 %v5676_v48  ;;  %5167 = vmatprep.subr.bf16.mxu0 %v5166_v49  ;;  %v1173_v48 = vld [vmem:[%s7560_s24 + $0x1bd0] sm:$0xff]  ;;  %v1180_v49 = vld [vmem:[%s7560_s24 + $0x1c08] sm:$0xff] }
 0x13d   : > { %5679 = vmatprep.subr.bf16.mxu1 %v5678_v54  ;;  %v5184_v54 = vpack.c.bf16 %v1171_v45, %v1163_v44  ;;  %v5696_v55 = vpack.c.bf16 %v1173_v48, %v1165_v46  ;;  %v5186_v57 = vpack.c.bf16 %v1188_v51, %v1180_v49  ;;  %v1252_v44 = vld [vmem:[%s7560_s24 + $0x1e48] sm:$0xff]  ;;  %v1246_v45 = vld [vmem:[%s7560_s24 + $0x1e18] sm:$0xff]  ;;  %v1243_v51 = vld [vmem:[%s7560_s24 + $0x1e00] sm:$0xff] }
 0x13e   : > { %v1254_v46 = vld [vmem:[%s7560_s24 + $0x1e58] sm:$0xff] }
 0x13f   : > { %5169 = vmatpush1.bf16.msra.mxu0 %v5168_v61  ;;  %v5698_v61 = vpack.c.bf16 %v1190_v53, %v1182_v52  ;;  %v1251_v52 = vld [vmem:[%s7560_s24 + $0x1e40] sm:$0xff]  ;;  %v1245_v53 = vld [vmem:[%s7560_s24 + $0x1e10] sm:$0xff] }
 0x140   : > { %5681 = vmatpush1.bf16.msra.mxu1 %v5680_v62  ;;  %5171 = vmatprep.subr.bf16.mxu0 %v5170_v1  ;;  %v1189_v62 = vld [vmem:[%s7560_s24 + $0x1c50] sm:$0xff]  ;;  %v1196_v1 = vld [vmem:[%s7560_s24 + $0x1c88] sm:$0xff] }
 0x141   : > { %5683 = vmatprep.subr.bf16.mxu1 %v5682_v5  ;;  %v5188_v5 = vpack.c.bf16 %v1187_v59, %v1179_v58  ;;  %v5700_v6 = vpack.c.bf16 %v1189_v62, %v1181_v60  ;;  %v5190_v7 = vpack.c.bf16 %v1204_v2, %v1196_v1  ;;  %v1268_v58 = vld [vmem:[%s7560_s24 + $0x1ec8] sm:$0xff]  ;;  %v1262_v59 = vld [vmem:[%s7560_s24 + $0x1e98] sm:$0xff]  ;;  %v1259_v2 = vld [vmem:[%s7560_s24 + $0x1e80] sm:$0xff] }
 0x142   : > { %v1270_v60 = vld [vmem:[%s7560_s24 + $0x1ed8] sm:$0xff] }
 0x143   : > { %5173 = vmatpush1.bf16.msra.mxu0 %v5172_v11  ;;  %v5702_v11 = vpack.c.bf16 %v1206_v4, %v1198_v3  ;;  %v1267_v3 = vld [vmem:[%s7560_s24 + $0x1ec0] sm:$0xff]  ;;  %v1261_v4 = vld [vmem:[%s7560_s24 + $0x1e90] sm:$0xff] }
 0x144   : > { %5685 = vmatpush1.bf16.msra.mxu1 %v5684_v50  ;;  %5175 = vmatprep.subr.bf16.mxu0 %v5174_v13  ;;  %v1205_v50 = vld [vmem:[%s7560_s24 + $0x1cd0] sm:$0xff]  ;;  %v1212_v13 = vld [vmem:[%s7560_s24 + $0x1d08] sm:$0xff] }
 0x145   : > { %5687 = vmatprep.subr.bf16.mxu1 %v5686_v18  ;;  %v5192_v18 = vpack.c.bf16 %v1203_v9, %v1195_v8  ;;  %v5704_v19 = vpack.c.bf16 %v1205_v50, %v1197_v10  ;;  %v5194_v20 = vpack.c.bf16 %v1220_v14, %v1212_v13  ;;  %v1284_v8 = vld [vmem:[%s7560_s24 + $0x1f48] sm:$0xff]  ;;  %v1278_v9 = vld [vmem:[%s7560_s24 + $0x1f18] sm:$0xff]  ;;  %v1275_v14 = vld [vmem:[%s7560_s24 + $0x1f00] sm:$0xff] }
 0x146   : > { %v1286_v10 = vld [vmem:[%s7560_s24 + $0x1f58] sm:$0xff] }
 0x147   : > { %5177 = vmatpush1.bf16.msra.mxu0 %v5176_v24  ;;  %v5706_v24 = vpack.c.bf16 %v1222_v17, %v1214_v16  ;;  %v1283_v16 = vld [vmem:[%s7560_s24 + $0x1f40] sm:$0xff]  ;;  %v1277_v17 = vld [vmem:[%s7560_s24 + $0x1f10] sm:$0xff] }
 0x148   : > { %5689 = vmatpush1.bf16.msra.mxu1 %v5688_v27  ;;  %5179 = vmatprep.subr.bf16.mxu0 %v5178_v28  ;;  %v1221_v27 = vld [vmem:[%s7560_s24 + $0x1d50] sm:$0xff]  ;;  %v1228_v28 = vld [vmem:[%s7560_s24 + $0x1d88] sm:$0xff] }
 0x149   : > { %5691 = vmatprep.subr.bf16.mxu1 %v5690_v34  ;;  %v5196_v34 = vpack.c.bf16 %v1219_v22, %v1211_v21  ;;  %v5708_v35 = vpack.c.bf16 %v1221_v27, %v1213_v23  ;;  %v5198_v36 = vpack.c.bf16 %v1236_v29, %v1228_v28  ;;  %v1300_v21 = vld [vmem:[%s7560_s24 + $0x1fc8] sm:$0xff]  ;;  %v1294_v22 = vld [vmem:[%s7560_s24 + $0x1f98] sm:$0xff]  ;;  %v1291_v29 = vld [vmem:[%s7560_s24 + $0x1f80] sm:$0xff] }
 0x14a   : > { %v1302_v23 = vld [vmem:[%s7560_s24 + $0x1fd8] sm:$0xff] }
 0x14b   : > { %5181 = vmatpush1.bf16.msra.mxu0 %v5180_v41  ;;  %v5710_v41 = vpack.c.bf16 %v1238_v32, %v1230_v31  ;;  %v1299_v31 = vld [vmem:[%s7560_s24 + $0x1fc0] sm:$0xff]  ;;  %v1293_v32 = vld [vmem:[%s7560_s24 + $0x1f90] sm:$0xff] }
 0x14c   : > { %5693 = vmatpush1.bf16.msra.mxu1 %v5692_v42  ;;  %5183 = vmatprep.subr.bf16.mxu0 %v5182_v43  ;;  %v1237_v42 = vld [vmem:[%s7560_s24 + $0x1dd0] sm:$0xff]  ;;  %v1244_v43 = vld [vmem:[%s7560_s24 + $0x1e08] sm:$0xff] }
 0x14d   : > { %5695 = vmatprep.subr.bf16.mxu1 %v5694_v47  ;;  %v5200_v47 = vpack.c.bf16 %v1235_v38, %v1227_v37  ;;  %v5712_v48 = vpack.c.bf16 %v1237_v42, %v1229_v39  ;;  %v5202_v49 = vpack.c.bf16 %v1252_v44, %v1244_v43  ;;  %v1316_v37 = vld [vmem:[%s7560_s24 + $0x2048] sm:$0xff]  ;;  %v1310_v38 = vld [vmem:[%s7560_s24 + $0x2018] sm:$0xff]  ;;  %v5216_v42 = vpack.c.bf16 %v1299_v31, %v1291_v29  ;;  %v1365_v31 = vld [vmem:[%s7560_s24 + $0x21d0] sm:$0xff] }
 0x14e   : > { %v1318_v39 = vld [vmem:[%s7560_s24 + $0x2058] sm:$0xff] }
 0x14f   : > { %5185 = vmatpush1.bf16.msra.mxu0 %v5184_v54  ;;  %v5714_v54 = vpack.c.bf16 %v1254_v46, %v1246_v45  ;;  %v1307_v45 = vld [vmem:[%s7560_s24 + $0x2000] sm:$0xff] }
 0x150   : > { %5697 = vmatpush1.bf16.msra.mxu1 %v5696_v55  ;;  %5187 = vmatprep.subr.bf16.mxu0 %v5186_v57  ;;  %v1253_v55 = vld [vmem:[%s7560_s24 + $0x1e50] sm:$0xff]  ;;  %v1260_v57 = vld [vmem:[%s7560_s24 + $0x1e88] sm:$0xff]  ;;  %v1315_v46 = vld [vmem:[%s7560_s24 + $0x2040] sm:$0xff] }
 0x151   : > { %5699 = vmatprep.subr.bf16.mxu1 %v5698_v61  ;;  %v5204_v61 = vpack.c.bf16 %v1251_v52, %v1243_v51  ;;  %v5716_v62 = vpack.c.bf16 %v1253_v55, %v1245_v53  ;;  %v5206_v1 = vpack.c.bf16 %v1268_v58, %v1260_v57  ;;  %v1324_v51 = vld [vmem:[%s7560_s24 + $0x2088] sm:$0xff]  ;;  %v1334_v55 = vld [vmem:[%s7560_s24 + $0x20d8] sm:$0xff]  ;;  %v5220_v57 = vpack.c.bf16 %v1315_v46, %v1307_v45  ;;  %v1381_v46 = vld [vmem:[%s7560_s24 + $0x2250] sm:$0xff] }
 0x152   : > { %v1332_v52 = vld [vmem:[%s7560_s24 + $0x20c8] sm:$0xff] }
 0x153   : > { %5189 = vmatpush1.bf16.msra.mxu0 %v5188_v5  ;;  %v5718_v5 = vpack.c.bf16 %v1270_v60, %v1262_v59  ;;  %v5222_v59 = vpack.c.bf16 %v1332_v52, %v1324_v51  ;;  %v1323_v60 = vld [vmem:[%s7560_s24 + $0x2080] sm:$0xff]  ;;  %v1398_v51 = vld [vmem:[%s7560_s24 + $0x22d8] sm:$0xff] }
 0x154   : > { %5701 = vmatpush1.bf16.msra.mxu1 %v5700_v6  ;;  %5191 = vmatprep.subr.bf16.mxu0 %v5190_v7  ;;  %v1269_v6 = vld [vmem:[%s7560_s24 + $0x1ed0] sm:$0xff]  ;;  %v1276_v7 = vld [vmem:[%s7560_s24 + $0x1f08] sm:$0xff] }
 0x155   : > { %5703 = vmatprep.subr.bf16.mxu1 %v5702_v11  ;;  %v5208_v11 = vpack.c.bf16 %v1267_v3, %v1259_v2  ;;  %v5720_v50 = vpack.c.bf16 %v1269_v6, %v1261_v4  ;;  %v5210_v13 = vpack.c.bf16 %v1284_v8, %v1276_v7  ;;  %v1333_v2 = vld [vmem:[%s7560_s24 + $0x20d0] sm:$0xff]  ;;  %v1340_v3 = vld [vmem:[%s7560_s24 + $0x2108] sm:$0xff]  ;;  %v1342_v6 = vld [vmem:[%s7560_s24 + $0x2118] sm:$0xff] }
 0x156   : > { %v1348_v4 = vld [vmem:[%s7560_s24 + $0x2148] sm:$0xff]  ;;  %v1350_v7 = vld [vmem:[%s7560_s24 + $0x2158] sm:$0xff] }
 0x157   : > { %5193 = vmatpush1.bf16.msra.mxu0 %v5192_v18  ;;  %v5722_v18 = vpack.c.bf16 %v1286_v10, %v1278_v9  ;;  %v5226_v10 = vpack.c.bf16 %v1348_v4, %v1340_v3  ;;  %v1414_v3 = vld [vmem:[%s7560_s24 + $0x2358] sm:$0xff] }
 0x158   : > { %5705 = vmatpush1.bf16.msra.mxu1 %v5704_v19  ;;  %5195 = vmatprep.subr.bf16.mxu0 %v5194_v20  ;;  %v1285_v19 = vld [vmem:[%s7560_s24 + $0x1f50] sm:$0xff]  ;;  %v1292_v20 = vld [vmem:[%s7560_s24 + $0x1f88] sm:$0xff] }
 0x159   : > { %5707 = vmatprep.subr.bf16.mxu1 %v5706_v24  ;;  %v5212_v24 = vpack.c.bf16 %v1283_v16, %v1275_v14  ;;  %v5724_v27 = vpack.c.bf16 %v1285_v19, %v1277_v17  ;;  %v5214_v28 = vpack.c.bf16 %v1300_v21, %v1292_v20  ;;  %v5738_v14 = vpack.c.bf16 %v1350_v7, %v1342_v6  ;;  %v1349_v16 = vld [vmem:[%s7560_s24 + $0x2150] sm:$0xff]  ;;  %v1356_v17 = vld [vmem:[%s7560_s24 + $0x2188] sm:$0xff]  ;;  %v1358_v19 = vld [vmem:[%s7560_s24 + $0x2198] sm:$0xff] }
 0x15a   : > { %v1366_v20 = vld [vmem:[%s7560_s24 + $0x21d8] sm:$0xff] }
 0x15b   : > { %5197 = vmatpush1.bf16.msra.mxu0 %v5196_v34  ;;  %v5726_v34 = vpack.c.bf16 %v1302_v23, %v1294_v22  ;;  %v5742_v29 = vpack.c.bf16 %v1366_v20, %v1358_v19 }
 0x15c   : > { %5709 = vmatpush1.bf16.msra.mxu1 %v5708_v35  ;;  %5199 = vmatprep.subr.bf16.mxu0 %v5198_v36  ;;  %v1301_v35 = vld [vmem:[%s7560_s24 + $0x1fd0] sm:$0xff]  ;;  %v1308_v36 = vld [vmem:[%s7560_s24 + $0x2008] sm:$0xff] }
 0x15d   : > { %5711 = vmatprep.subr.bf16.mxu1 %v5710_v41  ;;  %v8163_v41 = vld [vmem:[%s7579_s30 + $0x10] sm:$0xff]  ;;  %v5728_v43 = vpack.c.bf16 %v1301_v35, %v1293_v32  ;;  %v5218_v44 = vpack.c.bf16 %v1316_v37, %v1308_v36  ;;  %v1372_v32 = vld [vmem:[%s7560_s24 + $0x2208] sm:$0xff]  ;;  %v1374_v35 = vld [vmem:[%s7560_s24 + $0x2218] sm:$0xff] }
 0x15e   : > { %v8173_v53 = vrot.slane %v8163_v41, %v7682_v12  ;;  %v1382_v36 = vld [vmem:[%s7560_s24 + $0x2258] sm:$0xff] }
 0x15f   : > { %5201 = vmatpush1.bf16.msra.mxu0 %v5200_v47  ;;  %v1309_v47 = vld [vmem:[%s7560_s24 + $0x2010] sm:$0xff]  ;;  %v5746_v45 = vpack.c.bf16 %v1382_v36, %v1374_v35 }
 0x160   : > { %5713 = vmatpush1.bf16.msra.mxu1 %v5712_v48  ;;  %5203 = vmatprep.subr.bf16.mxu0 %v5202_v49  ;;  %v5730_v48 = vpack.c.bf16 %v1318_v39, %v1310_v38  ;;  %v1317_v49 = vld [vmem:[%s7560_s24 + $0x2050] sm:$0xff] }
 0x161   : > { %5715 = vmatprep.subr.bf16.mxu1 %v5714_v54  ;;  %v1326_v54 = vld [vmem:[%s7560_s24 + $0x2098] sm:$0xff]  ;;  %v5732_v58 = vpack.c.bf16 %v1317_v49, %v1309_v47  ;;  %v1388_v47 = vld [vmem:[%s7560_s24 + $0x2288] sm:$0xff] }
 0x162   : > { %v1390_v49 = vld [vmem:[%s7560_s24 + $0x2298] sm:$0xff] }
 0x163   : > { %5205 = vmatpush1.bf16.msra.mxu0 %v5204_v61  ;;  %v1331_v61 = vld [vmem:[%s7560_s24 + $0x20c0] sm:$0xff] }
 0x164   : > { %5717 = vmatpush1.bf16.msra.mxu1 %v5716_v62  ;;  %5207 = vmatprep.subr.bf16.mxu0 %v5206_v1  ;;  %v1325_v62 = vld [vmem:[%s7560_s24 + $0x2090] sm:$0xff]  ;;  %v5734_v1 = vpack.c.bf16 %v1334_v55, %v1326_v54  ;;  %v5224_v8 = vpack.c.bf16 %v1331_v61, %v1323_v60  ;;  %v5750_v60 = vpack.c.bf16 %v1398_v51, %v1390_v49 }
 0x165   : > { %5719 = vmatprep.subr.bf16.mxu1 %v5718_v5  ;;  %v8185_v5 = vcombine.high %v8173_v53, %v8173_v53  ;;  %v5736_v9 = vpack.c.bf16 %v1333_v2, %v1325_v62  ;;  %v1397_v61 = vld [vmem:[%s7560_s24 + $0x22d0] sm:$0xff]  ;;  %v1404_v62 = vld [vmem:[%s7560_s24 + $0x2308] sm:$0xff]  ;;  %v1406_v2 = vld [vmem:[%s7560_s24 + $0x2318] sm:$0xff] }
 0x167   : > { %5209 = vmatpush1.bf16.msra.mxu0 %v5208_v11  ;;  %v1339_v11 = vld [vmem:[%s7560_s24 + $0x2100] sm:$0xff] }
 0x168   : > { %5721 = vmatpush1.bf16.msra.mxu1 %v5720_v50  ;;  %5211 = vmatprep.subr.bf16.mxu0 %v5210_v13  ;;  %v1347_v50 = vld [vmem:[%s7560_s24 + $0x2140] sm:$0xff]  ;;  %v1341_v13 = vld [vmem:[%s7560_s24 + $0x2110] sm:$0xff] }
 0x169   : > { %5723 = vmatprep.subr.bf16.mxu1 %v5722_v18  ;;  %v1364_v18 = vld [vmem:[%s7560_s24 + $0x21c8] sm:$0xff]  ;;  %v5228_v21 = vpack.c.bf16 %v1347_v50, %v1339_v11  ;;  %v5740_v22 = vpack.c.bf16 %v1349_v16, %v1341_v13  ;;  %v5754_v11 = vpack.c.bf16 %v1414_v3, %v1406_v2  ;;  %v1413_v50 = vld [vmem:[%s7560_s24 + $0x2350] sm:$0xff]  ;;  %v1422_v16 = vld [vmem:[%s7560_s24 + $0x2398] sm:$0xff] }
 0x16a   : > { %v5230_v23 = vpack.c.bf16 %v1364_v18, %v1356_v17  ;;  %v1420_v13 = vld [vmem:[%s7560_s24 + $0x2388] sm:$0xff]  ;;  %v1430_v17 = vld [vmem:[%s7560_s24 + $0x23d8] sm:$0xff] }
 0x16b   : > { %5213 = vmatpush1.bf16.msra.mxu0 %v5212_v24  ;;  %v1355_v24 = vld [vmem:[%s7560_s24 + $0x2180] sm:$0xff] }
 0x16c   : > { %5725 = vmatpush1.bf16.msra.mxu1 %v5724_v27  ;;  %5215 = vmatprep.subr.bf16.mxu0 %v5214_v28  ;;  %v1363_v27 = vld [vmem:[%s7560_s24 + $0x21c0] sm:$0xff]  ;;  %v1357_v28 = vld [vmem:[%s7560_s24 + $0x2190] sm:$0xff] }
 0x16d   : > { %5727 = vmatprep.subr.bf16.mxu1 %v5726_v34  ;;  %v1380_v34 = vld [vmem:[%s7560_s24 + $0x2248] sm:$0xff]  ;;  %v5232_v37 = vpack.c.bf16 %v1363_v27, %v1355_v24  ;;  %v5744_v38 = vpack.c.bf16 %v1365_v31, %v1357_v28  ;;  %v5758_v24 = vpack.c.bf16 %v1430_v17, %v1422_v16  ;;  %v1429_v27 = vld [vmem:[%s7560_s24 + $0x23d0] sm:$0xff]  ;;  %v1438_v31 = vld [vmem:[%s7560_s24 + $0x2418] sm:$0xff] }
 0x16e   : > { %v5234_v39 = vpack.c.bf16 %v1380_v34, %v1372_v32  ;;  %v1436_v28 = vld [vmem:[%s7560_s24 + $0x2408] sm:$0xff]  ;;  %v1446_v32 = vld [vmem:[%s7560_s24 + $0x2458] sm:$0xff] }
 0x16f   : > { %5217 = vmatpush1.bf16.msra.mxu0 %v5216_v42  ;;  %v1371_v42 = vld [vmem:[%s7560_s24 + $0x2200] sm:$0xff] }
 0x170   : > { %5729 = vmatpush1.bf16.msra.mxu1 %v5728_v43  ;;  %5219 = vmatprep.subr.bf16.mxu0 %v5218_v44  ;;  %v1379_v43 = vld [vmem:[%s7560_s24 + $0x2240] sm:$0xff]  ;;  %v1373_v44 = vld [vmem:[%s7560_s24 + $0x2210] sm:$0xff] }
 0x171   : > { %5731 = vmatprep.subr.bf16.mxu1 %v5730_v48  ;;  %v1396_v48 = vld [vmem:[%s7560_s24 + $0x22c8] sm:$0xff]  ;;  %v5236_v52 = vpack.c.bf16 %v1379_v43, %v1371_v42  ;;  %v5748_v54 = vpack.c.bf16 %v1381_v46, %v1373_v44  ;;  %v5762_v42 = vpack.c.bf16 %v1446_v32, %v1438_v31  ;;  %v1445_v43 = vld [vmem:[%s7560_s24 + $0x2450] sm:$0xff]  ;;  %v1454_v46 = vld [vmem:[%s7560_s24 + $0x2498] sm:$0xff] }
 0x172   : > { %2697 = vmatmul.mubr.f32.vlgmr.msra.gmra.mrb[0].mxu0 %v8030_v15  ;;  %v5238_v55 = vpack.c.bf16 %v1396_v48, %v1388_v47  ;;  %v1452_v44 = vld [vmem:[%s7560_s24 + $0x2488] sm:$0xff]  ;;  %v1462_v47 = vld [vmem:[%s7560_s24 + $0x24d8] sm:$0xff] }
 0x173   : > { %5221 = vmatpush1.bf16.msra.mxu0 %v5220_v57  ;;  %3265 = vmatmul.mubr.f32.vlgmr.msra.gmra.mrb[0].mxu1 %v8030_v15  ;;  %v1387_v57 = vld [vmem:[%s7560_s24 + $0x2280] sm:$0xff] }
 0x174   : > { %5733 = vmatpush1.bf16.msra.mxu1 %v5732_v58  ;;  %5223 = vmatprep.subr.bf16.mxu0 %v5222_v59  ;;  %v1395_v58 = vld [vmem:[%s7560_s24 + $0x22c0] sm:$0xff]  ;;  %v1389_v59 = vld [vmem:[%s7560_s24 + $0x2290] sm:$0xff] }
 0x175   : > { %5735 = vmatprep.subr.bf16.mxu1 %v5734_v1  ;;  %2767 = vmatprep.mubr.f32.mxu0 %v8185_v5  ;;  %v1412_v1 = vld [vmem:[%s7560_s24 + $0x2348] sm:$0xff]  ;;  %v5240_v4 = vpack.c.bf16 %v1395_v58, %v1387_v57  ;;  %v5752_v6 = vpack.c.bf16 %v1397_v61, %v1389_v59  ;;  %v5766_v57 = vpack.c.bf16 %v1462_v47, %v1454_v46  ;;  %v1461_v58 = vld [vmem:[%s7560_s24 + $0x24d0] sm:$0xff]  ;;  %v1470_v61 = vld [vmem:[%s7560_s24 + $0x2518] sm:$0xff] }
 0x176   : > { %3335 = vmatprep.mubr.f32.mxu1 %v8185_v5  ;;  %v5242_v7 = vpack.c.bf16 %v1412_v1, %v1404_v62  ;;  %v1468_v59 = vld [vmem:[%s7560_s24 + $0x2508] sm:$0xff]  ;;  %v1478_v62 = vld [vmem:[%s7560_s24 + $0x2558] sm:$0xff] }
 0x177   : > { %5225 = vmatpush1.bf16.msra.mxu0 %v5224_v8  ;;  %v1403_v8 = vld [vmem:[%s7560_s24 + $0x2300] sm:$0xff] }
 0x178   : > { %5737 = vmatpush1.bf16.msra.mxu1 %v5736_v9  ;;  %5227 = vmatprep.subr.bf16.mxu0 %v5226_v10  ;;  %v1411_v9 = vld [vmem:[%s7560_s24 + $0x2340] sm:$0xff]  ;;  %v1405_v10 = vld [vmem:[%s7560_s24 + $0x2310] sm:$0xff] }
 0x179   : > { %5739 = vmatprep.subr.bf16.mxu1 %v5738_v14  ;;  %v1428_v14 = vld [vmem:[%s7560_s24 + $0x23c8] sm:$0xff]  ;;  %v5244_v18 = vpack.c.bf16 %v1411_v9, %v1403_v8  ;;  %v5756_v19 = vpack.c.bf16 %v1413_v50, %v1405_v10  ;;  %v5770_v8 = vpack.c.bf16 %v1478_v62, %v1470_v61  ;;  %v1477_v9 = vld [vmem:[%s7560_s24 + $0x2550] sm:$0xff]  ;;  %v1486_v50 = vld [vmem:[%s7560_s24 + $0x2598] sm:$0xff] }
 0x17a   : > { %v5246_v20 = vpack.c.bf16 %v1428_v14, %v1420_v13  ;;  %v1484_v10 = vld [vmem:[%s7560_s24 + $0x2588] sm:$0xff]  ;;  %v1494_v13 = vld [vmem:[%s7560_s24 + $0x25d8] sm:$0xff] }
 0x17b   : > { %5229 = vmatpush1.bf16.msra.mxu0 %v5228_v21  ;;  %v1419_v21 = vld [vmem:[%s7560_s24 + $0x2380] sm:$0xff] }
 0x17c   : > { %5741 = vmatpush1.bf16.msra.mxu1 %v5740_v22  ;;  %5231 = vmatprep.subr.bf16.mxu0 %v5230_v23  ;;  %v1427_v22 = vld [vmem:[%s7560_s24 + $0x23c0] sm:$0xff]  ;;  %v1421_v23 = vld [vmem:[%s7560_s24 + $0x2390] sm:$0xff] }
 0x17d   : > { %5743 = vmatprep.subr.bf16.mxu1 %v5742_v29  ;;  %v1444_v29 = vld [vmem:[%s7560_s24 + $0x2448] sm:$0xff]  ;;  %v5248_v34 = vpack.c.bf16 %v1427_v22, %v1419_v21  ;;  %v5760_v35 = vpack.c.bf16 %v1429_v27, %v1421_v23  ;;  %v5774_v21 = vpack.c.bf16 %v1494_v13, %v1486_v50  ;;  %v1493_v22 = vld [vmem:[%s7560_s24 + $0x25d0] sm:$0xff]  ;;  %v1502_v27 = vld [vmem:[%s7560_s24 + $0x2618] sm:$0xff] }
 0x17e   : > { %v5250_v36 = vpack.c.bf16 %v1444_v29, %v1436_v28  ;;  %v1500_v23 = vld [vmem:[%s7560_s24 + $0x2608] sm:$0xff]  ;;  %v1510_v28 = vld [vmem:[%s7560_s24 + $0x2658] sm:$0xff] }
 0x17f   : > { %5233 = vmatpush1.bf16.msra.mxu0 %v5232_v37  ;;  %v1435_v37 = vld [vmem:[%s7560_s24 + $0x2400] sm:$0xff] }
 0x180   : > { %5745 = vmatpush1.bf16.msra.mxu1 %v5744_v38  ;;  %5235 = vmatprep.subr.bf16.mxu0 %v5234_v39  ;;  %v1443_v38 = vld [vmem:[%s7560_s24 + $0x2440] sm:$0xff]  ;;  %v1437_v39 = vld [vmem:[%s7560_s24 + $0x2410] sm:$0xff] }
 0x181   : > { %5747 = vmatprep.subr.bf16.mxu1 %v5746_v45  ;;  %v1460_v45 = vld [vmem:[%s7560_s24 + $0x24c8] sm:$0xff]  ;;  %v5252_v48 = vpack.c.bf16 %v1443_v38, %v1435_v37  ;;  %v5764_v49 = vpack.c.bf16 %v1445_v43, %v1437_v39  ;;  %v5778_v37 = vpack.c.bf16 %v1510_v28, %v1502_v27  ;;  %v1509_v38 = vld [vmem:[%s7560_s24 + $0x2650] sm:$0xff]  ;;  %v1518_v43 = vld [vmem:[%s7560_s24 + $0x2698] sm:$0xff] }
 0x182   : > { %v5254_v51 = vpack.c.bf16 %v1460_v45, %v1452_v44  ;;  %v1516_v39 = vld [vmem:[%s7560_s24 + $0x2688] sm:$0xff]  ;;  %v1526_v44 = vld [vmem:[%s7560_s24 + $0x26d8] sm:$0xff] }
 0x183   : > { %5237 = vmatpush1.bf16.msra.mxu0 %v5236_v52  ;;  %v1451_v52 = vld [vmem:[%s7560_s24 + $0x2480] sm:$0xff] }
 0x184   : > { %5749 = vmatpush1.bf16.msra.mxu1 %v5748_v54  ;;  %5239 = vmatprep.subr.bf16.mxu0 %v5238_v55  ;;  %v1459_v54 = vld [vmem:[%s7560_s24 + $0x24c0] sm:$0xff]  ;;  %v1453_v55 = vld [vmem:[%s7560_s24 + $0x2490] sm:$0xff] }
 0x185   : > { %5751 = vmatprep.subr.bf16.mxu1 %v5750_v60  ;;  %v1476_v60 = vld [vmem:[%s7560_s24 + $0x2548] sm:$0xff]  ;;  %v5256_v1 = vpack.c.bf16 %v1459_v54, %v1451_v52  ;;  %v5768_v2 = vpack.c.bf16 %v1461_v58, %v1453_v55  ;;  %v5782_v52 = vpack.c.bf16 %v1526_v44, %v1518_v43  ;;  %v1525_v54 = vld [vmem:[%s7560_s24 + $0x26d0] sm:$0xff]  ;;  %v1534_v58 = vld [vmem:[%s7560_s24 + $0x2718] sm:$0xff] }
 0x186   : > { %v5258_v3 = vpack.c.bf16 %v1476_v60, %v1468_v59  ;;  %v1532_v55 = vld [vmem:[%s7560_s24 + $0x2708] sm:$0xff]  ;;  %v1542_v59 = vld [vmem:[%s7560_s24 + $0x2758] sm:$0xff] }
 0x187   : > { %5241 = vmatpush1.bf16.msra.mxu0 %v5240_v4  ;;  %v1467_v4 = vld [vmem:[%s7560_s24 + $0x2500] sm:$0xff] }
 0x188   : > { %5753 = vmatpush1.bf16.msra.mxu1 %v5752_v6  ;;  %5243 = vmatprep.subr.bf16.mxu0 %v5242_v7  ;;  %v1475_v6 = vld [vmem:[%s7560_s24 + $0x2540] sm:$0xff]  ;;  %v1469_v7 = vld [vmem:[%s7560_s24 + $0x2510] sm:$0xff] }
 0x189   : > { %5755 = vmatprep.subr.bf16.mxu1 %v5754_v11  ;;  %v1492_v11 = vld [vmem:[%s7560_s24 + $0x25c8] sm:$0xff]  ;;  %v5260_v14 = vpack.c.bf16 %v1475_v6, %v1467_v4  ;;  %v5772_v16 = vpack.c.bf16 %v1477_v9, %v1469_v7  ;;  %v5786_v4 = vpack.c.bf16 %v1542_v59, %v1534_v58  ;;  %v1541_v6 = vld [vmem:[%s7560_s24 + $0x2750] sm:$0xff]  ;;  %v1550_v9 = vld [vmem:[%s7560_s24 + $0x2798] sm:$0xff] }
 0x18a   : > { %v5262_v17 = vpack.c.bf16 %v1492_v11, %v1484_v10  ;;  %v1548_v7 = vld [vmem:[%s7560_s24 + $0x2788] sm:$0xff]  ;;  %v1558_v10 = vld [vmem:[%s7560_s24 + $0x27d8] sm:$0xff] }
 0x18b   : > { %5245 = vmatpush1.bf16.msra.mxu0 %v5244_v18  ;;  %v1483_v18 = vld [vmem:[%s7560_s24 + $0x2580] sm:$0xff]  ;;  %v1606_v58 = vld [vmem:[%s7560_s24 + $0x2958] sm:$0xff] }
 0x18c   : > { %5757 = vmatpush1.bf16.msra.mxu1 %v5756_v19  ;;  %5247 = vmatprep.subr.bf16.mxu0 %v5246_v20  ;;  %v1491_v19 = vld [vmem:[%s7560_s24 + $0x25c0] sm:$0xff]  ;;  %v1485_v20 = vld [vmem:[%s7560_s24 + $0x2590] sm:$0xff] }
 0x18d   : > { %5759 = vmatprep.subr.bf16.mxu1 %v5758_v24  ;;  %v1508_v24 = vld [vmem:[%s7560_s24 + $0x2648] sm:$0xff]  ;;  %v5264_v29 = vpack.c.bf16 %v1491_v19, %v1483_v18  ;;  %v5776_v31 = vpack.c.bf16 %v1493_v22, %v1485_v20  ;;  %v5790_v18 = vpack.c.bf16 %v1558_v10, %v1550_v9  ;;  %v1557_v19 = vld [vmem:[%s7560_s24 + $0x27d0] sm:$0xff]  ;;  %v2369_v22 = vcombine.high %v8163_v41, %v8163_v41  ;;  %v1622_v9 = vld [vmem:[%s7560_s24 + $0x29d8] sm:$0xff] }
 0x18e   : > { %v5266_v32 = vpack.c.bf16 %v1508_v24, %v1500_v23  ;;  %v1564_v20 = vld [vmem:[%s7560_s24 + $0x2808] sm:$0xff]  ;;  %v1566_v23 = vld [vmem:[%s7560_s24 + $0x2818] sm:$0xff]  ;;  %v1573_v41 = vld [vmem:[%s7560_s24 + $0x2850] sm:$0xff] }
 0x18f   : > { %5249 = vmatpush1.bf16.msra.mxu0 %v5248_v34  ;;  %v1499_v34 = vld [vmem:[%s7560_s24 + $0x2600] sm:$0xff]  ;;  %v1574_v24 = vld [vmem:[%s7560_s24 + $0x2858] sm:$0xff] }
 0x190   : > { %5761 = vmatpush1.bf16.msra.mxu1 %v5760_v35  ;;  %5251 = vmatprep.subr.bf16.mxu0 %v5250_v36  ;;  %v1507_v35 = vld [vmem:[%s7560_s24 + $0x2640] sm:$0xff]  ;;  %v1501_v36 = vld [vmem:[%s7560_s24 + $0x2610] sm:$0xff] }
 0x191   : > { %5763 = vmatprep.subr.bf16.mxu1 %v5762_v42  ;;  %v1524_v42 = vld [vmem:[%s7560_s24 + $0x26c8] sm:$0xff]  ;;  %v5268_v45 = vpack.c.bf16 %v1507_v35, %v1499_v34  ;;  %v5780_v46 = vpack.c.bf16 %v1509_v38, %v1501_v36  ;;  %v1565_v34 = vld [vmem:[%s7560_s24 + $0x2810] sm:$0xff]  ;;  %v5794_v35 = vpack.c.bf16 %v1574_v24, %v1566_v23  ;;  %v8314_v38 = vrot.slane %v2369_v22, %v7682_v12  ;;  %v1638_v22 = vld [vmem:[%s7560_s24 + $0x2a58] sm:$0xff] }
 0x192   : > { %v5270_v47 = vpack.c.bf16 %v1524_v42, %v1516_v39  ;;  %v1580_v36 = vld [vmem:[%s7560_s24 + $0x2888] sm:$0xff]  ;;  %v1582_v39 = vld [vmem:[%s7560_s24 + $0x2898] sm:$0xff]  ;;  %v5796_v44 = vpack.c.bf16 %v1573_v41, %v1565_v34  ;;  %v1637_v34 = vld [vmem:[%s7560_s24 + $0x2a50] sm:$0xff] }
 0x193   : > { %5253 = vmatpush1.bf16.msra.mxu0 %v5252_v48  ;;  %v1515_v48 = vld [vmem:[%s7560_s24 + $0x2680] sm:$0xff]  ;;  %v1590_v42 = vld [vmem:[%s7560_s24 + $0x28d8] sm:$0xff]  ;;  %v1652_v41 = vld [vmem:[%s7560_s24 + $0x2ac8] sm:$0xff] }
 0x194   : > { %5765 = vmatpush1.bf16.msra.mxu1 %v5764_v49  ;;  %5255 = vmatprep.subr.bf16.mxu0 %v5254_v51  ;;  %v1523_v49 = vld [vmem:[%s7560_s24 + $0x26c0] sm:$0xff]  ;;  %v1517_v51 = vld [vmem:[%s7560_s24 + $0x2690] sm:$0xff] }
 0x195   : > { %5767 = vmatprep.subr.bf16.mxu1 %v5766_v57  ;;  %v1540_v57 = vld [vmem:[%s7560_s24 + $0x2748] sm:$0xff]  ;;  %v5272_v60 = vpack.c.bf16 %v1523_v49, %v1515_v48  ;;  %v5784_v61 = vpack.c.bf16 %v1525_v54, %v1517_v51  ;;  %v1581_v48 = vld [vmem:[%s7560_s24 + $0x2890] sm:$0xff]  ;;  %v5798_v49 = vpack.c.bf16 %v1590_v42, %v1582_v39 }
 0x196   : > { %v5274_v62 = vpack.c.bf16 %v1540_v57, %v1532_v55  ;;  %v1589_v51 = vld [vmem:[%s7560_s24 + $0x28d0] sm:$0xff]  ;;  %v1604_v54 = vld [vmem:[%s7560_s24 + $0x2948] sm:$0xff]  ;;  %v8326_v55 = vcombine.high %v8314_v38, %v8314_v38  ;;  %v1598_v57 = vld [vmem:[%s7560_s24 + $0x2918] sm:$0xff] }
 0x197   : > { %5257 = vmatpush1.bf16.msra.mxu0 %v5256_v1  ;;  %v1531_v1 = vld [vmem:[%s7560_s24 + $0x2700] sm:$0xff] }
 0x198   : > { %5769 = vmatpush1.bf16.msra.mxu1 %v5768_v2  ;;  %5259 = vmatprep.subr.bf16.mxu0 %v5258_v3  ;;  %v1539_v2 = vld [vmem:[%s7560_s24 + $0x2740] sm:$0xff]  ;;  %v1533_v3 = vld [vmem:[%s7560_s24 + $0x2710] sm:$0xff] }
 0x199   : > { %5771 = vmatprep.subr.bf16.mxu1 %v5770_v8  ;;  %v1556_v8 = vld [vmem:[%s7560_s24 + $0x27c8] sm:$0xff]  ;;  %v5276_v11 = vpack.c.bf16 %v1539_v2, %v1531_v1  ;;  %v5788_v50 = vpack.c.bf16 %v1541_v6, %v1533_v3  ;;  %v1603_v1 = vld [vmem:[%s7560_s24 + $0x2940] sm:$0xff]  ;;  %v1597_v2 = vld [vmem:[%s7560_s24 + $0x2910] sm:$0xff]  ;;  %v5802_v3 = vpack.c.bf16 %v1606_v58, %v1598_v57 }
 0x19a   : > { %v5278_v13 = vpack.c.bf16 %v1556_v8, %v1548_v7  ;;  %v1612_v6 = vld [vmem:[%s7560_s24 + $0x2988] sm:$0xff]  ;;  %v1614_v8 = vld [vmem:[%s7560_s24 + $0x2998] sm:$0xff] }
 0x19b   : > { %5261 = vmatpush1.bf16.msra.mxu0 %v5260_v14  ;;  %v1547_v14 = vld [vmem:[%s7560_s24 + $0x2780] sm:$0xff]  ;;  %v1620_v7 = vld [vmem:[%s7560_s24 + $0x29c8] sm:$0xff] }
 0x19c   : > { %5773 = vmatpush1.bf16.msra.mxu1 %v5772_v16  ;;  %5263 = vmatprep.subr.bf16.mxu0 %v5262_v17  ;;  %v1555_v16 = vld [vmem:[%s7560_s24 + $0x27c0] sm:$0xff]  ;;  %v1549_v17 = vld [vmem:[%s7560_s24 + $0x2790] sm:$0xff] }
 0x19d   : > { %5775 = vmatprep.subr.bf16.mxu1 %v5774_v21  ;;  %v1572_v21 = vld [vmem:[%s7560_s24 + $0x2848] sm:$0xff]  ;;  %v5280_v27 = vpack.c.bf16 %v1555_v16, %v1547_v14  ;;  %v5792_v28 = vpack.c.bf16 %v1557_v19, %v1549_v17  ;;  %v1619_v14 = vld [vmem:[%s7560_s24 + $0x29c0] sm:$0xff]  ;;  %v1613_v16 = vld [vmem:[%s7560_s24 + $0x2990] sm:$0xff]  ;;  %v5806_v17 = vpack.c.bf16 %v1622_v9, %v1614_v8 }
 0x19e   : > { %v1628_v19 = vld [vmem:[%s7560_s24 + $0x2a08] sm:$0xff] }
 0x19f   : > { %5265 = vmatpush1.bf16.msra.mxu0 %v5264_v29  ;;  %v5282_v29 = vpack.c.bf16 %v1572_v21, %v1564_v20  ;;  %v1636_v20 = vld [vmem:[%s7560_s24 + $0x2a48] sm:$0xff]  ;;  %v1630_v21 = vld [vmem:[%s7560_s24 + $0x2a18] sm:$0xff] }
 0x1a0   : > { %5777 = vmatpush1.bf16.msra.mxu1 %v5776_v31  ;;  %5267 = vmatprep.subr.bf16.mxu0 %v5266_v32  ;;  %v1563_v31 = vld [vmem:[%s7560_s24 + $0x2800] sm:$0xff] }
 0x1a1   : > { %5779 = vmatprep.subr.bf16.mxu1 %v5778_v37  ;;  %v1571_v32 = vld [vmem:[%s7560_s24 + $0x2840] sm:$0xff]  ;;  %v1588_v37 = vld [vmem:[%s7560_s24 + $0x28c8] sm:$0xff] }
 0x1a2   : > { %v5284_v43 = vpack.c.bf16 %v1571_v32, %v1563_v31  ;;  %v1629_v31 = vld [vmem:[%s7560_s24 + $0x2a10] sm:$0xff]  ;;  %v5810_v32 = vpack.c.bf16 %v1638_v22, %v1630_v21 }
 0x1a3   : > { %5269 = vmatpush1.bf16.msra.mxu0 %v5268_v45  ;;  %v5286_v45 = vpack.c.bf16 %v1588_v37, %v1580_v36  ;;  %v1646_v36 = vld [vmem:[%s7560_s24 + $0x2a98] sm:$0xff]  ;;  %v5812_v42 = vpack.c.bf16 %v1637_v34, %v1629_v31  ;;  %v1701_v31 = vld [vmem:[%s7560_s24 + $0x2c50] sm:$0xff]  ;;  %v1716_v34 = vld [vmem:[%s7560_s24 + $0x2cc8] sm:$0xff] }
 0x1a4   : > { %5781 = vmatpush1.bf16.msra.mxu1 %v5780_v46  ;;  %5271 = vmatprep.subr.bf16.mxu0 %v5270_v47  ;;  %v1579_v46 = vld [vmem:[%s7560_s24 + $0x2880] sm:$0xff]  ;;  %v1654_v37 = vld [vmem:[%s7560_s24 + $0x2ad8] sm:$0xff] }
 0x1a5   : > { %5783 = vmatprep.subr.bf16.mxu1 %v5782_v52  ;;  %v1587_v47 = vld [vmem:[%s7560_s24 + $0x28c0] sm:$0xff]  ;;  %v1596_v52 = vld [vmem:[%s7560_s24 + $0x2908] sm:$0xff] }
 0x1a6   : > { %v5288_v59 = vpack.c.bf16 %v1587_v47, %v1579_v46  ;;  %v1645_v46 = vld [vmem:[%s7560_s24 + $0x2a90] sm:$0xff]  ;;  %v5814_v47 = vpack.c.bf16 %v1654_v37, %v1646_v36 }
 0x1a7   : > { %5273 = vmatpush1.bf16.msra.mxu0 %v5272_v60  ;;  %v5800_v60 = vpack.c.bf16 %v1589_v51, %v1581_v48  ;;  %v1653_v48 = vld [vmem:[%s7560_s24 + $0x2ad0] sm:$0xff]  ;;  %v1668_v51 = vld [vmem:[%s7560_s24 + $0x2b48] sm:$0xff] }
 0x1a8   : > { %5785 = vmatpush1.bf16.msra.mxu1 %v5784_v61  ;;  %5275 = vmatprep.subr.bf16.mxu0 %v5274_v62  ;;  %v5290_v61 = vpack.c.bf16 %v1604_v54, %v1596_v52  ;;  %v1595_v62 = vld [vmem:[%s7560_s24 + $0x2900] sm:$0xff]  ;;  %v1662_v52 = vld [vmem:[%s7560_s24 + $0x2b18] sm:$0xff]  ;;  %v5816_v58 = vpack.c.bf16 %v1653_v48, %v1645_v46  ;;  %v1717_v46 = vld [vmem:[%s7560_s24 + $0x2cd0] sm:$0xff] }
 0x1a9   : > { %5787 = vmatprep.subr.bf16.mxu1 %v5786_v4  ;;  %v1605_v4 = vld [vmem:[%s7560_s24 + $0x2950] sm:$0xff]  ;;  %v5292_v10 = vpack.c.bf16 %v1603_v1, %v1595_v62  ;;  %v1670_v54 = vld [vmem:[%s7560_s24 + $0x2b58] sm:$0xff]  ;;  %v1732_v48 = vld [vmem:[%s7560_s24 + $0x2d48] sm:$0xff] }
 0x1aa   : > { %v1661_v62 = vld [vmem:[%s7560_s24 + $0x2b10] sm:$0xff]  ;;  %v5818_v1 = vpack.c.bf16 %v1670_v54, %v1662_v52 }
 0x1ab   : > { %5277 = vmatpush1.bf16.msra.mxu0 %v5276_v11  ;;  %v5804_v11 = vpack.c.bf16 %v1605_v4, %v1597_v2  ;;  %v1669_v2 = vld [vmem:[%s7560_s24 + $0x2b50] sm:$0xff]  ;;  %v1684_v4 = vld [vmem:[%s7560_s24 + $0x2bc8] sm:$0xff] }
 0x1ac   : > { %5789 = vmatpush1.bf16.msra.mxu1 %v5788_v50  ;;  %5279 = vmatprep.subr.bf16.mxu0 %v5278_v13  ;;  %v5294_v50 = vpack.c.bf16 %v1620_v7, %v1612_v6  ;;  %v1611_v13 = vld [vmem:[%s7560_s24 + $0x2980] sm:$0xff]  ;;  %v1678_v6 = vld [vmem:[%s7560_s24 + $0x2b98] sm:$0xff]  ;;  %v5820_v9 = vpack.c.bf16 %v1669_v2, %v1661_v62  ;;  %v1733_v62 = vld [vmem:[%s7560_s24 + $0x2d50] sm:$0xff] }
 0x1ad   : > { %5791 = vmatprep.subr.bf16.mxu1 %v5790_v18  ;;  %v1621_v18 = vld [vmem:[%s7560_s24 + $0x29d0] sm:$0xff]  ;;  %v5296_v23 = vpack.c.bf16 %v1619_v14, %v1611_v13  ;;  %v1686_v7 = vld [vmem:[%s7560_s24 + $0x2bd8] sm:$0xff]  ;;  %v1748_v2 = vld [vmem:[%s7560_s24 + $0x2dc8] sm:$0xff] }
 0x1ae   : > { %v5808_v24 = vpack.c.bf16 %v1621_v18, %v1613_v16  ;;  %v1677_v13 = vld [vmem:[%s7560_s24 + $0x2b90] sm:$0xff]  ;;  %v5822_v14 = vpack.c.bf16 %v1686_v7, %v1678_v6  ;;  %v1700_v18 = vld [vmem:[%s7560_s24 + $0x2c48] sm:$0xff] }
 0x1af   : > { %5281 = vmatpush1.bf16.msra.mxu0 %v5280_v27  ;;  %v5298_v27 = vpack.c.bf16 %v1636_v20, %v1628_v19  ;;  %v1685_v16 = vld [vmem:[%s7560_s24 + $0x2bd0] sm:$0xff]  ;;  %v1694_v19 = vld [vmem:[%s7560_s24 + $0x2c18] sm:$0xff] }
 0x1b0   : > { %5793 = vmatpush1.bf16.msra.mxu1 %v5792_v28  ;;  %5283 = vmatprep.subr.bf16.mxu0 %v5282_v29  ;;  %v1627_v28 = vld [vmem:[%s7560_s24 + $0x2a00] sm:$0xff]  ;;  %v1702_v20 = vld [vmem:[%s7560_s24 + $0x2c58] sm:$0xff]  ;;  %v5824_v22 = vpack.c.bf16 %v1685_v16, %v1677_v13  ;;  %v1749_v13 = vld [vmem:[%s7560_s24 + $0x2dd0] sm:$0xff] }
 0x1b1   : > { %5795 = vmatprep.subr.bf16.mxu1 %v5794_v35  ;;  %v1635_v29 = vld [vmem:[%s7560_s24 + $0x2a40] sm:$0xff]  ;;  %v1644_v35 = vld [vmem:[%s7560_s24 + $0x2a88] sm:$0xff] }
 0x1b2   : > { %2768 = vmatmul.mubr.f32.vlgmr.msra.gmra.mrb[0].mxu0 %v8173_v53  ;;  %v5300_v39 = vpack.c.bf16 %v1635_v29, %v1627_v28  ;;  %v1693_v28 = vld [vmem:[%s7560_s24 + $0x2c10] sm:$0xff]  ;;  %v5826_v29 = vpack.c.bf16 %v1702_v20, %v1694_v19  ;;  %v1764_v16 = vld [vmem:[%s7560_s24 + $0x2e48] sm:$0xff] }
 0x1b3   : > { %5285 = vmatpush1.bf16.msra.mxu0 %v5284_v43  ;;  %3336 = vmatmul.mubr.f32.vlgmr.msra.gmra.mrb[0].mxu1 %v8173_v53  ;;  %v5302_v43 = vpack.c.bf16 %v1652_v41, %v1644_v35  ;;  %v1710_v35 = vld [vmem:[%s7560_s24 + $0x2c98] sm:$0xff]  ;;  %v5828_v37 = vpack.c.bf16 %v1701_v31, %v1693_v28  ;;  %v1765_v28 = vld [vmem:[%s7560_s24 + $0x2e50] sm:$0xff]  ;;  %v1780_v31 = vld [vmem:[%s7560_s24 + $0x2ec8] sm:$0xff] }
 0x1b4   : > { %5797 = vmatpush1.bf16.msra.mxu1 %v5796_v44  ;;  %5287 = vmatprep.subr.bf16.mxu0 %v5286_v45  ;;  %v1643_v44 = vld [vmem:[%s7560_s24 + $0x2a80] sm:$0xff]  ;;  %v1718_v41 = vld [vmem:[%s7560_s24 + $0x2cd8] sm:$0xff] }
 0x1b5   : > { %5799 = vmatprep.subr.bf16.mxu1 %v5798_v49  ;;  %2838 = vmatprep.mubr.f32.mxu0 %v8326_v55  ;;  %v1651_v45 = vld [vmem:[%s7560_s24 + $0x2ac0] sm:$0xff]  ;;  %v1660_v49 = vld [vmem:[%s7560_s24 + $0x2b08] sm:$0xff] }
 0x1b6   : > { %3406 = vmatprep.mubr.f32.mxu1 %v8326_v55  ;;  %v5304_v57 = vpack.c.bf16 %v1651_v45, %v1643_v44  ;;  %v1709_v44 = vld [vmem:[%s7560_s24 + $0x2c90] sm:$0xff]  ;;  %v5830_v45 = vpack.c.bf16 %v1718_v41, %v1710_v35 }
 0x1b7   : > { %5289 = vmatpush1.bf16.msra.mxu0 %v5288_v59  ;;  %v5306_v59 = vpack.c.bf16 %v1668_v51, %v1660_v49  ;;  %v1726_v49 = vld [vmem:[%s7560_s24 + $0x2d18] sm:$0xff]  ;;  %v5832_v54 = vpack.c.bf16 %v1717_v46, %v1709_v44  ;;  %v1781_v44 = vld [vmem:[%s7560_s24 + $0x2ed0] sm:$0xff]  ;;  %v1796_v46 = vld [vmem:[%s7560_s24 + $0x2f48] sm:$0xff] }
 0x1b8   : > { %5801 = vmatpush1.bf16.msra.mxu1 %v5800_v60  ;;  %5291 = vmatprep.subr.bf16.mxu0 %v5290_v61  ;;  %v1659_v60 = vld [vmem:[%s7560_s24 + $0x2b00] sm:$0xff]  ;;  %v1734_v51 = vld [vmem:[%s7560_s24 + $0x2d58] sm:$0xff] }
 0x1b9   : > { %5803 = vmatprep.subr.bf16.mxu1 %v5802_v3  ;;  %v1667_v61 = vld [vmem:[%s7560_s24 + $0x2b40] sm:$0xff]  ;;  %v1676_v3 = vld [vmem:[%s7560_s24 + $0x2b88] sm:$0xff] }
 0x1ba   : > { %v5308_v8 = vpack.c.bf16 %v1667_v61, %v1659_v60  ;;  %v1725_v60 = vld [vmem:[%s7560_s24 + $0x2d10] sm:$0xff]  ;;  %v5834_v61 = vpack.c.bf16 %v1734_v51, %v1726_v49 }
 0x1bb   : > { %5293 = vmatpush1.bf16.msra.mxu0 %v5292_v10  ;;  %v5310_v10 = vpack.c.bf16 %v1684_v4, %v1676_v3  ;;  %v1742_v3 = vld [vmem:[%s7560_s24 + $0x2d98] sm:$0xff]  ;;  %v5836_v7 = vpack.c.bf16 %v1733_v62, %v1725_v60  ;;  %v1797_v60 = vld [vmem:[%s7560_s24 + $0x2f50] sm:$0xff]  ;;  %v1812_v62 = vld [vmem:[%s7560_s24 + $0x2fc8] sm:$0xff] }
 0x1bc   : > { %5805 = vmatpush1.bf16.msra.mxu1 %v5804_v11  ;;  %5295 = vmatprep.subr.bf16.mxu0 %v5294_v50  ;;  %v1675_v11 = vld [vmem:[%s7560_s24 + $0x2b80] sm:$0xff]  ;;  %v1750_v4 = vld [vmem:[%s7560_s24 + $0x2dd8] sm:$0xff] }
 0x1bd   : > { %5807 = vmatprep.subr.bf16.mxu1 %v5806_v17  ;;  %v1683_v50 = vld [vmem:[%s7560_s24 + $0x2bc0] sm:$0xff]  ;;  %v1692_v17 = vld [vmem:[%s7560_s24 + $0x2c08] sm:$0xff] }
 0x1be   : > { %v5312_v21 = vpack.c.bf16 %v1683_v50, %v1675_v11  ;;  %v1741_v11 = vld [vmem:[%s7560_s24 + $0x2d90] sm:$0xff]  ;;  %v5838_v50 = vpack.c.bf16 %v1750_v4, %v1742_v3 }
 0x1bf   : > { %5297 = vmatpush1.bf16.msra.mxu0 %v5296_v23  ;;  %v5314_v23 = vpack.c.bf16 %v1700_v18, %v1692_v17  ;;  %v1758_v17 = vld [vmem:[%s7560_s24 + $0x2e18] sm:$0xff]  ;;  %v5840_v20 = vpack.c.bf16 %v1749_v13, %v1741_v11  ;;  %v1813_v11 = vld [vmem:[%s7560_s24 + $0x2fd0] sm:$0xff]  ;;  %v1828_v13 = vld [vmem:[%s7560_s24 + $0x3048] sm:$0xff] }
 0x1c0   : > { %5809 = vmatpush1.bf16.msra.mxu1 %v5808_v24  ;;  %5299 = vmatprep.subr.bf16.mxu0 %v5298_v27  ;;  %v1691_v24 = vld [vmem:[%s7560_s24 + $0x2c00] sm:$0xff]  ;;  %v1766_v18 = vld [vmem:[%s7560_s24 + $0x2e58] sm:$0xff] }
 0x1c1   : > { %5811 = vmatprep.subr.bf16.mxu1 %v5810_v32  ;;  %v1699_v27 = vld [vmem:[%s7560_s24 + $0x2c40] sm:$0xff]  ;;  %v1708_v32 = vld [vmem:[%s7560_s24 + $0x2c88] sm:$0xff] }
 0x1c2   : > { %v5316_v36 = vpack.c.bf16 %v1699_v27, %v1691_v24  ;;  %v1757_v24 = vld [vmem:[%s7560_s24 + $0x2e10] sm:$0xff]  ;;  %v5842_v27 = vpack.c.bf16 %v1766_v18, %v1758_v17  ;;  %v8447_v17 = vld [vmem:[%s7579_s30 + $0x18] sm:$0xff] }
 0x1c3   : > { %5301 = vmatpush1.bf16.msra.mxu0 %v5300_v39  ;;  %v5318_v39 = vpack.c.bf16 %v1716_v34, %v1708_v32  ;;  %v1774_v32 = vld [vmem:[%s7560_s24 + $0x2e98] sm:$0xff]  ;;  %v5844_v41 = vpack.c.bf16 %v1765_v28, %v1757_v24  ;;  %v1836_v28 = vld [vmem:[%s7560_s24 + $0x3088] sm:$0xff] }
 0x1c4   : > { %5813 = vmatpush1.bf16.msra.mxu1 %v5812_v42  ;;  %5303 = vmatprep.subr.bf16.mxu0 %v5302_v43  ;;  %v1707_v42 = vld [vmem:[%s7560_s24 + $0x2c80] sm:$0xff]  ;;  %v1782_v34 = vld [vmem:[%s7560_s24 + $0x2ed8] sm:$0xff] }
 0x1c5   : > { %5815 = vmatprep.subr.bf16.mxu1 %v5814_v47  ;;  %v1715_v43 = vld [vmem:[%s7560_s24 + $0x2cc0] sm:$0xff]  ;;  %v1724_v47 = vld [vmem:[%s7560_s24 + $0x2d08] sm:$0xff] }
 0x1c6   : > { %v5320_v52 = vpack.c.bf16 %v1715_v43, %v1707_v42  ;;  %v1773_v42 = vld [vmem:[%s7560_s24 + $0x2e90] sm:$0xff]  ;;  %v5846_v43 = vpack.c.bf16 %v1782_v34, %v1774_v32  ;;  %v1838_v32 = vld [vmem:[%s7560_s24 + $0x3098] sm:$0xff] }
 0x1c7   : > { %5305 = vmatpush1.bf16.msra.mxu0 %v5304_v57  ;;  %v5322_v57 = vpack.c.bf16 %v1732_v48, %v1724_v47  ;;  %v1790_v47 = vld [vmem:[%s7560_s24 + $0x2f18] sm:$0xff]  ;;  %v5848_v51 = vpack.c.bf16 %v1781_v44, %v1773_v42  ;;  %v1837_v42 = vld [vmem:[%s7560_s24 + $0x3090] sm:$0xff] }
 0x1c8   : > { %5817 = vmatpush1.bf16.msra.mxu1 %v5816_v58  ;;  %5307 = vmatprep.subr.bf16.mxu0 %v5306_v59  ;;  %v1723_v58 = vld [vmem:[%s7560_s24 + $0x2d00] sm:$0xff]  ;;  %v1798_v48 = vld [vmem:[%s7560_s24 + $0x2f58] sm:$0xff]  ;;  %v1845_v44 = vld [vmem:[%s7560_s24 + $0x30d0] sm:$0xff] }
 0x1c9   : > { %5819 = vmatprep.subr.bf16.mxu1 %v5818_v1  ;;  %v1731_v59 = vld [vmem:[%s7560_s24 + $0x2d40] sm:$0xff]  ;;  %v1740_v1 = vld [vmem:[%s7560_s24 + $0x2d88] sm:$0xff]  ;;  %v1846_v34 = vld [vmem:[%s7560_s24 + $0x30d8] sm:$0xff] }
 0x1ca   : > { %v5324_v6 = vpack.c.bf16 %v1731_v59, %v1723_v58  ;;  %v1789_v58 = vld [vmem:[%s7560_s24 + $0x2f10] sm:$0xff]  ;;  %v5850_v59 = vpack.c.bf16 %v1798_v48, %v1790_v47  ;;  %v1854_v48 = vld [vmem:[%s7560_s24 + $0x3118] sm:$0xff] }
 0x1cb   : > { %5309 = vmatpush1.bf16.msra.mxu0 %v5308_v8  ;;  %v5326_v8 = vpack.c.bf16 %v1748_v2, %v1740_v1  ;;  %v1806_v1 = vld [vmem:[%s7560_s24 + $0x2f98] sm:$0xff]  ;;  %v5852_v4 = vpack.c.bf16 %v1797_v60, %v1789_v58  ;;  %v1859_v58 = vld [vmem:[%s7560_s24 + $0x3140] sm:$0xff] }
 0x1cc   : > { %5821 = vmatpush1.bf16.msra.mxu1 %v5820_v9  ;;  %5311 = vmatprep.subr.bf16.mxu0 %v5310_v10  ;;  %v1739_v9 = vld [vmem:[%s7560_s24 + $0x2d80] sm:$0xff]  ;;  %v1814_v2 = vld [vmem:[%s7560_s24 + $0x2fd8] sm:$0xff] }
 0x1cd   : > { %5823 = vmatprep.subr.bf16.mxu1 %v5822_v14  ;;  %v1747_v10 = vld [vmem:[%s7560_s24 + $0x2dc0] sm:$0xff]  ;;  %v1756_v14 = vld [vmem:[%s7560_s24 + $0x2e08] sm:$0xff] }
 0x1ce   : > { %v5328_v19 = vpack.c.bf16 %v1747_v10, %v1739_v9  ;;  %v1805_v9 = vld [vmem:[%s7560_s24 + $0x2f90] sm:$0xff]  ;;  %v5854_v10 = vpack.c.bf16 %v1814_v2, %v1806_v1  ;;  %v1876_v1 = vld [vmem:[%s7560_s24 + $0x31c8] sm:$0xff]  ;;  %v1870_v2 = vld [vmem:[%s7560_s24 + $0x3198] sm:$0xff] }
 0x1cf   : > { %5313 = vmatpush1.bf16.msra.mxu0 %v5312_v21  ;;  %v5330_v21 = vpack.c.bf16 %v1764_v16, %v1756_v14  ;;  %v1822_v14 = vld [vmem:[%s7560_s24 + $0x3018] sm:$0xff] }
 0x1d0   : > { %5825 = vmatpush1.bf16.msra.mxu1 %v5824_v22  ;;  %5315 = vmatprep.subr.bf16.mxu0 %v5314_v23  ;;  %v1755_v22 = vld [vmem:[%s7560_s24 + $0x2e00] sm:$0xff]  ;;  %v1830_v16 = vld [vmem:[%s7560_s24 + $0x3058] sm:$0xff] }
 0x1d1   : > { %5827 = vmatprep.subr.bf16.mxu1 %v5826_v29  ;;  %v1763_v23 = vld [vmem:[%s7560_s24 + $0x2e40] sm:$0xff]  ;;  %v1772_v29 = vld [vmem:[%s7560_s24 + $0x2e88] sm:$0xff]  ;;  %v5858_v24 = vpack.c.bf16 %v1830_v16, %v1822_v14  ;;  %v1886_v16 = vld [vmem:[%s7560_s24 + $0x3218] sm:$0xff] }
 0x1d2   : > { %v5332_v35 = vpack.c.bf16 %v1763_v23, %v1755_v22  ;;  %v1827_v22 = vld [vmem:[%s7560_s24 + $0x3040] sm:$0xff]  ;;  %v1821_v23 = vld [vmem:[%s7560_s24 + $0x3010] sm:$0xff]  ;;  %v1892_v14 = vld [vmem:[%s7560_s24 + $0x3248] sm:$0xff] }
 0x1d3   : > { %5317 = vmatpush1.bf16.msra.mxu0 %v5316_v36  ;;  %v5334_v36 = vpack.c.bf16 %v1780_v31, %v1772_v29  ;;  %v1844_v29 = vld [vmem:[%s7560_s24 + $0x30c8] sm:$0xff]  ;;  %v8457_v31 = vrot.slane %v8447_v17, %v7682_v12 }
 0x1d4   : > { %5829 = vmatpush1.bf16.msra.mxu1 %v5828_v37  ;;  %5319 = vmatprep.subr.bf16.mxu0 %v5318_v39  ;;  %v1771_v37 = vld [vmem:[%s7560_s24 + $0x2e80] sm:$0xff] }
 0x1d5   : > { %5831 = vmatprep.subr.bf16.mxu1 %v5830_v45  ;;  %v1779_v39 = vld [vmem:[%s7560_s24 + $0x2ec0] sm:$0xff]  ;;  %v1788_v45 = vld [vmem:[%s7560_s24 + $0x2f08] sm:$0xff]  ;;  %v8469_v47 = vcombine.high %v8457_v31, %v8457_v31 }
 0x1d6   : > { %v5336_v49 = vpack.c.bf16 %v1779_v39, %v1771_v37  ;;  %v1835_v37 = vld [vmem:[%s7560_s24 + $0x3080] sm:$0xff] }
 0x1d7   : > { %5321 = vmatpush1.bf16.msra.mxu0 %v5320_v52  ;;  %v5338_v52 = vpack.c.bf16 %v1796_v46, %v1788_v45  ;;  %v1843_v39 = vld [vmem:[%s7560_s24 + $0x30c0] sm:$0xff]  ;;  %v1852_v45 = vld [vmem:[%s7560_s24 + $0x3108] sm:$0xff] }
 0x1d8   : > { %5833 = vmatpush1.bf16.msra.mxu1 %v5832_v54  ;;  %5323 = vmatprep.subr.bf16.mxu0 %v5322_v57  ;;  %v1787_v54 = vld [vmem:[%s7560_s24 + $0x2f00] sm:$0xff]  ;;  %v1860_v46 = vld [vmem:[%s7560_s24 + $0x3148] sm:$0xff] }
 0x1d9   : > { %5835 = vmatprep.subr.bf16.mxu1 %v5834_v61  ;;  %v1795_v57 = vld [vmem:[%s7560_s24 + $0x2f40] sm:$0xff]  ;;  %v1804_v61 = vld [vmem:[%s7560_s24 + $0x2f88] sm:$0xff] }
 0x1da   : > { %v5340_v3 = vpack.c.bf16 %v1795_v57, %v1787_v54  ;;  %v5354_v54 = vpack.c.bf16 %v1860_v46, %v1852_v45  ;;  %v1851_v57 = vld [vmem:[%s7560_s24 + $0x3100] sm:$0xff]  ;;  %v1909_v45 = vld [vmem:[%s7560_s24 + $0x32d0] sm:$0xff]  ;;  %v1916_v46 = vld [vmem:[%s7560_s24 + $0x3308] sm:$0xff] }
 0x1db   : > { %5325 = vmatpush1.bf16.msra.mxu0 %v5324_v6  ;;  %v5342_v6 = vpack.c.bf16 %v1812_v62, %v1804_v61  ;;  %v1861_v61 = vld [vmem:[%s7560_s24 + $0x3150] sm:$0xff]  ;;  %v1868_v62 = vld [vmem:[%s7560_s24 + $0x3188] sm:$0xff] }
 0x1dc   : > { %5837 = vmatpush1.bf16.msra.mxu1 %v5836_v7  ;;  %5327 = vmatprep.subr.bf16.mxu0 %v5326_v8  ;;  %v1803_v7 = vld [vmem:[%s7560_s24 + $0x2f80] sm:$0xff] }
 0x1dd   : > { %5839 = vmatprep.subr.bf16.mxu1 %v5838_v50  ;;  %v1811_v8 = vld [vmem:[%s7560_s24 + $0x2fc0] sm:$0xff]  ;;  %v1820_v50 = vld [vmem:[%s7560_s24 + $0x3008] sm:$0xff] }
 0x1de   : > { %v5344_v18 = vpack.c.bf16 %v1811_v8, %v1803_v7  ;;  %v5358_v7 = vpack.c.bf16 %v1876_v1, %v1868_v62  ;;  %v1867_v8 = vld [vmem:[%s7560_s24 + $0x3180] sm:$0xff]  ;;  %v1925_v62 = vld [vmem:[%s7560_s24 + $0x3350] sm:$0xff]  ;;  %v1932_v1 = vld [vmem:[%s7560_s24 + $0x3388] sm:$0xff] }
 0x1df   : > { %5329 = vmatpush1.bf16.msra.mxu0 %v5328_v19  ;;  %v5856_v19 = vpack.c.bf16 %v1813_v11, %v1805_v9  ;;  %v1875_v9 = vld [vmem:[%s7560_s24 + $0x31c0] sm:$0xff] }
 0x1e0   : > { %5841 = vmatpush1.bf16.msra.mxu1 %v5840_v20  ;;  %5331 = vmatprep.subr.bf16.mxu0 %v5330_v21  ;;  %v5346_v20 = vpack.c.bf16 %v1828_v13, %v1820_v50  ;;  %v1819_v21 = vld [vmem:[%s7560_s24 + $0x3000] sm:$0xff]  ;;  %v1877_v50 = vld [vmem:[%s7560_s24 + $0x31d0] sm:$0xff]  ;;  %v1884_v13 = vld [vmem:[%s7560_s24 + $0x3208] sm:$0xff] }
 0x1e1   : > { %5843 = vmatprep.subr.bf16.mxu1 %v5842_v27  ;;  %v1829_v27 = vld [vmem:[%s7560_s24 + $0x3050] sm:$0xff] }
 0x1e3   : > { %5333 = vmatpush1.bf16.msra.mxu0 %v5332_v35  ;;  %v5348_v35 = vpack.c.bf16 %v1827_v22, %v1819_v21  ;;  %v5362_v21 = vpack.c.bf16 %v1892_v14, %v1884_v13  ;;  %v1883_v22 = vld [vmem:[%s7560_s24 + $0x3200] sm:$0xff]  ;;  %v1941_v13 = vld [vmem:[%s7560_s24 + $0x33d0] sm:$0xff]  ;;  %v1948_v14 = vld [vmem:[%s7560_s24 + $0x3408] sm:$0xff] }
 0x1e4   : > { %5845 = vmatpush1.bf16.msra.mxu1 %v5844_v41  ;;  %5335 = vmatprep.subr.bf16.mxu0 %v5334_v36  ;;  %v5860_v41 = vpack.c.bf16 %v1829_v27, %v1821_v23  ;;  %v5350_v36 = vpack.c.bf16 %v1844_v29, %v1836_v28  ;;  %v1891_v23 = vld [vmem:[%s7560_s24 + $0x3240] sm:$0xff]  ;;  %v1893_v28 = vld [vmem:[%s7560_s24 + $0x3250] sm:$0xff]  ;;  %v1900_v29 = vld [vmem:[%s7560_s24 + $0x3288] sm:$0xff] }
 0x1e5   : > { %5847 = vmatprep.subr.bf16.mxu1 %v5846_v43  ;;  %v5862_v43 = vpack.c.bf16 %v1846_v34, %v1838_v32  ;;  %v1908_v32 = vld [vmem:[%s7560_s24 + $0x32c8] sm:$0xff]  ;;  %v1902_v34 = vld [vmem:[%s7560_s24 + $0x3298] sm:$0xff] }
 0x1e7   : > { %5337 = vmatpush1.bf16.msra.mxu0 %v5336_v49  ;;  %v1862_v49 = vld [vmem:[%s7560_s24 + $0x3158] sm:$0xff] }
 0x1e8   : > { %5849 = vmatpush1.bf16.msra.mxu1 %v5848_v51  ;;  %5339 = vmatprep.subr.bf16.mxu0 %v5338_v52  ;;  %v5352_v51 = vpack.c.bf16 %v1843_v39, %v1835_v37  ;;  %v5864_v52 = vpack.c.bf16 %v1845_v44, %v1837_v42  ;;  %v5866_v60 = vpack.c.bf16 %v1862_v49, %v1854_v48  ;;  %v1899_v39 = vld [vmem:[%s7560_s24 + $0x3280] sm:$0xff]  ;;  %v1924_v48 = vld [vmem:[%s7560_s24 + $0x3348] sm:$0xff]  ;;  %v1918_v49 = vld [vmem:[%s7560_s24 + $0x3318] sm:$0xff] }
 0x1e9   : > { %5851 = vmatprep.subr.bf16.mxu1 %v5850_v59  ;;  %v1853_v59 = vld [vmem:[%s7560_s24 + $0x3110] sm:$0xff]  ;;  %v5366_v37 = vpack.c.bf16 %v1908_v32, %v1900_v29  ;;  %v1907_v42 = vld [vmem:[%s7560_s24 + $0x32c0] sm:$0xff]  ;;  %v1964_v32 = vld [vmem:[%s7560_s24 + $0x3488] sm:$0xff] }
 0x1ea   : > { %v1957_v29 = vld [vmem:[%s7560_s24 + $0x3450] sm:$0xff] }
 0x1eb   : > { %5341 = vmatpush1.bf16.msra.mxu0 %v5340_v3  ;;  %v1878_v3 = vld [vmem:[%s7560_s24 + $0x31d8] sm:$0xff] }
 0x1ec   : > { %5853 = vmatpush1.bf16.msra.mxu1 %v5852_v4  ;;  %5343 = vmatprep.subr.bf16.mxu0 %v5342_v6  ;;  %v5356_v4 = vpack.c.bf16 %v1859_v58, %v1851_v57  ;;  %v5868_v6 = vpack.c.bf16 %v1861_v61, %v1853_v59  ;;  %v5870_v11 = vpack.c.bf16 %v1878_v3, %v1870_v2  ;;  %v1915_v58 = vld [vmem:[%s7560_s24 + $0x3300] sm:$0xff]  ;;  %v1940_v2 = vld [vmem:[%s7560_s24 + $0x33c8] sm:$0xff]  ;;  %v1934_v3 = vld [vmem:[%s7560_s24 + $0x3398] sm:$0xff] }
 0x1ed   : > { %5855 = vmatprep.subr.bf16.mxu1 %v5854_v10  ;;  %v1869_v10 = vld [vmem:[%s7560_s24 + $0x3190] sm:$0xff]  ;;  %v5370_v57 = vpack.c.bf16 %v1924_v48, %v1916_v46  ;;  %v1923_v59 = vld [vmem:[%s7560_s24 + $0x3340] sm:$0xff]  ;;  %v1980_v48 = vld [vmem:[%s7560_s24 + $0x3508] sm:$0xff] }
 0x1ee   : > { %v1973_v46 = vld [vmem:[%s7560_s24 + $0x34d0] sm:$0xff] }
 0x1ef   : > { %5345 = vmatpush1.bf16.msra.mxu0 %v5344_v18  ;;  %v1894_v18 = vld [vmem:[%s7560_s24 + $0x3258] sm:$0xff] }
 0x1f0   : > { %5857 = vmatpush1.bf16.msra.mxu1 %v5856_v19  ;;  %5347 = vmatprep.subr.bf16.mxu0 %v5346_v20  ;;  %v5360_v19 = vpack.c.bf16 %v1875_v9, %v1867_v8  ;;  %v5872_v20 = vpack.c.bf16 %v1877_v50, %v1869_v10  ;;  %v5874_v27 = vpack.c.bf16 %v1894_v18, %v1886_v16  ;;  %v1931_v9 = vld [vmem:[%s7560_s24 + $0x3380] sm:$0xff]  ;;  %v1956_v16 = vld [vmem:[%s7560_s24 + $0x3448] sm:$0xff]  ;;  %v1950_v18 = vld [vmem:[%s7560_s24 + $0x3418] sm:$0xff] }
 0x1f1   : > { %5859 = vmatprep.subr.bf16.mxu1 %v5858_v24  ;;  %v1885_v24 = vld [vmem:[%s7560_s24 + $0x3210] sm:$0xff]  ;;  %v5374_v8 = vpack.c.bf16 %v1940_v2, %v1932_v1  ;;  %v1939_v10 = vld [vmem:[%s7560_s24 + $0x33c0] sm:$0xff]  ;;  %v1996_v2 = vld [vmem:[%s7560_s24 + $0x3588] sm:$0xff] }
 0x1f2   : > { %2839 = vmatmul.mubr.f32.vlgmr.msra.gmra.mrb[0].mxu0 %v8314_v38  ;;  %v1989_v1 = vld [vmem:[%s7560_s24 + $0x3550] sm:$0xff] }
 0x1f3   : > { %5349 = vmatpush1.bf16.msra.mxu0 %v5348_v35  ;;  %3407 = vmatmul.mubr.f32.vlgmr.msra.gmra.mrb[0].mxu1 %v8314_v38  ;;  %v1910_v35 = vld [vmem:[%s7560_s24 + $0x32d8] sm:$0xff] }
 0x1f4   : > { %5861 = vmatpush1.bf16.msra.mxu1 %v5860_v41  ;;  %5351 = vmatprep.subr.bf16.mxu0 %v5350_v36  ;;  %v5364_v41 = vpack.c.bf16 %v1891_v23, %v1883_v22  ;;  %v5876_v36 = vpack.c.bf16 %v1893_v28, %v1885_v24  ;;  %v5878_v44 = vpack.c.bf16 %v1910_v35, %v1902_v34  ;;  %v1947_v23 = vld [vmem:[%s7560_s24 + $0x3400] sm:$0xff]  ;;  %v1972_v34 = vld [vmem:[%s7560_s24 + $0x34c8] sm:$0xff]  ;;  %v1966_v35 = vld [vmem:[%s7560_s24 + $0x3498] sm:$0xff] }
 0x1f5   : > { %5863 = vmatprep.subr.bf16.mxu1 %v5862_v43  ;;  %2909 = vmatprep.mubr.f32.mxu0 %v8469_v47  ;;  %v1901_v43 = vld [vmem:[%s7560_s24 + $0x3290] sm:$0xff]  ;;  %v5378_v22 = vpack.c.bf16 %v1956_v16, %v1948_v14  ;;  %v1955_v24 = vld [vmem:[%s7560_s24 + $0x3440] sm:$0xff]  ;;  %v2012_v16 = vld [vmem:[%s7560_s24 + $0x3608] sm:$0xff] }
 0x1f6   : > { %3477 = vmatprep.mubr.f32.mxu1 %v8469_v47  ;;  %v2005_v14 = vld [vmem:[%s7560_s24 + $0x35d0] sm:$0xff] }
 0x1f7   : > { %5353 = vmatpush1.bf16.msra.mxu0 %v5352_v51  ;;  %v1926_v51 = vld [vmem:[%s7560_s24 + $0x3358] sm:$0xff] }
 0x1f8   : > { %5865 = vmatpush1.bf16.msra.mxu1 %v5864_v52  ;;  %5355 = vmatprep.subr.bf16.mxu0 %v5354_v54  ;;  %v5368_v52 = vpack.c.bf16 %v1907_v42, %v1899_v39  ;;  %v5880_v54 = vpack.c.bf16 %v1909_v45, %v1901_v43  ;;  %v5882_v61 = vpack.c.bf16 %v1926_v51, %v1918_v49  ;;  %v1963_v42 = vld [vmem:[%s7560_s24 + $0x3480] sm:$0xff]  ;;  %v1988_v49 = vld [vmem:[%s7560_s24 + $0x3548] sm:$0xff]  ;;  %v1982_v51 = vld [vmem:[%s7560_s24 + $0x3518] sm:$0xff] }
 0x1f9   : > { %5867 = vmatprep.subr.bf16.mxu1 %v5866_v60  ;;  %v1917_v60 = vld [vmem:[%s7560_s24 + $0x3310] sm:$0xff]  ;;  %v5382_v39 = vpack.c.bf16 %v1972_v34, %v1964_v32  ;;  %v1971_v43 = vld [vmem:[%s7560_s24 + $0x34c0] sm:$0xff]  ;;  %v2028_v34 = vld [vmem:[%s7560_s24 + $0x3688] sm:$0xff] }
 0x1fa   : > { %v2021_v32 = vld [vmem:[%s7560_s24 + $0x3650] sm:$0xff] }
 0x1fb   : > { %5357 = vmatpush1.bf16.msra.mxu0 %v5356_v4  ;;  %v1942_v4 = vld [vmem:[%s7560_s24 + $0x33d8] sm:$0xff] }
 0x1fc   : > { %5869 = vmatpush1.bf16.msra.mxu1 %v5868_v6  ;;  %5359 = vmatprep.subr.bf16.mxu0 %v5358_v7  ;;  %v5372_v6 = vpack.c.bf16 %v1923_v59, %v1915_v58  ;;  %v5884_v7 = vpack.c.bf16 %v1925_v62, %v1917_v60  ;;  %v5886_v50 = vpack.c.bf16 %v1942_v4, %v1934_v3  ;;  %v1979_v59 = vld [vmem:[%s7560_s24 + $0x3500] sm:$0xff]  ;;  %v2004_v3 = vld [vmem:[%s7560_s24 + $0x35c8] sm:$0xff]  ;;  %v1998_v4 = vld [vmem:[%s7560_s24 + $0x3598] sm:$0xff] }
 0x1fd   : > { %5871 = vmatprep.subr.bf16.mxu1 %v5870_v11  ;;  %v1933_v11 = vld [vmem:[%s7560_s24 + $0x3390] sm:$0xff]  ;;  %v5386_v58 = vpack.c.bf16 %v1988_v49, %v1980_v48  ;;  %v1987_v60 = vld [vmem:[%s7560_s24 + $0x3540] sm:$0xff]  ;;  %v2044_v49 = vld [vmem:[%s7560_s24 + $0x3708] sm:$0xff] }
 0x1fe   : > { %v2037_v48 = vld [vmem:[%s7560_s24 + $0x36d0] sm:$0xff] }
 0x1ff   : > { %5361 = vmatpush1.bf16.msra.mxu0 %v5360_v19  ;;  %v1958_v19 = vld [vmem:[%s7560_s24 + $0x3458] sm:$0xff] }
 0x200   : > { %5873 = vmatpush1.bf16.msra.mxu1 %v5872_v20  ;;  %5363 = vmatprep.subr.bf16.mxu0 %v5362_v21  ;;  %v5376_v20 = vpack.c.bf16 %v1939_v10, %v1931_v9  ;;  %v5888_v21 = vpack.c.bf16 %v1941_v13, %v1933_v11  ;;  %v5890_v28 = vpack.c.bf16 %v1958_v19, %v1950_v18  ;;  %v1995_v10 = vld [vmem:[%s7560_s24 + $0x3580] sm:$0xff]  ;;  %v2020_v18 = vld [vmem:[%s7560_s24 + $0x3648] sm:$0xff]  ;;  %v2014_v19 = vld [vmem:[%s7560_s24 + $0x3618] sm:$0xff] }
 0x201   : > { %5875 = vmatprep.subr.bf16.mxu1 %v5874_v27  ;;  %v1949_v27 = vld [vmem:[%s7560_s24 + $0x3410] sm:$0xff]  ;;  %v5390_v9 = vpack.c.bf16 %v2004_v3, %v1996_v2  ;;  %v2003_v11 = vld [vmem:[%s7560_s24 + $0x35c0] sm:$0xff]  ;;  %v2060_v3 = vld [vmem:[%s7560_s24 + $0x3788] sm:$0xff] }
 0x202   : > { %v2053_v2 = vld [vmem:[%s7560_s24 + $0x3750] sm:$0xff] }
 0x203   : > { %5365 = vmatpush1.bf16.msra.mxu0 %v5364_v41  ;;  %v1974_v41 = vld [vmem:[%s7560_s24 + $0x34d8] sm:$0xff] }
 0x204   : > { %5877 = vmatpush1.bf16.msra.mxu1 %v5876_v36  ;;  %5367 = vmatprep.subr.bf16.mxu0 %v5366_v37  ;;  %v5380_v36 = vpack.c.bf16 %v1955_v24, %v1947_v23  ;;  %v5892_v37 = vpack.c.bf16 %v1957_v29, %v1949_v27  ;;  %v5894_v45 = vpack.c.bf16 %v1974_v41, %v1966_v35  ;;  %v2011_v24 = vld [vmem:[%s7560_s24 + $0x3600] sm:$0xff]  ;;  %v2036_v35 = vld [vmem:[%s7560_s24 + $0x36c8] sm:$0xff]  ;;  %v2030_v41 = vld [vmem:[%s7560_s24 + $0x3698] sm:$0xff] }
 0x205   : > { %5879 = vmatprep.subr.bf16.mxu1 %v5878_v44  ;;  %v1965_v44 = vld [vmem:[%s7560_s24 + $0x3490] sm:$0xff]  ;;  %v5394_v23 = vpack.c.bf16 %v2020_v18, %v2012_v16  ;;  %v2019_v27 = vld [vmem:[%s7560_s24 + $0x3640] sm:$0xff]  ;;  %v2076_v18 = vld [vmem:[%s7560_s24 + $0x3808] sm:$0xff] }
 0x206   : > { %v2069_v16 = vld [vmem:[%s7560_s24 + $0x37d0] sm:$0xff] }
 0x207   : > { %5369 = vmatpush1.bf16.msra.mxu0 %v5368_v52  ;;  %v1990_v52 = vld [vmem:[%s7560_s24 + $0x3558] sm:$0xff] }
 0x208   : > { %5881 = vmatpush1.bf16.msra.mxu1 %v5880_v54  ;;  %5371 = vmatprep.subr.bf16.mxu0 %v5370_v57  ;;  %v5384_v54 = vpack.c.bf16 %v1971_v43, %v1963_v42  ;;  %v5896_v57 = vpack.c.bf16 %v1973_v46, %v1965_v44  ;;  %v5898_v62 = vpack.c.bf16 %v1990_v52, %v1982_v51  ;;  %v2027_v43 = vld [vmem:[%s7560_s24 + $0x3680] sm:$0xff]  ;;  %v2052_v51 = vld [vmem:[%s7560_s24 + $0x3748] sm:$0xff]  ;;  %v2046_v52 = vld [vmem:[%s7560_s24 + $0x3718] sm:$0xff] }
 0x209   : > { %5883 = vmatprep.subr.bf16.mxu1 %v5882_v61  ;;  %v1981_v61 = vld [vmem:[%s7560_s24 + $0x3510] sm:$0xff]  ;;  %v5398_v42 = vpack.c.bf16 %v2036_v35, %v2028_v34  ;;  %v2035_v44 = vld [vmem:[%s7560_s24 + $0x36c0] sm:$0xff]  ;;  %v2092_v35 = vld [vmem:[%s7560_s24 + $0x3888] sm:$0xff] }
 0x20b   : > { %5373 = vmatpush1.bf16.msra.mxu0 %v5372_v6  ;;  %v2006_v6 = vld [vmem:[%s7560_s24 + $0x35d8] sm:$0xff] }
 0x20c   : > { %5885 = vmatpush1.bf16.msra.mxu1 %v5884_v7  ;;  %5375 = vmatprep.subr.bf16.mxu0 %v5374_v8  ;;  %v5388_v7 = vpack.c.bf16 %v1987_v60, %v1979_v59  ;;  %v5900_v8 = vpack.c.bf16 %v1989_v1, %v1981_v61  ;;  %v5902_v13 = vpack.c.bf16 %v2006_v6, %v1998_v4  ;;  %v2043_v60 = vld [vmem:[%s7560_s24 + $0x3700] sm:$0xff]  ;;  %v2068_v4 = vld [vmem:[%s7560_s24 + $0x37c8] sm:$0xff]  ;;  %v2062_v6 = vld [vmem:[%s7560_s24 + $0x3798] sm:$0xff] }
 0x20d   : > { %5887 = vmatprep.subr.bf16.mxu1 %v5886_v50  ;;  %v1997_v50 = vld [vmem:[%s7560_s24 + $0x3590] sm:$0xff]  ;;  %v5402_v59 = vpack.c.bf16 %v2052_v51, %v2044_v49  ;;  %v2051_v61 = vld [vmem:[%s7560_s24 + $0x3740] sm:$0xff] }
 0x20e   : > { %v2101_v51 = vld [vmem:[%s7560_s24 + $0x38d0] sm:$0xff] }
 0x20f   : > { %5377 = vmatpush1.bf16.msra.mxu0 %v5376_v20  ;;  %v2022_v20 = vld [vmem:[%s7560_s24 + $0x3658] sm:$0xff] }
 0x210   : > { %5889 = vmatpush1.bf16.msra.mxu1 %v5888_v21  ;;  %5379 = vmatprep.subr.bf16.mxu0 %v5378_v22  ;;  %v5392_v21 = vpack.c.bf16 %v2003_v11, %v1995_v10  ;;  %v5904_v22 = vpack.c.bf16 %v2005_v14, %v1997_v50  ;;  %v5906_v29 = vpack.c.bf16 %v2022_v20, %v2014_v19  ;;  %v2059_v11 = vld [vmem:[%s7560_s24 + $0x3780] sm:$0xff]  ;;  %v2084_v19 = vld [vmem:[%s7560_s24 + $0x3848] sm:$0xff] }
 0x211   : > { %5891 = vmatprep.subr.bf16.mxu1 %v5890_v28  ;;  %v2013_v28 = vld [vmem:[%s7560_s24 + $0x3610] sm:$0xff]  ;;  %v5406_v10 = vpack.c.bf16 %v2068_v4, %v2060_v3  ;;  %v2067_v50 = vld [vmem:[%s7560_s24 + $0x37c0] sm:$0xff]  ;;  %v2386_v20 = vcombine.high %v8447_v17, %v8447_v17 }
 0x212   : > { %v2085_v17 = vld [vmem:[%s7560_s24 + $0x3850] sm:$0xff] }
 0x213   : > { %5381 = vmatpush1.bf16.msra.mxu0 %v5380_v36  ;;  %v2038_v36 = vld [vmem:[%s7560_s24 + $0x36d8] sm:$0xff]  ;;  %v2109_v3 = vld [vmem:[%s7560_s24 + $0x3910] sm:$0xff] }
 0x214   : > { %5893 = vmatpush1.bf16.msra.mxu1 %v5892_v37  ;;  %5383 = vmatprep.subr.bf16.mxu0 %v5382_v39  ;;  %v5396_v37 = vpack.c.bf16 %v2019_v27, %v2011_v24  ;;  %v5908_v39 = vpack.c.bf16 %v2021_v32, %v2013_v28  ;;  %v5910_v46 = vpack.c.bf16 %v2038_v36, %v2030_v41  ;;  %v2075_v28 = vld [vmem:[%s7560_s24 + $0x3800] sm:$0xff]  ;;  %v2077_v32 = vld [vmem:[%s7560_s24 + $0x3810] sm:$0xff]  ;;  %v2100_v41 = vld [vmem:[%s7560_s24 + $0x38c8] sm:$0xff] }
 0x215   : > { %5895 = vmatprep.subr.bf16.mxu1 %v5894_v45  ;;  %v2029_v45 = vld [vmem:[%s7560_s24 + $0x3690] sm:$0xff]  ;;  %v5410_v27 = vpack.c.bf16 %v2084_v19, %v2076_v18  ;;  %v8598_v36 = vrot.slane %v2386_v20, %v7682_v12 }
 0x216   : > { %v2125_v18 = vld [vmem:[%s7560_s24 + $0x3990] sm:$0xff] }
 0x217   : > { %5385 = vmatpush1.bf16.msra.mxu0 %v5384_v54  ;;  %v2054_v54 = vld [vmem:[%s7560_s24 + $0x3758] sm:$0xff]  ;;  %v2133_v20 = vld [vmem:[%s7560_s24 + $0x39d0] sm:$0xff] }
 0x218   : > { %5897 = vmatpush1.bf16.msra.mxu1 %v5896_v57  ;;  %5387 = vmatprep.subr.bf16.mxu0 %v5386_v58  ;;  %v5400_v57 = vpack.c.bf16 %v2035_v44, %v2027_v43  ;;  %v5912_v58 = vpack.c.bf16 %v2037_v48, %v2029_v45  ;;  %v5914_v1 = vpack.c.bf16 %v2054_v54, %v2046_v52  ;;  %v2091_v45 = vld [vmem:[%s7560_s24 + $0x3880] sm:$0xff]  ;;  %v2093_v48 = vld [vmem:[%s7560_s24 + $0x3890] sm:$0xff]  ;;  %v2108_v52 = vld [vmem:[%s7560_s24 + $0x3908] sm:$0xff] }
 0x219   : > { %5899 = vmatprep.subr.bf16.mxu1 %v5898_v62  ;;  %v2045_v62 = vld [vmem:[%s7560_s24 + $0x3710] sm:$0xff]  ;;  %v5924_v43 = vpack.c.bf16 %v2085_v17, %v2077_v32  ;;  %v5414_v44 = vpack.c.bf16 %v2100_v41, %v2092_v35  ;;  %v2116_v54 = vld [vmem:[%s7560_s24 + $0x3948] sm:$0xff]  ;;  %v2139_v32 = vld [vmem:[%s7560_s24 + $0x3a00] sm:$0xff] }
 0x21a   : > { %v2141_v17 = vld [vmem:[%s7560_s24 + $0x3a10] sm:$0xff] }
 0x21b   : > { %5389 = vmatpush1.bf16.msra.mxu0 %v5388_v7  ;;  %v2070_v7 = vld [vmem:[%s7560_s24 + $0x37d8] sm:$0xff]  ;;  %v2149_v41 = vld [vmem:[%s7560_s24 + $0x3a50] sm:$0xff] }
 0x21c   : > { %5901 = vmatpush1.bf16.msra.mxu1 %v5900_v8  ;;  %5391 = vmatprep.subr.bf16.mxu0 %v5390_v9  ;;  %v5404_v8 = vpack.c.bf16 %v2051_v61, %v2043_v60  ;;  %v5916_v9 = vpack.c.bf16 %v2053_v2, %v2045_v62  ;;  %v5918_v14 = vpack.c.bf16 %v2070_v7, %v2062_v6  ;;  %v2115_v2 = vld [vmem:[%s7560_s24 + $0x3940] sm:$0xff]  ;;  %v2117_v6 = vld [vmem:[%s7560_s24 + $0x3950] sm:$0xff]  ;;  %v2124_v7 = vld [vmem:[%s7560_s24 + $0x3988] sm:$0xff] }
 0x21d   : > { %5903 = vmatprep.subr.bf16.mxu1 %v5902_v13  ;;  %v2061_v13 = vld [vmem:[%s7560_s24 + $0x3790] sm:$0xff]  ;;  %v5928_v61 = vpack.c.bf16 %v2101_v51, %v2093_v48  ;;  %v5418_v62 = vpack.c.bf16 %v2116_v54, %v2108_v52  ;;  %v2155_v48 = vld [vmem:[%s7560_s24 + $0x3a80] sm:$0xff] }
 0x21e   : > { %v5920_v24 = vpack.c.bf16 %v2069_v16, %v2061_v13  ;;  %v2131_v16 = vld [vmem:[%s7560_s24 + $0x39c0] sm:$0xff]  ;;  %v2157_v51 = vld [vmem:[%s7560_s24 + $0x3a90] sm:$0xff] }
 0x21f   : > { %5393 = vmatpush1.bf16.msra.mxu0 %v5392_v21  ;;  %v2078_v21 = vld [vmem:[%s7560_s24 + $0x3818] sm:$0xff]  ;;  %v2165_v54 = vld [vmem:[%s7560_s24 + $0x3ad0] sm:$0xff] }
 0x220   : > { %5905 = vmatpush1.bf16.msra.mxu1 %v5904_v22  ;;  %5395 = vmatprep.subr.bf16.mxu0 %v5394_v23  ;;  %v2086_v22 = vld [vmem:[%s7560_s24 + $0x3858] sm:$0xff]  ;;  %v5408_v23 = vpack.c.bf16 %v2067_v50, %v2059_v11  ;;  %v5932_v50 = vpack.c.bf16 %v2117_v6, %v2109_v3  ;;  %v2171_v3 = vld [vmem:[%s7560_s24 + $0x3b00] sm:$0xff]  ;;  %v2173_v6 = vld [vmem:[%s7560_s24 + $0x3b10] sm:$0xff] }
 0x221   : > { %5907 = vmatprep.subr.bf16.mxu1 %v5906_v29  ;;  %v2083_v29 = vld [vmem:[%s7560_s24 + $0x3840] sm:$0xff]  ;;  %v5922_v34 = vpack.c.bf16 %v2086_v22, %v2078_v21  ;;  %v2140_v21 = vld [vmem:[%s7560_s24 + $0x3a08] sm:$0xff] }
 0x222   : > { %v2148_v22 = vld [vmem:[%s7560_s24 + $0x3a48] sm:$0xff] }
 0x223   : > { %5397 = vmatpush1.bf16.msra.mxu0 %v5396_v37  ;;  %v2094_v37 = vld [vmem:[%s7560_s24 + $0x3898] sm:$0xff] }
 0x224   : > { %5909 = vmatpush1.bf16.msra.mxu1 %v5908_v39  ;;  %5399 = vmatprep.subr.bf16.mxu0 %v5398_v42  ;;  %v2102_v39 = vld [vmem:[%s7560_s24 + $0x38d8] sm:$0xff]  ;;  %v5412_v42 = vpack.c.bf16 %v2083_v29, %v2075_v28  ;;  %v5936_v28 = vpack.c.bf16 %v2133_v20, %v2125_v18  ;;  %v5426_v29 = vpack.c.bf16 %v2148_v22, %v2140_v21  ;;  %v2187_v18 = vld [vmem:[%s7560_s24 + $0x3b80] sm:$0xff]  ;;  %v2189_v20 = vld [vmem:[%s7560_s24 + $0x3b90] sm:$0xff] }
 0x225   : > { %5911 = vmatprep.subr.bf16.mxu1 %v5910_v46  ;;  %v2099_v46 = vld [vmem:[%s7560_s24 + $0x38c0] sm:$0xff]  ;;  %v5926_v49 = vpack.c.bf16 %v2102_v39, %v2094_v37  ;;  %v2156_v37 = vld [vmem:[%s7560_s24 + $0x3a88] sm:$0xff]  ;;  %v2197_v22 = vld [vmem:[%s7560_s24 + $0x3bd0] sm:$0xff] }
 0x226   : > { %v5416_v60 = vpack.c.bf16 %v2099_v46, %v2091_v45  ;;  %v2164_v39 = vld [vmem:[%s7560_s24 + $0x3ac8] sm:$0xff]  ;;  %v5940_v45 = vpack.c.bf16 %v2149_v41, %v2141_v17  ;;  %v2203_v17 = vld [vmem:[%s7560_s24 + $0x3c00] sm:$0xff]  ;;  %v2205_v41 = vld [vmem:[%s7560_s24 + $0x3c10] sm:$0xff] }
 0x227   : > { %5401 = vmatpush1.bf16.msra.mxu0 %v5400_v57  ;;  %v8610_v57 = vcombine.high %v8598_v36, %v8598_v36  ;;  %v5430_v46 = vpack.c.bf16 %v2164_v39, %v2156_v37  ;;  %v2213_v39 = vld [vmem:[%s7560_s24 + $0x3c50] sm:$0xff] }
 0x228   : > { %5913 = vmatpush1.bf16.msra.mxu1 %v5912_v58  ;;  %5403 = vmatprep.subr.bf16.mxu0 %v5402_v59  ;;  %v2110_v58 = vld [vmem:[%s7560_s24 + $0x3918] sm:$0xff] }
 0x229   : > { %5915 = vmatprep.subr.bf16.mxu1 %v5914_v1  ;;  %v2118_v59 = vld [vmem:[%s7560_s24 + $0x3958] sm:$0xff]  ;;  %v2107_v1 = vld [vmem:[%s7560_s24 + $0x3900] sm:$0xff] }
 0x22a   : > { %v5930_v4 = vpack.c.bf16 %v2118_v59, %v2110_v58  ;;  %v5420_v11 = vpack.c.bf16 %v2115_v2, %v2107_v1  ;;  %v2172_v58 = vld [vmem:[%s7560_s24 + $0x3b08] sm:$0xff]  ;;  %v5944_v1 = vpack.c.bf16 %v2165_v54, %v2157_v51  ;;  %v2219_v51 = vld [vmem:[%s7560_s24 + $0x3c80] sm:$0xff]  ;;  %v2221_v54 = vld [vmem:[%s7560_s24 + $0x3c90] sm:$0xff] }
 0x22b   : > { %5405 = vmatpush1.bf16.msra.mxu0 %v5404_v8  ;;  %v2132_v8 = vld [vmem:[%s7560_s24 + $0x39c8] sm:$0xff] }
 0x22c   : > { %5917 = vmatpush1.bf16.msra.mxu1 %v5916_v9  ;;  %5407 = vmatprep.subr.bf16.mxu0 %v5406_v10  ;;  %v2126_v9 = vld [vmem:[%s7560_s24 + $0x3998] sm:$0xff]  ;;  %v5422_v13 = vpack.c.bf16 %v2132_v8, %v2124_v7  ;;  %v2180_v59 = vld [vmem:[%s7560_s24 + $0x3b48] sm:$0xff]  ;;  %v2181_v8 = vld [vmem:[%s7560_s24 + $0x3b50] sm:$0xff] }
 0x22d   : > { %5919 = vmatprep.subr.bf16.mxu1 %v5918_v14  ;;  %v2134_v10 = vld [vmem:[%s7560_s24 + $0x39d8] sm:$0xff]  ;;  %v2123_v14 = vld [vmem:[%s7560_s24 + $0x3980] sm:$0xff]  ;;  %v5434_v2 = vpack.c.bf16 %v2180_v59, %v2172_v58  ;;  %v2229_v59 = vld [vmem:[%s7560_s24 + $0x3cd0] sm:$0xff] }
 0x22e   : > { %v5934_v19 = vpack.c.bf16 %v2134_v10, %v2126_v9  ;;  %v2188_v9 = vld [vmem:[%s7560_s24 + $0x3b88] sm:$0xff] }
 0x22f   : > { %5409 = vmatpush1.bf16.msra.mxu0 %v5408_v23  ;;  %v2142_v23 = vld [vmem:[%s7560_s24 + $0x3a18] sm:$0xff]  ;;  %v2196_v10 = vld [vmem:[%s7560_s24 + $0x3bc8] sm:$0xff] }
 0x230   : > { %5921 = vmatpush1.bf16.msra.mxu1 %v5920_v24  ;;  %5411 = vmatprep.subr.bf16.mxu0 %v5410_v27  ;;  %v2150_v24 = vld [vmem:[%s7560_s24 + $0x3a58] sm:$0xff]  ;;  %v5424_v27 = vpack.c.bf16 %v2131_v16, %v2123_v14  ;;  %v5948_v14 = vpack.c.bf16 %v2181_v8, %v2173_v6  ;;  %v5438_v16 = vpack.c.bf16 %v2196_v10, %v2188_v9  ;;  %v2235_v6 = vld [vmem:[%s7560_s24 + $0x3d00] sm:$0xff]  ;;  %v2237_v8 = vld [vmem:[%s7560_s24 + $0x3d10] sm:$0xff] }
 0x231   : > { %5923 = vmatprep.subr.bf16.mxu1 %v5922_v34  ;;  %v2147_v34 = vld [vmem:[%s7560_s24 + $0x3a40] sm:$0xff]  ;;  %v5938_v35 = vpack.c.bf16 %v2150_v24, %v2142_v23  ;;  %v2204_v23 = vld [vmem:[%s7560_s24 + $0x3c08] sm:$0xff]  ;;  %v2245_v10 = vld [vmem:[%s7560_s24 + $0x3d50] sm:$0xff] }
 0x232   : > { %2910 = vmatmul.mubr.f32.vlgmr.msra.gmra.mrb[0].mxu0 %v8457_v31  ;;  %v2212_v24 = vld [vmem:[%s7560_s24 + $0x3c48] sm:$0xff] }
 0x233   : > { %5413 = vmatpush1.bf16.msra.mxu0 %v5412_v42  ;;  %3478 = vmatmul.mubr.f32.vlgmr.msra.gmra.mrb[0].mxu1 %v8457_v31  ;;  %v2158_v42 = vld [vmem:[%s7560_s24 + $0x3a98] sm:$0xff] }
 0x234   : > { %5925 = vmatpush1.bf16.msra.mxu1 %v5924_v43  ;;  %5415 = vmatprep.subr.bf16.mxu0 %v5414_v44  ;;  %v2166_v43 = vld [vmem:[%s7560_s24 + $0x3ad8] sm:$0xff]  ;;  %v5428_v44 = vpack.c.bf16 %v2147_v34, %v2139_v32  ;;  %v5952_v32 = vpack.c.bf16 %v2197_v22, %v2189_v20  ;;  %v5442_v34 = vpack.c.bf16 %v2212_v24, %v2204_v23  ;;  %v2251_v20 = vld [vmem:[%s7560_s24 + $0x3d80] sm:$0xff]  ;;  %v2253_v22 = vld [vmem:[%s7560_s24 + $0x3d90] sm:$0xff] }
 0x235   : > { %5927 = vmatprep.subr.bf16.mxu1 %v5926_v49  ;;  %2980 = vmatprep.mubr.f32.mxu0 %v8610_v57  ;;  %v2163_v49 = vld [vmem:[%s7560_s24 + $0x3ac0] sm:$0xff]  ;;  %v5942_v52 = vpack.c.bf16 %v2166_v43, %v2158_v42  ;;  %v2220_v42 = vld [vmem:[%s7560_s24 + $0x3c88] sm:$0xff]  ;;  %v2261_v24 = vld [vmem:[%s7560_s24 + $0x3dd0] sm:$0xff] }
 0x236   : > { %3548 = vmatprep.mubr.f32.mxu1 %v8610_v57  ;;  %v2228_v43 = vld [vmem:[%s7560_s24 + $0x3cc8] sm:$0xff] }
 0x237   : > { %5417 = vmatpush1.bf16.msra.mxu0 %v5416_v60  ;;  %v2174_v60 = vld [vmem:[%s7560_s24 + $0x3b18] sm:$0xff] }
 0x238   : > { %5929 = vmatpush1.bf16.msra.mxu1 %v5928_v61  ;;  %5419 = vmatprep.subr.bf16.mxu0 %v5418_v62  ;;  %v2182_v61 = vld [vmem:[%s7560_s24 + $0x3b58] sm:$0xff]  ;;  %v5432_v62 = vpack.c.bf16 %v2163_v49, %v2155_v48  ;;  %v5956_v48 = vpack.c.bf16 %v2213_v39, %v2205_v41  ;;  %v5446_v49 = vpack.c.bf16 %v2228_v43, %v2220_v42  ;;  %v2267_v41 = vld [vmem:[%s7560_s24 + $0x3e00] sm:$0xff]  ;;  %v2269_v39 = vld [vmem:[%s7560_s24 + $0x3e10] sm:$0xff] }
 0x239   : > { %5931 = vmatprep.subr.bf16.mxu1 %v5930_v4  ;;  %v2179_v4 = vld [vmem:[%s7560_s24 + $0x3b40] sm:$0xff]  ;;  %v5946_v7 = vpack.c.bf16 %v2182_v61, %v2174_v60  ;;  %v2236_v60 = vld [vmem:[%s7560_s24 + $0x3d08] sm:$0xff]  ;;  %v2277_v43 = vld [vmem:[%s7560_s24 + $0x3e50] sm:$0xff] }
 0x23a   : > { %v2244_v61 = vld [vmem:[%s7560_s24 + $0x3d48] sm:$0xff] }
 0x23b   : > { %5421 = vmatpush1.bf16.msra.mxu0 %v5420_v11  ;;  %v2190_v11 = vld [vmem:[%s7560_s24 + $0x3b98] sm:$0xff] }
 0x23c   : > { %5933 = vmatpush1.bf16.msra.mxu1 %v5932_v50  ;;  %5423 = vmatprep.subr.bf16.mxu0 %v5422_v13  ;;  %v2198_v50 = vld [vmem:[%s7560_s24 + $0x3bd8] sm:$0xff]  ;;  %v5436_v13 = vpack.c.bf16 %v2179_v4, %v2171_v3  ;;  %v5960_v3 = vpack.c.bf16 %v2229_v59, %v2221_v54  ;;  %v5450_v4 = vpack.c.bf16 %v2244_v61, %v2236_v60  ;;  %v2283_v54 = vld [vmem:[%s7560_s24 + $0x3e80] sm:$0xff]  ;;  %v2285_v59 = vld [vmem:[%s7560_s24 + $0x3e90] sm:$0xff] }
 0x23d   : > { %5935 = vmatprep.subr.bf16.mxu1 %v5934_v19  ;;  %v2195_v19 = vld [vmem:[%s7560_s24 + $0x3bc0] sm:$0xff]  ;;  %v5950_v21 = vpack.c.bf16 %v2198_v50, %v2190_v11  ;;  %v2252_v11 = vld [vmem:[%s7560_s24 + $0x3d88] sm:$0xff]  ;;  %v2293_v61 = vld [vmem:[%s7560_s24 + $0x3ed0] sm:$0xff] }
 0x23e   : > { %v2260_v50 = vld [vmem:[%s7560_s24 + $0x3dc8] sm:$0xff] }
 0x23f   : > { %5425 = vmatpush1.bf16.msra.mxu0 %v5424_v27  ;;  %v2206_v27 = vld [vmem:[%s7560_s24 + $0x3c18] sm:$0xff] }
 0x240   : > { %5937 = vmatpush1.bf16.msra.mxu1 %v5936_v28  ;;  %5427 = vmatprep.subr.bf16.mxu0 %v5426_v29  ;;  %v2214_v28 = vld [vmem:[%s7560_s24 + $0x3c58] sm:$0xff]  ;;  %v5440_v29 = vpack.c.bf16 %v2195_v19, %v2187_v18  ;;  %v5964_v18 = vpack.c.bf16 %v2245_v10, %v2237_v8  ;;  %v5454_v19 = vpack.c.bf16 %v2260_v50, %v2252_v11  ;;  %v2299_v8 = vld [vmem:[%s7560_s24 + $0x3f00] sm:$0xff]  ;;  %v2301_v10 = vld [vmem:[%s7560_s24 + $0x3f10] sm:$0xff] }
 0x241   : > { %5939 = vmatprep.subr.bf16.mxu1 %v5938_v35  ;;  %v2211_v35 = vld [vmem:[%s7560_s24 + $0x3c40] sm:$0xff]  ;;  %v5954_v37 = vpack.c.bf16 %v2214_v28, %v2206_v27  ;;  %v2268_v27 = vld [vmem:[%s7560_s24 + $0x3e08] sm:$0xff]  ;;  %v2309_v50 = vld [vmem:[%s7560_s24 + $0x3f50] sm:$0xff] }
 0x242   : > { %v2276_v28 = vld [vmem:[%s7560_s24 + $0x3e48] sm:$0xff] }
 0x243   : > { %5429 = vmatpush1.bf16.msra.mxu0 %v5428_v44  ;;  %v2222_v44 = vld [vmem:[%s7560_s24 + $0x3c98] sm:$0xff] }
 0x244   : > { %5941 = vmatpush1.bf16.msra.mxu1 %v5940_v45  ;;  %5431 = vmatprep.subr.bf16.mxu0 %v5430_v46  ;;  %v2230_v45 = vld [vmem:[%s7560_s24 + $0x3cd8] sm:$0xff]  ;;  %v5444_v46 = vpack.c.bf16 %v2211_v35, %v2203_v17  ;;  %v5968_v17 = vpack.c.bf16 %v2261_v24, %v2253_v22  ;;  %v5458_v35 = vpack.c.bf16 %v2276_v28, %v2268_v27  ;;  %v2315_v22 = vld [vmem:[%s7560_s24 + $0x3f80] sm:$0xff]  ;;  %v2317_v24 = vld [vmem:[%s7560_s24 + $0x3f90] sm:$0xff] }
 0x245   : > { %5943 = vmatprep.subr.bf16.mxu1 %v5942_v52  ;;  %v2227_v52 = vld [vmem:[%s7560_s24 + $0x3cc0] sm:$0xff]  ;;  %v5958_v58 = vpack.c.bf16 %v2230_v45, %v2222_v44  ;;  %v2284_v44 = vld [vmem:[%s7560_s24 + $0x3e88] sm:$0xff]  ;;  %v2325_v28 = vld [vmem:[%s7560_s24 + $0x3fd0] sm:$0xff] }
 0x246   : > { %v2292_v45 = vld [vmem:[%s7560_s24 + $0x3ec8] sm:$0xff] }
 0x247   : > { %5433 = vmatpush1.bf16.msra.mxu0 %v5432_v62  ;;  %v2238_v62 = vld [vmem:[%s7560_s24 + $0x3d18] sm:$0xff] }
 0x248   : > { %5945 = vmatpush1.bf16.msra.mxu1 %v5944_v1  ;;  %5435 = vmatprep.subr.bf16.mxu0 %v5434_v2  ;;  %v2246_v1 = vld [vmem:[%s7560_s24 + $0x3d58] sm:$0xff]  ;;  %v5448_v2 = vpack.c.bf16 %v2227_v52, %v2219_v51  ;;  %v5972_v51 = vpack.c.bf16 %v2277_v43, %v2269_v39  ;;  %v5462_v52 = vpack.c.bf16 %v2292_v45, %v2284_v44  ;;  %v287_v39 = vld [vmem:[%s7560_s24 + $0x20] sm:$0xff]  ;;  %v289_v43 = vld [vmem:[%s7560_s24 + $0x30] sm:$0xff] }
 0x249   : > { %5947 = vmatprep.subr.bf16.mxu1 %v5946_v7  ;;  %v2243_v7 = vld [vmem:[%s7560_s24 + $0x3d40] sm:$0xff]  ;;  %v5962_v9 = vpack.c.bf16 %v2246_v1, %v2238_v62  ;;  %v2300_v62 = vld [vmem:[%s7560_s24 + $0x3f08] sm:$0xff]  ;;  %v297_v45 = vld [vmem:[%s7560_s24 + $0x70] sm:$0xff] }
 0x24a   : > { %v2308_v1 = vld [vmem:[%s7560_s24 + $0x3f48] sm:$0xff] }
 0x24b   : > { %5437 = vmatpush1.bf16.msra.mxu0 %v5436_v13  ;;  %v2254_v13 = vld [vmem:[%s7560_s24 + $0x3d98] sm:$0xff] }
 0x24c   : > { %5949 = vmatpush1.bf16.msra.mxu1 %v5948_v14  ;;  %5439 = vmatprep.subr.bf16.mxu0 %v5438_v16  ;;  %v2262_v14 = vld [vmem:[%s7560_s24 + $0x3dd8] sm:$0xff]  ;;  %v5452_v16 = vpack.c.bf16 %v2243_v7, %v2235_v6  ;;  %v5976_v6 = vpack.c.bf16 %v2293_v61, %v2285_v59  ;;  %v5466_v7 = vpack.c.bf16 %v2308_v1, %v2300_v62  ;;  %v303_v59 = vld [vmem:[%s7560_s24 + $0xa0] sm:$0xff]  ;;  %v305_v61 = vld [vmem:[%s7560_s24 + $0xb0] sm:$0xff] }
 0x24d   : > { %5951 = vmatprep.subr.bf16.mxu1 %v5950_v21  ;;  %v2259_v21 = vld [vmem:[%s7560_s24 + $0x3dc0] sm:$0xff]  ;;  %v5966_v23 = vpack.c.bf16 %v2262_v14, %v2254_v13  ;;  %v2316_v13 = vld [vmem:[%s7560_s24 + $0x3f88] sm:$0xff]  ;;  %v313_v1 = vld [vmem:[%s7560_s24 + $0xf0] sm:$0xff] }
 0x24e   : > { %v2324_v14 = vld [vmem:[%s7560_s24 + $0x3fc8] sm:$0xff] }
 0x24f   : > { %5441 = vmatpush1.bf16.msra.mxu0 %v5440_v29  ;;  %v2270_v29 = vld [vmem:[%s7560_s24 + $0x3e18] sm:$0xff] }
 0x250   : > { %5953 = vmatpush1.bf16.msra.mxu1 %v5952_v32  ;;  %5443 = vmatprep.subr.bf16.mxu0 %v5442_v34  ;;  %v2278_v32 = vld [vmem:[%s7560_s24 + $0x3e58] sm:$0xff]  ;;  %v5456_v34 = vpack.c.bf16 %v2259_v21, %v2251_v20  ;;  %v5980_v20 = vpack.c.bf16 %v2309_v50, %v2301_v10  ;;  %v5470_v21 = vpack.c.bf16 %v2324_v14, %v2316_v13  ;;  %v319_v10 = vld [vmem:[%s7560_s24 + $0x120] sm:$0xff]  ;;  %v321_v50 = vld [vmem:[%s7560_s24 + $0x130] sm:$0xff] }
 0x251   : > { %5955 = vmatprep.subr.bf16.mxu1 %v5954_v37  ;;  %v2275_v37 = vld [vmem:[%s7560_s24 + $0x3e40] sm:$0xff]  ;;  %v5970_v42 = vpack.c.bf16 %v2278_v32, %v2270_v29  ;;  %v288_v29 = vld [vmem:[%s7560_s24 + $0x28] sm:$0xff]  ;;  %v329_v14 = vld [vmem:[%s7560_s24 + $0x170] sm:$0xff] }
 0x252   : > { %v296_v32 = vld [vmem:[%s7560_s24 + $0x68] sm:$0xff] }
 0x253   : > { %5445 = vmatpush1.bf16.msra.mxu0 %v5444_v46  ;;  %v2286_v46 = vld [vmem:[%s7560_s24 + $0x3e98] sm:$0xff] }
 0x254   : > { %5957 = vmatpush1.bf16.msra.mxu1 %v5956_v48  ;;  %5447 = vmatprep.subr.bf16.mxu0 %v5446_v49  ;;  %v2294_v48 = vld [vmem:[%s7560_s24 + $0x3ed8] sm:$0xff]  ;;  %v5460_v49 = vpack.c.bf16 %v2275_v37, %v2267_v41  ;;  %v5984_v41 = vpack.c.bf16 %v2325_v28, %v2317_v24  ;;  %v5986_v37 = vpack.c.bf16 %v296_v32, %v288_v29  ;;  %v335_v24 = vld [vmem:[%s7560_s24 + $0x1a0] sm:$0xff]  ;;  %v337_v28 = vld [vmem:[%s7560_s24 + $0x1b0] sm:$0xff] }
 0x255   : > { %5959 = vmatprep.subr.bf16.mxu1 %v5958_v58  ;;  %v2291_v58 = vld [vmem:[%s7560_s24 + $0x3ec0] sm:$0xff]  ;;  %v5974_v60 = vpack.c.bf16 %v2294_v48, %v2286_v46  ;;  %v304_v46 = vld [vmem:[%s7560_s24 + $0xa8] sm:$0xff]  ;;  %v345_v32 = vld [vmem:[%s7560_s24 + $0x1f0] sm:$0xff] }
 0x256   : > { %v312_v48 = vld [vmem:[%s7560_s24 + $0xe8] sm:$0xff] }
 0x257   : > { %5449 = vmatpush1.bf16.msra.mxu0 %v5448_v2  ;;  %v2302_v2 = vld [vmem:[%s7560_s24 + $0x3f18] sm:$0xff] }
 0x258   : > { %5961 = vmatpush1.bf16.msra.mxu1 %v5960_v3  ;;  %5451 = vmatprep.subr.bf16.mxu0 %v5450_v4  ;;  %v2310_v3 = vld [vmem:[%s7560_s24 + $0x3f58] sm:$0xff]  ;;  %v5464_v4 = vpack.c.bf16 %v2291_v58, %v2283_v54  ;;  %v6500_v54 = vpack.c.bf16 %v297_v45, %v289_v43  ;;  %v5990_v58 = vpack.c.bf16 %v312_v48, %v304_v46  ;;  %v359_v43 = vld [vmem:[%s7560_s24 + $0x260] sm:$0xff]  ;;  %v361_v46 = vld [vmem:[%s7560_s24 + $0x270] sm:$0xff] }
 0x259   : > { %5963 = vmatprep.subr.bf16.mxu1 %v5962_v9  ;;  %v2307_v9 = vld [vmem:[%s7560_s24 + $0x3f40] sm:$0xff]  ;;  %v5978_v11 = vpack.c.bf16 %v2310_v3, %v2302_v2  ;;  %v320_v2 = vld [vmem:[%s7560_s24 + $0x128] sm:$0xff] }
 0x25a   : > { %v328_v3 = vld [vmem:[%s7560_s24 + $0x168] sm:$0xff] }
 0x25b   : > { %5453 = vmatpush1.bf16.msra.mxu0 %v5452_v16  ;;  %v2318_v16 = vld [vmem:[%s7560_s24 + $0x3f98] sm:$0xff]  ;;  %v368_v48 = vld [vmem:[%s7560_s24 + $0x2a8] sm:$0xff] }
 0x25c   : > { %5965 = vmatpush1.bf16.msra.mxu1 %v5964_v18  ;;  %5455 = vmatprep.subr.bf16.mxu0 %v5454_v19  ;;  %v2326_v18 = vld [vmem:[%s7560_s24 + $0x3fd8] sm:$0xff]  ;;  %v5468_v19 = vpack.c.bf16 %v2307_v9, %v2299_v8  ;;  %v6504_v8 = vpack.c.bf16 %v313_v1, %v305_v61  ;;  %v5994_v9 = vpack.c.bf16 %v328_v3, %v320_v2  ;;  %v375_v61 = vld [vmem:[%s7560_s24 + $0x2e0] sm:$0xff]  ;;  %v377_v2 = vld [vmem:[%s7560_s24 + $0x2f0] sm:$0xff] }
 0x25d   : > { %5967 = vmatprep.subr.bf16.mxu1 %v5966_v23  ;;  %v2323_v23 = vld [vmem:[%s7560_s24 + $0x3fc0] sm:$0xff]  ;;  %v5982_v27 = vpack.c.bf16 %v2326_v18, %v2318_v16  ;;  %v336_v16 = vld [vmem:[%s7560_s24 + $0x1a8] sm:$0xff] }
 0x25e   : > { %v344_v18 = vld [vmem:[%s7560_s24 + $0x1e8] sm:$0xff] }
 0x25f   : > { %5457 = vmatpush1.bf16.msra.mxu0 %v5456_v34  ;;  %v290_v34 = vld [vmem:[%s7560_s24 + $0x38] sm:$0xff]  ;;  %v384_v3 = vld [vmem:[%s7560_s24 + $0x328] sm:$0xff] }
 0x260   : > { %5969 = vmatpush1.bf16.msra.mxu1 %v5968_v17  ;;  %5459 = vmatprep.subr.bf16.mxu0 %v5458_v35  ;;  %v298_v17 = vld [vmem:[%s7560_s24 + $0x78] sm:$0xff]  ;;  %v5472_v35 = vpack.c.bf16 %v2323_v23, %v2315_v22  ;;  %v6508_v22 = vpack.c.bf16 %v329_v14, %v321_v50  ;;  %v5998_v23 = vpack.c.bf16 %v344_v18, %v336_v16  ;;  %v391_v50 = vld [vmem:[%s7560_s24 + $0x360] sm:$0xff]  ;;  %v393_v16 = vld [vmem:[%s7560_s24 + $0x370] sm:$0xff] }
 0x261   : > { %5971 = vmatprep.subr.bf16.mxu1 %v5970_v42  ;;  %v295_v42 = vld [vmem:[%s7560_s24 + $0x60] sm:$0xff]  ;;  %v6498_v44 = vpack.c.bf16 %v298_v17, %v290_v34  ;;  %v352_v34 = vld [vmem:[%s7560_s24 + $0x228] sm:$0xff]  ;;  %v354_v17 = vld [vmem:[%s7560_s24 + $0x238] sm:$0xff] }
 0x262   : > { %v400_v18 = vld [vmem:[%s7560_s24 + $0x3a8] sm:$0xff] }
 0x263   : > { %5461 = vmatpush1.bf16.msra.mxu0 %v5460_v49  ;;  %v306_v49 = vld [vmem:[%s7560_s24 + $0xb8] sm:$0xff] }
 0x264   : > { %5973 = vmatpush1.bf16.msra.mxu1 %v5972_v51  ;;  %5463 = vmatprep.subr.bf16.mxu0 %v5462_v52  ;;  %v314_v51 = vld [vmem:[%s7560_s24 + $0xf8] sm:$0xff]  ;;  %v5988_v52 = vpack.c.bf16 %v295_v42, %v287_v39  ;;  %v351_v42 = vld [vmem:[%s7560_s24 + $0x220] sm:$0xff] }
 0x265   : > { %5975 = vmatprep.subr.bf16.mxu1 %v5974_v60  ;;  %v311_v60 = vld [vmem:[%s7560_s24 + $0xe0] sm:$0xff]  ;;  %v6502_v62 = vpack.c.bf16 %v314_v51, %v306_v49  ;;  %v376_v49 = vld [vmem:[%s7560_s24 + $0x2e8] sm:$0xff]  ;;  %v370_v51 = vld [vmem:[%s7560_s24 + $0x2b8] sm:$0xff] }
 0x267   : > { %5465 = vmatpush1.bf16.msra.mxu0 %v5464_v4  ;;  %v322_v4 = vld [vmem:[%s7560_s24 + $0x138] sm:$0xff] }
 0x268   : > { %5977 = vmatpush1.bf16.msra.mxu1 %v5976_v6  ;;  %5467 = vmatprep.subr.bf16.mxu0 %v5466_v7  ;;  %v330_v6 = vld [vmem:[%s7560_s24 + $0x178] sm:$0xff]  ;;  %v5992_v7 = vpack.c.bf16 %v311_v60, %v303_v59  ;;  %v6006_v59 = vpack.c.bf16 %v376_v49, %v368_v48  ;;  %v367_v60 = vld [vmem:[%s7560_s24 + $0x2a0] sm:$0xff]  ;;  %v425_v48 = vld [vmem:[%s7560_s24 + $0x470] sm:$0xff] }
 0x269   : > { %5979 = vmatprep.subr.bf16.mxu1 %v5978_v11  ;;  %v327_v11 = vld [vmem:[%s7560_s24 + $0x160] sm:$0xff]  ;;  %v6506_v13 = vpack.c.bf16 %v330_v6, %v322_v4  ;;  %v392_v4 = vld [vmem:[%s7560_s24 + $0x368] sm:$0xff]  ;;  %v386_v6 = vld [vmem:[%s7560_s24 + $0x338] sm:$0xff] }
 0x26a   : > { %v432_v49 = vld [vmem:[%s7560_s24 + $0x4a8] sm:$0xff] }
 0x26b   : > { %5469 = vmatpush1.bf16.msra.mxu0 %v5468_v19  ;;  %v338_v19 = vld [vmem:[%s7560_s24 + $0x1b8] sm:$0xff] }
 0x26c   : > { %5981 = vmatpush1.bf16.msra.mxu1 %v5980_v20  ;;  %5471 = vmatprep.subr.bf16.mxu0 %v5470_v21  ;;  %v346_v20 = vld [vmem:[%s7560_s24 + $0x1f8] sm:$0xff]  ;;  %v5996_v21 = vpack.c.bf16 %v327_v11, %v319_v10  ;;  %v6010_v10 = vpack.c.bf16 %v392_v4, %v384_v3  ;;  %v383_v11 = vld [vmem:[%s7560_s24 + $0x320] sm:$0xff]  ;;  %v441_v3 = vld [vmem:[%s7560_s24 + $0x4f0] sm:$0xff] }
 0x26d   : > { %5983 = vmatprep.subr.bf16.mxu1 %v5982_v27  ;;  %v343_v27 = vld [vmem:[%s7560_s24 + $0x1e0] sm:$0xff]  ;;  %v6510_v29 = vpack.c.bf16 %v346_v20, %v338_v19  ;;  %v408_v19 = vld [vmem:[%s7560_s24 + $0x3e8] sm:$0xff]  ;;  %v402_v20 = vld [vmem:[%s7560_s24 + $0x3b8] sm:$0xff] }
 0x26e   : > { %v448_v4 = vld [vmem:[%s7560_s24 + $0x528] sm:$0xff] }
 0x26f   : > { %5473 = vmatpush1.bf16.msra.mxu0 %v5472_v35  ;;  %v362_v35 = vld [vmem:[%s7560_s24 + $0x278] sm:$0xff] }
 0x270   : > { %5985 = vmatpush1.bf16.msra.mxu1 %v5984_v41  ;;  %5987 = vmatprep.subr.bf16.mxu0 %v5986_v37  ;;  %v6000_v41 = vpack.c.bf16 %v343_v27, %v335_v24  ;;  %v6512_v37 = vpack.c.bf16 %v345_v32, %v337_v28  ;;  %v6514_v45 = vpack.c.bf16 %v362_v35, %v354_v17  ;;  %v399_v27 = vld [vmem:[%s7560_s24 + $0x3a0] sm:$0xff]  ;;  %v424_v17 = vld [vmem:[%s7560_s24 + $0x468] sm:$0xff]  ;;  %v418_v35 = vld [vmem:[%s7560_s24 + $0x438] sm:$0xff] }
 0x271   : > { %6499 = vmatprep.subr.bf16.mxu1 %v6498_v44  ;;  %v353_v44 = vld [vmem:[%s7560_s24 + $0x230] sm:$0xff]  ;;  %v6014_v24 = vpack.c.bf16 %v408_v19, %v400_v18  ;;  %v407_v28 = vld [vmem:[%s7560_s24 + $0x3e0] sm:$0xff]  ;;  %v464_v19 = vld [vmem:[%s7560_s24 + $0x5a8] sm:$0xff] }
 0x272   : > { %2981 = vmatmul.mubr.f32.vlgmr.msra.gmra.mrb[0].mxu0 %v8598_v36  ;;  %v457_v18 = vld [vmem:[%s7560_s24 + $0x570] sm:$0xff] }
 0x273   : > { %3549 = vmatmul.mubr.f32.vlgmr.msra.gmra.mrb[0].mxu1 %v8598_v36  ;;  %5989 = vmatpush1.bf16.msra.mxu0 %v5988_v52  ;;  %v378_v52 = vld [vmem:[%s7560_s24 + $0x2f8] sm:$0xff] }
 0x274   : > { %6501 = vmatpush1.bf16.msra.mxu1 %v6500_v54  ;;  %5991 = vmatprep.subr.bf16.mxu0 %v5990_v58  ;;  %v6004_v54 = vpack.c.bf16 %v359_v43, %v351_v42  ;;  %v6516_v58 = vpack.c.bf16 %v361_v46, %v353_v44  ;;  %v6518_v1 = vpack.c.bf16 %v378_v52, %v370_v51  ;;  %v415_v43 = vld [vmem:[%s7560_s24 + $0x420] sm:$0xff]  ;;  %v440_v51 = vld [vmem:[%s7560_s24 + $0x4e8] sm:$0xff]  ;;  %v434_v52 = vld [vmem:[%s7560_s24 + $0x4b8] sm:$0xff] }
 0x275   : > { %6503 = vmatprep.subr.bf16.mxu1 %v6502_v62  ;;  %3619 = vmatprep.mubr.f32.mxu0 %v7704_v33  ;;  %v369_v62 = vld [vmem:[%s7560_s24 + $0x2b0] sm:$0xff]  ;;  %v423_v44 = vld [vmem:[%s7560_s24 + $0x460] sm:$0xff] }
 0x276   : > { %4187 = vmatprep.mubr.f32.mxu1 %v7704_v33  ;;  %v360_v33 = vld [vmem:[%s7560_s24 + $0x268] sm:$0xff] }
 0x277   : > { %5993 = vmatpush1.bf16.msra.mxu0 %v5992_v7  ;;  %v6002_v39 = vpack.c.bf16 %v360_v33, %v352_v34  ;;  %v394_v7 = vld [vmem:[%s7560_s24 + $0x378] sm:$0xff]  ;;  %v409_v34 = vld [vmem:[%s7560_s24 + $0x3f0] sm:$0xff]  ;;  %v416_v33 = vld [vmem:[%s7560_s24 + $0x428] sm:$0xff] }
 0x278   : > { %6505 = vmatpush1.bf16.msra.mxu1 %v6504_v8  ;;  %5995 = vmatprep.subr.bf16.mxu0 %v5994_v9  ;;  %v6008_v8 = vpack.c.bf16 %v375_v61, %v367_v60  ;;  %v6520_v9 = vpack.c.bf16 %v377_v2, %v369_v62  ;;  %v6522_v14 = vpack.c.bf16 %v394_v7, %v386_v6  ;;  %v431_v61 = vld [vmem:[%s7560_s24 + $0x4a0] sm:$0xff]  ;;  %v456_v6 = vld [vmem:[%s7560_s24 + $0x568] sm:$0xff]  ;;  %v450_v7 = vld [vmem:[%s7560_s24 + $0x538] sm:$0xff] }
 0x279   : > { %6507 = vmatprep.subr.bf16.mxu1 %v6506_v13  ;;  %v385_v13 = vld [vmem:[%s7560_s24 + $0x330] sm:$0xff]  ;;  %v6018_v42 = vpack.c.bf16 %v424_v17, %v416_v33  ;;  %v6022_v60 = vpack.c.bf16 %v440_v51, %v432_v49  ;;  %v439_v62 = vld [vmem:[%s7560_s24 + $0x4e0] sm:$0xff]  ;;  %v480_v17 = vld [vmem:[%s7560_s24 + $0x628] sm:$0xff] }
 0x27a   : > { %v473_v33 = vld [vmem:[%s7560_s24 + $0x5f0] sm:$0xff]  ;;  %v496_v51 = vld [vmem:[%s7560_s24 + $0x6a8] sm:$0xff] }
 0x27b   : > { %5997 = vmatpush1.bf16.msra.mxu0 %v5996_v21  ;;  %v410_v21 = vld [vmem:[%s7560_s24 + $0x3f8] sm:$0xff]  ;;  %v489_v49 = vld [vmem:[%s7560_s24 + $0x670] sm:$0xff] }
 0x27c   : > { %6509 = vmatpush1.bf16.msra.mxu1 %v6508_v22  ;;  %5999 = vmatprep.subr.bf16.mxu0 %v5998_v23  ;;  %v6012_v22 = vpack.c.bf16 %v391_v50, %v383_v11  ;;  %v6524_v23 = vpack.c.bf16 %v393_v16, %v385_v13  ;;  %v6526_v32 = vpack.c.bf16 %v410_v21, %v402_v20  ;;  %v447_v50 = vld [vmem:[%s7560_s24 + $0x520] sm:$0xff]  ;;  %v472_v20 = vld [vmem:[%s7560_s24 + $0x5e8] sm:$0xff]  ;;  %v466_v21 = vld [vmem:[%s7560_s24 + $0x5b8] sm:$0xff] }
 0x27d   : > { %6511 = vmatprep.subr.bf16.mxu1 %v6510_v29  ;;  %v401_v29 = vld [vmem:[%s7560_s24 + $0x3b0] sm:$0xff]  ;;  %v6026_v11 = vpack.c.bf16 %v456_v6, %v448_v4  ;;  %v455_v13 = vld [vmem:[%s7560_s24 + $0x560] sm:$0xff]  ;;  %v512_v6 = vld [vmem:[%s7560_s24 + $0x728] sm:$0xff] }
 0x27e   : > { %v505_v4 = vld [vmem:[%s7560_s24 + $0x6f0] sm:$0xff] }
 0x27f   : > { %6001 = vmatpush1.bf16.msra.mxu0 %v6000_v41  ;;  %v426_v41 = vld [vmem:[%s7560_s24 + $0x478] sm:$0xff] }
 0x280   : > { %6513 = vmatpush1.bf16.msra.mxu1 %v6512_v37  ;;  %6003 = vmatprep.subr.bf16.mxu0 %v6002_v39  ;;  %v6016_v37 = vpack.c.bf16 %v407_v28, %v399_v27  ;;  %v6528_v39 = vpack.c.bf16 %v409_v34, %v401_v29  ;;  %v6530_v46 = vpack.c.bf16 %v426_v41, %v418_v35  ;;  %v463_v28 = vld [vmem:[%s7560_s24 + $0x5a0] sm:$0xff]  ;;  %v488_v35 = vld [vmem:[%s7560_s24 + $0x668] sm:$0xff]  ;;  %v482_v41 = vld [vmem:[%s7560_s24 + $0x638] sm:$0xff] }
 0x281   : > { %6515 = vmatprep.subr.bf16.mxu1 %v6514_v45  ;;  %v417_v45 = vld [vmem:[%s7560_s24 + $0x430] sm:$0xff]  ;;  %v6030_v27 = vpack.c.bf16 %v472_v20, %v464_v19  ;;  %v471_v29 = vld [vmem:[%s7560_s24 + $0x5e0] sm:$0xff]  ;;  %v528_v20 = vld [vmem:[%s7560_s24 + $0x7a8] sm:$0xff] }
 0x282   : > { %v521_v19 = vld [vmem:[%s7560_s24 + $0x770] sm:$0xff] }
 0x283   : > { %6005 = vmatpush1.bf16.msra.mxu0 %v6004_v54  ;;  %v442_v54 = vld [vmem:[%s7560_s24 + $0x4f8] sm:$0xff] }
 0x284   : > { %6517 = vmatpush1.bf16.msra.mxu1 %v6516_v58  ;;  %6007 = vmatprep.subr.bf16.mxu0 %v6006_v59  ;;  %v6020_v58 = vpack.c.bf16 %v423_v44, %v415_v43  ;;  %v6532_v59 = vpack.c.bf16 %v425_v48, %v417_v45  ;;  %v6534_v2 = vpack.c.bf16 %v442_v54, %v434_v52  ;;  %v479_v44 = vld [vmem:[%s7560_s24 + $0x620] sm:$0xff]  ;;  %v504_v52 = vld [vmem:[%s7560_s24 + $0x6e8] sm:$0xff]  ;;  %v498_v54 = vld [vmem:[%s7560_s24 + $0x6b8] sm:$0xff] }
 0x285   : > { %6519 = vmatprep.subr.bf16.mxu1 %v6518_v1  ;;  %v433_v1 = vld [vmem:[%s7560_s24 + $0x4b0] sm:$0xff]  ;;  %v6034_v43 = vpack.c.bf16 %v488_v35, %v480_v17  ;;  %v487_v45 = vld [vmem:[%s7560_s24 + $0x660] sm:$0xff]  ;;  %v544_v35 = vld [vmem:[%s7560_s24 + $0x828] sm:$0xff] }
 0x286   : > { %v537_v17 = vld [vmem:[%s7560_s24 + $0x7f0] sm:$0xff] }
 0x287   : > { %6009 = vmatpush1.bf16.msra.mxu0 %v6008_v8  ;;  %v458_v8 = vld [vmem:[%s7560_s24 + $0x578] sm:$0xff] }
 0x288   : > { %6521 = vmatpush1.bf16.msra.mxu1 %v6520_v9  ;;  %6011 = vmatprep.subr.bf16.mxu0 %v6010_v10  ;;  %v6024_v9 = vpack.c.bf16 %v439_v62, %v431_v61  ;;  %v6536_v10 = vpack.c.bf16 %v441_v3, %v433_v1  ;;  %v6538_v16 = vpack.c.bf16 %v458_v8, %v450_v7  ;;  %v495_v62 = vld [vmem:[%s7560_s24 + $0x6a0] sm:$0xff]  ;;  %v520_v7 = vld [vmem:[%s7560_s24 + $0x768] sm:$0xff]  ;;  %v514_v8 = vld [vmem:[%s7560_s24 + $0x738] sm:$0xff] }
 0x289   : > { %6523 = vmatprep.subr.bf16.mxu1 %v6522_v14  ;;  %v449_v14 = vld [vmem:[%s7560_s24 + $0x530] sm:$0xff]  ;;  %v6038_v61 = vpack.c.bf16 %v504_v52, %v496_v51  ;;  %v503_v1 = vld [vmem:[%s7560_s24 + $0x6e0] sm:$0xff]  ;;  %v560_v52 = vld [vmem:[%s7560_s24 + $0x8a8] sm:$0xff] }
 0x28a   : > { %v553_v51 = vld [vmem:[%s7560_s24 + $0x870] sm:$0xff] }
 0x28b   : > { %6013 = vmatpush1.bf16.msra.mxu0 %v6012_v22  ;;  %v474_v22 = vld [vmem:[%s7560_s24 + $0x5f8] sm:$0xff] }
 0x28c   : > { %6525 = vmatpush1.bf16.msra.mxu1 %v6524_v23  ;;  %6015 = vmatprep.subr.bf16.mxu0 %v6014_v24  ;;  %v6028_v23 = vpack.c.bf16 %v455_v13, %v447_v50  ;;  %v6540_v24 = vpack.c.bf16 %v457_v18, %v449_v14  ;;  %v6542_v34 = vpack.c.bf16 %v474_v22, %v466_v21  ;;  %v511_v13 = vld [vmem:[%s7560_s24 + $0x720] sm:$0xff]  ;;  %v536_v21 = vld [vmem:[%s7560_s24 + $0x7e8] sm:$0xff]  ;;  %v530_v22 = vld [vmem:[%s7560_s24 + $0x7b8] sm:$0xff] }
 0x28d   : > { %6527 = vmatprep.subr.bf16.mxu1 %v6526_v32  ;;  %v465_v32 = vld [vmem:[%s7560_s24 + $0x5b0] sm:$0xff]  ;;  %v6042_v50 = vpack.c.bf16 %v520_v7, %v512_v6  ;;  %v519_v14 = vld [vmem:[%s7560_s24 + $0x760] sm:$0xff]  ;;  %v576_v7 = vld [vmem:[%s7560_s24 + $0x928] sm:$0xff] }
 0x28e   : > { %v569_v6 = vld [vmem:[%s7560_s24 + $0x8f0] sm:$0xff] }
 0x28f   : > { %6017 = vmatpush1.bf16.msra.mxu0 %v6016_v37  ;;  %v490_v37 = vld [vmem:[%s7560_s24 + $0x678] sm:$0xff] }
 0x290   : > { %6529 = vmatpush1.bf16.msra.mxu1 %v6528_v39  ;;  %6019 = vmatprep.subr.bf16.mxu0 %v6018_v42  ;;  %v6032_v39 = vpack.c.bf16 %v471_v29, %v463_v28  ;;  %v6544_v42 = vpack.c.bf16 %v473_v33, %v465_v32  ;;  %v6546_v48 = vpack.c.bf16 %v490_v37, %v482_v41  ;;  %v527_v29 = vld [vmem:[%s7560_s24 + $0x7a0] sm:$0xff]  ;;  %v552_v41 = vld [vmem:[%s7560_s24 + $0x868] sm:$0xff]  ;;  %v546_v37 = vld [vmem:[%s7560_s24 + $0x838] sm:$0xff] }
 0x291   : > { %6531 = vmatprep.subr.bf16.mxu1 %v6530_v46  ;;  %v481_v46 = vld [vmem:[%s7560_s24 + $0x630] sm:$0xff]  ;;  %v6046_v28 = vpack.c.bf16 %v536_v21, %v528_v20  ;;  %v535_v32 = vld [vmem:[%s7560_s24 + $0x7e0] sm:$0xff]  ;;  %v592_v21 = vld [vmem:[%s7560_s24 + $0x9a8] sm:$0xff] }
 0x292   : > { %v585_v20 = vld [vmem:[%s7560_s24 + $0x970] sm:$0xff] }
 0x293   : > { %6021 = vmatpush1.bf16.msra.mxu0 %v6020_v58  ;;  %v506_v58 = vld [vmem:[%s7560_s24 + $0x6f8] sm:$0xff] }
 0x294   : > { %6533 = vmatpush1.bf16.msra.mxu1 %v6532_v59  ;;  %6023 = vmatprep.subr.bf16.mxu0 %v6022_v60  ;;  %v6036_v59 = vpack.c.bf16 %v487_v45, %v479_v44  ;;  %v6548_v60 = vpack.c.bf16 %v489_v49, %v481_v46  ;;  %v6550_v3 = vpack.c.bf16 %v506_v58, %v498_v54  ;;  %v543_v45 = vld [vmem:[%s7560_s24 + $0x820] sm:$0xff]  ;;  %v568_v54 = vld [vmem:[%s7560_s24 + $0x8e8] sm:$0xff]  ;;  %v562_v58 = vld [vmem:[%s7560_s24 + $0x8b8] sm:$0xff] }
 0x295   : > { %6535 = vmatprep.subr.bf16.mxu1 %v6534_v2  ;;  %v497_v2 = vld [vmem:[%s7560_s24 + $0x6b0] sm:$0xff]  ;;  %v6050_v44 = vpack.c.bf16 %v552_v41, %v544_v35  ;;  %v551_v46 = vld [vmem:[%s7560_s24 + $0x860] sm:$0xff]  ;;  %v608_v35 = vld [vmem:[%s7560_s24 + $0xa28] sm:$0xff] }
 0x296   : > { %v610_v41 = vld [vmem:[%s7560_s24 + $0xa38] sm:$0xff] }
 0x297   : > { %6025 = vmatpush1.bf16.msra.mxu0 %v6024_v9  ;;  %v522_v9 = vld [vmem:[%s7560_s24 + $0x778] sm:$0xff] }
 0x298   : > { %6537 = vmatpush1.bf16.msra.mxu1 %v6536_v10  ;;  %6027 = vmatprep.subr.bf16.mxu0 %v6026_v11  ;;  %v6040_v10 = vpack.c.bf16 %v503_v1, %v495_v62  ;;  %v6552_v11 = vpack.c.bf16 %v505_v4, %v497_v2  ;;  %v6554_v18 = vpack.c.bf16 %v522_v9, %v514_v8  ;;  %v559_v1 = vld [vmem:[%s7560_s24 + $0x8a0] sm:$0xff]  ;;  %v584_v8 = vld [vmem:[%s7560_s24 + $0x968] sm:$0xff]  ;;  %v578_v9 = vld [vmem:[%s7560_s24 + $0x938] sm:$0xff] }
 0x299   : > { %6539 = vmatprep.subr.bf16.mxu1 %v6538_v16  ;;  %v513_v16 = vld [vmem:[%s7560_s24 + $0x730] sm:$0xff]  ;;  %v6054_v62 = vpack.c.bf16 %v568_v54, %v560_v52  ;;  %v567_v2 = vld [vmem:[%s7560_s24 + $0x8e0] sm:$0xff]  ;;  %v632_v52 = vld [vmem:[%s7560_s24 + $0xae8] sm:$0xff] }
 0x29a   : > { %v626_v54 = vld [vmem:[%s7560_s24 + $0xab8] sm:$0xff] }
 0x29b   : > { %6029 = vmatpush1.bf16.msra.mxu0 %v6028_v23  ;;  %v538_v23 = vld [vmem:[%s7560_s24 + $0x7f8] sm:$0xff] }
 0x29c   : > { %6541 = vmatpush1.bf16.msra.mxu1 %v6540_v24  ;;  %6031 = vmatprep.subr.bf16.mxu0 %v6030_v27  ;;  %v6044_v24 = vpack.c.bf16 %v519_v14, %v511_v13  ;;  %v6556_v27 = vpack.c.bf16 %v521_v19, %v513_v16  ;;  %v6558_v33 = vpack.c.bf16 %v538_v23, %v530_v22  ;;  %v575_v14 = vld [vmem:[%s7560_s24 + $0x920] sm:$0xff]  ;;  %v600_v22 = vld [vmem:[%s7560_s24 + $0x9e8] sm:$0xff]  ;;  %v602_v23 = vld [vmem:[%s7560_s24 + $0x9f8] sm:$0xff] }
 0x29d   : > { %6543 = vmatprep.subr.bf16.mxu1 %v6542_v34  ;;  %v529_v34 = vld [vmem:[%s7560_s24 + $0x7b0] sm:$0xff]  ;;  %v6058_v13 = vpack.c.bf16 %v584_v8, %v576_v7  ;;  %v583_v16 = vld [vmem:[%s7560_s24 + $0x960] sm:$0xff]  ;;  %v648_v7 = vld [vmem:[%s7560_s24 + $0xb68] sm:$0xff] }
 0x29e   : > { %v642_v8 = vld [vmem:[%s7560_s24 + $0xb38] sm:$0xff] }
 0x29f   : > { %6033 = vmatpush1.bf16.msra.mxu0 %v6032_v39  ;;  %v554_v39 = vld [vmem:[%s7560_s24 + $0x878] sm:$0xff] }
 0x2a0   : > { %6545 = vmatpush1.bf16.msra.mxu1 %v6544_v42  ;;  %6035 = vmatprep.subr.bf16.mxu0 %v6034_v43  ;;  %v6048_v42 = vpack.c.bf16 %v535_v32, %v527_v29  ;;  %v6560_v43 = vpack.c.bf16 %v537_v17, %v529_v34  ;;  %v6562_v49 = vpack.c.bf16 %v554_v39, %v546_v37  ;;  %v591_v29 = vld [vmem:[%s7560_s24 + $0x9a0] sm:$0xff]  ;;  %v593_v34 = vld [vmem:[%s7560_s24 + $0x9b0] sm:$0xff]  ;;  %v618_v37 = vld [vmem:[%s7560_s24 + $0xa78] sm:$0xff] }
 0x2a1   : > { %6547 = vmatprep.subr.bf16.mxu1 %v6546_v48  ;;  %v545_v48 = vld [vmem:[%s7560_s24 + $0x830] sm:$0xff]  ;;  %v599_v32 = vld [vmem:[%s7560_s24 + $0x9e0] sm:$0xff] }
 0x2a2   : > { %v601_v17 = vld [vmem:[%s7560_s24 + $0x9f0] sm:$0xff]  ;;  %v6064_v39 = vpack.c.bf16 %v599_v32, %v591_v29  ;;  %v663_v29 = vld [vmem:[%s7560_s24 + $0xbe0] sm:$0xff] }
 0x2a3   : > { %6037 = vmatpush1.bf16.msra.mxu0 %v6036_v59  ;;  %v570_v59 = vld [vmem:[%s7560_s24 + $0x8f8] sm:$0xff]  ;;  %v657_v32 = vld [vmem:[%s7560_s24 + $0xbb0] sm:$0xff] }
 0x2a4   : > { %6549 = vmatpush1.bf16.msra.mxu1 %v6548_v60  ;;  %6039 = vmatprep.subr.bf16.mxu0 %v6038_v61  ;;  %v6052_v60 = vpack.c.bf16 %v551_v46, %v543_v45  ;;  %v6564_v61 = vpack.c.bf16 %v553_v51, %v545_v48  ;;  %v6566_v4 = vpack.c.bf16 %v570_v59, %v562_v58  ;;  %v615_v45 = vld [vmem:[%s7560_s24 + $0xa60] sm:$0xff]  ;;  %v609_v46 = vld [vmem:[%s7560_s24 + $0xa30] sm:$0xff]  ;;  %v624_v51 = vld [vmem:[%s7560_s24 + $0xaa8] sm:$0xff] }
 0x2a5   : > { %6551 = vmatprep.subr.bf16.mxu1 %v6550_v3  ;;  %v561_v3 = vld [vmem:[%s7560_s24 + $0x8b0] sm:$0xff]  ;;  %v6578_v48 = vpack.c.bf16 %v618_v37, %v610_v41  ;;  %v634_v58 = vld [vmem:[%s7560_s24 + $0xaf8] sm:$0xff] }
 0x2a6   : > { %v682_v41 = vld [vmem:[%s7560_s24 + $0xc78] sm:$0xff] }
 0x2a7   : > { %6041 = vmatpush1.bf16.msra.mxu0 %v6040_v10  ;;  %v586_v10 = vld [vmem:[%s7560_s24 + $0x978] sm:$0xff] }
 0x2a8   : > { %6553 = vmatpush1.bf16.msra.mxu1 %v6552_v11  ;;  %6043 = vmatprep.subr.bf16.mxu0 %v6042_v50  ;;  %v6056_v11 = vpack.c.bf16 %v567_v2, %v559_v1  ;;  %v6568_v50 = vpack.c.bf16 %v569_v6, %v561_v3  ;;  %v6570_v19 = vpack.c.bf16 %v586_v10, %v578_v9  ;;  %v631_v1 = vld [vmem:[%s7560_s24 + $0xae0] sm:$0xff]  ;;  %v625_v2 = vld [vmem:[%s7560_s24 + $0xab0] sm:$0xff]  ;;  %v640_v6 = vld [vmem:[%s7560_s24 + $0xb28] sm:$0xff] }
 0x2a9   : > { %6555 = vmatprep.subr.bf16.mxu1 %v6554_v18  ;;  %v577_v18 = vld [vmem:[%s7560_s24 + $0x930] sm:$0xff]  ;;  %v6582_v3 = vpack.c.bf16 %v634_v58, %v626_v54  ;;  %v650_v9 = vld [vmem:[%s7560_s24 + $0xb78] sm:$0xff] }
 0x2aa   : > { %v698_v54 = vld [vmem:[%s7560_s24 + $0xcf8] sm:$0xff] }
 0x2ab   : > { %6045 = vmatpush1.bf16.msra.mxu0 %v6044_v24  ;;  %v6060_v24 = vpack.c.bf16 %v583_v16, %v575_v14  ;;  %v647_v14 = vld [vmem:[%s7560_s24 + $0xb60] sm:$0xff]  ;;  %v641_v16 = vld [vmem:[%s7560_s24 + $0xb30] sm:$0xff] }
 0x2ac   : > { %6557 = vmatpush1.bf16.msra.mxu1 %v6556_v27  ;;  %6047 = vmatprep.subr.bf16.mxu0 %v6046_v28  ;;  %v6572_v27 = vpack.c.bf16 %v585_v20, %v577_v18  ;;  %v6062_v28 = vpack.c.bf16 %v600_v22, %v592_v21  ;;  %v6586_v18 = vpack.c.bf16 %v650_v9, %v642_v8  ;;  %v656_v20 = vld [vmem:[%s7560_s24 + $0xba8] sm:$0xff]  ;;  %v658_v22 = vld [vmem:[%s7560_s24 + $0xbb8] sm:$0xff] }
 0x2ad   : > { %6559 = vmatprep.subr.bf16.mxu1 %v6558_v33  ;;  %v664_v21 = vld [vmem:[%s7560_s24 + $0xbe8] sm:$0xff]  ;;  %v714_v8 = vld [vmem:[%s7560_s24 + $0xd78] sm:$0xff] }
 0x2af   : > { %6049 = vmatpush1.bf16.msra.mxu0 %v6048_v42  ;;  %v6576_v42 = vpack.c.bf16 %v601_v17, %v593_v34  ;;  %v672_v17 = vld [vmem:[%s7560_s24 + $0xc28] sm:$0xff] }
 0x2b0   : > { %6561 = vmatpush1.bf16.msra.mxu1 %v6560_v43  ;;  %6051 = vmatprep.subr.bf16.mxu0 %v6050_v44  ;;  %v607_v44 = vld [vmem:[%s7560_s24 + $0xa20] sm:$0xff] }
 0x2b1   : > { %6563 = vmatprep.subr.bf16.mxu1 %v6562_v49  ;;  %v617_v49 = vld [vmem:[%s7560_s24 + $0xa70] sm:$0xff]  ;;  %v6068_v59 = vpack.c.bf16 %v615_v45, %v607_v44  ;;  %v679_v44 = vld [vmem:[%s7560_s24 + $0xc60] sm:$0xff] }
 0x2b2   : > { %3620 = vmatmul.mubr.f32.vlgmr.msra.gmra.mrb[2].mxu0 %v7697_v26  ;;  %v673_v45 = vld [vmem:[%s7560_s24 + $0xc30] sm:$0xff] }
 0x2b3   : > { %6053 = vmatpush1.bf16.msra.mxu0 %v6052_v60  ;;  %4188 = vmatmul.mubr.f32.vlgmr.msra.gmra.mrb[2].mxu1 %v7697_v26  ;;  %v594_v26 = vld [vmem:[%s7560_s24 + $0x9b8] sm:$0xff]  ;;  %v6580_v60 = vpack.c.bf16 %v617_v49, %v609_v46  ;;  %v688_v49 = vld [vmem:[%s7560_s24 + $0xca8] sm:$0xff] }
 0x2b4   : > { %6565 = vmatpush1.bf16.msra.mxu1 %v6564_v61  ;;  %6055 = vmatprep.subr.bf16.mxu0 %v6054_v62  ;;  %v6574_v33 = vpack.c.bf16 %v602_v23, %v594_v26  ;;  %v6070_v61 = vpack.c.bf16 %v632_v52, %v624_v51  ;;  %v623_v62 = vld [vmem:[%s7560_s24 + $0xaa0] sm:$0xff]  ;;  %v666_v26 = vld [vmem:[%s7560_s24 + $0xbf8] sm:$0xff]  ;;  %v696_v51 = vld [vmem:[%s7560_s24 + $0xce8] sm:$0xff] }
 0x2b5   : > { %6567 = vmatprep.subr.bf16.mxu1 %v6566_v4  ;;  %3690 = vmatprep.mubr.f32.mxu0 %v7758_v40  ;;  %v633_v4 = vld [vmem:[%s7560_s24 + $0xaf0] sm:$0xff]  ;;  %v6072_v10 = vpack.c.bf16 %v631_v1, %v623_v62  ;;  %v6590_v34 = vpack.c.bf16 %v666_v26, %v658_v22  ;;  %v690_v52 = vld [vmem:[%s7560_s24 + $0xcb8] sm:$0xff]  ;;  %v695_v62 = vld [vmem:[%s7560_s24 + $0xce0] sm:$0xff] }
 0x2b6   : > { %4258 = vmatprep.mubr.f32.mxu1 %v7758_v40  ;;  %v616_v40 = vld [vmem:[%s7560_s24 + $0xa68] sm:$0xff]  ;;  %v689_v1 = vld [vmem:[%s7560_s24 + $0xcb0] sm:$0xff]  ;;  %v730_v22 = vld [vmem:[%s7560_s24 + $0xdf8] sm:$0xff] }
 0x2b7   : > { %6057 = vmatpush1.bf16.msra.mxu0 %v6056_v11  ;;  %v6066_v43 = vpack.c.bf16 %v616_v40, %v608_v35  ;;  %v6584_v11 = vpack.c.bf16 %v633_v4, %v625_v2  ;;  %v680_v35 = vld [vmem:[%s7560_s24 + $0xc68] sm:$0xff]  ;;  %v674_v40 = vld [vmem:[%s7560_s24 + $0xc38] sm:$0xff]  ;;  %v6598_v2 = vpack.c.bf16 %v698_v54, %v690_v52 }
 0x2b8   : > { %6569 = vmatpush1.bf16.msra.mxu1 %v6568_v50  ;;  %6059 = vmatprep.subr.bf16.mxu0 %v6058_v13  ;;  %v6074_v50 = vpack.c.bf16 %v648_v7, %v640_v6  ;;  %v639_v13 = vld [vmem:[%s7560_s24 + $0xb20] sm:$0xff]  ;;  %v6594_v46 = vpack.c.bf16 %v682_v41, %v674_v40  ;;  %v704_v4 = vld [vmem:[%s7560_s24 + $0xd28] sm:$0xff]  ;;  %v706_v7 = vld [vmem:[%s7560_s24 + $0xd38] sm:$0xff] }
 0x2b9   : > { %6571 = vmatprep.subr.bf16.mxu1 %v6570_v19  ;;  %v649_v19 = vld [vmem:[%s7560_s24 + $0xb70] sm:$0xff]  ;;  %v6076_v23 = vpack.c.bf16 %v647_v14, %v639_v13  ;;  %v712_v6 = vld [vmem:[%s7560_s24 + $0xd68] sm:$0xff]  ;;  %v711_v13 = vld [vmem:[%s7560_s24 + $0xd60] sm:$0xff] }
 0x2ba   : > { %v705_v14 = vld [vmem:[%s7560_s24 + $0xd30] sm:$0xff]  ;;  %v746_v40 = vld [vmem:[%s7560_s24 + $0xe78] sm:$0xff] }
 0x2bb   : > { %6061 = vmatpush1.bf16.msra.mxu0 %v6060_v24  ;;  %v6588_v24 = vpack.c.bf16 %v649_v19, %v641_v16  ;;  %v6602_v16 = vpack.c.bf16 %v714_v8, %v706_v7  ;;  %v720_v19 = vld [vmem:[%s7560_s24 + $0xda8] sm:$0xff]  ;;  %v762_v52 = vld [vmem:[%s7560_s24 + $0xef8] sm:$0xff] }
 0x2bc   : > { %6573 = vmatpush1.bf16.msra.mxu1 %v6572_v27  ;;  %6063 = vmatprep.subr.bf16.mxu0 %v6062_v28  ;;  %v6078_v27 = vpack.c.bf16 %v664_v21, %v656_v20  ;;  %v655_v28 = vld [vmem:[%s7560_s24 + $0xba0] sm:$0xff]  ;;  %v728_v20 = vld [vmem:[%s7560_s24 + $0xde8] sm:$0xff]  ;;  %v722_v21 = vld [vmem:[%s7560_s24 + $0xdb8] sm:$0xff] }
 0x2bd   : > { %6575 = vmatprep.subr.bf16.mxu1 %v6574_v33  ;;  %v665_v33 = vld [vmem:[%s7560_s24 + $0xbf0] sm:$0xff]  ;;  %v6080_v37 = vpack.c.bf16 %v663_v29, %v655_v28  ;;  %v727_v28 = vld [vmem:[%s7560_s24 + $0xde0] sm:$0xff]  ;;  %v778_v7 = vld [vmem:[%s7560_s24 + $0xf78] sm:$0xff] }
 0x2be   : > { %v721_v29 = vld [vmem:[%s7560_s24 + $0xdb0] sm:$0xff] }
 0x2bf   : > { %6065 = vmatpush1.bf16.msra.mxu0 %v6064_v39  ;;  %v6592_v39 = vpack.c.bf16 %v665_v33, %v657_v32  ;;  %v6606_v32 = vpack.c.bf16 %v730_v22, %v722_v21  ;;  %v736_v33 = vld [vmem:[%s7560_s24 + $0xe28] sm:$0xff]  ;;  %v794_v21 = vld [vmem:[%s7560_s24 + $0xff8] sm:$0xff] }
 0x2c0   : > { %6577 = vmatpush1.bf16.msra.mxu1 %v6576_v42  ;;  %6067 = vmatprep.subr.bf16.mxu0 %v6066_v43  ;;  %v6082_v42 = vpack.c.bf16 %v680_v35, %v672_v17  ;;  %v671_v43 = vld [vmem:[%s7560_s24 + $0xc20] sm:$0xff]  ;;  %v744_v17 = vld [vmem:[%s7560_s24 + $0xe68] sm:$0xff]  ;;  %v738_v35 = vld [vmem:[%s7560_s24 + $0xe38] sm:$0xff] }
 0x2c1   : > { %6579 = vmatprep.subr.bf16.mxu1 %v6578_v48  ;;  %v681_v48 = vld [vmem:[%s7560_s24 + $0xc70] sm:$0xff]  ;;  %v6084_v58 = vpack.c.bf16 %v679_v44, %v671_v43  ;;  %v743_v43 = vld [vmem:[%s7560_s24 + $0xe60] sm:$0xff] }
 0x2c2   : > { %v737_v44 = vld [vmem:[%s7560_s24 + $0xe30] sm:$0xff] }
 0x2c3   : > { %6069 = vmatpush1.bf16.msra.mxu0 %v6068_v59  ;;  %v6596_v59 = vpack.c.bf16 %v681_v48, %v673_v45  ;;  %v6610_v45 = vpack.c.bf16 %v746_v40, %v738_v35  ;;  %v752_v48 = vld [vmem:[%s7560_s24 + $0xea8] sm:$0xff]  ;;  %v810_v35 = vld [vmem:[%s7560_s24 + $0x1078] sm:$0xff] }
 0x2c4   : > { %6581 = vmatpush1.bf16.msra.mxu1 %v6580_v60  ;;  %6071 = vmatprep.subr.bf16.mxu0 %v6070_v61  ;;  %v6086_v60 = vpack.c.bf16 %v696_v51, %v688_v49  ;;  %v687_v61 = vld [vmem:[%s7560_s24 + $0xca0] sm:$0xff]  ;;  %v760_v49 = vld [vmem:[%s7560_s24 + $0xee8] sm:$0xff]  ;;  %v754_v51 = vld [vmem:[%s7560_s24 + $0xeb8] sm:$0xff] }
 0x2c5   : > { %6583 = vmatprep.subr.bf16.mxu1 %v6582_v3  ;;  %v697_v3 = vld [vmem:[%s7560_s24 + $0xcf0] sm:$0xff]  ;;  %v6088_v9 = vpack.c.bf16 %v695_v62, %v687_v61  ;;  %v759_v61 = vld [vmem:[%s7560_s24 + $0xee0] sm:$0xff] }
 0x2c6   : > { %v753_v62 = vld [vmem:[%s7560_s24 + $0xeb0] sm:$0xff] }
 0x2c7   : > { %6073 = vmatpush1.bf16.msra.mxu0 %v6072_v10  ;;  %v6600_v10 = vpack.c.bf16 %v697_v3, %v689_v1  ;;  %v6614_v1 = vpack.c.bf16 %v762_v52, %v754_v51  ;;  %v768_v3 = vld [vmem:[%s7560_s24 + $0xf28] sm:$0xff]  ;;  %v826_v51 = vld [vmem:[%s7560_s24 + $0x10f8] sm:$0xff] }
 0x2c8   : > { %6585 = vmatpush1.bf16.msra.mxu1 %v6584_v11  ;;  %6075 = vmatprep.subr.bf16.mxu0 %v6074_v50  ;;  %v6090_v11 = vpack.c.bf16 %v712_v6, %v704_v4  ;;  %v703_v50 = vld [vmem:[%s7560_s24 + $0xd20] sm:$0xff]  ;;  %v776_v4 = vld [vmem:[%s7560_s24 + $0xf68] sm:$0xff]  ;;  %v770_v6 = vld [vmem:[%s7560_s24 + $0xf38] sm:$0xff] }
 0x2c9   : > { %6587 = vmatprep.subr.bf16.mxu1 %v6586_v18  ;;  %v713_v18 = vld [vmem:[%s7560_s24 + $0xd70] sm:$0xff]  ;;  %v6092_v26 = vpack.c.bf16 %v711_v13, %v703_v50  ;;  %v775_v50 = vld [vmem:[%s7560_s24 + $0xf60] sm:$0xff] }
 0x2ca   : > { %v769_v13 = vld [vmem:[%s7560_s24 + $0xf30] sm:$0xff] }
 0x2cb   : > { %6077 = vmatpush1.bf16.msra.mxu0 %v6076_v23  ;;  %v6604_v23 = vpack.c.bf16 %v713_v18, %v705_v14  ;;  %v6618_v14 = vpack.c.bf16 %v778_v7, %v770_v6  ;;  %v784_v18 = vld [vmem:[%s7560_s24 + $0xfa8] sm:$0xff]  ;;  %v842_v6 = vld [vmem:[%s7560_s24 + $0x1178] sm:$0xff] }
 0x2cc   : > { %6589 = vmatpush1.bf16.msra.mxu1 %v6588_v24  ;;  %6079 = vmatprep.subr.bf16.mxu0 %v6078_v27  ;;  %v6094_v24 = vpack.c.bf16 %v728_v20, %v720_v19  ;;  %v719_v27 = vld [vmem:[%s7560_s24 + $0xda0] sm:$0xff]  ;;  %v792_v19 = vld [vmem:[%s7560_s24 + $0xfe8] sm:$0xff]  ;;  %v786_v20 = vld [vmem:[%s7560_s24 + $0xfb8] sm:$0xff] }
 0x2cd   : > { %6591 = vmatprep.subr.bf16.mxu1 %v6590_v34  ;;  %v729_v34 = vld [vmem:[%s7560_s24 + $0xdf0] sm:$0xff]  ;;  %v6096_v41 = vpack.c.bf16 %v727_v28, %v719_v27  ;;  %v791_v27 = vld [vmem:[%s7560_s24 + $0xfe0] sm:$0xff] }
 0x2ce   : > { %v785_v28 = vld [vmem:[%s7560_s24 + $0xfb0] sm:$0xff] }
 0x2cf   : > { %6081 = vmatpush1.bf16.msra.mxu0 %v6080_v37  ;;  %v6608_v37 = vpack.c.bf16 %v729_v34, %v721_v29  ;;  %v6622_v29 = vpack.c.bf16 %v794_v21, %v786_v20  ;;  %v800_v34 = vld [vmem:[%s7560_s24 + $0x1028] sm:$0xff] }
 0x2d0   : > { %6593 = vmatpush1.bf16.msra.mxu1 %v6592_v39  ;;  %6083 = vmatprep.subr.bf16.mxu0 %v6082_v42  ;;  %v6098_v39 = vpack.c.bf16 %v744_v17, %v736_v33  ;;  %v735_v42 = vld [vmem:[%s7560_s24 + $0xe20] sm:$0xff]  ;;  %v808_v33 = vld [vmem:[%s7560_s24 + $0x1068] sm:$0xff]  ;;  %v802_v17 = vld [vmem:[%s7560_s24 + $0x1038] sm:$0xff] }
 0x2d1   : > { %6595 = vmatprep.subr.bf16.mxu1 %v6594_v46  ;;  %v745_v46 = vld [vmem:[%s7560_s24 + $0xe70] sm:$0xff]  ;;  %v6100_v54 = vpack.c.bf16 %v743_v43, %v735_v42  ;;  %v807_v42 = vld [vmem:[%s7560_s24 + $0x1060] sm:$0xff] }
 0x2d2   : > { %v801_v43 = vld [vmem:[%s7560_s24 + $0x1030] sm:$0xff] }
 0x2d3   : > { %6085 = vmatpush1.bf16.msra.mxu0 %v6084_v58  ;;  %v6612_v58 = vpack.c.bf16 %v745_v46, %v737_v44  ;;  %v6626_v44 = vpack.c.bf16 %v810_v35, %v802_v17  ;;  %v816_v46 = vld [vmem:[%s7560_s24 + $0x10a8] sm:$0xff] }
 0x2d4   : > { %6597 = vmatpush1.bf16.msra.mxu1 %v6596_v59  ;;  %6087 = vmatprep.subr.bf16.mxu0 %v6086_v60  ;;  %v6102_v59 = vpack.c.bf16 %v760_v49, %v752_v48  ;;  %v751_v60 = vld [vmem:[%s7560_s24 + $0xea0] sm:$0xff]  ;;  %v824_v48 = vld [vmem:[%s7560_s24 + $0x10e8] sm:$0xff]  ;;  %v818_v49 = vld [vmem:[%s7560_s24 + $0x10b8] sm:$0xff] }
 0x2d5   : > { %6599 = vmatprep.subr.bf16.mxu1 %v6598_v2  ;;  %v761_v2 = vld [vmem:[%s7560_s24 + $0xef0] sm:$0xff]  ;;  %v6104_v8 = vpack.c.bf16 %v759_v61, %v751_v60  ;;  %v823_v60 = vld [vmem:[%s7560_s24 + $0x10e0] sm:$0xff] }
 0x2d6   : > { %v817_v61 = vld [vmem:[%s7560_s24 + $0x10b0] sm:$0xff] }
 0x2d7   : > { %6089 = vmatpush1.bf16.msra.mxu0 %v6088_v9  ;;  %v6616_v9 = vpack.c.bf16 %v761_v2, %v753_v62  ;;  %v6630_v62 = vpack.c.bf16 %v826_v51, %v818_v49  ;;  %v832_v2 = vld [vmem:[%s7560_s24 + $0x1128] sm:$0xff] }
 0x2d8   : > { %6601 = vmatpush1.bf16.msra.mxu1 %v6600_v10  ;;  %6091 = vmatprep.subr.bf16.mxu0 %v6090_v11  ;;  %v6106_v10 = vpack.c.bf16 %v776_v4, %v768_v3  ;;  %v767_v11 = vld [vmem:[%s7560_s24 + $0xf20] sm:$0xff]  ;;  %v840_v3 = vld [vmem:[%s7560_s24 + $0x1168] sm:$0xff]  ;;  %v834_v4 = vld [vmem:[%s7560_s24 + $0x1138] sm:$0xff] }
 0x2d9   : > { %6603 = vmatprep.subr.bf16.mxu1 %v6602_v16  ;;  %v777_v16 = vld [vmem:[%s7560_s24 + $0xf70] sm:$0xff]  ;;  %v6108_v22 = vpack.c.bf16 %v775_v50, %v767_v11  ;;  %v839_v11 = vld [vmem:[%s7560_s24 + $0x1160] sm:$0xff] }
 0x2da   : > { %v833_v50 = vld [vmem:[%s7560_s24 + $0x1130] sm:$0xff] }
 0x2db   : > { %6093 = vmatpush1.bf16.msra.mxu0 %v6092_v26  ;;  %v6620_v26 = vpack.c.bf16 %v777_v16, %v769_v13  ;;  %v6634_v13 = vpack.c.bf16 %v842_v6, %v834_v4  ;;  %v848_v16 = vld [vmem:[%s7560_s24 + $0x11a8] sm:$0xff] }
 0x2dc   : > { %6605 = vmatpush1.bf16.msra.mxu1 %v6604_v23  ;;  %6095 = vmatprep.subr.bf16.mxu0 %v6094_v24  ;;  %v6110_v23 = vpack.c.bf16 %v792_v19, %v784_v18  ;;  %v783_v24 = vld [vmem:[%s7560_s24 + $0xfa0] sm:$0xff]  ;;  %v856_v18 = vld [vmem:[%s7560_s24 + $0x11e8] sm:$0xff]  ;;  %v858_v19 = vld [vmem:[%s7560_s24 + $0x11f8] sm:$0xff] }
 0x2dd   : > { %6607 = vmatprep.subr.bf16.mxu1 %v6606_v32  ;;  %v793_v32 = vld [vmem:[%s7560_s24 + $0xff0] sm:$0xff]  ;;  %v6112_v40 = vpack.c.bf16 %v791_v27, %v783_v24 }
 0x2de   : > { %v849_v24 = vld [vmem:[%s7560_s24 + $0x11b0] sm:$0xff] }
 0x2df   : > { %6097 = vmatpush1.bf16.msra.mxu0 %v6096_v41  ;;  %v6624_v41 = vpack.c.bf16 %v793_v32, %v785_v28  ;;  %v857_v28 = vld [vmem:[%s7560_s24 + $0x11f0] sm:$0xff]  ;;  %v866_v32 = vld [vmem:[%s7560_s24 + $0x1238] sm:$0xff] }
 0x2e0   : > { %6609 = vmatpush1.bf16.msra.mxu1 %v6608_v37  ;;  %6099 = vmatprep.subr.bf16.mxu0 %v6098_v39  ;;  %v6114_v37 = vpack.c.bf16 %v808_v33, %v800_v34  ;;  %v799_v39 = vld [vmem:[%s7560_s24 + $0x1020] sm:$0xff]  ;;  %v874_v34 = vld [vmem:[%s7560_s24 + $0x1278] sm:$0xff]  ;;  %v6640_v17 = vpack.c.bf16 %v857_v28, %v849_v24  ;;  %v928_v24 = vld [vmem:[%s7560_s24 + $0x1428] sm:$0xff] }
 0x2e1   : > { %6611 = vmatprep.subr.bf16.mxu1 %v6610_v45  ;;  %v809_v45 = vld [vmem:[%s7560_s24 + $0x1070] sm:$0xff]  ;;  %v6116_v52 = vpack.c.bf16 %v807_v42, %v799_v39  ;;  %v6642_v39 = vpack.c.bf16 %v874_v34, %v866_v32  ;;  %v930_v28 = vld [vmem:[%s7560_s24 + $0x1438] sm:$0xff] }
 0x2e2   : > { %v873_v42 = vld [vmem:[%s7560_s24 + $0x1270] sm:$0xff] }
 0x2e3   : > { %6101 = vmatpush1.bf16.msra.mxu0 %v6100_v54  ;;  %v6628_v54 = vpack.c.bf16 %v809_v45, %v801_v43  ;;  %v880_v43 = vld [vmem:[%s7560_s24 + $0x12a8] sm:$0xff]  ;;  %v882_v45 = vld [vmem:[%s7560_s24 + $0x12b8] sm:$0xff] }
 0x2e4   : > { %6613 = vmatpush1.bf16.msra.mxu1 %v6612_v58  ;;  %6103 = vmatprep.subr.bf16.mxu0 %v6102_v59  ;;  %v6118_v58 = vpack.c.bf16 %v824_v48, %v816_v46  ;;  %v815_v59 = vld [vmem:[%s7560_s24 + $0x10a0] sm:$0xff]  ;;  %v890_v46 = vld [vmem:[%s7560_s24 + $0x12f8] sm:$0xff] }
 0x2e5   : > { %6615 = vmatprep.subr.bf16.mxu1 %v6614_v1  ;;  %v825_v1 = vld [vmem:[%s7560_s24 + $0x10f0] sm:$0xff]  ;;  %v6120_v7 = vpack.c.bf16 %v823_v60, %v815_v59  ;;  %v6646_v59 = vpack.c.bf16 %v890_v46, %v882_v45 }
 0x2e6   : > { %v889_v60 = vld [vmem:[%s7560_s24 + $0x12f0] sm:$0xff] }
 0x2e7   : > { %6105 = vmatpush1.bf16.msra.mxu0 %v6104_v8  ;;  %v6632_v8 = vpack.c.bf16 %v825_v1, %v817_v61  ;;  %v896_v61 = vld [vmem:[%s7560_s24 + $0x1328] sm:$0xff]  ;;  %v898_v1 = vld [vmem:[%s7560_s24 + $0x1338] sm:$0xff] }
 0x2e8   : > { %6617 = vmatpush1.bf16.msra.mxu1 %v6616_v9  ;;  %6107 = vmatprep.subr.bf16.mxu0 %v6106_v10  ;;  %v6122_v9 = vpack.c.bf16 %v840_v3, %v832_v2  ;;  %v831_v10 = vld [vmem:[%s7560_s24 + $0x1120] sm:$0xff]  ;;  %v906_v2 = vld [vmem:[%s7560_s24 + $0x1378] sm:$0xff] }
 0x2e9   : > { %6619 = vmatprep.subr.bf16.mxu1 %v6618_v14  ;;  %v841_v14 = vld [vmem:[%s7560_s24 + $0x1170] sm:$0xff]  ;;  %v6124_v20 = vpack.c.bf16 %v839_v11, %v831_v10  ;;  %v6650_v10 = vpack.c.bf16 %v906_v2, %v898_v1 }
 0x2ea   : > { %v6636_v21 = vpack.c.bf16 %v841_v14, %v833_v50  ;;  %v905_v11 = vld [vmem:[%s7560_s24 + $0x1370] sm:$0xff]  ;;  %v912_v50 = vld [vmem:[%s7560_s24 + $0x13a8] sm:$0xff]  ;;  %v914_v14 = vld [vmem:[%s7560_s24 + $0x13b8] sm:$0xff] }
 0x2eb   : > { %6109 = vmatpush1.bf16.msra.mxu0 %v6108_v22  ;;  %v6126_v22 = vpack.c.bf16 %v856_v18, %v848_v16  ;;  %v922_v16 = vld [vmem:[%s7560_s24 + $0x13f8] sm:$0xff] }
 0x2ec   : > { %6621 = vmatpush1.bf16.msra.mxu1 %v6620_v26  ;;  %6111 = vmatprep.subr.bf16.mxu0 %v6110_v23  ;;  %v847_v26 = vld [vmem:[%s7560_s24 + $0x11a0] sm:$0xff] }
 0x2ed   : > { %6623 = vmatprep.subr.bf16.mxu1 %v6622_v29  ;;  %v855_v23 = vld [vmem:[%s7560_s24 + $0x11e0] sm:$0xff]  ;;  %v864_v29 = vld [vmem:[%s7560_s24 + $0x1228] sm:$0xff] }
 0x2ee   : > { %v6128_v33 = vpack.c.bf16 %v855_v23, %v847_v26  ;;  %v6654_v26 = vpack.c.bf16 %v922_v16, %v914_v14  ;;  %v921_v23 = vld [vmem:[%s7560_s24 + $0x13f0] sm:$0xff] }
 0x2ef   : > { %6113 = vmatpush1.bf16.msra.mxu0 %v6112_v40  ;;  %v863_v40 = vld [vmem:[%s7560_s24 + $0x1220] sm:$0xff] }
 0x2f0   : > { %6625 = vmatpush1.bf16.msra.mxu1 %v6624_v41  ;;  %6115 = vmatprep.subr.bf16.mxu0 %v6114_v37  ;;  %v871_v41 = vld [vmem:[%s7560_s24 + $0x1260] sm:$0xff]  ;;  %v865_v37 = vld [vmem:[%s7560_s24 + $0x1230] sm:$0xff] }
 0x2f1   : > { %6627 = vmatprep.subr.bf16.mxu1 %v6626_v44  ;;  %v888_v44 = vld [vmem:[%s7560_s24 + $0x12e8] sm:$0xff]  ;;  %v6132_v48 = vpack.c.bf16 %v871_v41, %v863_v40  ;;  %v6644_v49 = vpack.c.bf16 %v873_v42, %v865_v37  ;;  %v937_v41 = vld [vmem:[%s7560_s24 + $0x1470] sm:$0xff]  ;;  %v946_v42 = vld [vmem:[%s7560_s24 + $0x14b8] sm:$0xff] }
 0x2f2   : > { %3691 = vmatmul.mubr.f32.vlgmr.msra.gmra.mrb[2].mxu0 %v7746_v25  ;;  %v6134_v51 = vpack.c.bf16 %v888_v44, %v880_v43  ;;  %v944_v37 = vld [vmem:[%s7560_s24 + $0x14a8] sm:$0xff]  ;;  %v954_v43 = vld [vmem:[%s7560_s24 + $0x14f8] sm:$0xff] }
 0x2f3   : > { %6117 = vmatpush1.bf16.msra.mxu0 %v6116_v52  ;;  %4259 = vmatmul.mubr.f32.vlgmr.msra.gmra.mrb[2].mxu1 %v7746_v25  ;;  %v850_v25 = vld [vmem:[%s7560_s24 + $0x11b8] sm:$0xff]  ;;  %v879_v52 = vld [vmem:[%s7560_s24 + $0x12a0] sm:$0xff] }
 0x2f4   : > { %6629 = vmatpush1.bf16.msra.mxu1 %v6628_v54  ;;  %6119 = vmatprep.subr.bf16.mxu0 %v6118_v58  ;;  %v6638_v27 = vpack.c.bf16 %v858_v19, %v850_v25  ;;  %v887_v54 = vld [vmem:[%s7560_s24 + $0x12e0] sm:$0xff]  ;;  %v881_v58 = vld [vmem:[%s7560_s24 + $0x12b0] sm:$0xff] }
 0x2f5   : > { %6631 = vmatprep.subr.bf16.mxu1 %v6630_v62  ;;  %3761 = vmatprep.mubr.f32.mxu0 %v7904_v0  ;;  %v904_v62 = vld [vmem:[%s7560_s24 + $0x1368] sm:$0xff]  ;;  %v6136_v3 = vpack.c.bf16 %v887_v54, %v879_v52  ;;  %v6648_v4 = vpack.c.bf16 %v889_v60, %v881_v58  ;;  %v6662_v52 = vpack.c.bf16 %v954_v43, %v946_v42  ;;  %v953_v54 = vld [vmem:[%s7560_s24 + $0x14f0] sm:$0xff]  ;;  %v962_v60 = vld [vmem:[%s7560_s24 + $0x1538] sm:$0xff] }
 0x2f6   : > { %4329 = vmatprep.mubr.f32.mxu1 %v7904_v0  ;;  %v872_v0 = vld [vmem:[%s7560_s24 + $0x1268] sm:$0xff]  ;;  %v6138_v6 = vpack.c.bf16 %v904_v62, %v896_v61  ;;  %v970_v61 = vld [vmem:[%s7560_s24 + $0x1578] sm:$0xff] }
 0x2f7   : > { %6121 = vmatpush1.bf16.msra.mxu0 %v6120_v7  ;;  %v6130_v35 = vpack.c.bf16 %v872_v0, %v864_v29  ;;  %v895_v7 = vld [vmem:[%s7560_s24 + $0x1320] sm:$0xff]  ;;  %v938_v29 = vld [vmem:[%s7560_s24 + $0x1478] sm:$0xff]  ;;  %v960_v58 = vld [vmem:[%s7560_s24 + $0x1528] sm:$0xff] }
 0x2f8   : > { %6633 = vmatpush1.bf16.msra.mxu1 %v6632_v8  ;;  %6123 = vmatprep.subr.bf16.mxu0 %v6122_v9  ;;  %v903_v8 = vld [vmem:[%s7560_s24 + $0x1360] sm:$0xff]  ;;  %v897_v9 = vld [vmem:[%s7560_s24 + $0x1330] sm:$0xff]  ;;  %v6658_v40 = vpack.c.bf16 %v938_v29, %v930_v28 }
 0x2f9   : > { %6635 = vmatprep.subr.bf16.mxu1 %v6634_v13  ;;  %v920_v13 = vld [vmem:[%s7560_s24 + $0x13e8] sm:$0xff]  ;;  %v6140_v18 = vpack.c.bf16 %v903_v8, %v895_v7  ;;  %v6652_v25 = vpack.c.bf16 %v905_v11, %v897_v9  ;;  %v6666_v7 = vpack.c.bf16 %v970_v61, %v962_v60  ;;  %v969_v8 = vld [vmem:[%s7560_s24 + $0x1570] sm:$0xff]  ;;  %v978_v11 = vld [vmem:[%s7560_s24 + $0x15b8] sm:$0xff] }
 0x2fa   : > { %v6142_v19 = vpack.c.bf16 %v920_v13, %v912_v50  ;;  %v976_v9 = vld [vmem:[%s7560_s24 + $0x15a8] sm:$0xff]  ;;  %v986_v50 = vld [vmem:[%s7560_s24 + $0x15f8] sm:$0xff] }
 0x2fb   : > { %6125 = vmatpush1.bf16.msra.mxu0 %v6124_v20  ;;  %v911_v20 = vld [vmem:[%s7560_s24 + $0x13a0] sm:$0xff] }
 0x2fc   : > { %6637 = vmatpush1.bf16.msra.mxu1 %v6636_v21  ;;  %6127 = vmatprep.subr.bf16.mxu0 %v6126_v22  ;;  %v919_v21 = vld [vmem:[%s7560_s24 + $0x13e0] sm:$0xff]  ;;  %v913_v22 = vld [vmem:[%s7560_s24 + $0x13b0] sm:$0xff] }
 0x2fd   : > { %6639 = vmatprep.subr.bf16.mxu1 %v6638_v27  ;;  %v936_v27 = vld [vmem:[%s7560_s24 + $0x1468] sm:$0xff]  ;;  %v6144_v0 = vpack.c.bf16 %v919_v21, %v911_v20  ;;  %v6656_v32 = vpack.c.bf16 %v921_v23, %v913_v22  ;;  %v6670_v20 = vpack.c.bf16 %v986_v50, %v978_v11  ;;  %v985_v21 = vld [vmem:[%s7560_s24 + $0x15f0] sm:$0xff]  ;;  %v994_v23 = vld [vmem:[%s7560_s24 + $0x1638] sm:$0xff] }
 0x2fe   : > { %v6146_v34 = vpack.c.bf16 %v936_v27, %v928_v24  ;;  %v992_v22 = vld [vmem:[%s7560_s24 + $0x1628] sm:$0xff]  ;;  %v1002_v24 = vld [vmem:[%s7560_s24 + $0x1678] sm:$0xff] }
 0x2ff   : > { %6129 = vmatpush1.bf16.msra.mxu0 %v6128_v33  ;;  %v927_v33 = vld [vmem:[%s7560_s24 + $0x1420] sm:$0xff] }
 0x300   : > { %6641 = vmatpush1.bf16.msra.mxu1 %v6640_v17  ;;  %6131 = vmatprep.subr.bf16.mxu0 %v6130_v35  ;;  %v935_v17 = vld [vmem:[%s7560_s24 + $0x1460] sm:$0xff]  ;;  %v929_v35 = vld [vmem:[%s7560_s24 + $0x1430] sm:$0xff] }
 0x301   : > { %6643 = vmatprep.subr.bf16.mxu1 %v6642_v39  ;;  %v952_v39 = vld [vmem:[%s7560_s24 + $0x14e8] sm:$0xff]  ;;  %v6148_v44 = vpack.c.bf16 %v935_v17, %v927_v33  ;;  %v6660_v45 = vpack.c.bf16 %v937_v41, %v929_v35  ;;  %v6674_v33 = vpack.c.bf16 %v1002_v24, %v994_v23  ;;  %v1001_v17 = vld [vmem:[%s7560_s24 + $0x1670] sm:$0xff]  ;;  %v1010_v41 = vld [vmem:[%s7560_s24 + $0x16b8] sm:$0xff] }
 0x302   : > { %v6150_v46 = vpack.c.bf16 %v952_v39, %v944_v37  ;;  %v1008_v35 = vld [vmem:[%s7560_s24 + $0x16a8] sm:$0xff]  ;;  %v1018_v37 = vld [vmem:[%s7560_s24 + $0x16f8] sm:$0xff] }
 0x303   : > { %6133 = vmatpush1.bf16.msra.mxu0 %v6132_v48  ;;  %v943_v48 = vld [vmem:[%s7560_s24 + $0x14a0] sm:$0xff] }
 0x304   : > { %6645 = vmatpush1.bf16.msra.mxu1 %v6644_v49  ;;  %6135 = vmatprep.subr.bf16.mxu0 %v6134_v51  ;;  %v951_v49 = vld [vmem:[%s7560_s24 + $0x14e0] sm:$0xff]  ;;  %v945_v51 = vld [vmem:[%s7560_s24 + $0x14b0] sm:$0xff] }
 0x305   : > { %6647 = vmatprep.subr.bf16.mxu1 %v6646_v59  ;;  %v968_v59 = vld [vmem:[%s7560_s24 + $0x1568] sm:$0xff]  ;;  %v6152_v62 = vpack.c.bf16 %v951_v49, %v943_v48  ;;  %v6664_v1 = vpack.c.bf16 %v953_v54, %v945_v51  ;;  %v6678_v48 = vpack.c.bf16 %v1018_v37, %v1010_v41  ;;  %v1017_v49 = vld [vmem:[%s7560_s24 + $0x16f0] sm:$0xff]  ;;  %v1026_v54 = vld [vmem:[%s7560_s24 + $0x1738] sm:$0xff] }
 0x306   : > { %v6154_v2 = vpack.c.bf16 %v968_v59, %v960_v58  ;;  %v1024_v51 = vld [vmem:[%s7560_s24 + $0x1728] sm:$0xff]  ;;  %v1034_v58 = vld [vmem:[%s7560_s24 + $0x1778] sm:$0xff] }
 0x307   : > { %6137 = vmatpush1.bf16.msra.mxu0 %v6136_v3  ;;  %v959_v3 = vld [vmem:[%s7560_s24 + $0x1520] sm:$0xff] }
 0x308   : > { %6649 = vmatpush1.bf16.msra.mxu1 %v6648_v4  ;;  %6139 = vmatprep.subr.bf16.mxu0 %v6138_v6  ;;  %v967_v4 = vld [vmem:[%s7560_s24 + $0x1560] sm:$0xff]  ;;  %v961_v6 = vld [vmem:[%s7560_s24 + $0x1530] sm:$0xff] }
 0x309   : > { %6651 = vmatprep.subr.bf16.mxu1 %v6650_v10  ;;  %v984_v10 = vld [vmem:[%s7560_s24 + $0x15e8] sm:$0xff]  ;;  %v6156_v13 = vpack.c.bf16 %v967_v4, %v959_v3  ;;  %v6668_v14 = vpack.c.bf16 %v969_v8, %v961_v6  ;;  %v6682_v3 = vpack.c.bf16 %v1034_v58, %v1026_v54  ;;  %v1033_v4 = vld [vmem:[%s7560_s24 + $0x1770] sm:$0xff]  ;;  %v1042_v8 = vld [vmem:[%s7560_s24 + $0x17b8] sm:$0xff] }
 0x30a   : > { %v6158_v16 = vpack.c.bf16 %v984_v10, %v976_v9  ;;  %v1040_v6 = vld [vmem:[%s7560_s24 + $0x17a8] sm:$0xff]  ;;  %v1050_v9 = vld [vmem:[%s7560_s24 + $0x17f8] sm:$0xff] }
 0x30b   : > { %6141 = vmatpush1.bf16.msra.mxu0 %v6140_v18  ;;  %v975_v18 = vld [vmem:[%s7560_s24 + $0x15a0] sm:$0xff] }
 0x30c   : > { %6653 = vmatpush1.bf16.msra.mxu1 %v6652_v25  ;;  %6143 = vmatprep.subr.bf16.mxu0 %v6142_v19  ;;  %v983_v25 = vld [vmem:[%s7560_s24 + $0x15e0] sm:$0xff]  ;;  %v977_v19 = vld [vmem:[%s7560_s24 + $0x15b0] sm:$0xff] }
 0x30d   : > { %6655 = vmatprep.subr.bf16.mxu1 %v6654_v26  ;;  %v1000_v26 = vld [vmem:[%s7560_s24 + $0x1668] sm:$0xff]  ;;  %v6160_v27 = vpack.c.bf16 %v983_v25, %v975_v18  ;;  %v6672_v28 = vpack.c.bf16 %v985_v21, %v977_v19  ;;  %v6686_v18 = vpack.c.bf16 %v1050_v9, %v1042_v8  ;;  %v1049_v25 = vld [vmem:[%s7560_s24 + $0x17f0] sm:$0xff]  ;;  %v1058_v21 = vld [vmem:[%s7560_s24 + $0x1838] sm:$0xff] }
 0x30e   : > { %v6162_v29 = vpack.c.bf16 %v1000_v26, %v992_v22  ;;  %v1056_v19 = vld [vmem:[%s7560_s24 + $0x1828] sm:$0xff]  ;;  %v1066_v22 = vld [vmem:[%s7560_s24 + $0x1878] sm:$0xff]  ;;  %v1103_v9 = vld [vmem:[%s7560_s24 + $0x19a0] sm:$0xff] }
 0x30f   : > { %6145 = vmatpush1.bf16.msra.mxu0 %v6144_v0  ;;  %v991_v0 = vld [vmem:[%s7560_s24 + $0x1620] sm:$0xff] }
 0x310   : > { %6657 = vmatpush1.bf16.msra.mxu1 %v6656_v32  ;;  %6147 = vmatprep.subr.bf16.mxu0 %v6146_v34  ;;  %v999_v32 = vld [vmem:[%s7560_s24 + $0x1660] sm:$0xff]  ;;  %v993_v34 = vld [vmem:[%s7560_s24 + $0x1630] sm:$0xff] }
 0x311   : > { %6659 = vmatprep.subr.bf16.mxu1 %v6658_v40  ;;  %v1016_v40 = vld [vmem:[%s7560_s24 + $0x16e8] sm:$0xff]  ;;  %v6164_v39 = vpack.c.bf16 %v999_v32, %v991_v0  ;;  %v6676_v42 = vpack.c.bf16 %v1001_v17, %v993_v34  ;;  %v6690_v0 = vpack.c.bf16 %v1066_v22, %v1058_v21  ;;  %v1065_v32 = vld [vmem:[%s7560_s24 + $0x1870] sm:$0xff]  ;;  %v1074_v17 = vld [vmem:[%s7560_s24 + $0x18b8] sm:$0xff] }
 0x312   : > { %v6166_v43 = vpack.c.bf16 %v1016_v40, %v1008_v35  ;;  %v1072_v34 = vld [vmem:[%s7560_s24 + $0x18a8] sm:$0xff]  ;;  %v1082_v35 = vld [vmem:[%s7560_s24 + $0x18f8] sm:$0xff]  ;;  %v1119_v21 = vld [vmem:[%s7560_s24 + $0x1a20] sm:$0xff] }
 0x313   : > { %6149 = vmatpush1.bf16.msra.mxu0 %v6148_v44  ;;  %v1007_v44 = vld [vmem:[%s7560_s24 + $0x16a0] sm:$0xff] }
 0x314   : > { %6661 = vmatpush1.bf16.msra.mxu1 %v6660_v45  ;;  %6151 = vmatprep.subr.bf16.mxu0 %v6150_v46  ;;  %v1015_v45 = vld [vmem:[%s7560_s24 + $0x16e0] sm:$0xff]  ;;  %v1009_v46 = vld [vmem:[%s7560_s24 + $0x16b0] sm:$0xff] }
 0x315   : > { %6663 = vmatprep.subr.bf16.mxu1 %v6662_v52  ;;  %v1032_v52 = vld [vmem:[%s7560_s24 + $0x1768] sm:$0xff]  ;;  %v6168_v59 = vpack.c.bf16 %v1015_v45, %v1007_v44  ;;  %v6680_v60 = vpack.c.bf16 %v1017_v49, %v1009_v46  ;;  %v6694_v44 = vpack.c.bf16 %v1082_v35, %v1074_v17  ;;  %v1081_v45 = vld [vmem:[%s7560_s24 + $0x18f0] sm:$0xff]  ;;  %v1090_v49 = vld [vmem:[%s7560_s24 + $0x1938] sm:$0xff] }
 0x316   : > { %v6170_v61 = vpack.c.bf16 %v1032_v52, %v1024_v51  ;;  %v1088_v46 = vld [vmem:[%s7560_s24 + $0x1928] sm:$0xff]  ;;  %v1098_v51 = vld [vmem:[%s7560_s24 + $0x1978] sm:$0xff]  ;;  %v1127_v22 = vld [vmem:[%s7560_s24 + $0x1a60] sm:$0xff] }
 0x317   : > { %6153 = vmatpush1.bf16.msra.mxu0 %v6152_v62  ;;  %v1023_v62 = vld [vmem:[%s7560_s24 + $0x1720] sm:$0xff] }
 0x318   : > { %6665 = vmatpush1.bf16.msra.mxu1 %v6664_v1  ;;  %6155 = vmatprep.subr.bf16.mxu0 %v6154_v2  ;;  %v1031_v1 = vld [vmem:[%s7560_s24 + $0x1760] sm:$0xff]  ;;  %v1025_v2 = vld [vmem:[%s7560_s24 + $0x1730] sm:$0xff] }
 0x319   : > { %6667 = vmatprep.subr.bf16.mxu1 %v6666_v7  ;;  %v1048_v7 = vld [vmem:[%s7560_s24 + $0x17e8] sm:$0xff]  ;;  %v6172_v10 = vpack.c.bf16 %v1031_v1, %v1023_v62  ;;  %v6684_v11 = vpack.c.bf16 %v1033_v4, %v1025_v2  ;;  %v6698_v62 = vpack.c.bf16 %v1098_v51, %v1090_v49  ;;  %v1097_v1 = vld [vmem:[%s7560_s24 + $0x1970] sm:$0xff]  ;;  %v1114_v4 = vld [vmem:[%s7560_s24 + $0x19f8] sm:$0xff] }
 0x31a   : > { %v6174_v50 = vpack.c.bf16 %v1048_v7, %v1040_v6  ;;  %v1104_v2 = vld [vmem:[%s7560_s24 + $0x19a8] sm:$0xff]  ;;  %v1135_v17 = vld [vmem:[%s7560_s24 + $0x1aa0] sm:$0xff] }
 0x31b   : > { %6157 = vmatpush1.bf16.msra.mxu0 %v6156_v13  ;;  %v1039_v13 = vld [vmem:[%s7560_s24 + $0x17a0] sm:$0xff] }
 0x31c   : > { %6669 = vmatpush1.bf16.msra.mxu1 %v6668_v14  ;;  %6159 = vmatprep.subr.bf16.mxu0 %v6158_v16  ;;  %v1047_v14 = vld [vmem:[%s7560_s24 + $0x17e0] sm:$0xff]  ;;  %v1041_v16 = vld [vmem:[%s7560_s24 + $0x17b0] sm:$0xff] }
 0x31d   : > { %6671 = vmatprep.subr.bf16.mxu1 %v6670_v20  ;;  %v1064_v20 = vld [vmem:[%s7560_s24 + $0x1868] sm:$0xff]  ;;  %v6176_v26 = vpack.c.bf16 %v1047_v14, %v1039_v13  ;;  %v6688_v23 = vpack.c.bf16 %v1049_v25, %v1041_v16  ;;  %v1113_v13 = vld [vmem:[%s7560_s24 + $0x19f0] sm:$0xff]  ;;  %v1122_v16 = vld [vmem:[%s7560_s24 + $0x1a38] sm:$0xff] }
 0x31e   : > { %v6178_v24 = vpack.c.bf16 %v1064_v20, %v1056_v19  ;;  %v1120_v14 = vld [vmem:[%s7560_s24 + $0x1a28] sm:$0xff]  ;;  %v1143_v35 = vld [vmem:[%s7560_s24 + $0x1ae0] sm:$0xff] }
 0x31f   : > { %6161 = vmatpush1.bf16.msra.mxu0 %v6160_v27  ;;  %v1055_v27 = vld [vmem:[%s7560_s24 + $0x1820] sm:$0xff] }
 0x320   : > { %6673 = vmatpush1.bf16.msra.mxu1 %v6672_v28  ;;  %6163 = vmatprep.subr.bf16.mxu0 %v6162_v29  ;;  %v1063_v28 = vld [vmem:[%s7560_s24 + $0x1860] sm:$0xff]  ;;  %v1057_v29 = vld [vmem:[%s7560_s24 + $0x1830] sm:$0xff] }
 0x321   : > { %6675 = vmatprep.subr.bf16.mxu1 %v6674_v33  ;;  %v1080_v33 = vld [vmem:[%s7560_s24 + $0x18e8] sm:$0xff]  ;;  %v6180_v40 = vpack.c.bf16 %v1063_v28, %v1055_v27  ;;  %v6692_v41 = vpack.c.bf16 %v1065_v32, %v1057_v29  ;;  %v1138_v29 = vld [vmem:[%s7560_s24 + $0x1ab8] sm:$0xff]  ;;  %v6196_v32 = vpack.c.bf16 %v1127_v22, %v1119_v21  ;;  %v1151_v49 = vld [vmem:[%s7560_s24 + $0x1b20] sm:$0xff] }
 0x322   : > { %v6182_v37 = vpack.c.bf16 %v1080_v33, %v1072_v34  ;;  %v1136_v27 = vld [vmem:[%s7560_s24 + $0x1aa8] sm:$0xff]  ;;  %v1159_v51 = vld [vmem:[%s7560_s24 + $0x1b60] sm:$0xff]  ;;  %v277_v21 = vld [vmem:[#allocation2] sm:$0xff] }
 0x323   : > { %6165 = vmatpush1.bf16.msra.mxu0 %v6164_v39  ;;  %v1071_v39 = vld [vmem:[%s7560_s24 + $0x18a0] sm:$0xff]  ;;  %v1144_v28 = vld [vmem:[%s7560_s24 + $0x1ae8] sm:$0xff] }
 0x324   : > { %6677 = vmatpush1.bf16.msra.mxu1 %v6676_v42  ;;  %6167 = vmatprep.subr.bf16.mxu0 %v6166_v43  ;;  %v1079_v42 = vld [vmem:[%s7560_s24 + $0x18e0] sm:$0xff]  ;;  %v1073_v43 = vld [vmem:[%s7560_s24 + $0x18b0] sm:$0xff]  ;;  %v6198_v33 = vpack.c.bf16 %v1144_v28, %v1136_v27 }
 0x325   : > { %6679 = vmatprep.subr.bf16.mxu1 %v6678_v48  ;;  %v1096_v48 = vld [vmem:[%s7560_s24 + $0x1968] sm:$0xff]  ;;  %v6184_v52 = vpack.c.bf16 %v1079_v42, %v1071_v39  ;;  %v6696_v54 = vpack.c.bf16 %v1081_v45, %v1073_v43  ;;  %v1154_v43 = vld [vmem:[%s7560_s24 + $0x1b38] sm:$0xff]  ;;  %v6200_v45 = vpack.c.bf16 %v1143_v35, %v1135_v17  ;;  %v1183_v27 = vld [vmem:[%s7560_s24 + $0x1c20] sm:$0xff] }
 0x326   : > { %v6186_v58 = vpack.c.bf16 %v1096_v48, %v1088_v46  ;;  %v1152_v39 = vld [vmem:[%s7560_s24 + $0x1b28] sm:$0xff]  ;;  %v1191_v28 = vld [vmem:[%s7560_s24 + $0x1c60] sm:$0xff]  ;;  %v1202_v35 = vld [vmem:[%s7560_s24 + $0x1cb8] sm:$0xff] }
 0x327   : > { %6169 = vmatpush1.bf16.msra.mxu0 %v6168_v59  ;;  %v1087_v59 = vld [vmem:[%s7560_s24 + $0x1920] sm:$0xff]  ;;  %v1160_v42 = vld [vmem:[%s7560_s24 + $0x1b68] sm:$0xff] }
 0x328   : > { %6681 = vmatpush1.bf16.msra.mxu1 %v6680_v60  ;;  %6171 = vmatprep.subr.bf16.mxu0 %v6170_v61  ;;  %v1095_v60 = vld [vmem:[%s7560_s24 + $0x1960] sm:$0xff]  ;;  %v1089_v61 = vld [vmem:[%s7560_s24 + $0x1930] sm:$0xff]  ;;  %v6202_v48 = vpack.c.bf16 %v1160_v42, %v1152_v39 }
 0x329   : > { %6683 = vmatprep.subr.bf16.mxu1 %v6682_v3  ;;  %v1112_v3 = vld [vmem:[%s7560_s24 + $0x19e8] sm:$0xff]  ;;  %v6188_v6 = vpack.c.bf16 %v1095_v60, %v1087_v59  ;;  %v6700_v7 = vpack.c.bf16 %v1097_v1, %v1089_v61  ;;  %v1161_v59 = vld [vmem:[%s7560_s24 + $0x1b70] sm:$0xff]  ;;  %v1199_v42 = vld [vmem:[%s7560_s24 + $0x1ca0] sm:$0xff] }
 0x32a   : > { %v6190_v8 = vpack.c.bf16 %v1112_v3, %v1104_v2  ;;  %v1168_v60 = vld [vmem:[%s7560_s24 + $0x1ba8] sm:$0xff]  ;;  %v1170_v2 = vld [vmem:[%s7560_s24 + $0x1bb8] sm:$0xff] }
 0x32b   : > { %6173 = vmatpush1.bf16.msra.mxu0 %v6172_v10  ;;  %v1111_v10 = vld [vmem:[%s7560_s24 + $0x19e0] sm:$0xff]  ;;  %v1176_v61 = vld [vmem:[%s7560_s24 + $0x1be8] sm:$0xff]  ;;  %v1178_v3 = vld [vmem:[%s7560_s24 + $0x1bf8] sm:$0xff] }
 0x32c   : > { %6685 = vmatpush1.bf16.msra.mxu1 %v6684_v11  ;;  %6175 = vmatprep.subr.bf16.mxu0 %v6174_v50  ;;  %v1105_v11 = vld [vmem:[%s7560_s24 + $0x19b0] sm:$0xff]  ;;  %v6192_v25 = vpack.c.bf16 %v1111_v10, %v1103_v9  ;;  %v6206_v9 = vpack.c.bf16 %v1176_v61, %v1168_v60  ;;  %v1167_v10 = vld [vmem:[%s7560_s24 + $0x1ba0] sm:$0xff] }
 0x32d   : > { %6687 = vmatprep.subr.bf16.mxu1 %v6686_v18  ;;  %v1130_v18 = vld [vmem:[%s7560_s24 + $0x1a78] sm:$0xff]  ;;  %v6704_v19 = vpack.c.bf16 %v1113_v13, %v1105_v11  ;;  %v1175_v11 = vld [vmem:[%s7560_s24 + $0x1be0] sm:$0xff] }
 0x32e   : > { %v6208_v22 = vpack.c.bf16 %v1175_v11, %v1167_v10  ;;  %v1215_v60 = vld [vmem:[%s7560_s24 + $0x1d20] sm:$0xff] }
 0x32f   : > { %6177 = vmatpush1.bf16.msra.mxu0 %v6176_v26  ;;  %v1121_v26 = vld [vmem:[%s7560_s24 + $0x1a30] sm:$0xff]  ;;  %v1223_v61 = vld [vmem:[%s7560_s24 + $0x1d60] sm:$0xff] }
 0x330   : > { %6689 = vmatpush1.bf16.msra.mxu1 %v6688_v23  ;;  %6179 = vmatprep.subr.bf16.mxu0 %v6178_v24  ;;  %v6706_v23 = vpack.c.bf16 %v1130_v18, %v1122_v16  ;;  %v1129_v24 = vld [vmem:[%s7560_s24 + $0x1a70] sm:$0xff]  ;;  %v1184_v16 = vld [vmem:[%s7560_s24 + $0x1c28] sm:$0xff]  ;;  %v1231_v10 = vld [vmem:[%s7560_s24 + $0x1da0] sm:$0xff] }
 0x331   : > { %6691 = vmatprep.subr.bf16.mxu1 %v6690_v0  ;;  %v1146_v0 = vld [vmem:[%s7560_s24 + $0x1af8] sm:$0xff]  ;;  %v6708_v34 = vpack.c.bf16 %v1129_v24, %v1121_v26  ;;  %v1192_v18 = vld [vmem:[%s7560_s24 + $0x1c68] sm:$0xff]  ;;  %v1239_v11 = vld [vmem:[%s7560_s24 + $0x1de0] sm:$0xff] }
 0x332   : > { %3762 = vmatmul.mubr.f32.vlgmr.msra.gmra.mrb[2].mxu0 %v7894_v56  ;;  %v6210_v24 = vpack.c.bf16 %v1192_v18, %v1184_v16  ;;  %v1256_v16 = vld [vmem:[%s7560_s24 + $0x1e68] sm:$0xff]  ;;  %v1250_v18 = vld [vmem:[%s7560_s24 + $0x1e38] sm:$0xff] }
 0x333   : > { %6181 = vmatpush1.bf16.msra.mxu0 %v6180_v40  ;;  %4330 = vmatmul.mubr.f32.vlgmr.msra.gmra.mrb[2].mxu1 %v7894_v56  ;;  %v1106_v56 = vld [vmem:[%s7560_s24 + $0x19b8] sm:$0xff]  ;;  %v1137_v40 = vld [vmem:[%s7560_s24 + $0x1ab0] sm:$0xff] }
 0x334   : > { %6693 = vmatpush1.bf16.msra.mxu1 %v6692_v41  ;;  %6183 = vmatprep.subr.bf16.mxu0 %v6182_v37  ;;  %v6702_v50 = vpack.c.bf16 %v1114_v4, %v1106_v56  ;;  %v6710_v41 = vpack.c.bf16 %v1146_v0, %v1138_v29  ;;  %v1145_v37 = vld [vmem:[%s7560_s24 + $0x1af0] sm:$0xff] }
 0x335   : > { %6695 = vmatprep.subr.bf16.mxu1 %v6694_v44  ;;  %3832 = vmatprep.mubr.f32.mxu0 %v8042_v30  ;;  %v1162_v44 = vld [vmem:[%s7560_s24 + $0x1b78] sm:$0xff]  ;;  %v6712_v46 = vpack.c.bf16 %v1145_v37, %v1137_v40  ;;  %v1185_v29 = vld [vmem:[%s7560_s24 + $0x1c30] sm:$0xff] }
 0x336   : > { %4400 = vmatprep.mubr.f32.mxu1 %v8042_v30  ;;  %v1128_v30 = vld [vmem:[%s7560_s24 + $0x1a68] sm:$0xff]  ;;  %v1210_v40 = vld [vmem:[%s7560_s24 + $0x1cf8] sm:$0xff] }
 0x337   : > { %6185 = vmatpush1.bf16.msra.mxu0 %v6184_v52  ;;  %v6194_v20 = vpack.c.bf16 %v1128_v30, %v1120_v14  ;;  %v1153_v52 = vld [vmem:[%s7560_s24 + $0x1b30] sm:$0xff]  ;;  %v6718_v14 = vpack.c.bf16 %v1178_v3, %v1170_v2  ;;  %v1232_v3 = vld [vmem:[%s7560_s24 + $0x1da8] sm:$0xff] }
 0x338   : > { %6697 = vmatpush1.bf16.msra.mxu1 %v6696_v54  ;;  %6187 = vmatprep.subr.bf16.mxu0 %v6186_v58  ;;  %v6714_v58 = vpack.c.bf16 %v1162_v44, %v1154_v43  ;;  %v1177_v30 = vld [vmem:[%s7560_s24 + $0x1bf0] sm:$0xff]  ;;  %v1207_v43 = vld [vmem:[%s7560_s24 + $0x1ce0] sm:$0xff] }
 0x339   : > { %6699 = vmatprep.subr.bf16.mxu1 %v6698_v62  ;;  %v1201_v44 = vld [vmem:[%s7560_s24 + $0x1cb0] sm:$0xff] }
 0x33a   : > { %v1225_v2 = vld [vmem:[%s7560_s24 + $0x1d70] sm:$0xff] }
 0x33b   : > { %6189 = vmatpush1.bf16.msra.mxu0 %v6188_v6  ;;  %v6204_v6 = vpack.c.bf16 %v1159_v51, %v1151_v49  ;;  %v1224_v49 = vld [vmem:[%s7560_s24 + $0x1d68] sm:$0xff]  ;;  %v1218_v51 = vld [vmem:[%s7560_s24 + $0x1d38] sm:$0xff] }
 0x33c   : > { %6701 = vmatpush1.bf16.msra.mxu1 %v6700_v7  ;;  %6191 = vmatprep.subr.bf16.mxu0 %v6190_v8  ;;  %v6716_v8 = vpack.c.bf16 %v1161_v59, %v1153_v52  ;;  %v1226_v52 = vld [vmem:[%s7560_s24 + $0x1d78] sm:$0xff] }
 0x33d   : > { %6703 = vmatprep.subr.bf16.mxu1 %v6702_v50  ;;  %v1169_v50 = vld [vmem:[%s7560_s24 + $0x1bb0] sm:$0xff] }
 0x33f   : > { %6193 = vmatpush1.bf16.msra.mxu0 %v6192_v25 }
 0x340   : > { %6705 = vmatpush1.bf16.msra.mxu1 %v6704_v19  ;;  %6195 = vmatprep.subr.bf16.mxu0 %v6194_v20  ;;  %v1186_v19 = vld [vmem:[%s7560_s24 + $0x1c38] sm:$0xff] }
 0x341   : > { %6707 = vmatprep.subr.bf16.mxu1 %v6706_v23  ;;  %v1194_v20 = vld [vmem:[%s7560_s24 + $0x1c78] sm:$0xff]  ;;  %v6720_v23 = vpack.c.bf16 %v1177_v30, %v1169_v50  ;;  %v1233_v50 = vld [vmem:[%s7560_s24 + $0x1db0] sm:$0xff]  ;;  %v1248_v30 = vld [vmem:[%s7560_s24 + $0x1e28] sm:$0xff] }
 0x342   : > { %v6722_v0 = vpack.c.bf16 %v1194_v20, %v1186_v19  ;;  %v6224_v19 = vpack.c.bf16 %v1239_v11, %v1231_v10  ;;  %v1312_v10 = vld [vmem:[%s7560_s24 + $0x2028] sm:$0xff] }
 0x343   : > { %6197 = vmatpush1.bf16.msra.mxu0 %v6196_v32  ;;  %v1193_v32 = vld [vmem:[%s7560_s24 + $0x1c70] sm:$0xff]  ;;  %v1320_v11 = vld [vmem:[%s7560_s24 + $0x2068] sm:$0xff] }
 0x344   : > { %6709 = vmatpush1.bf16.msra.mxu1 %v6708_v34  ;;  %6199 = vmatprep.subr.bf16.mxu0 %v6198_v33  ;;  %v1200_v34 = vld [vmem:[%s7560_s24 + $0x1ca8] sm:$0xff]  ;;  %v6724_v37 = vpack.c.bf16 %v1193_v32, %v1185_v29  ;;  %v1274_v32 = vld [vmem:[%s7560_s24 + $0x1ef8] sm:$0xff] }
 0x345   : > { %v2982_v54 = vpop.f32.mrb[0].mxu0  ;;  %6711 = vmatprep.subr.bf16.mxu1 %v6710_v41  ;;  %v1208_v33 = vld [vmem:[%s7560_s24 + $0x1ce8] sm:$0xff]  ;;  %v6212_v41 = vpack.c.bf16 %v1191_v28, %v1183_v27  ;;  %v1257_v27 = vld [vmem:[%s7560_s24 + $0x1e70] sm:$0xff] }
 0x346   : > { %v3550_v62 = vpop.f32.mrb[0].mxu1  ;;  %v2984_v1 = vpop.f32.mrb[1].mxu0  ;;  %v6214_v39 = vpack.c.bf16 %v1208_v33, %v1200_v34  ;;  %v1264_v28 = vld [vmem:[%s7560_s24 + $0x1ea8] sm:$0xff] }
 0x347   : > { %v4699_v56 = vcombine.low %v2982_v54, %v2984_v1  ;;  %v3552_v4 = vpop.f32.mrb[1].mxu1  ;;  %6201 = vmatpush1.bf16.msra.mxu0 %v6200_v45  ;;  %v6726_v45 = vpack.c.bf16 %v1210_v40, %v1202_v35  ;;  %v6216_v54 = vpack.c.bf16 %v1207_v43, %v1199_v42  ;;  %v6730_v1 = vpack.c.bf16 %v1226_v52, %v1218_v51  ;;  %v1272_v29 = vld [vmem:[%s7560_s24 + $0x1ee8] sm:$0xff]  ;;  %v1263_v35 = vld [vmem:[%s7560_s24 + $0x1ea0] sm:$0xff] }
 0x348   : > { %v4700_v7 = vcombine.low %v3550_v62, %v3552_v4  ;;  %6713 = vmatpush1.bf16.msra.mxu1 %v6712_v46  ;;  %6203 = vmatprep.subr.bf16.mxu0 %v6202_v48  ;;  %v1209_v46 = vld [vmem:[%s7560_s24 + $0x1cf0] sm:$0xff]  ;;  %v1216_v48 = vld [vmem:[%s7560_s24 + $0x1d28] sm:$0xff]  ;;  %v1234_v4 = vld [vmem:[%s7560_s24 + $0x1db8] sm:$0xff] }
 0x349   : > { %v4707_v13 = vrot.slane %v4699_v56, %v7682_v12  ;;  %6715 = vmatprep.subr.bf16.mxu1 %v6714_v58  ;;  %v6728_v58 = vpack.c.bf16 %v1209_v46, %v1201_v44  ;;  %v6218_v59 = vpack.c.bf16 %v1224_v49, %v1216_v48  ;;  %v1217_v62 = vld [vmem:[%s7560_s24 + $0x1d30] sm:$0xff]  ;;  %v1240_v56 = vld [vmem:[%s7560_s24 + $0x1de8] sm:$0xff]  ;;  %v1271_v40 = vld [vmem:[%s7560_s24 + $0x1ee0] sm:$0xff] }
 0x34a   : > { %v4714_v25 = vrot.slane %v4700_v7, %v7682_v12  ;;  %v6220_v7 = vpack.c.bf16 %v1223_v61, %v1215_v60  ;;  %v1280_v42 = vld [vmem:[%s7560_s24 + $0x1f28] sm:$0xff]  ;;  %v1282_v44 = vld [vmem:[%s7560_s24 + $0x1f38] sm:$0xff]  ;;  %v6232_v46 = vpack.c.bf16 %v1271_v40, %v1263_v35  ;;  %v1279_v51 = vld [vmem:[%s7560_s24 + $0x1f20] sm:$0xff] }
 0x34b   : > { %6205 = vmatpush1.bf16.msra.mxu0 %v6204_v6  ;;  %v1242_v6 = vld [vmem:[%s7560_s24 + $0x1df8] sm:$0xff]  ;;  %v1288_v43 = vld [vmem:[%s7560_s24 + $0x1f68] sm:$0xff]  ;;  %v1287_v52 = vld [vmem:[%s7560_s24 + $0x1f60] sm:$0xff] }
 0x34c   : > { %v4715_v26 = vcombine.low %v4707_v13, %v4714_v25  ;;  %6717 = vmatpush1.bf16.msra.mxu1 %v6716_v8  ;;  %6207 = vmatprep.subr.bf16.mxu0 %v6206_v9  ;;  %v6732_v8 = vpack.c.bf16 %v1225_v2, %v1217_v62  ;;  %v6222_v9 = vpack.c.bf16 %v1240_v56, %v1232_v3  ;;  %v1258_v25 = vld [vmem:[%s7560_s24 + $0x1e78] sm:$0xff]  ;;  %v1296_v60 = vld [vmem:[%s7560_s24 + $0x1fa8] sm:$0xff] }
 0x34d   : > { %6719 = vmatprep.subr.bf16.mxu1 %v6718_v14  ;;  %v6734_v13 = vpack.c.bf16 %v1242_v6, %v1234_v4  ;;  %v1241_v14 = vld [vmem:[%s7560_s24 + $0x1df0] sm:$0xff]  ;;  %v6234_v49 = vpack.c.bf16 %v1288_v43, %v1280_v42  ;;  %v1304_v61 = vld [vmem:[%s7560_s24 + $0x1fe8] sm:$0xff]  ;;  %v1298_v62 = vld [vmem:[%s7560_s24 + $0x1fb8] sm:$0xff]  ;;  %v6236_v2 = vpack.c.bf16 %v1287_v52, %v1279_v51 }
 0x34e   : > { %v4735_v17 = vadd.f32 %v4715_v26, %v277_v21  ;;  %v6736_v20 = vpack.c.bf16 %v1241_v14, %v1233_v50  ;;  %v6226_v21 = vpack.c.bf16 %v1256_v16, %v1248_v30  ;;  %v1255_v26 = vld [vmem:[%s7560_s24 + $0x1e60] sm:$0xff]  ;;  %v6238_v56 = vpack.c.bf16 %v1304_v61, %v1296_v60  ;;  %v1314_v50 = vld [vmem:[%s7560_s24 + $0x2038] sm:$0xff]  ;;  %v1344_v35 = vld [vmem:[%s7560_s24 + $0x2128] sm:$0xff] }
 0x34f   : > { %6209 = vmatpush1.bf16.msra.mxu0 %v6208_v22  ;;  %v1247_v22 = vld [vmem:[%s7560_s24 + $0x1e20] sm:$0xff]  ;;  %v6242_v16 = vpack.c.bf16 %v1320_v11, %v1312_v10  ;;  %v1352_v40 = vld [vmem:[%s7560_s24 + $0x2168] sm:$0xff] }
 0x350   : > { %4737 = vst [vmem:[#allocation2] sm:$0xff] %v4735_v17  ;;  %6721 = vmatpush1.bf16.msra.mxu1 %v6720_v23  ;;  %6211 = vmatprep.subr.bf16.mxu0 %v6210_v24  ;;  %v1249_v23 = vld [vmem:[%s7560_s24 + $0x1e30] sm:$0xff]  ;;  %v6738_v24 = vpack.c.bf16 %v1258_v25, %v1250_v18  ;;  %v6228_v34 = vpack.c.bf16 %v1255_v26, %v1247_v22  ;;  %v1295_v4 = vld [vmem:[%s7560_s24 + $0x1fa0] sm:$0xff]  ;;  %v1328_v22 = vld [vmem:[%s7560_s24 + $0x20a8] sm:$0xff] }
 0x351   : > { %6723 = vmatprep.subr.bf16.mxu1 %v6722_v0  ;;  %v1266_v0 = vld [vmem:[%s7560_s24 + $0x1eb8] sm:$0xff]  ;;  %v6740_v33 = vpack.c.bf16 %v1257_v27, %v1249_v23  ;;  %v6230_v17 = vpack.c.bf16 %v1272_v29, %v1264_v28  ;;  %v1303_v6 = vld [vmem:[%s7560_s24 + $0x1fe0] sm:$0xff]  ;;  %v1336_v26 = vld [vmem:[%s7560_s24 + $0x20e8] sm:$0xff]  ;;  %v6250_v43 = vpack.c.bf16 %v1352_v40, %v1344_v35 }
 0x352   : > { %v6240_v14 = vpack.c.bf16 %v1303_v6, %v1295_v4  ;;  %v1311_v18 = vld [vmem:[%s7560_s24 + $0x2020] sm:$0xff]  ;;  %v1330_v23 = vld [vmem:[%s7560_s24 + $0x20b8] sm:$0xff]  ;;  %v6246_v29 = vpack.c.bf16 %v1336_v26, %v1328_v22  ;;  %v1360_v51 = vld [vmem:[%s7560_s24 + $0x21a8] sm:$0xff] }
 0x353   : > { %6213 = vmatpush1.bf16.msra.mxu0 %v6212_v41  ;;  %v1265_v41 = vld [vmem:[%s7560_s24 + $0x1eb0] sm:$0xff]  ;;  %v1319_v25 = vld [vmem:[%s7560_s24 + $0x2060] sm:$0xff]  ;;  %v1368_v52 = vld [vmem:[%s7560_s24 + $0x21e8] sm:$0xff] }
 0x354   : > { %6725 = vmatpush1.bf16.msra.mxu1 %v6724_v37  ;;  %6215 = vmatprep.subr.bf16.mxu0 %v6214_v39  ;;  %v6742_v37 = vpack.c.bf16 %v1274_v32, %v1266_v0  ;;  %v1273_v39 = vld [vmem:[%s7560_s24 + $0x1ef0] sm:$0xff]  ;;  %v6244_v27 = vpack.c.bf16 %v1319_v25, %v1311_v18  ;;  %v1327_v0 = vld [vmem:[%s7560_s24 + $0x20a0] sm:$0xff]  ;;  %v6254_v60 = vpack.c.bf16 %v1368_v52, %v1360_v51  ;;  %v1378_v4 = vld [vmem:[%s7560_s24 + $0x2238] sm:$0xff] }
 0x355   : > { %6727 = vmatprep.subr.bf16.mxu1 %v6726_v45  ;;  %v1290_v45 = vld [vmem:[%s7560_s24 + $0x1f78] sm:$0xff]  ;;  %v6744_v48 = vpack.c.bf16 %v1273_v39, %v1265_v41  ;;  %v1335_v32 = vld [vmem:[%s7560_s24 + $0x20e0] sm:$0xff] }
 0x356   : > { %v1346_v41 = vld [vmem:[%s7560_s24 + $0x2138] sm:$0xff]  ;;  %v6248_v39 = vpack.c.bf16 %v1335_v32, %v1327_v0  ;;  %v1359_v61 = vld [vmem:[%s7560_s24 + $0x21a0] sm:$0xff] }
 0x357   : > { %6217 = vmatpush1.bf16.msra.mxu0 %v6216_v54  ;;  %v1281_v54 = vld [vmem:[%s7560_s24 + $0x1f30] sm:$0xff]  ;;  %v1386_v6 = vld [vmem:[%s7560_s24 + $0x2278] sm:$0xff]  ;;  %v1375_v10 = vld [vmem:[%s7560_s24 + $0x2220] sm:$0xff] }
 0x358   : > { %6729 = vmatpush1.bf16.msra.mxu1 %v6728_v58  ;;  %6219 = vmatprep.subr.bf16.mxu0 %v6218_v59  ;;  %v6746_v58 = vpack.c.bf16 %v1290_v45, %v1282_v44  ;;  %v1289_v59 = vld [vmem:[%s7560_s24 + $0x1f70] sm:$0xff]  ;;  %v1343_v44 = vld [vmem:[%s7560_s24 + $0x2120] sm:$0xff]  ;;  %v1394_v18 = vld [vmem:[%s7560_s24 + $0x22b8] sm:$0xff] }
 0x359   : > { %6731 = vmatprep.subr.bf16.mxu1 %v6730_v1  ;;  %v1306_v1 = vld [vmem:[%s7560_s24 + $0x1ff8] sm:$0xff]  ;;  %v6748_v3 = vpack.c.bf16 %v1289_v59, %v1281_v54  ;;  %v1351_v45 = vld [vmem:[%s7560_s24 + $0x2160] sm:$0xff] }
 0x35a   : > { %v1370_v54 = vld [vmem:[%s7560_s24 + $0x21f8] sm:$0xff]  ;;  %v1383_v11 = vld [vmem:[%s7560_s24 + $0x2260] sm:$0xff] }
 0x35b   : > { %6221 = vmatpush1.bf16.msra.mxu0 %v6220_v7  ;;  %v1297_v7 = vld [vmem:[%s7560_s24 + $0x1fb0] sm:$0xff]  ;;  %v1402_v25 = vld [vmem:[%s7560_s24 + $0x22f8] sm:$0xff]  ;;  %v1391_v22 = vld [vmem:[%s7560_s24 + $0x22a0] sm:$0xff] }
 0x35c   : > { %6733 = vmatpush1.bf16.msra.mxu1 %v6732_v8  ;;  %6223 = vmatprep.subr.bf16.mxu0 %v6222_v9  ;;  %v6750_v8 = vpack.c.bf16 %v1306_v1, %v1298_v62  ;;  %v1305_v9 = vld [vmem:[%s7560_s24 + $0x1ff0] sm:$0xff]  ;;  %v1367_v62 = vld [vmem:[%s7560_s24 + $0x21e0] sm:$0xff]  ;;  %v1410_v0 = vld [vmem:[%s7560_s24 + $0x2338] sm:$0xff] }
 0x35d   : > { %6735 = vmatprep.subr.bf16.mxu1 %v6734_v13  ;;  %v1322_v13 = vld [vmem:[%s7560_s24 + $0x2078] sm:$0xff]  ;;  %v6752_v30 = vpack.c.bf16 %v1305_v9, %v1297_v7  ;;  %v1361_v1 = vld [vmem:[%s7560_s24 + $0x21b0] sm:$0xff]  ;;  %v6256_v7 = vpack.c.bf16 %v1367_v62, %v1359_v61  ;;  %v1399_v26 = vld [vmem:[%s7560_s24 + $0x22e0] sm:$0xff] }
 0x35e   : > { %v1418_v32 = vld [vmem:[%s7560_s24 + $0x2378] sm:$0xff]  ;;  %v1407_v35 = vld [vmem:[%s7560_s24 + $0x2320] sm:$0xff] }
 0x35f   : > { %6225 = vmatpush1.bf16.msra.mxu0 %v6224_v19  ;;  %v1313_v19 = vld [vmem:[%s7560_s24 + $0x2030] sm:$0xff]  ;;  %v1415_v40 = vld [vmem:[%s7560_s24 + $0x2360] sm:$0xff]  ;;  %v1442_v61 = vld [vmem:[%s7560_s24 + $0x2438] sm:$0xff] }
 0x360   : > { %6737 = vmatpush1.bf16.msra.mxu1 %v6736_v20  ;;  %6227 = vmatprep.subr.bf16.mxu0 %v6226_v21  ;;  %v6754_v20 = vpack.c.bf16 %v1322_v13, %v1314_v50  ;;  %v1321_v21 = vld [vmem:[%s7560_s24 + $0x2070] sm:$0xff]  ;;  %v6770_v13 = vpack.c.bf16 %v1386_v6, %v1378_v4  ;;  %v1423_v51 = vld [vmem:[%s7560_s24 + $0x23a0] sm:$0xff]  ;;  %v1450_v62 = vld [vmem:[%s7560_s24 + $0x2478] sm:$0xff] }
 0x361   : > { %6739 = vmatprep.subr.bf16.mxu1 %v6738_v24  ;;  %v1338_v24 = vld [vmem:[%s7560_s24 + $0x20f8] sm:$0xff]  ;;  %v6756_v28 = vpack.c.bf16 %v1321_v21, %v1313_v19  ;;  %v1377_v50 = vld [vmem:[%s7560_s24 + $0x2230] sm:$0xff]  ;;  %v6260_v19 = vpack.c.bf16 %v1383_v11, %v1375_v10  ;;  %v1431_v52 = vld [vmem:[%s7560_s24 + $0x23e0] sm:$0xff]  ;;  %v6786_v6 = vpack.c.bf16 %v1450_v62, %v1442_v61 }
 0x362   : > { %v1441_v4 = vld [vmem:[%s7560_s24 + $0x2430] sm:$0xff]  ;;  %v1458_v10 = vld [vmem:[%s7560_s24 + $0x24b8] sm:$0xff] }
 0x363   : > { %6229 = vmatpush1.bf16.msra.mxu0 %v6228_v34  ;;  %v1329_v34 = vld [vmem:[%s7560_s24 + $0x20b0] sm:$0xff]  ;;  %v1466_v11 = vld [vmem:[%s7560_s24 + $0x24f8] sm:$0xff] }
 0x364   : > { %6741 = vmatpush1.bf16.msra.mxu1 %v6740_v33  ;;  %6231 = vmatprep.subr.bf16.mxu0 %v6230_v17  ;;  %v6758_v33 = vpack.c.bf16 %v1338_v24, %v1330_v23  ;;  %v1337_v17 = vld [vmem:[%s7560_s24 + $0x20f0] sm:$0xff]  ;;  %v6774_v24 = vpack.c.bf16 %v1402_v25, %v1394_v18  ;;  %v6790_v25 = vpack.c.bf16 %v1466_v11, %v1458_v10 }
 0x365   : > { %6743 = vmatprep.subr.bf16.mxu1 %v6742_v37  ;;  %v1354_v37 = vld [vmem:[%s7560_s24 + $0x2178] sm:$0xff]  ;;  %v6760_v42 = vpack.c.bf16 %v1337_v17, %v1329_v34  ;;  %v1393_v23 = vld [vmem:[%s7560_s24 + $0x22b0] sm:$0xff]  ;;  %v6264_v34 = vpack.c.bf16 %v1399_v26, %v1391_v22 }
 0x366   : > { %v1457_v18 = vld [vmem:[%s7560_s24 + $0x24b0] sm:$0xff]  ;;  %v1474_v22 = vld [vmem:[%s7560_s24 + $0x2538] sm:$0xff] }
 0x367   : > { %6233 = vmatpush1.bf16.msra.mxu0 %v6232_v46  ;;  %v1345_v46 = vld [vmem:[%s7560_s24 + $0x2130] sm:$0xff]  ;;  %v1482_v26 = vld [vmem:[%s7560_s24 + $0x2578] sm:$0xff] }
 0x368   : > { %6745 = vmatpush1.bf16.msra.mxu1 %v6744_v48  ;;  %6235 = vmatprep.subr.bf16.mxu0 %v6234_v49  ;;  %v6762_v48 = vpack.c.bf16 %v1354_v37, %v1346_v41  ;;  %v1353_v49 = vld [vmem:[%s7560_s24 + $0x2170] sm:$0xff]  ;;  %v6778_v37 = vpack.c.bf16 %v1418_v32, %v1410_v0  ;;  %v6794_v32 = vpack.c.bf16 %v1482_v26, %v1474_v22 }
 0x369   : > { %6747 = vmatprep.subr.bf16.mxu1 %v6746_v58  ;;  %v6252_v58 = vpack.c.bf16 %v1351_v45, %v1343_v44  ;;  %v6764_v59 = vpack.c.bf16 %v1353_v49, %v1345_v46  ;;  %v1409_v41 = vld [vmem:[%s7560_s24 + $0x2330] sm:$0xff]  ;;  %v1426_v44 = vld [vmem:[%s7560_s24 + $0x23b8] sm:$0xff]  ;;  %v6268_v46 = vpack.c.bf16 %v1415_v40, %v1407_v35 }
 0x36a   : > { %v1434_v45 = vld [vmem:[%s7560_s24 + $0x23f8] sm:$0xff]  ;;  %v1473_v0 = vld [vmem:[%s7560_s24 + $0x2530] sm:$0xff] }
 0x36b   : > { %6237 = vmatpush1.bf16.msra.mxu0 %v6236_v2  ;;  %v1490_v35 = vld [vmem:[%s7560_s24 + $0x25b8] sm:$0xff]  ;;  %v1505_v61 = vld [vmem:[%s7560_s24 + $0x2630] sm:$0xff] }
 0x36c   : > { %6749 = vmatpush1.bf16.msra.mxu1 %v6748_v3  ;;  %6239 = vmatprep.subr.bf16.mxu0 %v6238_v56  ;;  %v1369_v3 = vld [vmem:[%s7560_s24 + $0x21f0] sm:$0xff]  ;;  %v1376_v56 = vld [vmem:[%s7560_s24 + $0x2228] sm:$0xff]  ;;  %v1498_v40 = vld [vmem:[%s7560_s24 + $0x25f8] sm:$0xff] }
 0x36d   : > { %6751 = vmatprep.subr.bf16.mxu1 %v6750_v8  ;;  %v6768_v8 = vpack.c.bf16 %v1369_v3, %v1361_v1  ;;  %v6272_v1 = vpack.c.bf16 %v1431_v52, %v1423_v51  ;;  %v1506_v51 = vld [vmem:[%s7560_s24 + $0x2638] sm:$0xff]  ;;  %v1521_v10 = vld [vmem:[%s7560_s24 + $0x26b0] sm:$0xff] }
 0x36e   : > { %v1514_v52 = vld [vmem:[%s7560_s24 + $0x2678] sm:$0xff]  ;;  %v1537_v22 = vld [vmem:[%s7560_s24 + $0x2730] sm:$0xff] }
 0x36f   : > { %6241 = vmatpush1.bf16.msra.mxu0 %v6240_v14  ;;  %v1385_v14 = vld [vmem:[%s7560_s24 + $0x2270] sm:$0xff]  ;;  %v6802_v62 = vpack.c.bf16 %v1514_v52, %v1506_v51 }
 0x370   : > { %6753 = vmatpush1.bf16.msra.mxu1 %v6752_v30  ;;  %6243 = vmatprep.subr.bf16.mxu0 %v6242_v16  ;;  %v1392_v30 = vld [vmem:[%s7560_s24 + $0x22a8] sm:$0xff]  ;;  %v1569_v51 = vld [vmem:[%s7560_s24 + $0x2830] sm:$0xff] }
 0x371   : > { %6755 = vmatprep.subr.bf16.mxu1 %v6754_v20  ;;  %v1400_v16 = vld [vmem:[%s7560_s24 + $0x22e8] sm:$0xff]  ;;  %v6772_v20 = vpack.c.bf16 %v1385_v14, %v1377_v50 }
 0x372   : > { %3833 = vmatmul.mubr.f32.vlgmr.msra.gmra.mrb[2].mxu0 %v8030_v15  ;;  %v6262_v21 = vpack.c.bf16 %v1400_v16, %v1392_v30  ;;  %v1455_v30 = vld [vmem:[%s7560_s24 + $0x24a0] sm:$0xff] }
 0x373   : > { %6245 = vmatpush1.bf16.msra.mxu0 %v6244_v27  ;;  %4401 = vmatmul.mubr.f32.vlgmr.msra.gmra.mrb[2].mxu1 %v8030_v15  ;;  %v1362_v15 = vld [vmem:[%s7560_s24 + $0x21b8] sm:$0xff]  ;;  %v1401_v27 = vld [vmem:[%s7560_s24 + $0x22f0] sm:$0xff]  ;;  %v1463_v16 = vld [vmem:[%s7560_s24 + $0x24e0] sm:$0xff] }
 0x374   : > { %6757 = vmatpush1.bf16.msra.mxu1 %v6756_v28  ;;  %6247 = vmatprep.subr.bf16.mxu0 %v6246_v29  ;;  %v6766_v2 = vpack.c.bf16 %v1370_v54, %v1362_v15  ;;  %v1408_v28 = vld [vmem:[%s7560_s24 + $0x2328] sm:$0xff]  ;;  %v1425_v15 = vld [vmem:[%s7560_s24 + $0x23b0] sm:$0xff]  ;;  %v6782_v54 = vpack.c.bf16 %v1434_v45, %v1426_v44  ;;  %v6798_v45 = vpack.c.bf16 %v1498_v40, %v1490_v35 }
 0x375   : > { %6759 = vmatprep.subr.bf16.mxu1 %v6758_v33  ;;  %3903 = vmatprep.mubr.f32.mxu0 %v8185_v5  ;;  %v1416_v29 = vld [vmem:[%s7560_s24 + $0x2368] sm:$0xff]  ;;  %v6776_v33 = vpack.c.bf16 %v1401_v27, %v1393_v23  ;;  %v6280_v23 = vpack.c.bf16 %v1463_v16, %v1455_v30  ;;  %v1489_v44 = vld [vmem:[%s7560_s24 + $0x25b0] sm:$0xff]  ;;  %v1538_v30 = vld [vmem:[%s7560_s24 + $0x2738] sm:$0xff] }
 0x376   : > { %4471 = vmatprep.mubr.f32.mxu1 %v8185_v5  ;;  %v1384_v5 = vld [vmem:[%s7560_s24 + $0x2268] sm:$0xff]  ;;  %v6266_v17 = vpack.c.bf16 %v1416_v29, %v1408_v28  ;;  %v1471_v28 = vld [vmem:[%s7560_s24 + $0x2520] sm:$0xff]  ;;  %v1546_v16 = vld [vmem:[%s7560_s24 + $0x2778] sm:$0xff] }
 0x377   : > { %6249 = vmatpush1.bf16.msra.mxu0 %v6248_v39  ;;  %v6258_v9 = vpack.c.bf16 %v1384_v5, %v1376_v56  ;;  %v1417_v39 = vld [vmem:[%s7560_s24 + $0x2370] sm:$0xff]  ;;  %v1439_v56 = vld [vmem:[%s7560_s24 + $0x2420] sm:$0xff]  ;;  %v6810_v26 = vpack.c.bf16 %v1546_v16, %v1538_v30 }
 0x378   : > { %6761 = vmatpush1.bf16.msra.mxu1 %v6760_v42  ;;  %6251 = vmatprep.subr.bf16.mxu0 %v6250_v43  ;;  %v1424_v42 = vld [vmem:[%s7560_s24 + $0x23a8] sm:$0xff]  ;;  %v1447_v5 = vld [vmem:[%s7560_s24 + $0x2460] sm:$0xff]  ;;  %v1553_v35 = vld [vmem:[%s7560_s24 + $0x27b0] sm:$0xff] }
 0x379   : > { %6763 = vmatprep.subr.bf16.mxu1 %v6762_v48  ;;  %v1432_v43 = vld [vmem:[%s7560_s24 + $0x23e8] sm:$0xff]  ;;  %v6780_v48 = vpack.c.bf16 %v1417_v39, %v1409_v41  ;;  %v6276_v50 = vpack.c.bf16 %v1447_v5, %v1439_v56  ;;  %v1479_v29 = vld [vmem:[%s7560_s24 + $0x2560] sm:$0xff]  ;;  %v1522_v56 = vld [vmem:[%s7560_s24 + $0x26b8] sm:$0xff] }
 0x37a   : > { %v6270_v49 = vpack.c.bf16 %v1432_v43, %v1424_v42  ;;  %v6284_v41 = vpack.c.bf16 %v1479_v29, %v1471_v28  ;;  %v1487_v42 = vld [vmem:[%s7560_s24 + $0x25a0] sm:$0xff]  ;;  %v1530_v5 = vld [vmem:[%s7560_s24 + $0x26f8] sm:$0xff]  ;;  %v1601_v30 = vld [vmem:[%s7560_s24 + $0x2930] sm:$0xff] }
 0x37b   : > { %6253 = vmatpush1.bf16.msra.mxu0 %v6252_v58  ;;  %v1433_v58 = vld [vmem:[%s7560_s24 + $0x23f0] sm:$0xff]  ;;  %v1495_v43 = vld [vmem:[%s7560_s24 + $0x25e0] sm:$0xff]  ;;  %v6806_v11 = vpack.c.bf16 %v1530_v5, %v1522_v56  ;;  %v1554_v28 = vld [vmem:[%s7560_s24 + $0x27b8] sm:$0xff] }
 0x37c   : > { %6765 = vmatpush1.bf16.msra.mxu1 %v6764_v59  ;;  %6255 = vmatprep.subr.bf16.mxu0 %v6254_v60  ;;  %v1440_v59 = vld [vmem:[%s7560_s24 + $0x2428] sm:$0xff]  ;;  %v1562_v29 = vld [vmem:[%s7560_s24 + $0x27f8] sm:$0xff]  ;;  %v1585_v56 = vld [vmem:[%s7560_s24 + $0x28b0] sm:$0xff] }
 0x37d   : > { %6767 = vmatprep.subr.bf16.mxu1 %v6766_v2  ;;  %v1448_v60 = vld [vmem:[%s7560_s24 + $0x2468] sm:$0xff]  ;;  %v6784_v2 = vpack.c.bf16 %v1433_v58, %v1425_v15  ;;  %v6288_v15 = vpack.c.bf16 %v1495_v43, %v1487_v42  ;;  %v6814_v40 = vpack.c.bf16 %v1562_v29, %v1554_v28  ;;  %v1570_v42 = vld [vmem:[%s7560_s24 + $0x2838] sm:$0xff]  ;;  %v1625_v29 = vld [vmem:[%s7560_s24 + $0x29f0] sm:$0xff] }
 0x37e   : > { %v6274_v3 = vpack.c.bf16 %v1448_v60, %v1440_v59  ;;  %v1503_v59 = vld [vmem:[%s7560_s24 + $0x2620] sm:$0xff]  ;;  %v1578_v43 = vld [vmem:[%s7560_s24 + $0x2878] sm:$0xff] }
 0x37f   : > { %6257 = vmatpush1.bf16.msra.mxu0 %v6256_v7  ;;  %v1449_v7 = vld [vmem:[%s7560_s24 + $0x2470] sm:$0xff]  ;;  %v1511_v60 = vld [vmem:[%s7560_s24 + $0x2660] sm:$0xff]  ;;  %v6818_v52 = vpack.c.bf16 %v1578_v43, %v1570_v42  ;;  %v1648_v43 = vld [vmem:[%s7560_s24 + $0x2aa8] sm:$0xff] }
 0x380   : > { %6769 = vmatpush1.bf16.msra.mxu1 %v6768_v8  ;;  %6259 = vmatprep.subr.bf16.mxu0 %v6258_v9  ;;  %v1456_v8 = vld [vmem:[%s7560_s24 + $0x24a8] sm:$0xff]  ;;  %v1641_v42 = vld [vmem:[%s7560_s24 + $0x2a70] sm:$0xff] }
 0x381   : > { %6771 = vmatprep.subr.bf16.mxu1 %v6770_v13  ;;  %v1464_v9 = vld [vmem:[%s7560_s24 + $0x24e8] sm:$0xff]  ;;  %v6788_v13 = vpack.c.bf16 %v1449_v7, %v1441_v4  ;;  %v6292_v4 = vpack.c.bf16 %v1511_v60, %v1503_v59  ;;  %v1586_v59 = vld [vmem:[%s7560_s24 + $0x28b8] sm:$0xff] }
 0x382   : > { %v6278_v14 = vpack.c.bf16 %v1464_v9, %v1456_v8  ;;  %v1519_v8 = vld [vmem:[%s7560_s24 + $0x26a0] sm:$0xff]  ;;  %v1594_v60 = vld [vmem:[%s7560_s24 + $0x28f8] sm:$0xff] }
 0x383   : > { %6261 = vmatpush1.bf16.msra.mxu0 %v6260_v19  ;;  %v1465_v19 = vld [vmem:[%s7560_s24 + $0x24f0] sm:$0xff]  ;;  %v1527_v9 = vld [vmem:[%s7560_s24 + $0x26e0] sm:$0xff]  ;;  %v6822_v5 = vpack.c.bf16 %v1594_v60, %v1586_v59  ;;  %v1664_v60 = vld [vmem:[%s7560_s24 + $0x2b28] sm:$0xff] }
 0x384   : > { %6773 = vmatpush1.bf16.msra.mxu1 %v6772_v20  ;;  %6263 = vmatprep.subr.bf16.mxu0 %v6262_v21  ;;  %v1472_v20 = vld [vmem:[%s7560_s24 + $0x2528] sm:$0xff]  ;;  %v1657_v59 = vld [vmem:[%s7560_s24 + $0x2af0] sm:$0xff] }
 0x385   : > { %6775 = vmatprep.subr.bf16.mxu1 %v6774_v24  ;;  %v1480_v21 = vld [vmem:[%s7560_s24 + $0x2568] sm:$0xff]  ;;  %v6792_v24 = vpack.c.bf16 %v1465_v19, %v1457_v18  ;;  %v6296_v18 = vpack.c.bf16 %v1527_v9, %v1519_v8  ;;  %v1602_v8 = vld [vmem:[%s7560_s24 + $0x2938] sm:$0xff] }
 0x386   : > { %v6282_v27 = vpack.c.bf16 %v1480_v21, %v1472_v20  ;;  %v1535_v20 = vld [vmem:[%s7560_s24 + $0x2720] sm:$0xff]  ;;  %v1610_v9 = vld [vmem:[%s7560_s24 + $0x2978] sm:$0xff] }
 0x387   : > { %6265 = vmatpush1.bf16.msra.mxu0 %v6264_v34  ;;  %v1481_v34 = vld [vmem:[%s7560_s24 + $0x2570] sm:$0xff]  ;;  %v1543_v21 = vld [vmem:[%s7560_s24 + $0x2760] sm:$0xff]  ;;  %v6826_v16 = vpack.c.bf16 %v1610_v9, %v1602_v8  ;;  %v1680_v9 = vld [vmem:[%s7560_s24 + $0x2ba8] sm:$0xff] }
 0x388   : > { %6777 = vmatpush1.bf16.msra.mxu1 %v6776_v33  ;;  %6267 = vmatprep.subr.bf16.mxu0 %v6266_v17  ;;  %v1488_v33 = vld [vmem:[%s7560_s24 + $0x25a8] sm:$0xff]  ;;  %v1673_v8 = vld [vmem:[%s7560_s24 + $0x2b70] sm:$0xff] }
 0x389   : > { %6779 = vmatprep.subr.bf16.mxu1 %v6778_v37  ;;  %v1496_v17 = vld [vmem:[%s7560_s24 + $0x25e8] sm:$0xff]  ;;  %v6796_v37 = vpack.c.bf16 %v1481_v34, %v1473_v0  ;;  %v6300_v0 = vpack.c.bf16 %v1543_v21, %v1535_v20  ;;  %v1626_v20 = vld [vmem:[%s7560_s24 + $0x29f8] sm:$0xff] }
 0x38a   : > { %v6286_v39 = vpack.c.bf16 %v1496_v17, %v1488_v33  ;;  %v1551_v33 = vld [vmem:[%s7560_s24 + $0x27a0] sm:$0xff] }
 0x38b   : > { %6269 = vmatpush1.bf16.msra.mxu0 %v6268_v46  ;;  %v1497_v46 = vld [vmem:[%s7560_s24 + $0x25f0] sm:$0xff]  ;;  %v1559_v17 = vld [vmem:[%s7560_s24 + $0x27e0] sm:$0xff] }
 0x38c   : > { %6781 = vmatpush1.bf16.msra.mxu1 %v6780_v48  ;;  %6271 = vmatprep.subr.bf16.mxu0 %v6270_v49  ;;  %v1504_v48 = vld [vmem:[%s7560_s24 + $0x2628] sm:$0xff] }
 0x38d   : > { %6783 = vmatprep.subr.bf16.mxu1 %v6782_v54  ;;  %v1512_v49 = vld [vmem:[%s7560_s24 + $0x2668] sm:$0xff]  ;;  %v6800_v54 = vpack.c.bf16 %v1497_v46, %v1489_v44  ;;  %v6304_v44 = vpack.c.bf16 %v1559_v17, %v1551_v33 }
 0x38e   : > { %v6290_v58 = vpack.c.bf16 %v1512_v49, %v1504_v48  ;;  %v1567_v48 = vld [vmem:[%s7560_s24 + $0x2820] sm:$0xff] }
 0x38f   : > { %6273 = vmatpush1.bf16.msra.mxu0 %v6272_v1  ;;  %v1513_v1 = vld [vmem:[%s7560_s24 + $0x2670] sm:$0xff]  ;;  %v1575_v49 = vld [vmem:[%s7560_s24 + $0x2860] sm:$0xff] }
 0x390   : > { %6785 = vmatpush1.bf16.msra.mxu1 %v6784_v2  ;;  %6275 = vmatprep.subr.bf16.mxu0 %v6274_v3  ;;  %v1520_v2 = vld [vmem:[%s7560_s24 + $0x26a8] sm:$0xff] }
 0x391   : > { %6787 = vmatprep.subr.bf16.mxu1 %v6786_v6  ;;  %v1528_v3 = vld [vmem:[%s7560_s24 + $0x26e8] sm:$0xff]  ;;  %v6804_v6 = vpack.c.bf16 %v1513_v1, %v1505_v61  ;;  %v6308_v61 = vpack.c.bf16 %v1575_v49, %v1567_v48 }
 0x392   : > { %v6294_v7 = vpack.c.bf16 %v1528_v3, %v1520_v2  ;;  %v1583_v2 = vld [vmem:[%s7560_s24 + $0x28a0] sm:$0xff] }
 0x393   : > { %6277 = vmatpush1.bf16.msra.mxu0 %v6276_v50  ;;  %v1529_v50 = vld [vmem:[%s7560_s24 + $0x26f0] sm:$0xff]  ;;  %v1591_v3 = vld [vmem:[%s7560_s24 + $0x28e0] sm:$0xff] }
 0x394   : > { %6789 = vmatpush1.bf16.msra.mxu1 %v6788_v13  ;;  %6279 = vmatprep.subr.bf16.mxu0 %v6278_v14  ;;  %v1536_v13 = vld [vmem:[%s7560_s24 + $0x2728] sm:$0xff] }
 0x395   : > { %6791 = vmatprep.subr.bf16.mxu1 %v6790_v25  ;;  %v1544_v14 = vld [vmem:[%s7560_s24 + $0x2768] sm:$0xff]  ;;  %v6808_v25 = vpack.c.bf16 %v1529_v50, %v1521_v10  ;;  %v6312_v10 = vpack.c.bf16 %v1591_v3, %v1583_v2 }
 0x396   : > { %v6298_v19 = vpack.c.bf16 %v1544_v14, %v1536_v13  ;;  %v1599_v13 = vld [vmem:[%s7560_s24 + $0x2920] sm:$0xff] }
 0x397   : > { %6281 = vmatpush1.bf16.msra.mxu0 %v6280_v23  ;;  %v1545_v23 = vld [vmem:[%s7560_s24 + $0x2770] sm:$0xff]  ;;  %v1607_v14 = vld [vmem:[%s7560_s24 + $0x2960] sm:$0xff] }
 0x398   : > { %6793 = vmatpush1.bf16.msra.mxu1 %v6792_v24  ;;  %6283 = vmatprep.subr.bf16.mxu0 %v6282_v27  ;;  %v1552_v24 = vld [vmem:[%s7560_s24 + $0x27a8] sm:$0xff]  ;;  %v6316_v21 = vpack.c.bf16 %v1607_v14, %v1599_v13 }
 0x399   : > { %6795 = vmatprep.subr.bf16.mxu1 %v6794_v32  ;;  %v1560_v27 = vld [vmem:[%s7560_s24 + $0x27e8] sm:$0xff]  ;;  %v6812_v32 = vpack.c.bf16 %v1545_v23, %v1537_v22  ;;  %v1615_v23 = vld [vmem:[%s7560_s24 + $0x29a0] sm:$0xff] }
 0x39a   : > { %v6302_v34 = vpack.c.bf16 %v1560_v27, %v1552_v24  ;;  %v1623_v24 = vld [vmem:[%s7560_s24 + $0x29e0] sm:$0xff]  ;;  %v1617_v27 = vld [vmem:[%s7560_s24 + $0x29b0] sm:$0xff] }
 0x39b   : > { %6285 = vmatpush1.bf16.msra.mxu0 %v6284_v41  ;;  %v1561_v41 = vld [vmem:[%s7560_s24 + $0x27f0] sm:$0xff]  ;;  %v6320_v33 = vpack.c.bf16 %v1623_v24, %v1615_v23  ;;  %v6832_v17 = vpack.c.bf16 %v1625_v29, %v1617_v27  ;;  %v1703_v29 = vld [vmem:[%s7560_s24 + $0x2c60] sm:$0xff] }
 0x39c   : > { %6797 = vmatpush1.bf16.msra.mxu1 %v6796_v37  ;;  %6287 = vmatprep.subr.bf16.mxu0 %v6286_v39  ;;  %v1568_v37 = vld [vmem:[%s7560_s24 + $0x2828] sm:$0xff] }
 0x39d   : > { %6799 = vmatprep.subr.bf16.mxu1 %v6798_v45  ;;  %v1576_v39 = vld [vmem:[%s7560_s24 + $0x2868] sm:$0xff]  ;;  %v6816_v45 = vpack.c.bf16 %v1561_v41, %v1553_v35  ;;  %v1639_v41 = vld [vmem:[%s7560_s24 + $0x2a60] sm:$0xff] }
 0x39e   : > { %v6306_v46 = vpack.c.bf16 %v1576_v39, %v1568_v37  ;;  %v1633_v37 = vld [vmem:[%s7560_s24 + $0x2a30] sm:$0xff] }
 0x39f   : > { %6289 = vmatpush1.bf16.msra.mxu0 %v6288_v15  ;;  %v1577_v15 = vld [vmem:[%s7560_s24 + $0x2870] sm:$0xff]  ;;  %v6836_v49 = vpack.c.bf16 %v1641_v42, %v1633_v37  ;;  %v1719_v42 = vld [vmem:[%s7560_s24 + $0x2ce0] sm:$0xff] }
 0x3a0   : > { %6801 = vmatpush1.bf16.msra.mxu1 %v6800_v54  ;;  %6291 = vmatprep.subr.bf16.mxu0 %v6290_v58  ;;  %v1584_v54 = vld [vmem:[%s7560_s24 + $0x28a8] sm:$0xff] }
 0x3a1   : > { %6803 = vmatprep.subr.bf16.mxu1 %v6802_v62  ;;  %v1592_v58 = vld [vmem:[%s7560_s24 + $0x28e8] sm:$0xff]  ;;  %v6820_v62 = vpack.c.bf16 %v1577_v15, %v1569_v51  ;;  %v1655_v15 = vld [vmem:[%s7560_s24 + $0x2ae0] sm:$0xff] }
 0x3a2   : > { %v6310_v1 = vpack.c.bf16 %v1592_v58, %v1584_v54  ;;  %v1649_v54 = vld [vmem:[%s7560_s24 + $0x2ab0] sm:$0xff] }
 0x3a3   : > { %6293 = vmatpush1.bf16.msra.mxu0 %v6292_v4  ;;  %v1593_v4 = vld [vmem:[%s7560_s24 + $0x28f0] sm:$0xff]  ;;  %v6840_v3 = vpack.c.bf16 %v1657_v59, %v1649_v54  ;;  %v1735_v59 = vld [vmem:[%s7560_s24 + $0x2d60] sm:$0xff] }
 0x3a4   : > { %6805 = vmatpush1.bf16.msra.mxu1 %v6804_v6  ;;  %6295 = vmatprep.subr.bf16.mxu0 %v6294_v7  ;;  %v1600_v6 = vld [vmem:[%s7560_s24 + $0x2928] sm:$0xff] }
 0x3a5   : > { %6807 = vmatprep.subr.bf16.mxu1 %v6806_v11  ;;  %v1608_v7 = vld [vmem:[%s7560_s24 + $0x2968] sm:$0xff]  ;;  %v6824_v11 = vpack.c.bf16 %v1593_v4, %v1585_v56  ;;  %v1671_v4 = vld [vmem:[%s7560_s24 + $0x2b60] sm:$0xff] }
 0x3a6   : > { %v6314_v50 = vpack.c.bf16 %v1608_v7, %v1600_v6  ;;  %v1665_v6 = vld [vmem:[%s7560_s24 + $0x2b30] sm:$0xff] }
 0x3a7   : > { %6297 = vmatpush1.bf16.msra.mxu0 %v6296_v18  ;;  %v1609_v18 = vld [vmem:[%s7560_s24 + $0x2970] sm:$0xff]  ;;  %v6844_v14 = vpack.c.bf16 %v1673_v8, %v1665_v6  ;;  %v1751_v8 = vld [vmem:[%s7560_s24 + $0x2de0] sm:$0xff] }
 0x3a8   : > { %6809 = vmatpush1.bf16.msra.mxu1 %v6808_v25  ;;  %6299 = vmatprep.subr.bf16.mxu0 %v6298_v19  ;;  %v1616_v25 = vld [vmem:[%s7560_s24 + $0x29a8] sm:$0xff]  ;;  %v6828_v22 = vpack.c.bf16 %v1609_v18, %v1601_v30  ;;  %v1687_v18 = vld [vmem:[%s7560_s24 + $0x2be0] sm:$0xff] }
 0x3a9   : > { %6811 = vmatprep.subr.bf16.mxu1 %v6810_v26  ;;  %v1624_v19 = vld [vmem:[%s7560_s24 + $0x29e8] sm:$0xff] }
 0x3aa   : > { %v6318_v26 = vpack.c.bf16 %v1624_v19, %v1616_v25  ;;  %v1681_v25 = vld [vmem:[%s7560_s24 + $0x2bb0] sm:$0xff] }
 0x3ab   : > { %6301 = vmatpush1.bf16.msra.mxu0 %v6300_v0  ;;  %v1632_v0 = vld [vmem:[%s7560_s24 + $0x2a28] sm:$0xff] }
 0x3ac   : > { %6813 = vmatpush1.bf16.msra.mxu1 %v6812_v32  ;;  %6303 = vmatprep.subr.bf16.mxu0 %v6302_v34  ;;  %v1634_v32 = vld [vmem:[%s7560_s24 + $0x2a38] sm:$0xff] }
 0x3ad   : > { %6815 = vmatprep.subr.bf16.mxu1 %v6814_v40  ;;  %v1642_v34 = vld [vmem:[%s7560_s24 + $0x2a78] sm:$0xff]  ;;  %v1631_v40 = vld [vmem:[%s7560_s24 + $0x2a20] sm:$0xff] }
 0x3ae   : > { %v6834_v39 = vpack.c.bf16 %v1642_v34, %v1634_v32  ;;  %v6324_v48 = vpack.c.bf16 %v1639_v41, %v1631_v40  ;;  %v1705_v32 = vld [vmem:[%s7560_s24 + $0x2c70] sm:$0xff]  ;;  %v1712_v34 = vld [vmem:[%s7560_s24 + $0x2ca8] sm:$0xff] }
 0x3af   : > { %6305 = vmatpush1.bf16.msra.mxu0 %v6304_v44  ;;  %v1656_v44 = vld [vmem:[%s7560_s24 + $0x2ae8] sm:$0xff] }
 0x3b0   : > { %6817 = vmatpush1.bf16.msra.mxu1 %v6816_v45  ;;  %6307 = vmatprep.subr.bf16.mxu0 %v6306_v46  ;;  %v1650_v45 = vld [vmem:[%s7560_s24 + $0x2ab8] sm:$0xff]  ;;  %v6326_v51 = vpack.c.bf16 %v1656_v44, %v1648_v43  ;;  %v1713_v43 = vld [vmem:[%s7560_s24 + $0x2cb0] sm:$0xff] }
 0x3b1   : > { %6819 = vmatprep.subr.bf16.mxu1 %v6818_v52  ;;  %v1658_v46 = vld [vmem:[%s7560_s24 + $0x2af8] sm:$0xff]  ;;  %v1647_v52 = vld [vmem:[%s7560_s24 + $0x2aa0] sm:$0xff] }
 0x3b2   : > { %3904 = vmatmul.mubr.f32.vlgmr.msra.gmra.mrb[2].mxu0 %v8173_v53  ;;  %v6838_v58 = vpack.c.bf16 %v1658_v46, %v1650_v45  ;;  %v6328_v2 = vpack.c.bf16 %v1655_v15, %v1647_v52  ;;  %v1721_v45 = vld [vmem:[%s7560_s24 + $0x2cf0] sm:$0xff]  ;;  %v1728_v46 = vld [vmem:[%s7560_s24 + $0x2d28] sm:$0xff] }
 0x3b3   : > { %6309 = vmatpush1.bf16.msra.mxu0 %v6308_v61  ;;  %4472 = vmatmul.mubr.f32.vlgmr.msra.gmra.mrb[2].mxu1 %v8173_v53  ;;  %v1618_v53 = vld [vmem:[%s7560_s24 + $0x29b8] sm:$0xff]  ;;  %v1672_v61 = vld [vmem:[%s7560_s24 + $0x2b68] sm:$0xff]  ;;  %v6856_v15 = vpack.c.bf16 %v1721_v45, %v1713_v43  ;;  %v1799_v45 = vld [vmem:[%s7560_s24 + $0x2f60] sm:$0xff] }
 0x3b4   : > { %6821 = vmatpush1.bf16.msra.mxu1 %v6820_v62  ;;  %6311 = vmatprep.subr.bf16.mxu0 %v6310_v1  ;;  %v6830_v28 = vpack.c.bf16 %v1626_v20, %v1618_v53  ;;  %v1666_v62 = vld [vmem:[%s7560_s24 + $0x2b38] sm:$0xff]  ;;  %v6330_v56 = vpack.c.bf16 %v1672_v61, %v1664_v60  ;;  %v1689_v53 = vld [vmem:[%s7560_s24 + $0x2bf0] sm:$0xff]  ;;  %v1696_v20 = vld [vmem:[%s7560_s24 + $0x2c28] sm:$0xff] }
 0x3b5   : > { %6823 = vmatprep.subr.bf16.mxu1 %v6822_v5  ;;  %3974 = vmatprep.mubr.f32.mxu0 %v8326_v55  ;;  %v1674_v1 = vld [vmem:[%s7560_s24 + $0x2b78] sm:$0xff]  ;;  %v1663_v5 = vld [vmem:[%s7560_s24 + $0x2b20] sm:$0xff]  ;;  %v6848_v24 = vpack.c.bf16 %v1689_v53, %v1681_v25  ;;  %v1729_v60 = vld [vmem:[%s7560_s24 + $0x2d30] sm:$0xff] }
 0x3b6   : > { %4542 = vmatprep.mubr.f32.mxu1 %v8326_v55  ;;  %v1640_v55 = vld [vmem:[%s7560_s24 + $0x2a68] sm:$0xff]  ;;  %v6842_v7 = vpack.c.bf16 %v1674_v1, %v1666_v62  ;;  %v6332_v13 = vpack.c.bf16 %v1671_v4, %v1663_v5  ;;  %v1737_v62 = vld [vmem:[%s7560_s24 + $0x2d70] sm:$0xff]  ;;  %v1767_v53 = vld [vmem:[%s7560_s24 + $0x2e60] sm:$0xff] }
 0x3b7   : > { %6313 = vmatpush1.bf16.msra.mxu0 %v6312_v10  ;;  %v6322_v35 = vpack.c.bf16 %v1640_v55, %v1632_v0  ;;  %v1688_v10 = vld [vmem:[%s7560_s24 + $0x2be8] sm:$0xff]  ;;  %v1697_v0 = vld [vmem:[%s7560_s24 + $0x2c30] sm:$0xff]  ;;  %v6860_v4 = vpack.c.bf16 %v1737_v62, %v1729_v60  ;;  %v1815_v62 = vld [vmem:[%s7560_s24 + $0x2fe0] sm:$0xff] }
 0x3b8   : > { %6825 = vmatpush1.bf16.msra.mxu1 %v6824_v11  ;;  %6315 = vmatprep.subr.bf16.mxu0 %v6314_v50  ;;  %v1682_v11 = vld [vmem:[%s7560_s24 + $0x2bb8] sm:$0xff]  ;;  %v6334_v30 = vpack.c.bf16 %v1688_v10, %v1680_v9  ;;  %v6852_v41 = vpack.c.bf16 %v1705_v32, %v1697_v0  ;;  %v1744_v1 = vld [vmem:[%s7560_s24 + $0x2da8] sm:$0xff]  ;;  %v1745_v9 = vld [vmem:[%s7560_s24 + $0x2db0] sm:$0xff] }
 0x3b9   : > { %6827 = vmatprep.subr.bf16.mxu1 %v6826_v16  ;;  %v1690_v50 = vld [vmem:[%s7560_s24 + $0x2bf8] sm:$0xff]  ;;  %v1679_v16 = vld [vmem:[%s7560_s24 + $0x2ba0] sm:$0xff] }
 0x3ba   : > { %v6846_v19 = vpack.c.bf16 %v1690_v50, %v1682_v11  ;;  %v6336_v23 = vpack.c.bf16 %v1687_v18, %v1679_v16  ;;  %v1753_v11 = vld [vmem:[%s7560_s24 + $0x2df0] sm:$0xff]  ;;  %v1760_v50 = vld [vmem:[%s7560_s24 + $0x2e28] sm:$0xff]  ;;  %v1783_v32 = vld [vmem:[%s7560_s24 + $0x2ee0] sm:$0xff] }
 0x3bb   : > { %6317 = vmatpush1.bf16.msra.mxu0 %v6316_v21  ;;  %v1704_v21 = vld [vmem:[%s7560_s24 + $0x2c68] sm:$0xff]  ;;  %v6864_v18 = vpack.c.bf16 %v1753_v11, %v1745_v9  ;;  %v1831_v11 = vld [vmem:[%s7560_s24 + $0x3060] sm:$0xff] }
 0x3bc   : > { %6829 = vmatpush1.bf16.msra.mxu1 %v6828_v22  ;;  %6319 = vmatprep.subr.bf16.mxu0 %v6318_v26  ;;  %v1698_v22 = vld [vmem:[%s7560_s24 + $0x2c38] sm:$0xff]  ;;  %v6338_v27 = vpack.c.bf16 %v1704_v21, %v1696_v20  ;;  %v1761_v20 = vld [vmem:[%s7560_s24 + $0x2e30] sm:$0xff] }
 0x3bd   : > { %6831 = vmatprep.subr.bf16.mxu1 %v6830_v28  ;;  %v1706_v26 = vld [vmem:[%s7560_s24 + $0x2c78] sm:$0xff]  ;;  %v1695_v28 = vld [vmem:[%s7560_s24 + $0x2c20] sm:$0xff] }
 0x3be   : > { %v6850_v55 = vpack.c.bf16 %v1706_v26, %v1698_v22  ;;  %v6340_v40 = vpack.c.bf16 %v1703_v29, %v1695_v28  ;;  %v1769_v22 = vld [vmem:[%s7560_s24 + $0x2e70] sm:$0xff]  ;;  %v1776_v26 = vld [vmem:[%s7560_s24 + $0x2ea8] sm:$0xff] }
 0x3bf   : > { %6321 = vmatpush1.bf16.msra.mxu0 %v6320_v33  ;;  %v1720_v33 = vld [vmem:[%s7560_s24 + $0x2ce8] sm:$0xff]  ;;  %v6868_v29 = vpack.c.bf16 %v1769_v22, %v1761_v20  ;;  %v1847_v22 = vld [vmem:[%s7560_s24 + $0x30e0] sm:$0xff] }
 0x3c0   : > { %6833 = vmatpush1.bf16.msra.mxu1 %v6832_v17  ;;  %6323 = vmatprep.subr.bf16.mxu0 %v6322_v35  ;;  %v1714_v17 = vld [vmem:[%s7560_s24 + $0x2cb8] sm:$0xff]  ;;  %v6342_v37 = vpack.c.bf16 %v1720_v33, %v1712_v34  ;;  %v1777_v34 = vld [vmem:[%s7560_s24 + $0x2eb0] sm:$0xff] }
 0x3c1   : > { %6835 = vmatprep.subr.bf16.mxu1 %v6834_v39  ;;  %v1722_v35 = vld [vmem:[%s7560_s24 + $0x2cf8] sm:$0xff]  ;;  %v1711_v39 = vld [vmem:[%s7560_s24 + $0x2ca0] sm:$0xff] }
 0x3c2   : > { %v6854_v44 = vpack.c.bf16 %v1722_v35, %v1714_v17  ;;  %v6344_v52 = vpack.c.bf16 %v1719_v42, %v1711_v39  ;;  %v1785_v17 = vld [vmem:[%s7560_s24 + $0x2ef0] sm:$0xff]  ;;  %v1792_v35 = vld [vmem:[%s7560_s24 + $0x2f28] sm:$0xff] }
 0x3c3   : > { %6325 = vmatpush1.bf16.msra.mxu0 %v6324_v48  ;;  %v1736_v48 = vld [vmem:[%s7560_s24 + $0x2d68] sm:$0xff]  ;;  %v6872_v42 = vpack.c.bf16 %v1785_v17, %v1777_v34  ;;  %v1863_v17 = vld [vmem:[%s7560_s24 + $0x3160] sm:$0xff] }
 0x3c4   : > { %6837 = vmatpush1.bf16.msra.mxu1 %v6836_v49  ;;  %6327 = vmatprep.subr.bf16.mxu0 %v6326_v51  ;;  %v1730_v49 = vld [vmem:[%s7560_s24 + $0x2d38] sm:$0xff]  ;;  %v6346_v54 = vpack.c.bf16 %v1736_v48, %v1728_v46  ;;  %v1793_v46 = vld [vmem:[%s7560_s24 + $0x2f30] sm:$0xff] }
 0x3c5   : > { %6839 = vmatprep.subr.bf16.mxu1 %v6838_v58  ;;  %v1738_v51 = vld [vmem:[%s7560_s24 + $0x2d78] sm:$0xff]  ;;  %v1727_v58 = vld [vmem:[%s7560_s24 + $0x2d20] sm:$0xff] }
 0x3c6   : > { %v6858_v61 = vpack.c.bf16 %v1738_v51, %v1730_v49  ;;  %v6348_v5 = vpack.c.bf16 %v1735_v59, %v1727_v58  ;;  %v1801_v49 = vld [vmem:[%s7560_s24 + $0x2f70] sm:$0xff]  ;;  %v1808_v51 = vld [vmem:[%s7560_s24 + $0x2fa8] sm:$0xff] }
 0x3c7   : > { %6329 = vmatpush1.bf16.msra.mxu0 %v6328_v2  ;;  %v1752_v2 = vld [vmem:[%s7560_s24 + $0x2de8] sm:$0xff]  ;;  %v6876_v59 = vpack.c.bf16 %v1801_v49, %v1793_v46  ;;  %v1871_v46 = vld [vmem:[%s7560_s24 + $0x31a0] sm:$0xff]  ;;  %v1873_v49 = vld [vmem:[%s7560_s24 + $0x31b0] sm:$0xff] }
 0x3c8   : > { %6841 = vmatpush1.bf16.msra.mxu1 %v6840_v3  ;;  %6331 = vmatprep.subr.bf16.mxu0 %v6330_v56  ;;  %v1746_v3 = vld [vmem:[%s7560_s24 + $0x2db8] sm:$0xff]  ;;  %v6350_v6 = vpack.c.bf16 %v1752_v2, %v1744_v1  ;;  %v1809_v1 = vld [vmem:[%s7560_s24 + $0x2fb0] sm:$0xff] }
 0x3c9   : > { %6843 = vmatprep.subr.bf16.mxu1 %v6842_v7  ;;  %v1754_v56 = vld [vmem:[%s7560_s24 + $0x2df8] sm:$0xff]  ;;  %v1743_v7 = vld [vmem:[%s7560_s24 + $0x2da0] sm:$0xff] }
 0x3ca   : > { %v6862_v10 = vpack.c.bf16 %v1754_v56, %v1746_v3  ;;  %v6352_v16 = vpack.c.bf16 %v1751_v8, %v1743_v7  ;;  %v1817_v3 = vld [vmem:[%s7560_s24 + $0x2ff0] sm:$0xff]  ;;  %v1824_v56 = vld [vmem:[%s7560_s24 + $0x3028] sm:$0xff] }
 0x3cb   : > { %6333 = vmatpush1.bf16.msra.mxu0 %v6332_v13  ;;  %v1768_v13 = vld [vmem:[%s7560_s24 + $0x2e68] sm:$0xff]  ;;  %v6880_v8 = vpack.c.bf16 %v1817_v3, %v1809_v1  ;;  %v1895_v1 = vld [vmem:[%s7560_s24 + $0x3260] sm:$0xff] }
 0x3cc   : > { %6845 = vmatpush1.bf16.msra.mxu1 %v6844_v14  ;;  %6335 = vmatprep.subr.bf16.mxu0 %v6334_v30  ;;  %v1762_v14 = vld [vmem:[%s7560_s24 + $0x2e38] sm:$0xff]  ;;  %v6354_v25 = vpack.c.bf16 %v1768_v13, %v1760_v50  ;;  %v1825_v50 = vld [vmem:[%s7560_s24 + $0x3030] sm:$0xff] }
 0x3cd   : > { %6847 = vmatprep.subr.bf16.mxu1 %v6846_v19  ;;  %v1770_v30 = vld [vmem:[%s7560_s24 + $0x2e78] sm:$0xff]  ;;  %v1759_v19 = vld [vmem:[%s7560_s24 + $0x2e20] sm:$0xff] }
 0x3ce   : > { %v6866_v21 = vpack.c.bf16 %v1770_v30, %v1762_v14  ;;  %v6356_v28 = vpack.c.bf16 %v1767_v53, %v1759_v19  ;;  %v1833_v14 = vld [vmem:[%s7560_s24 + $0x3070] sm:$0xff]  ;;  %v1840_v30 = vld [vmem:[%s7560_s24 + $0x30a8] sm:$0xff] }
 0x3cf   : > { %6337 = vmatpush1.bf16.msra.mxu0 %v6336_v23  ;;  %v1784_v23 = vld [vmem:[%s7560_s24 + $0x2ee8] sm:$0xff]  ;;  %v6884_v53 = vpack.c.bf16 %v1833_v14, %v1825_v50  ;;  %v1911_v50 = vld [vmem:[%s7560_s24 + $0x32e0] sm:$0xff] }
 0x3d0   : > { %6849 = vmatpush1.bf16.msra.mxu1 %v6848_v24  ;;  %6339 = vmatprep.subr.bf16.mxu0 %v6338_v27  ;;  %v1778_v24 = vld [vmem:[%s7560_s24 + $0x2eb8] sm:$0xff]  ;;  %v6358_v0 = vpack.c.bf16 %v1784_v23, %v1776_v26  ;;  %v1841_v26 = vld [vmem:[%s7560_s24 + $0x30b0] sm:$0xff] }
 0x3d1   : > { %6851 = vmatprep.subr.bf16.mxu1 %v6850_v55  ;;  %v1786_v27 = vld [vmem:[%s7560_s24 + $0x2ef8] sm:$0xff]  ;;  %v1775_v55 = vld [vmem:[%s7560_s24 + $0x2ea0] sm:$0xff] }
 0x3d2   : > { %v6870_v33 = vpack.c.bf16 %v1786_v27, %v1778_v24  ;;  %v6360_v39 = vpack.c.bf16 %v1783_v32, %v1775_v55  ;;  %v1849_v24 = vld [vmem:[%s7560_s24 + $0x30f0] sm:$0xff]  ;;  %v1856_v27 = vld [vmem:[%s7560_s24 + $0x3128] sm:$0xff] }
 0x3d3   : > { %6341 = vmatpush1.bf16.msra.mxu0 %v6340_v40  ;;  %v1800_v40 = vld [vmem:[%s7560_s24 + $0x2f68] sm:$0xff]  ;;  %v6888_v32 = vpack.c.bf16 %v1849_v24, %v1841_v26  ;;  %v1927_v26 = vld [vmem:[%s7560_s24 + $0x3360] sm:$0xff] }
 0x3d4   : > { %6853 = vmatpush1.bf16.msra.mxu1 %v6852_v41  ;;  %6343 = vmatprep.subr.bf16.mxu0 %v6342_v37  ;;  %v1794_v41 = vld [vmem:[%s7560_s24 + $0x2f38] sm:$0xff]  ;;  %v6362_v43 = vpack.c.bf16 %v1800_v40, %v1792_v35  ;;  %v1857_v35 = vld [vmem:[%s7560_s24 + $0x3130] sm:$0xff] }
 0x3d5   : > { %6855 = vmatprep.subr.bf16.mxu1 %v6854_v44  ;;  %v1802_v37 = vld [vmem:[%s7560_s24 + $0x2f78] sm:$0xff]  ;;  %v1791_v44 = vld [vmem:[%s7560_s24 + $0x2f20] sm:$0xff] }
 0x3d6   : > { %v6874_v48 = vpack.c.bf16 %v1802_v37, %v1794_v41  ;;  %v6364_v58 = vpack.c.bf16 %v1799_v45, %v1791_v44  ;;  %v1865_v41 = vld [vmem:[%s7560_s24 + $0x3170] sm:$0xff]  ;;  %v1872_v37 = vld [vmem:[%s7560_s24 + $0x31a8] sm:$0xff] }
 0x3d7   : > { %6345 = vmatpush1.bf16.msra.mxu0 %v6344_v52  ;;  %v1816_v52 = vld [vmem:[%s7560_s24 + $0x2fe8] sm:$0xff]  ;;  %v6892_v44 = vpack.c.bf16 %v1865_v41, %v1857_v35  ;;  %v1943_v35 = vld [vmem:[%s7560_s24 + $0x33e0] sm:$0xff] }
 0x3d8   : > { %6857 = vmatpush1.bf16.msra.mxu1 %v6856_v15  ;;  %6347 = vmatprep.subr.bf16.mxu0 %v6346_v54  ;;  %v1810_v15 = vld [vmem:[%s7560_s24 + $0x2fb8] sm:$0xff]  ;;  %v6366_v60 = vpack.c.bf16 %v1816_v52, %v1808_v51  ;;  %v1881_v52 = vld [vmem:[%s7560_s24 + $0x31f0] sm:$0xff] }
 0x3d9   : > { %6859 = vmatprep.subr.bf16.mxu1 %v6858_v61  ;;  %v1818_v54 = vld [vmem:[%s7560_s24 + $0x2ff8] sm:$0xff]  ;;  %v1807_v61 = vld [vmem:[%s7560_s24 + $0x2fa0] sm:$0xff] }
 0x3da   : > { %v6878_v2 = vpack.c.bf16 %v1818_v54, %v1810_v15  ;;  %v6368_v7 = vpack.c.bf16 %v1815_v62, %v1807_v61  ;;  %v1888_v15 = vld [vmem:[%s7560_s24 + $0x3228] sm:$0xff]  ;;  %v1890_v54 = vld [vmem:[%s7560_s24 + $0x3238] sm:$0xff]  ;;  %v1887_v62 = vld [vmem:[%s7560_s24 + $0x3220] sm:$0xff] }
 0x3db   : > { %6349 = vmatpush1.bf16.msra.mxu0 %v6348_v5  ;;  %v1832_v5 = vld [vmem:[%s7560_s24 + $0x3068] sm:$0xff] }
 0x3dc   : > { %6861 = vmatpush1.bf16.msra.mxu1 %v6860_v4  ;;  %6351 = vmatprep.subr.bf16.mxu0 %v6350_v6  ;;  %v1826_v4 = vld [vmem:[%s7560_s24 + $0x3038] sm:$0xff]  ;;  %v6370_v9 = vpack.c.bf16 %v1832_v5, %v1824_v56  ;;  %v1897_v56 = vld [vmem:[%s7560_s24 + $0x3270] sm:$0xff]  ;;  %v1904_v5 = vld [vmem:[%s7560_s24 + $0x32a8] sm:$0xff] }
 0x3dd   : > { %6863 = vmatprep.subr.bf16.mxu1 %v6862_v10  ;;  %v1834_v6 = vld [vmem:[%s7560_s24 + $0x3078] sm:$0xff]  ;;  %v1823_v10 = vld [vmem:[%s7560_s24 + $0x3020] sm:$0xff] }
 0x3de   : > { %v6882_v13 = vpack.c.bf16 %v1834_v6, %v1826_v4  ;;  %v6372_v19 = vpack.c.bf16 %v1831_v11, %v1823_v10  ;;  %v1912_v4 = vld [vmem:[%s7560_s24 + $0x32e8] sm:$0xff]  ;;  %v1906_v6 = vld [vmem:[%s7560_s24 + $0x32b8] sm:$0xff]  ;;  %v1903_v11 = vld [vmem:[%s7560_s24 + $0x32a0] sm:$0xff] }
 0x3df   : > { %6353 = vmatpush1.bf16.msra.mxu0 %v6352_v16  ;;  %v1848_v16 = vld [vmem:[%s7560_s24 + $0x30e8] sm:$0xff]  ;;  %v6390_v10 = vpack.c.bf16 %v1912_v4, %v1904_v5  ;;  %v1977_v5 = vld [vmem:[%s7560_s24 + $0x34f0] sm:$0xff] }
 0x3e0   : > { %6865 = vmatpush1.bf16.msra.mxu1 %v6864_v18  ;;  %6355 = vmatprep.subr.bf16.mxu0 %v6354_v25  ;;  %v1842_v18 = vld [vmem:[%s7560_s24 + $0x30b8] sm:$0xff]  ;;  %v6374_v20 = vpack.c.bf16 %v1848_v16, %v1840_v30  ;;  %v1913_v30 = vld [vmem:[%s7560_s24 + $0x32f0] sm:$0xff]  ;;  %v1920_v16 = vld [vmem:[%s7560_s24 + $0x3328] sm:$0xff] }
 0x3e1   : > { %6867 = vmatprep.subr.bf16.mxu1 %v6866_v21  ;;  %v1850_v25 = vld [vmem:[%s7560_s24 + $0x30f8] sm:$0xff]  ;;  %v1839_v21 = vld [vmem:[%s7560_s24 + $0x30a0] sm:$0xff]  ;;  %v1984_v4 = vld [vmem:[%s7560_s24 + $0x3528] sm:$0xff] }
 0x3e2   : > { %v6886_v23 = vpack.c.bf16 %v1850_v25, %v1842_v18  ;;  %v6376_v55 = vpack.c.bf16 %v1847_v22, %v1839_v21  ;;  %v1928_v18 = vld [vmem:[%s7560_s24 + $0x3368] sm:$0xff]  ;;  %v1922_v25 = vld [vmem:[%s7560_s24 + $0x3338] sm:$0xff]  ;;  %v1919_v22 = vld [vmem:[%s7560_s24 + $0x3320] sm:$0xff] }
 0x3e3   : > { %6357 = vmatpush1.bf16.msra.mxu0 %v6356_v28  ;;  %v1864_v28 = vld [vmem:[%s7560_s24 + $0x3168] sm:$0xff]  ;;  %v6394_v21 = vpack.c.bf16 %v1928_v18, %v1920_v16  ;;  %v1993_v16 = vld [vmem:[%s7560_s24 + $0x3570] sm:$0xff] }
 0x3e4   : > { %6869 = vmatpush1.bf16.msra.mxu1 %v6868_v29  ;;  %6359 = vmatprep.subr.bf16.mxu0 %v6358_v0  ;;  %v1858_v29 = vld [vmem:[%s7560_s24 + $0x3138] sm:$0xff]  ;;  %v6378_v34 = vpack.c.bf16 %v1864_v28, %v1856_v27  ;;  %v1929_v27 = vld [vmem:[%s7560_s24 + $0x3370] sm:$0xff]  ;;  %v1936_v28 = vld [vmem:[%s7560_s24 + $0x33a8] sm:$0xff] }
 0x3e5   : > { %6871 = vmatprep.subr.bf16.mxu1 %v6870_v33  ;;  %v1866_v0 = vld [vmem:[%s7560_s24 + $0x3178] sm:$0xff]  ;;  %v1855_v33 = vld [vmem:[%s7560_s24 + $0x3120] sm:$0xff]  ;;  %v2000_v18 = vld [vmem:[%s7560_s24 + $0x35a8] sm:$0xff] }
 0x3e6   : > { %v6890_v40 = vpack.c.bf16 %v1866_v0, %v1858_v29  ;;  %v1944_v29 = vld [vmem:[%s7560_s24 + $0x33e8] sm:$0xff]  ;;  %v1938_v0 = vld [vmem:[%s7560_s24 + $0x33b8] sm:$0xff] }
 0x3e7   : > { %6361 = vmatpush1.bf16.msra.mxu0 %v6360_v39  ;;  %v1880_v39 = vld [vmem:[%s7560_s24 + $0x31e8] sm:$0xff] }
 0x3e8   : > { %6873 = vmatpush1.bf16.msra.mxu1 %v6872_v42  ;;  %6363 = vmatprep.subr.bf16.mxu0 %v6362_v43  ;;  %v1882_v42 = vld [vmem:[%s7560_s24 + $0x31f8] sm:$0xff]  ;;  %v6380_v43 = vpack.c.bf16 %v1863_v17, %v1855_v33  ;;  %v6382_v45 = vpack.c.bf16 %v1880_v39, %v1872_v37  ;;  %v6398_v33 = vpack.c.bf16 %v1944_v29, %v1936_v28  ;;  %v1935_v17 = vld [vmem:[%s7560_s24 + $0x33a0] sm:$0xff]  ;;  %v1945_v37 = vld [vmem:[%s7560_s24 + $0x33f0] sm:$0xff] }
 0x3e9   : > { %6875 = vmatprep.subr.bf16.mxu1 %v6874_v48  ;;  %v1879_v48 = vld [vmem:[%s7560_s24 + $0x31e0] sm:$0xff]  ;;  %v1952_v39 = vld [vmem:[%s7560_s24 + $0x3428] sm:$0xff]  ;;  %v2009_v28 = vld [vmem:[%s7560_s24 + $0x35f0] sm:$0xff] }
 0x3ea   : > { %v2016_v29 = vld [vmem:[%s7560_s24 + $0x3628] sm:$0xff] }
 0x3eb   : > { %6365 = vmatpush1.bf16.msra.mxu0 %v6364_v58  ;;  %v1898_v58 = vld [vmem:[%s7560_s24 + $0x3278] sm:$0xff] }
 0x3ec   : > { %6877 = vmatpush1.bf16.msra.mxu1 %v6876_v59  ;;  %6367 = vmatprep.subr.bf16.mxu0 %v6366_v60  ;;  %v6384_v59 = vpack.c.bf16 %v1879_v48, %v1871_v46  ;;  %v6896_v60 = vpack.c.bf16 %v1881_v52, %v1873_v49  ;;  %v6898_v3 = vpack.c.bf16 %v1898_v58, %v1890_v54  ;;  %v1951_v48 = vld [vmem:[%s7560_s24 + $0x3420] sm:$0xff]  ;;  %v1976_v54 = vld [vmem:[%s7560_s24 + $0x34e8] sm:$0xff]  ;;  %v1970_v58 = vld [vmem:[%s7560_s24 + $0x34b8] sm:$0xff] }
 0x3ed   : > { %6879 = vmatprep.subr.bf16.mxu1 %v6878_v2  ;;  %v1889_v2 = vld [vmem:[%s7560_s24 + $0x3230] sm:$0xff]  ;;  %v1959_v49 = vld [vmem:[%s7560_s24 + $0x3460] sm:$0xff] }
 0x3ef   : > { %6369 = vmatpush1.bf16.msra.mxu0 %v6368_v7  ;;  %v1914_v7 = vld [vmem:[%s7560_s24 + $0x32f8] sm:$0xff] }
 0x3f0   : > { %6881 = vmatpush1.bf16.msra.mxu1 %v6880_v8  ;;  %6371 = vmatprep.subr.bf16.mxu0 %v6370_v9  ;;  %v6388_v8 = vpack.c.bf16 %v1895_v1, %v1887_v62  ;;  %v6900_v9 = vpack.c.bf16 %v1897_v56, %v1889_v2  ;;  %v6902_v14 = vpack.c.bf16 %v1914_v7, %v1906_v6  ;;  %v1967_v1 = vld [vmem:[%s7560_s24 + $0x34a0] sm:$0xff]  ;;  %v1992_v6 = vld [vmem:[%s7560_s24 + $0x3568] sm:$0xff]  ;;  %v1986_v7 = vld [vmem:[%s7560_s24 + $0x3538] sm:$0xff] }
 0x3f1   : > { %6883 = vmatprep.subr.bf16.mxu1 %v6882_v13  ;;  %v1905_v13 = vld [vmem:[%s7560_s24 + $0x32b0] sm:$0xff]  ;;  %v1975_v2 = vld [vmem:[%s7560_s24 + $0x34e0] sm:$0xff] }
 0x3f2   : > { %3975 = vmatmul.mubr.f32.vlgmr.msra.gmra.mrb[2].mxu0 %v8314_v38 }
 0x3f3   : > { %6373 = vmatpush1.bf16.msra.mxu0 %v6372_v19  ;;  %4543 = vmatmul.mubr.f32.vlgmr.msra.gmra.mrb[2].mxu1 %v8314_v38  ;;  %v1874_v38 = vld [vmem:[%s7560_s24 + $0x31b8] sm:$0xff] }
 0x3f4   : > { %6885 = vmatpush1.bf16.msra.mxu1 %v6884_v53  ;;  %6375 = vmatprep.subr.bf16.mxu0 %v6374_v20  ;;  %v6894_v51 = vpack.c.bf16 %v1882_v42, %v1874_v38  ;;  %v1930_v19 = vld [vmem:[%s7560_s24 + $0x3378] sm:$0xff]  ;;  %v6392_v53 = vpack.c.bf16 %v1911_v50, %v1903_v11  ;;  %v6904_v20 = vpack.c.bf16 %v1913_v30, %v1905_v13  ;;  %v1960_v38 = vld [vmem:[%s7560_s24 + $0x3468] sm:$0xff]  ;;  %v1983_v50 = vld [vmem:[%s7560_s24 + $0x3520] sm:$0xff] }
 0x3f5   : > { %6887 = vmatprep.subr.bf16.mxu1 %v6886_v23  ;;  %4045 = vmatprep.mubr.f32.mxu0 %v8469_v47  ;;  %v1921_v23 = vld [vmem:[%s7560_s24 + $0x3330] sm:$0xff]  ;;  %v6906_v24 = vpack.c.bf16 %v1930_v19, %v1922_v25  ;;  %v1954_v42 = vld [vmem:[%s7560_s24 + $0x3438] sm:$0xff]  ;;  %v6402_v46 = vpack.c.bf16 %v1960_v38, %v1952_v39  ;;  %v6410_v11 = vpack.c.bf16 %v1992_v6, %v1984_v4  ;;  %v1991_v13 = vld [vmem:[%s7560_s24 + $0x3560] sm:$0xff] }
 0x3f6   : > { %4613 = vmatprep.mubr.f32.mxu1 %v8469_v47  ;;  %v1896_v47 = vld [vmem:[%s7560_s24 + $0x3268] sm:$0xff]  ;;  %v2002_v19 = vld [vmem:[%s7560_s24 + $0x35b8] sm:$0xff]  ;;  %v2025_v39 = vld [vmem:[%s7560_s24 + $0x3670] sm:$0xff] }
 0x3f7   : > { %6377 = vmatpush1.bf16.msra.mxu0 %v6376_v55  ;;  %v6386_v61 = vpack.c.bf16 %v1896_v47, %v1888_v15  ;;  %v1946_v55 = vld [vmem:[%s7560_s24 + $0x33f8] sm:$0xff]  ;;  %v1961_v15 = vld [vmem:[%s7560_s24 + $0x3470] sm:$0xff]  ;;  %v1968_v47 = vld [vmem:[%s7560_s24 + $0x34a8] sm:$0xff] }
 0x3f8   : > { %6889 = vmatpush1.bf16.msra.mxu1 %v6888_v32  ;;  %6379 = vmatprep.subr.bf16.mxu0 %v6378_v34  ;;  %v6396_v32 = vpack.c.bf16 %v1927_v26, %v1919_v22  ;;  %v6908_v34 = vpack.c.bf16 %v1929_v27, %v1921_v23  ;;  %v6910_v41 = vpack.c.bf16 %v1946_v55, %v1938_v0  ;;  %v2008_v25 = vld [vmem:[%s7560_s24 + $0x35e8] sm:$0xff]  ;;  %v1999_v26 = vld [vmem:[%s7560_s24 + $0x35a0] sm:$0xff]  ;;  %v2018_v55 = vld [vmem:[%s7560_s24 + $0x3638] sm:$0xff] }
 0x3f9   : > { %6891 = vmatprep.subr.bf16.mxu1 %v6890_v40  ;;  %v1937_v40 = vld [vmem:[%s7560_s24 + $0x33b0] sm:$0xff]  ;;  %v6406_v62 = vpack.c.bf16 %v1976_v54, %v1968_v47  ;;  %v6414_v22 = vpack.c.bf16 %v2008_v25, %v2000_v18  ;;  %v2007_v23 = vld [vmem:[%s7560_s24 + $0x35e0] sm:$0xff]  ;;  %v2024_v0 = vld [vmem:[%s7560_s24 + $0x3668] sm:$0xff] }
 0x3fa   : > { %v2032_v38 = vld [vmem:[%s7560_s24 + $0x36a8] sm:$0xff]  ;;  %v2041_v47 = vld [vmem:[%s7560_s24 + $0x36f0] sm:$0xff] }
 0x3fb   : > { %6381 = vmatpush1.bf16.msra.mxu0 %v6380_v43  ;;  %v1962_v43 = vld [vmem:[%s7560_s24 + $0x3478] sm:$0xff]  ;;  %v2048_v54 = vld [vmem:[%s7560_s24 + $0x3728] sm:$0xff]  ;;  %v2057_v4 = vld [vmem:[%s7560_s24 + $0x3770] sm:$0xff] }
 0x3fc   : > { %6893 = vmatpush1.bf16.msra.mxu1 %v6892_v44  ;;  %6383 = vmatprep.subr.bf16.mxu0 %v6382_v45  ;;  %v6400_v44 = vpack.c.bf16 %v1943_v35, %v1935_v17  ;;  %v6912_v45 = vpack.c.bf16 %v1945_v37, %v1937_v40  ;;  %v6914_v52 = vpack.c.bf16 %v1962_v43, %v1954_v42  ;;  %v2015_v35 = vld [vmem:[%s7560_s24 + $0x3620] sm:$0xff]  ;;  %v2040_v42 = vld [vmem:[%s7560_s24 + $0x36e8] sm:$0xff]  ;;  %v2034_v43 = vld [vmem:[%s7560_s24 + $0x36b8] sm:$0xff] }
 0x3fd   : > { %6895 = vmatprep.subr.bf16.mxu1 %v6894_v51  ;;  %v1953_v51 = vld [vmem:[%s7560_s24 + $0x3430] sm:$0xff]  ;;  %v6418_v17 = vpack.c.bf16 %v2024_v0, %v2016_v29  ;;  %v2023_v40 = vld [vmem:[%s7560_s24 + $0x3660] sm:$0xff]  ;;  %v2064_v6 = vld [vmem:[%s7560_s24 + $0x37a8] sm:$0xff] }
 0x3fe   : > { %v2073_v18 = vld [vmem:[%s7560_s24 + $0x37f0] sm:$0xff]  ;;  %v2080_v25 = vld [vmem:[%s7560_s24 + $0x3828] sm:$0xff] }
 0x3ff   : > { %6385 = vmatpush1.bf16.msra.mxu0 %v6384_v59  ;;  %v1978_v59 = vld [vmem:[%s7560_s24 + $0x34f8] sm:$0xff]  ;;  %v2089_v29 = vld [vmem:[%s7560_s24 + $0x3870] sm:$0xff]  ;;  %v2096_v0 = vld [vmem:[%s7560_s24 + $0x38a8] sm:$0xff] }
 0x400   : > { %6897 = vmatpush1.bf16.msra.mxu1 %v6896_v60  ;;  %6387 = vmatprep.subr.bf16.mxu0 %v6386_v61  ;;  %v6404_v60 = vpack.c.bf16 %v1959_v49, %v1951_v48  ;;  %v6916_v61 = vpack.c.bf16 %v1961_v15, %v1953_v51  ;;  %v6918_v56 = vpack.c.bf16 %v1978_v59, %v1970_v58  ;;  %v2031_v49 = vld [vmem:[%s7560_s24 + $0x36a0] sm:$0xff]  ;;  %v2056_v58 = vld [vmem:[%s7560_s24 + $0x3768] sm:$0xff]  ;;  %v2050_v59 = vld [vmem:[%s7560_s24 + $0x3738] sm:$0xff] }
 0x401   : > { %6899 = vmatprep.subr.bf16.mxu1 %v6898_v3  ;;  %v1969_v3 = vld [vmem:[%s7560_s24 + $0x34b0] sm:$0xff]  ;;  %v6422_v48 = vpack.c.bf16 %v2040_v42, %v2032_v38  ;;  %v2039_v51 = vld [vmem:[%s7560_s24 + $0x36e0] sm:$0xff]  ;;  %v2112_v42 = vld [vmem:[%s7560_s24 + $0x3928] sm:$0xff] }
 0x402   : > { %v2105_v38 = vld [vmem:[%s7560_s24 + $0x38f0] sm:$0xff] }
 0x403   : > { %6389 = vmatpush1.bf16.msra.mxu0 %v6388_v8  ;;  %v1994_v8 = vld [vmem:[%s7560_s24 + $0x3578] sm:$0xff] }
 0x404   : > { %6901 = vmatpush1.bf16.msra.mxu1 %v6900_v9  ;;  %6391 = vmatprep.subr.bf16.mxu0 %v6390_v10  ;;  %v6408_v9 = vpack.c.bf16 %v1975_v2, %v1967_v1  ;;  %v6920_v10 = vpack.c.bf16 %v1977_v5, %v1969_v3  ;;  %v6922_v30 = vpack.c.bf16 %v1994_v8, %v1986_v7  ;;  %v2047_v2 = vld [vmem:[%s7560_s24 + $0x3720] sm:$0xff]  ;;  %v2072_v7 = vld [vmem:[%s7560_s24 + $0x37e8] sm:$0xff]  ;;  %v2066_v8 = vld [vmem:[%s7560_s24 + $0x37b8] sm:$0xff] }
 0x405   : > { %6903 = vmatprep.subr.bf16.mxu1 %v6902_v14  ;;  %v1985_v14 = vld [vmem:[%s7560_s24 + $0x3530] sm:$0xff]  ;;  %v6426_v1 = vpack.c.bf16 %v2056_v58, %v2048_v54  ;;  %v2055_v3 = vld [vmem:[%s7560_s24 + $0x3760] sm:$0xff]  ;;  %v2128_v58 = vld [vmem:[%s7560_s24 + $0x39a8] sm:$0xff] }
 0x406   : > { %v2121_v54 = vld [vmem:[%s7560_s24 + $0x3970] sm:$0xff] }
 0x407   : > { %6393 = vmatpush1.bf16.msra.mxu0 %v6392_v53  ;;  %v2010_v53 = vld [vmem:[%s7560_s24 + $0x35f8] sm:$0xff] }
 0x408   : > { %6905 = vmatpush1.bf16.msra.mxu1 %v6904_v20  ;;  %6395 = vmatprep.subr.bf16.mxu0 %v6394_v21  ;;  %v6412_v20 = vpack.c.bf16 %v1991_v13, %v1983_v50  ;;  %v6924_v21 = vpack.c.bf16 %v1993_v16, %v1985_v14  ;;  %v6926_v27 = vpack.c.bf16 %v2010_v53, %v2002_v19  ;;  %v2063_v13 = vld [vmem:[%s7560_s24 + $0x37a0] sm:$0xff]  ;;  %v2088_v19 = vld [vmem:[%s7560_s24 + $0x3868] sm:$0xff]  ;;  %v2082_v53 = vld [vmem:[%s7560_s24 + $0x3838] sm:$0xff] }
 0x409   : > { %6907 = vmatprep.subr.bf16.mxu1 %v6906_v24  ;;  %v2001_v24 = vld [vmem:[%s7560_s24 + $0x35b0] sm:$0xff]  ;;  %v6430_v50 = vpack.c.bf16 %v2072_v7, %v2064_v6  ;;  %v2071_v14 = vld [vmem:[%s7560_s24 + $0x37e0] sm:$0xff]  ;;  %v2144_v6 = vld [vmem:[%s7560_s24 + $0x3a28] sm:$0xff] }
 0x40a   : > { %v2146_v7 = vld [vmem:[%s7560_s24 + $0x3a38] sm:$0xff] }
 0x40b   : > { %6397 = vmatpush1.bf16.msra.mxu0 %v6396_v32  ;;  %v2026_v32 = vld [vmem:[%s7560_s24 + $0x3678] sm:$0xff] }
 0x40c   : > { %6909 = vmatpush1.bf16.msra.mxu1 %v6908_v34  ;;  %6399 = vmatprep.subr.bf16.mxu0 %v6398_v33  ;;  %v6416_v34 = vpack.c.bf16 %v2007_v23, %v1999_v26  ;;  %v6928_v33 = vpack.c.bf16 %v2009_v28, %v2001_v24  ;;  %v6930_v37 = vpack.c.bf16 %v2026_v32, %v2018_v55  ;;  %v2079_v23 = vld [vmem:[%s7560_s24 + $0x3820] sm:$0xff]  ;;  %v2104_v55 = vld [vmem:[%s7560_s24 + $0x38e8] sm:$0xff]  ;;  %v2098_v32 = vld [vmem:[%s7560_s24 + $0x38b8] sm:$0xff] }
 0x40d   : > { %6911 = vmatprep.subr.bf16.mxu1 %v6910_v41  ;;  %v2017_v41 = vld [vmem:[%s7560_s24 + $0x3630] sm:$0xff]  ;;  %v6434_v26 = vpack.c.bf16 %v2088_v19, %v2080_v25  ;;  %v2087_v24 = vld [vmem:[%s7560_s24 + $0x3860] sm:$0xff]  ;;  %v2168_v25 = vld [vmem:[%s7560_s24 + $0x3ae8] sm:$0xff] }
 0x40e   : > { %v2162_v19 = vld [vmem:[%s7560_s24 + $0x3ab8] sm:$0xff] }
 0x40f   : > { %6401 = vmatpush1.bf16.msra.mxu0 %v6400_v44  ;;  %v2042_v44 = vld [vmem:[%s7560_s24 + $0x36f8] sm:$0xff] }
 0x410   : > { %6913 = vmatpush1.bf16.msra.mxu1 %v6912_v45  ;;  %6403 = vmatprep.subr.bf16.mxu0 %v6402_v46  ;;  %v6420_v45 = vpack.c.bf16 %v2023_v40, %v2015_v35  ;;  %v6932_v46 = vpack.c.bf16 %v2025_v39, %v2017_v41  ;;  %v6934_v15 = vpack.c.bf16 %v2042_v44, %v2034_v43  ;;  %v2095_v40 = vld [vmem:[%s7560_s24 + $0x38a0] sm:$0xff]  ;;  %v2120_v43 = vld [vmem:[%s7560_s24 + $0x3968] sm:$0xff]  ;;  %v2114_v44 = vld [vmem:[%s7560_s24 + $0x3938] sm:$0xff] }
 0x411   : > { %6915 = vmatprep.subr.bf16.mxu1 %v6914_v52  ;;  %v2033_v52 = vld [vmem:[%s7560_s24 + $0x36b0] sm:$0xff]  ;;  %v6438_v35 = vpack.c.bf16 %v2104_v55, %v2096_v0  ;;  %v2103_v41 = vld [vmem:[%s7560_s24 + $0x38e0] sm:$0xff]  ;;  %v2184_v0 = vld [vmem:[%s7560_s24 + $0x3b68] sm:$0xff] }
 0x412   : > { %v2178_v55 = vld [vmem:[%s7560_s24 + $0x3b38] sm:$0xff] }
 0x413   : > { %6405 = vmatpush1.bf16.msra.mxu0 %v6404_v60  ;;  %v2058_v60 = vld [vmem:[%s7560_s24 + $0x3778] sm:$0xff] }
 0x414   : > { %6917 = vmatpush1.bf16.msra.mxu1 %v6916_v61  ;;  %6407 = vmatprep.subr.bf16.mxu0 %v6406_v62  ;;  %v6424_v61 = vpack.c.bf16 %v2039_v51, %v2031_v49  ;;  %v6936_v62 = vpack.c.bf16 %v2041_v47, %v2033_v52  ;;  %v6938_v5 = vpack.c.bf16 %v2058_v60, %v2050_v59  ;;  %v2111_v51 = vld [vmem:[%s7560_s24 + $0x3920] sm:$0xff]  ;;  %v2136_v59 = vld [vmem:[%s7560_s24 + $0x39e8] sm:$0xff]  ;;  %v2138_v60 = vld [vmem:[%s7560_s24 + $0x39f8] sm:$0xff] }
 0x415   : > { %6919 = vmatprep.subr.bf16.mxu1 %v6918_v56  ;;  %v2049_v56 = vld [vmem:[%s7560_s24 + $0x3730] sm:$0xff]  ;;  %v6442_v49 = vpack.c.bf16 %v2120_v43, %v2112_v42  ;;  %v2119_v52 = vld [vmem:[%s7560_s24 + $0x3960] sm:$0xff]  ;;  %v2200_v42 = vld [vmem:[%s7560_s24 + $0x3be8] sm:$0xff] }
 0x416   : > { %v2194_v43 = vld [vmem:[%s7560_s24 + $0x3bb8] sm:$0xff] }
 0x417   : > { %6409 = vmatpush1.bf16.msra.mxu0 %v6408_v9  ;;  %v2074_v9 = vld [vmem:[%s7560_s24 + $0x37f8] sm:$0xff] }
 0x418   : > { %6921 = vmatpush1.bf16.msra.mxu1 %v6920_v10  ;;  %6411 = vmatprep.subr.bf16.mxu0 %v6410_v11  ;;  %v6428_v10 = vpack.c.bf16 %v2055_v3, %v2047_v2  ;;  %v6940_v11 = vpack.c.bf16 %v2057_v4, %v2049_v56  ;;  %v6942_v16 = vpack.c.bf16 %v2074_v9, %v2066_v8  ;;  %v2127_v2 = vld [vmem:[%s7560_s24 + $0x39a0] sm:$0xff]  ;;  %v2129_v56 = vld [vmem:[%s7560_s24 + $0x39b0] sm:$0xff]  ;;  %v2154_v8 = vld [vmem:[%s7560_s24 + $0x3a78] sm:$0xff] }
 0x419   : > { %6923 = vmatprep.subr.bf16.mxu1 %v6922_v30  ;;  %v2065_v30 = vld [vmem:[%s7560_s24 + $0x37b0] sm:$0xff]  ;;  %v2135_v3 = vld [vmem:[%s7560_s24 + $0x39e0] sm:$0xff] }
 0x41a   : > { %v2137_v4 = vld [vmem:[%s7560_s24 + $0x39f0] sm:$0xff]  ;;  %v6448_v9 = vpack.c.bf16 %v2135_v3, %v2127_v2  ;;  %v2215_v2 = vld [vmem:[%s7560_s24 + $0x3c60] sm:$0xff] }
 0x41b   : > { %6413 = vmatpush1.bf16.msra.mxu0 %v6412_v20  ;;  %v2090_v20 = vld [vmem:[%s7560_s24 + $0x3878] sm:$0xff]  ;;  %v2209_v3 = vld [vmem:[%s7560_s24 + $0x3c30] sm:$0xff] }
 0x41c   : > { %6925 = vmatpush1.bf16.msra.mxu1 %v6924_v21  ;;  %6415 = vmatprep.subr.bf16.mxu0 %v6414_v22  ;;  %v6432_v21 = vpack.c.bf16 %v2071_v14, %v2063_v13  ;;  %v6944_v22 = vpack.c.bf16 %v2073_v18, %v2065_v30  ;;  %v6946_v28 = vpack.c.bf16 %v2090_v20, %v2082_v53  ;;  %v2151_v13 = vld [vmem:[%s7560_s24 + $0x3a60] sm:$0xff]  ;;  %v2145_v14 = vld [vmem:[%s7560_s24 + $0x3a30] sm:$0xff]  ;;  %v2160_v18 = vld [vmem:[%s7560_s24 + $0x3aa8] sm:$0xff] }
 0x41d   : > { %6927 = vmatprep.subr.bf16.mxu1 %v6926_v27  ;;  %v2081_v27 = vld [vmem:[%s7560_s24 + $0x3830] sm:$0xff]  ;;  %v6962_v30 = vpack.c.bf16 %v2154_v8, %v2146_v7  ;;  %v2170_v53 = vld [vmem:[%s7560_s24 + $0x3af8] sm:$0xff] }
 0x41e   : > { %v2234_v7 = vld [vmem:[%s7560_s24 + $0x3cf8] sm:$0xff] }
 0x41f   : > { %6417 = vmatpush1.bf16.msra.mxu0 %v6416_v34  ;;  %v2106_v34 = vld [vmem:[%s7560_s24 + $0x38f8] sm:$0xff] }
 0x420   : > { %6929 = vmatpush1.bf16.msra.mxu1 %v6928_v33  ;;  %6419 = vmatprep.subr.bf16.mxu0 %v6418_v17  ;;  %v6436_v33 = vpack.c.bf16 %v2087_v24, %v2079_v23  ;;  %v6948_v17 = vpack.c.bf16 %v2089_v29, %v2081_v27  ;;  %v6950_v39 = vpack.c.bf16 %v2106_v34, %v2098_v32  ;;  %v2167_v23 = vld [vmem:[%s7560_s24 + $0x3ae0] sm:$0xff]  ;;  %v2161_v24 = vld [vmem:[%s7560_s24 + $0x3ab0] sm:$0xff]  ;;  %v2176_v29 = vld [vmem:[%s7560_s24 + $0x3b28] sm:$0xff] }
 0x421   : > { %6931 = vmatprep.subr.bf16.mxu1 %v6930_v37  ;;  %v2097_v37 = vld [vmem:[%s7560_s24 + $0x38b0] sm:$0xff]  ;;  %v6966_v27 = vpack.c.bf16 %v2170_v53, %v2162_v19  ;;  %v2186_v32 = vld [vmem:[%s7560_s24 + $0x3b78] sm:$0xff] }
 0x422   : > { %v2250_v19 = vld [vmem:[%s7560_s24 + $0x3d78] sm:$0xff] }
 0x423   : > { %6421 = vmatpush1.bf16.msra.mxu0 %v6420_v45  ;;  %v2122_v45 = vld [vmem:[%s7560_s24 + $0x3978] sm:$0xff] }
 0x424   : > { %6933 = vmatpush1.bf16.msra.mxu1 %v6932_v46  ;;  %6423 = vmatprep.subr.bf16.mxu0 %v6422_v48  ;;  %v6440_v46 = vpack.c.bf16 %v2103_v41, %v2095_v40  ;;  %v6952_v48 = vpack.c.bf16 %v2105_v38, %v2097_v37  ;;  %v6954_v47 = vpack.c.bf16 %v2122_v45, %v2114_v44  ;;  %v2183_v40 = vld [vmem:[%s7560_s24 + $0x3b60] sm:$0xff]  ;;  %v2177_v41 = vld [vmem:[%s7560_s24 + $0x3b30] sm:$0xff]  ;;  %v2192_v38 = vld [vmem:[%s7560_s24 + $0x3ba8] sm:$0xff] }
 0x425   : > { %6935 = vmatprep.subr.bf16.mxu1 %v6934_v15  ;;  %v2113_v15 = vld [vmem:[%s7560_s24 + $0x3930] sm:$0xff]  ;;  %v6970_v37 = vpack.c.bf16 %v2186_v32, %v2178_v55  ;;  %v2202_v44 = vld [vmem:[%s7560_s24 + $0x3bf8] sm:$0xff] }
 0x426   : > { %v2266_v55 = vld [vmem:[%s7560_s24 + $0x3df8] sm:$0xff] }
 0x427   : > { %6425 = vmatpush1.bf16.msra.mxu0 %v6424_v61  ;;  %v6444_v61 = vpack.c.bf16 %v2119_v52, %v2111_v51  ;;  %v2199_v51 = vld [vmem:[%s7560_s24 + $0x3be0] sm:$0xff]  ;;  %v2193_v52 = vld [vmem:[%s7560_s24 + $0x3bb0] sm:$0xff] }
 0x428   : > { %6937 = vmatpush1.bf16.msra.mxu1 %v6936_v62  ;;  %6427 = vmatprep.subr.bf16.mxu0 %v6426_v1  ;;  %v6956_v62 = vpack.c.bf16 %v2121_v54, %v2113_v15  ;;  %v6446_v1 = vpack.c.bf16 %v2136_v59, %v2128_v58  ;;  %v6974_v15 = vpack.c.bf16 %v2202_v44, %v2194_v43  ;;  %v2208_v54 = vld [vmem:[%s7560_s24 + $0x3c28] sm:$0xff]  ;;  %v2210_v59 = vld [vmem:[%s7560_s24 + $0x3c38] sm:$0xff] }
 0x429   : > { %6939 = vmatprep.subr.bf16.mxu1 %v6938_v5  ;;  %v2216_v58 = vld [vmem:[%s7560_s24 + $0x3c68] sm:$0xff]  ;;  %v2282_v43 = vld [vmem:[%s7560_s24 + $0x3e78] sm:$0xff] }
 0x42b   : > { %6429 = vmatpush1.bf16.msra.mxu0 %v6428_v10  ;;  %v6960_v10 = vpack.c.bf16 %v2137_v4, %v2129_v56  ;;  %v2224_v4 = vld [vmem:[%s7560_s24 + $0x3ca8] sm:$0xff] }
 0x42c   : > { %6941 = vmatpush1.bf16.msra.mxu1 %v6940_v11  ;;  %6431 = vmatprep.subr.bf16.mxu0 %v6430_v50  ;;  %v2143_v50 = vld [vmem:[%s7560_s24 + $0x3a20] sm:$0xff] }
 0x42d   : > { %6943 = vmatprep.subr.bf16.mxu1 %v6942_v16  ;;  %v2153_v16 = vld [vmem:[%s7560_s24 + $0x3a70] sm:$0xff]  ;;  %v6452_v20 = vpack.c.bf16 %v2151_v13, %v2143_v50  ;;  %v2231_v50 = vld [vmem:[%s7560_s24 + $0x3ce0] sm:$0xff] }
 0x42e   : > { %v2225_v13 = vld [vmem:[%s7560_s24 + $0x3cb0] sm:$0xff] }
 0x42f   : > { %6433 = vmatpush1.bf16.msra.mxu0 %v6432_v21  ;;  %v6964_v21 = vpack.c.bf16 %v2153_v16, %v2145_v14  ;;  %v2240_v16 = vld [vmem:[%s7560_s24 + $0x3d28] sm:$0xff] }
 0x430   : > { %6945 = vmatpush1.bf16.msra.mxu1 %v6944_v22  ;;  %6435 = vmatprep.subr.bf16.mxu0 %v6434_v26  ;;  %v6454_v22 = vpack.c.bf16 %v2168_v25, %v2160_v18  ;;  %v2159_v26 = vld [vmem:[%s7560_s24 + $0x3aa0] sm:$0xff]  ;;  %v2248_v18 = vld [vmem:[%s7560_s24 + $0x3d68] sm:$0xff]  ;;  %v2242_v25 = vld [vmem:[%s7560_s24 + $0x3d38] sm:$0xff] }
 0x431   : > { %6947 = vmatprep.subr.bf16.mxu1 %v6946_v28  ;;  %v2169_v28 = vld [vmem:[%s7560_s24 + $0x3af0] sm:$0xff]  ;;  %v6456_v34 = vpack.c.bf16 %v2167_v23, %v2159_v26  ;;  %v2247_v26 = vld [vmem:[%s7560_s24 + $0x3d60] sm:$0xff] }
 0x432   : > { %4046 = vmatmul.mubr.f32.vlgmr.msra.gmra.mrb[2].mxu0 %v8457_v31  ;;  %v2241_v23 = vld [vmem:[%s7560_s24 + $0x3d30] sm:$0xff] }
 0x433   : > { %6437 = vmatpush1.bf16.msra.mxu0 %v6436_v33  ;;  %4614 = vmatmul.mubr.f32.vlgmr.msra.gmra.mrb[2].mxu1 %v8457_v31  ;;  %v2130_v31 = vld [vmem:[%s7560_s24 + $0x39b8] sm:$0xff]  ;;  %v6968_v33 = vpack.c.bf16 %v2169_v28, %v2161_v24  ;;  %v6986_v24 = vpack.c.bf16 %v2250_v19, %v2242_v25  ;;  %v2256_v28 = vld [vmem:[%s7560_s24 + $0x3da8] sm:$0xff] }
 0x434   : > { %6949 = vmatpush1.bf16.msra.mxu1 %v6948_v17  ;;  %6439 = vmatprep.subr.bf16.mxu0 %v6438_v35  ;;  %v6958_v5 = vpack.c.bf16 %v2138_v60, %v2130_v31  ;;  %v6458_v17 = vpack.c.bf16 %v2184_v0, %v2176_v29  ;;  %v2175_v35 = vld [vmem:[%s7560_s24 + $0x3b20] sm:$0xff]  ;;  %v2218_v31 = vld [vmem:[%s7560_s24 + $0x3c78] sm:$0xff]  ;;  %v2264_v29 = vld [vmem:[%s7560_s24 + $0x3de8] sm:$0xff] }
 0x435   : > { %6951 = vmatprep.subr.bf16.mxu1 %v6950_v39  ;;  %4116 = vmatprep.mubr.f32.mxu0 %v8610_v57  ;;  %v2185_v39 = vld [vmem:[%s7560_s24 + $0x3b70] sm:$0xff]  ;;  %v6460_v45 = vpack.c.bf16 %v2183_v40, %v2175_v35  ;;  %v6978_v56 = vpack.c.bf16 %v2218_v31, %v2210_v59  ;;  %v2258_v0 = vld [vmem:[%s7560_s24 + $0x3db8] sm:$0xff]  ;;  %v2263_v35 = vld [vmem:[%s7560_s24 + $0x3de0] sm:$0xff] }
 0x436   : > { %4684 = vmatprep.mubr.f32.mxu1 %v8610_v57  ;;  %v2152_v57 = vld [vmem:[%s7560_s24 + $0x3a68] sm:$0xff]  ;;  %v2257_v40 = vld [vmem:[%s7560_s24 + $0x3db0] sm:$0xff]  ;;  %v2298_v59 = vld [vmem:[%s7560_s24 + $0x3ef8] sm:$0xff] }
 0x437   : > { %6441 = vmatpush1.bf16.msra.mxu0 %v6440_v46  ;;  %v6450_v11 = vpack.c.bf16 %v2152_v57, %v2144_v6  ;;  %v6972_v46 = vpack.c.bf16 %v2185_v39, %v2177_v41  ;;  %v2232_v6 = vld [vmem:[%s7560_s24 + $0x3ce8] sm:$0xff]  ;;  %v2226_v57 = vld [vmem:[%s7560_s24 + $0x3cb8] sm:$0xff]  ;;  %v6990_v41 = vpack.c.bf16 %v2266_v55, %v2258_v0 }
 0x438   : > { %6953 = vmatpush1.bf16.msra.mxu1 %v6952_v48  ;;  %6443 = vmatprep.subr.bf16.mxu0 %v6442_v49  ;;  %v6462_v48 = vpack.c.bf16 %v2200_v42, %v2192_v38  ;;  %v2191_v49 = vld [vmem:[%s7560_s24 + $0x3ba0] sm:$0xff]  ;;  %v6982_v14 = vpack.c.bf16 %v2234_v7, %v2226_v57  ;;  %v2272_v39 = vld [vmem:[%s7560_s24 + $0x3e28] sm:$0xff]  ;;  %v2274_v42 = vld [vmem:[%s7560_s24 + $0x3e38] sm:$0xff] }
 0x439   : > { %6955 = vmatprep.subr.bf16.mxu1 %v6954_v47  ;;  %v2201_v47 = vld [vmem:[%s7560_s24 + $0x3bf0] sm:$0xff]  ;;  %v6464_v60 = vpack.c.bf16 %v2199_v51, %v2191_v49  ;;  %v2280_v38 = vld [vmem:[%s7560_s24 + $0x3e68] sm:$0xff]  ;;  %v2279_v49 = vld [vmem:[%s7560_s24 + $0x3e60] sm:$0xff] }
 0x43a   : > { %v2273_v51 = vld [vmem:[%s7560_s24 + $0x3e30] sm:$0xff]  ;;  %v2314_v57 = vld [vmem:[%s7560_s24 + $0x3f78] sm:$0xff] }
 0x43b   : > { %6445 = vmatpush1.bf16.msra.mxu0 %v6444_v61  ;;  %v6976_v61 = vpack.c.bf16 %v2201_v47, %v2193_v52  ;;  %v6994_v52 = vpack.c.bf16 %v2282_v43, %v2274_v42  ;;  %v2288_v47 = vld [vmem:[%s7560_s24 + $0x3ea8] sm:$0xff]  ;;  %v2330_v25 = vld [vmem:[%s7560_s24 + $0x3ff8] sm:$0xff]  ;;  %v4757_v42 = vsub.s32 (!%p4957_p12), 2, %v7671_v63  ;;  %v4761_v43 = vsub.s32 (!%p4957_p12), 3, %v7671_v63 }
 0x43c   : > { %6957 = vmatpush1.bf16.msra.mxu1 %v6956_v62  ;;  %6447 = vmatprep.subr.bf16.mxu0 %v6446_v1  ;;  %v6466_v62 = vpack.c.bf16 %v2216_v58, %v2208_v54  ;;  %v2207_v1 = vld [vmem:[%s7560_s24 + $0x3c20] sm:$0xff]  ;;  %v2296_v54 = vld [vmem:[%s7560_s24 + $0x3ee8] sm:$0xff]  ;;  %v2290_v58 = vld [vmem:[%s7560_s24 + $0x3eb8] sm:$0xff] }
 0x43d   : > { %6959 = vmatprep.subr.bf16.mxu1 %v6958_v5  ;;  %v2217_v5 = vld [vmem:[%s7560_s24 + $0x3c70] sm:$0xff]  ;;  %v6468_v8 = vpack.c.bf16 %v2215_v2, %v2207_v1  ;;  %v2295_v1 = vld [vmem:[%s7560_s24 + $0x3ee0] sm:$0xff] }
 0x43e   : > { %v2289_v2 = vld [vmem:[%s7560_s24 + $0x3eb0] sm:$0xff] }
 0x43f   : > { %6449 = vmatpush1.bf16.msra.mxu0 %v6448_v9  ;;  %v6980_v9 = vpack.c.bf16 %v2217_v5, %v2209_v3  ;;  %v6998_v3 = vpack.c.bf16 %v2298_v59, %v2290_v58  ;;  %v2304_v5 = vld [vmem:[%s7560_s24 + $0x3f28] sm:$0xff] }
 0x440   : > { %6961 = vmatpush1.bf16.msra.mxu1 %v6960_v10  ;;  %6451 = vmatprep.subr.bf16.mxu0 %v6450_v11  ;;  %v6470_v10 = vpack.c.bf16 %v2232_v6, %v2224_v4  ;;  %v2223_v11 = vld [vmem:[%s7560_s24 + $0x3ca0] sm:$0xff]  ;;  %v2312_v4 = vld [vmem:[%s7560_s24 + $0x3f68] sm:$0xff]  ;;  %v2306_v6 = vld [vmem:[%s7560_s24 + $0x3f38] sm:$0xff] }
 0x441   : > { %6963 = vmatprep.subr.bf16.mxu1 %v6962_v30  ;;  %v2233_v30 = vld [vmem:[%s7560_s24 + $0x3cf0] sm:$0xff]  ;;  %v6472_v53 = vpack.c.bf16 %v2231_v50, %v2223_v11  ;;  %v2311_v11 = vld [vmem:[%s7560_s24 + $0x3f60] sm:$0xff] }
 0x442   : > { %v2305_v50 = vld [vmem:[%s7560_s24 + $0x3f30] sm:$0xff] }
 0x443   : > { %6453 = vmatpush1.bf16.msra.mxu0 %v6452_v20  ;;  %v6984_v20 = vpack.c.bf16 %v2233_v30, %v2225_v13  ;;  %v7002_v13 = vpack.c.bf16 %v2314_v57, %v2306_v6  ;;  %v2320_v30 = vld [vmem:[%s7560_s24 + $0x3fa8] sm:$0xff] }
 0x444   : > { %6965 = vmatpush1.bf16.msra.mxu1 %v6964_v21  ;;  %6455 = vmatprep.subr.bf16.mxu0 %v6454_v22  ;;  %v6474_v21 = vpack.c.bf16 %v2248_v18, %v2240_v16  ;;  %v2239_v22 = vld [vmem:[%s7560_s24 + $0x3d20] sm:$0xff]  ;;  %v2328_v16 = vld [vmem:[%s7560_s24 + $0x3fe8] sm:$0xff]  ;;  %v2322_v18 = vld [vmem:[%s7560_s24 + $0x3fb8] sm:$0xff] }
 0x445   : > { %6967 = vmatprep.subr.bf16.mxu1 %v6966_v27  ;;  %v2249_v27 = vld [vmem:[%s7560_s24 + $0x3d70] sm:$0xff]  ;;  %v6476_v32 = vpack.c.bf16 %v2247_v26, %v2239_v22  ;;  %v2327_v22 = vld [vmem:[%s7560_s24 + $0x3fe0] sm:$0xff]  ;;  %v7006_v26 = vpack.c.bf16 %v2330_v25, %v2322_v18 }
 0x447   : > { %6457 = vmatpush1.bf16.msra.mxu0 %v6456_v34  ;;  %v6988_v34 = vpack.c.bf16 %v2249_v27, %v2241_v23  ;;  %v2321_v23 = vld [vmem:[%s7560_s24 + $0x3fb0] sm:$0xff] }
 0x448   : > { %6969 = vmatpush1.bf16.msra.mxu1 %v6968_v33  ;;  %6459 = vmatprep.subr.bf16.mxu0 %v6458_v17  ;;  %v6478_v33 = vpack.c.bf16 %v2264_v29, %v2256_v28  ;;  %v2255_v17 = vld [vmem:[%s7560_s24 + $0x3da0] sm:$0xff] }
 0x449   : > { %6971 = vmatprep.subr.bf16.mxu1 %v6970_v37  ;;  %v2265_v37 = vld [vmem:[%s7560_s24 + $0x3df0] sm:$0xff]  ;;  %v6480_v44 = vpack.c.bf16 %v2263_v35, %v2255_v17 }
 0x44b   : > { %6461 = vmatpush1.bf16.msra.mxu0 %v6460_v45  ;;  %v6992_v45 = vpack.c.bf16 %v2265_v37, %v2257_v40  ;;  %v278_v40 = vld [vmem:[#allocation2 + $0x8] sm:$0xff] }
 0x44c   : > { %6973 = vmatpush1.bf16.msra.mxu1 %v6972_v46  ;;  %6463 = vmatprep.subr.bf16.mxu0 %v6462_v48  ;;  %v6482_v46 = vpack.c.bf16 %v2280_v38, %v2272_v39  ;;  %v2271_v48 = vld [vmem:[%s7560_s24 + $0x3e20] sm:$0xff]  ;;  %v4749_v39 = vsub.s32 (!%p4957_p12), 0, %v7671_v63  ;;  %v4753_v38 = vsub.s32 (!%p4957_p12), 1, %v7671_v63 }
 0x44d   : > { %6975 = vmatprep.subr.bf16.mxu1 %v6974_v15  ;;  %v2281_v15 = vld [vmem:[%s7560_s24 + $0x3e70] sm:$0xff]  ;;  %v6484_v31 = vpack.c.bf16 %v2279_v49, %v2271_v48  ;;  %v4777_v48 = vsub.s32 (!%p4957_p12), 7, %v7671_v63 }
 0x44f   : > { %6465 = vmatpush1.bf16.msra.mxu0 %v6464_v60  ;;  %v6996_v60 = vpack.c.bf16 %v2281_v15, %v2273_v51 }
 0x450   : > { %6977 = vmatpush1.bf16.msra.mxu1 %v6976_v61  ;;  %6467 = vmatprep.subr.bf16.mxu0 %v6466_v62  ;;  %v6486_v61 = vpack.c.bf16 %v2296_v54, %v2288_v47  ;;  %v2287_v62 = vld [vmem:[%s7560_s24 + $0x3ea0] sm:$0xff] }
 0x451   : > { %6979 = vmatprep.subr.bf16.mxu1 %v6978_v56  ;;  %v2297_v56 = vld [vmem:[%s7560_s24 + $0x3ef0] sm:$0xff]  ;;  %v6488_v7 = vpack.c.bf16 %v2295_v1, %v2287_v62 }
 0x453   : > { %6469 = vmatpush1.bf16.msra.mxu0 %v6468_v8  ;;  %v7000_v8 = vpack.c.bf16 %v2297_v56, %v2289_v2 }
 0x454   : > { %6981 = vmatpush1.bf16.msra.mxu1 %v6980_v9  ;;  %6471 = vmatprep.subr.bf16.mxu0 %v6470_v10  ;;  %v6490_v9 = vpack.c.bf16 %v2312_v4, %v2304_v5  ;;  %v2303_v10 = vld [vmem:[%s7560_s24 + $0x3f20] sm:$0xff] }
 0x455   : > { %6983 = vmatprep.subr.bf16.mxu1 %v6982_v14  ;;  %v2313_v14 = vld [vmem:[%s7560_s24 + $0x3f70] sm:$0xff]  ;;  %v6492_v19 = vpack.c.bf16 %v2311_v11, %v2303_v10 }
 0x457   : > { %6473 = vmatpush1.bf16.msra.mxu0 %v6472_v53  ;;  %v7004_v53 = vpack.c.bf16 %v2313_v14, %v2305_v50 }
 0x458   : > { %6985 = vmatpush1.bf16.msra.mxu1 %v6984_v20  ;;  %6475 = vmatprep.subr.bf16.mxu0 %v6474_v21  ;;  %v6494_v20 = vpack.c.bf16 %v2328_v16, %v2320_v30  ;;  %v2319_v21 = vld [vmem:[%s7560_s24 + $0x3fa0] sm:$0xff] }
 0x459   : > { %6987 = vmatprep.subr.bf16.mxu1 %v6986_v24  ;;  %v2329_v24 = vld [vmem:[%s7560_s24 + $0x3ff0] sm:$0xff]  ;;  %v6496_v27 = vpack.c.bf16 %v2327_v22, %v2319_v21 }
 0x45a   : > { %v7008_v28 = vpack.c.bf16 %v2329_v24, %v2321_v23 }
 0x45b   : > { %6477 = vmatpush1.bf16.msra.mxu0 %v6476_v32 }
 0x45c   : > { %6989 = vmatpush1.bf16.msra.mxu1 %v6988_v34  ;;  %6479 = vmatprep.subr.bf16.mxu0 %v6478_v33 }
 0x45d   : > { %6991 = vmatprep.subr.bf16.mxu1 %v6990_v41 }
 0x45f   : > { %6481 = vmatpush1.bf16.msra.mxu0 %v6480_v44  ;;  %v4765_v44 = vsub.s32 (!%p4957_p12), 4, %v7671_v63 }
 0x460   : > { %6993 = vmatpush1.bf16.msra.mxu1 %v6992_v45  ;;  %6483 = vmatprep.subr.bf16.mxu0 %v6482_v46  ;;  %v4769_v45 = vsub.s32 (!%p4957_p12), 5, %v7671_v63  ;;  %v4773_v46 = vsub.s32 (!%p4957_p12), 6, %v7671_v63 }
 0x461   : > { %6995 = vmatprep.subr.bf16.mxu1 %v6994_v52 }
 0x463   : > { %6485 = vmatpush1.bf16.msra.mxu0 %v6484_v31 }
 0x464   : > { %6997 = vmatpush1.bf16.msra.mxu1 %v6996_v60  ;;  %6487 = vmatprep.subr.bf16.mxu0 %v6486_v61 }
 0x465   : > { %6999 = vmatprep.subr.bf16.mxu1 %v6998_v3  ;;  %v4743_v3 = vld [vmem:[#allocation2] sm:$0xff] (!%p4957_p12) }
 0x467   : > { %6489 = vmatpush1.bf16.msra.mxu0 %v6488_v7 }
 0x468   : > { %7001 = vmatpush1.bf16.msra.mxu1 %v7000_v8  ;;  %6491 = vmatprep.subr.bf16.mxu0 %v6490_v9 }
 0x469   : > { %7003 = vmatprep.subr.bf16.mxu1 %v7002_v13 }
 0x46b   : > { %6493 = vmatpush1.bf16.msra.mxu0 %v6492_v19 }
 0x46c   : > { %7005 = vmatpush1.bf16.msra.mxu1 %v7004_v53  ;;  %6495 = vmatprep.subr.bf16.mxu0 %v6494_v20 }
 0x46d   : > { %7007 = vmatprep.subr.bf16.mxu1 %v7006_v26 }
 0x46f   : > { %6497 = vmatpush1.bf16.msra.mxu0 %v6496_v27 }
 0x470   : > { %7009 = vmatpush1.bf16.msra.mxu1 %v7008_v28 }
 0x472   : > { %4117 = vmatmul.mubr.f32.vlgmr.msra.gmra.mrb[2].mxu0 %v8598_v36 }
 0x473   : > { %4685 = vmatmul.mubr.f32.vlgmr.msra.gmra.mrb[2].mxu1 %v8598_v36  ;;  %v4745_v36 = vld [vmem:[%s224_s15] sm:$0xff] (!%p4957_p12) }
 0x474   : > { %v4750_v49 = vrot.slane (!%p4957_p12), %v4745_v36, %v4749_v39  ;;  %v4754_v51 = vrot.slane (!%p4957_p12), %v4745_v36, %v4753_v38  ;;  %v4758_v52 = vrot.slane (!%p4957_p12), %v4745_v36, %v4757_v42  ;;  %v4762_v15 = vrot.slane (!%p4957_p12), %v4745_v36, %v4761_v43 }
 0x475   : > { %v4766_v47 = vrot.slane (!%p4957_p12), %v4745_v36, %v4765_v44  ;;  %v4770_v54 = vrot.slane (!%p4957_p12), %v4745_v36, %v4769_v45  ;;  %v4774_v58 = vrot.slane (!%p4957_p12), %v4745_v36, %v4773_v46  ;;  %v4778_v59 = vrot.slane (!%p4957_p12), %v4745_v36, %v4777_v48 }
 0x476   : > { %v4779_v31 = vcombine.low (!%p4957_p12), %v4750_v49, %v4754_v51  ;;  %v4780_v60 = vcombine.low (!%p4957_p12), %v4758_v52, %v4762_v15 }
 0x477   : > { %v4796_v61 = vcombine.low (!%p4957_p12), %v4766_v47, %v4770_v54  ;;  %v4797_v62 = vcombine.low (!%p4957_p12), %v4774_v58, %v4778_v59 }
 0x478   : > { %v4787_v1 = vrot.slane (!%p4957_p12), %v4779_v31, %v7682_v12  ;;  %v4794_v2 = vrot.slane (!%p4957_p12), %v4780_v60, %v7682_v12 }
 0x479   : > { %v4804_v63 = vrot.slane (!%p4957_p12), %v4796_v61, %v7682_v12  ;;  %v4811_v56 = vrot.slane (!%p4957_p12), %v4797_v62, %v7682_v12 }
 0x47a   : > { %v4795_v5 = vcombine.low (!%p4957_p12), %v4787_v1, %v4794_v2 }
 0x47b   : > { %v4812_v6 = vcombine.low (!%p4957_p12), %v4804_v63, %v4811_v56 }
 0x47c   : > { %v4815_v57 = vadd.f32 (!%p4957_p12), %v4795_v5, %v4743_v3 }
 0x47e   : > { %v4817_v8 = vmax.f32 (!%p4957_p12), %v4815_v57, 0.0 }
 0x480   : > { %4819 = vst [vmem:[%s7584_s8] sm:$0xff] (!%p4957_p12), %v4817_v8 }
 0x545   : > { %v4118_v29 = vpop.f32.mrb[2].mxu0 }
 0x546   : > { %v4686_v0 = vpop.f32.mrb[2].mxu1  ;;  %v4120_v55 = vpop.f32.mrb[3].mxu0 }
 0x547   : > { %v4716_v32 = vcombine.low %v4118_v29, %v4120_v55  ;;  %v4688_v34 = vpop.f32.mrb[3].mxu1 }
 0x548   : > { %v4717_v33 = vcombine.low %v4686_v0, %v4688_v34 }
 0x549   : > { %v4724_v17 = vrot.slane %v4716_v32, %v7682_v12 }
 0x54a   : > { %v4731_v35 = vrot.slane %v4717_v33, %v7682_v12  ;;  %4742 = sbr.rel (%p4957_p12) target bundleno = 1373 (0x55d), region = 48 }
 0x54c   : > { %v4732_v41 = vcombine.low %v4724_v17, %v4731_v35 }
 0x54e   : > { %v4736_v37 = vadd.f32 %v4732_v41, %v278_v40 }
 0x550   : > { %4738 = vst [vmem:[#allocation2 + $0x8] sm:$0xff] %v4736_v37 }
 0x557   : > { %v4744_v4 = vld [vmem:[#allocation2 + $0x8] sm:$0xff] }
 0x558   : > { %v4816_v7 = vadd.f32 %v4812_v6, %v4744_v4 }
 0x55a   : > { %v4818_v9 = vmax.f32 %v4816_v7, 0.0 }
 0x55c   : > { %4820 = vst [vmem:[%s7584_s8 + $0x8] sm:$0xff] %v4818_v9 }
 0x55d PF: > { %s19_s22 = sadd.s32 1, %s7329_s22   ;;  %s9862_s18 = sld [smem:[#allocation9_spill]] }
 0x55e   : > { %p16_p8 = scmp.ge.s32.totalorder %s19_s22, 32   ;;  %s9863_s20 = sld [smem:[#allocation10_spill]] }
 0x55f   : > { %s9864_s29 = sld [smem:[#allocation11_spill]]  ;;  %s9865_s12 = smov %s7293_s13 }
 0x560   : > { %s9866_s13 = smov %s7297_s14  ;;  %s9867_s14 = smov %s7509_s23 }
 0x561   : > { %s9868_s15 = smov %s7305_s16  ;;  %s9869_s16 = smov %s7309_s17 }
 0x562   : > { %s9870_s17 = smov %s7443_s9  ;;  %s9871_s19 = smov %s7325_s21 }
 0x563   :  { %18 = sbr.rel (!%p16_p8) target bundleno = 9 (0x9), region = 96 }
 0x565   : > { %s9872_s21 = smov %s9864_s29 }
 0x56a   :  { %4843 = vsyncpa [#allocation4], 1 }
 0x56b   :  { %4845 = vsyncpa [#allocation4 + $0x1], 1 }
 0x56c   :  { %4846 = vsyncpa [#allocation6], 1 }
 0x56d   :  { %4848 = vsyncpa [#allocation6 + $0x1], 1 }

</bundles_post_ra>
